<compile_context>
chip_gen: v7x
topology: tpu7x:2x2x1
jax: 0.10.0
libtpu: 0.0.40
codegen_flags: <defaults>
</compile_context>

<pallas_src>
import functools

import jax
import jax.numpy as jnp
from jax.experimental import pallas as pl
from jax.experimental.pallas import tpu as pltpu


# ----------------------------------------------------------------------------
# Hardware queries (generation-aware tiling / VMEM budgets).
# ----------------------------------------------------------------------------
@functools.lru_cache(maxsize=None)
def _tpu_budgets():
    """Returns (vmem_capacity_bytes, num_tensorcores_per_device)."""
    vmem_cap = 128 << 20  # v5e / v6e physical VMEM
    try:
        info = pltpu.get_tpu_info()
        vmem_cap = int(getattr(info, "vmem_capacity_bytes", vmem_cap) or vmem_cap)
    except Exception:
        pass
    # TODO(synk): TpuInfo exposes no TensorCore count; infer 2 TCs for
    # v7x-class chips (64 MiB VMEM per core), 1 TC otherwise (v5e/v6e).
    num_tc = 2 if vmem_cap <= (64 << 20) else 1
    return vmem_cap, num_tc


@functools.lru_cache(maxsize=None)
def _bgrx_byte_shifts():
    """Bit positions of the (R, G, B) bytes inside one packed BGRX int32 word,
    as produced by lax.bitcast_convert_type(uint8[..., 4] -> int32)."""
    probe = jnp.array([[1, 0, 0, 0]], dtype=jnp.uint8)
    word = int(jax.lax.bitcast_convert_type(probe, jnp.int32)[0])
    if word == 1:            # byte k -> bits [8k, 8k+8): B=byte0, G=1, R=2
        return (16, 8, 0)    # output order R, G, B
    return (8, 16, 24)       # opposite packing


def _choose_tile_h(H, row_block_bytes, batch, *, block_budget_bytes, num_tc):
    """Largest h-tile (power-of-two multiple of 32, or the full extent H) whose
    in+out block fits the VMEM budget.  On multi-TensorCore chips (v7x) also
    require >= 2 grid steps per core after megacore sharding so DMA-in /
    compute / DMA-out overlap.  The grid uses pl.cdiv, so tile_h need not
    divide H (ragged last block handled by Pallas)."""
    cands = [H] + [t for t in (512, 256, 128, 64, 32) if t < H]
    smallest = cands[-1]
    for t in cands:
        if t * row_block_bytes > block_budget_bytes and t != smallest:
            continue
        steps = batch * pl.cdiv(H, t)
        if num_tc > 1 and steps < 2 * num_tc and t != smallest:
            continue
        return t
    return smallest


def _vmem_limit(block_bytes, vmem_cap):
    # double-buffered in+out blocks + headroom, capped at 3/4 of physical VMEM
    return int(min(vmem_cap * 3 // 4, max(2 * block_bytes + (8 << 20), 32 << 20)))


# ----------------------------------------------------------------------------
# Kernel 1: fused BGRX-deinterleave + BGR->RGB flip + NCHW write + /255 + cast.
# Input block:  (1, tile_h, W) int32  (one packed pixel per lane)
# Output block: (1, 3, tile_h, W) out_dtype
# ----------------------------------------------------------------------------
def _deinterleave_cast_kernel(x_ref, o_ref, *, shifts, divide_by_255):
    x = x_ref[0]                                             # (tile_h, W) int32
    for c, sh in enumerate(shifts):                          # c = R, G, B
        ch = jnp.bitwise_and(jnp.right_shift(x, sh), 0xFF)   # VPU shift + mask
        ch = ch.astype(jnp.float32)
        if divide_by_255:
            ch = ch / jnp.float32(255.0)   # true division, matches torch `im /= 255`
        o_ref[0, c] = ch.astype(o_ref.dtype)


def yolo_images_to_nchw_pallas(stacked_bgrx_u8, *, out_dtype=jnp.float32):
    """(B, H, W, 4) uint8 BGRX -> (B, 3, H, W) out_dtype RGB, values / 255.
    Flip, transpose, u8->float convert and /255 all fused into one Pallas pass."""
    B, H, W, C4 = stacked_bgrx_u8.shape
    assert C4 == 4, "pixel channel dim must be padded to 4 bytes"
    packed = jax.lax.bitcast_convert_type(stacked_bgrx_u8, jnp.int32)  # (B,H,W)

    out_bytes = jnp.dtype(out_dtype).itemsize
    row_bytes = W * 4 + 3 * W * out_bytes
    vmem_cap, num_tc = _tpu_budgets()
    tile_h = _choose_tile_h(H, row_bytes, B,
                            block_budget_bytes=vmem_cap // 16, num_tc=num_tc)
    grid = (B, pl.cdiv(H, tile_h))

    total_out = B * 3 * H * W
    cost = pl.CostEstimate(flops=2 * total_out, transcendentals=0,
                           bytes_accessed=B * H * W * 4 + total_out * out_bytes)

    return pl.pallas_call(
        functools.partial(_deinterleave_cast_kernel,
                          shifts=_bgrx_byte_shifts(), divide_by_255=True),
        out_shape=jax.ShapeDtypeStruct((B, 3, H, W), out_dtype),
        grid_spec=pltpu.PrefetchScalarGridSpec(
            num_scalar_prefetch=0,
            grid=grid,
            in_specs=[pl.BlockSpec((1, tile_h, W), lambda b, h: (b, h, 0))],
            out_specs=pl.BlockSpec((1, 3, tile_h, W), lambda b, h: (b, 0, h, 0)),
        ),
        compiler_params=pltpu.CompilerParams(
            dimension_semantics=("parallel", "parallel"),
            vmem_limit_bytes=_vmem_limit(tile_h * row_bytes, vmem_cap)),
        cost_estimate=cost,
    )(packed)


# ----------------------------------------------------------------------------
# Kernel 2: plain elementwise cast (+ optional /255) for the BCHW tensor path.
# ----------------------------------------------------------------------------
def _cast_kernel(x_ref, o_ref, *, divide_by_255):
    x = x_ref[...].astype(jnp.float32)
    if divide_by_255:
        x = x / jnp.float32(255.0)
    o_ref[...] = x.astype(o_ref.dtype)


def yolo_cast_pallas(x_nchw, *, out_dtype=jnp.float32, divide_by_255=False):
    B, C, H, W = x_nchw.shape
    in_bytes = jnp.dtype(x_nchw.dtype).itemsize
    out_bytes = jnp.dtype(out_dtype).itemsize
    row_bytes = C * W * (in_bytes + out_bytes)
    vmem_cap, num_tc = _tpu_budgets()
    tile_h = _choose_tile_h(H, row_bytes, B,
                            block_budget_bytes=vmem_cap // 16, num_tc=num_tc)
    grid = (B, pl.cdiv(H, tile_h))
    block = (1, C, tile_h, W)
    idx = lambda b, h: (b, 0, h, 0)

    total = B * C * H * W
    cost = pl.CostEstimate(flops=total, transcendentals=0,
                           bytes_accessed=total * (in_bytes + out_bytes))

    return pl.pallas_call(
        functools.partial(_cast_kernel, divide_by_255=divide_by_255),
        out_shape=jax.ShapeDtypeStruct((B, C, H, W), out_dtype),
        grid_spec=pltpu.PrefetchScalarGridSpec(
            num_scalar_prefetch=0, grid=grid,
            in_specs=[pl.BlockSpec(block, idx)],
            out_specs=pl.BlockSpec(block, idx)),
        compiler_params=pltpu.CompilerParams(
            dimension_semantics=("parallel", "parallel"),
            vmem_limit_bytes=_vmem_limit(tile_h * row_bytes, vmem_cap)),
        cost_estimate=cost,
    )(x_nchw)


# ----------------------------------------------------------------------------
# LetterBox (plain-JAX glue; mirrors the cv2-based host preprocessing).
# Stays uint8 so every pass downstream reads 1 byte/elem; the optional channel
# pad to 4 bytes/pixel is folded into the border pad (enables the packed-int32
# Pallas deinterleave with zero extra XLA passes).
# ----------------------------------------------------------------------------
def letterbox_jax(img, new_shape=(640, 640), stride=32, auto=True,
                  scale_fill=False, scaleup=True, center=True,
                  pad_channels_to=None):
    """img: (H, W, C) uint8/float BGR image with values in [0, 255]."""
    h, w = int(img.shape[0]), int(img.shape[1])
    c = int(img.shape[2])
    if isinstance(new_shape, int):
        new_shape = (new_shape, new_shape)
    r = min(new_shape[0] / h, new_shape[1] / w)
    if not scaleup:
        r = min(r, 1.0)
    new_unpad = (int(round(w * r)), int(round(h * r)))  # (W, H)
    dw, dh = new_shape[1] - new_unpad[0], new_shape[0] - new_unpad[1]
    if auto:
        dw, dh = dw % stride, dh % stride
    elif scale_fill:
        dw, dh = 0.0, 0.0
        new_unpad = (new_shape[1], new_shape[0])
    if center:
        dw /= 2
        dh /= 2
    if (w, h) != new_unpad:
        # TODO(synk): cv2.resize(INTER_LINEAR) on uint8 and jax.image.resize
        # ('linear') + round can differ by 1 LSB at edges; the host-side cv2
        # resize has no Pallas equivalent.
        imgf = jax.image.resize(img.astype(jnp.float32),
                                (new_unpad[1], new_unpad[0], c), method="linear")
        img = jnp.clip(jnp.round(imgf), 0, 255).astype(jnp.uint8)
    elif img.dtype != jnp.uint8:
        img = jnp.clip(jnp.round(img.astype(jnp.float32)), 0, 255).astype(jnp.uint8)
    top = int(round(dh - 0.1)) if center else 0
    bottom = int(round(dh + 0.1))
    left = int(round(dw - 0.1)) if center else 0
    right = int(round(dw + 0.1))
    chan_pad = max(0, (pad_channels_to or c) - c)
    # TODO(synk): auto=True can yield widths that are a multiple of 32 but not
    # 128 (partially masked last-lane-tile stores); kept as-is — padding W to
    # 128 and slicing afterwards would cost a full extra f32 copy pass.
    return jnp.pad(img, ((top, bottom), (left, right), (0, chan_pad)),
                   constant_values=114)


# ----------------------------------------------------------------------------
# YoloTransform (JAX/Pallas version of the PyTorch module's forward()).
# ----------------------------------------------------------------------------
class YoloTransformPallas:
    def __init__(self, min_size, max_size, image_mean=None, image_std=None,
                 fp16=False, cfgs=None, size_divisible=32):
        if not isinstance(min_size, (list, tuple)):
            min_size = (min_size,)
        self.min_size = min_size
        self.max_size = max_size
        self.image_mean = image_mean
        self.image_std = image_std
        self.size_divisible = size_divisible
        self.fp16 = fp16
        # TODO(synk): torch .half() is IEEE float16; bfloat16 is the TPU-native
        # half type and is what the kernel emits when fp16=True.
        self.out_dtype = jnp.bfloat16 if fp16 else jnp.float32
        self.imgsz = 640
        cfgs = cfgs or {}
        self.nms_conf = cfgs.get('conf') or 0.25
        self.nms_iou = cfgs.get('iou') or 0.45
        self.nms_agnostic = cfgs.get('agnostic_nms') or False
        self.nms_max_det = cfgs.get('max_det') or 300
        self.classes = cfgs.get('classes')

    def _image_list_path(self, images):
        # [(H,W,3) BGR u8] x B -> letterbox (u8, channel-padded to 4 B/pixel)
        # -> stack -> bitcast each pixel to one int32 -> single Pallas pass
        # (deinterleave + BGR->RGB + NCHW + /255 + cast).  No standalone XLA
        # transpose pass over the stacked images.
        lb = [letterbox_jax(x, (self.imgsz, self.imgsz),
                            stride=self.size_divisible, auto=True,
                            pad_channels_to=4)
              for x in images]
        stacked = jnp.stack(lb)                     # (B, H, W, 4) u8 BGRX
        return yolo_images_to_nchw_pallas(stacked, out_dtype=self.out_dtype)

    def forward(self, images):
        if isinstance(images, (list, tuple)):
            return self._image_list_path(images)
        if getattr(images, "ndim", 4) == 3:
            # single HWC image behaves like a 1-element list (torch else-branch)
            return self._image_list_path([images])
        # BCHW tensor path: dtype cast only (no /255, no flip) — matches torch.
        if images.dtype == self.out_dtype:
            return images  # torch .float()/.half() is a no-op here
        return yolo_cast_pallas(images, out_dtype=self.out_dtype,
                                divide_by_255=False)

    __call__ = forward

    # TODO(synk): postprocess() (NMS + box rescaling) is dynamic-shape logic
    # with no clean Pallas equivalent; it is not part of forward().


# ----------------------------------------------------------------------------
# main
# ----------------------------------------------------------------------------
if __name__ == "__main__":
    cfgs = {'conf': 0.25, 'iou': 0.45, 'agnostic_nms': False,
            'max_det': 300, 'classes': None}
    transform = YoloTransformPallas(min_size=640, max_size=640,
                                    cfgs=cfgs, size_divisible=32)

    key = jax.random.PRNGKey(0)
    k1, k2, k3 = jax.random.split(key, 3)

    # ---- List-of-images path: two HWC "BGR" uint8 images. ----
    img1 = jax.random.randint(k1, (100, 128, 3), 0, 256,
                              dtype=jnp.int32).astype(jnp.uint8)
    img2 = jax.random.randint(k2, (100, 128, 3), 0, 256,
                              dtype=jnp.int32).astype(jnp.uint8)
    out_list = jax.block_until_ready(transform([img1, img2]))  # (2,3,512,640)

    # Reference (plain JAX) for the fused hot path.
    lb3 = jnp.stack([letterbox_jax(img1, (640, 640), 32),
                     letterbox_jax(img2, (640, 640), 32)])
    ref_list = jnp.transpose(lb3[..., ::-1], (0, 3, 1, 2)).astype(
        jnp.float32) / 255.0
    assert out_list.shape == (2, 3, 512, 640) and out_list.dtype == jnp.float32
    assert float(jnp.max(jnp.abs(out_list - ref_list))) < 1e-6

    # ---- fp16=True list path (bfloat16 on TPU). ----
    transform_half = YoloTransformPallas(min_size=640, max_size=640, fp16=True,
                                         cfgs=cfgs, size_divisible=32)
    out_half = jax.block_until_ready(transform_half([img1, img2]))
    assert out_half.shape == (2, 3, 512, 640) and out_half.dtype == jnp.bfloat16
    assert float(jnp.max(jnp.abs(out_half.astype(jnp.float32) - ref_list))) < 1e-2

    # ---- Tensor (BCHW) path, float32 input: pure no-op, short-circuited. ----
    tens_f32 = jax.random.uniform(k3, (2, 3, 64, 128), minval=0.0, maxval=255.0)
    out_t = jax.block_until_ready(transform(tens_f32))
    assert out_t.shape == (2, 3, 64, 128) and out_t.dtype == jnp.float32
    assert float(jnp.max(jnp.abs(out_t - tens_f32))) == 0.0

    # ---- Tensor (BCHW) path, uint8 input: kernel cast only (no /255). ----
    tens_u8 = jax.random.randint(k3, (2, 3, 64, 128), 0, 256,
                                 dtype=jnp.int32).astype(jnp.uint8)
    out_tu8 = jax.block_until_ready(transform(tens_u8))
    assert out_tu8.shape == (2, 3, 64, 128) and out_tu8.dtype == jnp.float32
    assert float(jnp.max(jnp.abs(out_tu8 - tens_u8.astype(jnp.float32)))) < 1e-6

    print("KERNEL_OK")
</pallas_src>

<mosaic_0001>
module attributes {stable_mosaic.version = 11 : i64} {
  func.func @_deinterleave_cast_kernel(%arg0: i32, %arg1: i32, %arg2: memref<1x512x640xi32, #tpu.memory_space<vmem>>, %arg3: memref<1x3x512x640xf32, #tpu.memory_space<vmem>>) attributes {dimension_semantics = [#tpu.dimension_semantics<parallel>, #tpu.dimension_semantics<parallel>], iteration_bounds = array<i64: 2, 1>, scalar_prefetch = 0 : i64, scratch_operands = 0 : i64, tpu.core_type = #tpu.core_type<tc>, window_params = [{transform_indices = @transform_0, window_bounds = array<i64: 1, 512, 640>}, {transform_indices = @transform_1, window_bounds = array<i64: 1, 3, 512, 640>}]} {
    %c0 = arith.constant 0 : index
    %c0_0 = arith.constant 0 : index
    %c0_1 = arith.constant 0 : index
    %0 = vector.load %arg2[%c0, %c0_0, %c0_1] : memref<1x512x640xi32, #tpu.memory_space<vmem>>, vector<1x512x640xi32>
    %1 = vector.shape_cast %0 : vector<1x512x640xi32> to vector<512x640xi32>
    %c16_i32 = arith.constant 16 : i32
    %2 = vector.broadcast %c16_i32 : i32 to vector<512x640xi32>
    %3 = arith.shrsi %1, %2 : vector<512x640xi32>
    %c255_i32 = arith.constant 255 : i32
    %4 = vector.broadcast %c255_i32 : i32 to vector<512x640xi32>
    %5 = arith.andi %3, %4 : vector<512x640xi32>
    %6 = arith.sitofp %5 : vector<512x640xi32> to vector<512x640xf32>
    %cst = arith.constant 2.550000e+02 : f32
    %7 = vector.broadcast %cst : f32 to vector<512x640xf32>
    %8 = arith.divf %6, %7 : vector<512x640xf32>
    %c0_2 = arith.constant 0 : index
    %c0_3 = arith.constant 0 : index
    %c0_4 = arith.constant 0 : index
    %c0_5 = arith.constant 0 : index
    %9 = vector.load %arg3[%c0_2, %c0_3, %c0_4, %c0_5] : memref<1x3x512x640xf32, #tpu.memory_space<vmem>>, vector<1x1x512x640xf32>
    %10 = vector.shape_cast %9 : vector<1x1x512x640xf32> to vector<512x640xf32>
    %11 = vector.shape_cast %8 : vector<512x640xf32> to vector<1x1x512x640xf32>
    tpu.vector_store %arg3[%c0_2, %c0_3, %c0_4, %c0_5], %11 {strides = array<i32>} : memref<1x3x512x640xf32, #tpu.memory_space<vmem>>, vector<1x1x512x640xf32>,
    %c8_i32 = arith.constant 8 : i32
    %12 = vector.broadcast %c8_i32 : i32 to vector<512x640xi32>
    %13 = arith.shrsi %1, %12 : vector<512x640xi32>
    %c255_i32_6 = arith.constant 255 : i32
    %14 = vector.broadcast %c255_i32_6 : i32 to vector<512x640xi32>
    %15 = arith.andi %13, %14 : vector<512x640xi32>
    %16 = arith.sitofp %15 : vector<512x640xi32> to vector<512x640xf32>
    %cst_7 = arith.constant 2.550000e+02 : f32
    %17 = vector.broadcast %cst_7 : f32 to vector<512x640xf32>
    %18 = arith.divf %16, %17 : vector<512x640xf32>
    %c0_8 = arith.constant 0 : index
    %c1 = arith.constant 1 : index
    %c0_9 = arith.constant 0 : index
    %c0_10 = arith.constant 0 : index
    %19 = vector.load %arg3[%c0_8, %c1, %c0_9, %c0_10] : memref<1x3x512x640xf32, #tpu.memory_space<vmem>>, vector<1x1x512x640xf32>
    %20 = vector.shape_cast %19 : vector<1x1x512x640xf32> to vector<512x640xf32>
    %21 = vector.shape_cast %18 : vector<512x640xf32> to vector<1x1x512x640xf32>
    tpu.vector_store %arg3[%c0_8, %c1, %c0_9, %c0_10], %21 {strides = array<i32>} : memref<1x3x512x640xf32, #tpu.memory_space<vmem>>, vector<1x1x512x640xf32>,
    %c0_i32 = arith.constant 0 : i32
    %22 = vector.broadcast %c0_i32 : i32 to vector<512x640xi32>
    %23 = arith.shrsi %1, %22 : vector<512x640xi32>
    %c255_i32_11 = arith.constant 255 : i32
    %24 = vector.broadcast %c255_i32_11 : i32 to vector<512x640xi32>
    %25 = arith.andi %23, %24 : vector<512x640xi32>
    %26 = arith.sitofp %25 : vector<512x640xi32> to vector<512x640xf32>
    %cst_12 = arith.constant 2.550000e+02 : f32
    %27 = vector.broadcast %cst_12 : f32 to vector<512x640xf32>
    %28 = arith.divf %26, %27 : vector<512x640xf32>
    %c0_13 = arith.constant 0 : index
    %c2 = arith.constant 2 : index
    %c0_14 = arith.constant 0 : index
    %c0_15 = arith.constant 0 : index
    %29 = vector.load %arg3[%c0_13, %c2, %c0_14, %c0_15] : memref<1x3x512x640xf32, #tpu.memory_space<vmem>>, vector<1x1x512x640xf32>
    %30 = vector.shape_cast %29 : vector<1x1x512x640xf32> to vector<512x640xf32>
    %31 = vector.shape_cast %28 : vector<512x640xf32> to vector<1x1x512x640xf32>
    tpu.vector_store %arg3[%c0_13, %c2, %c0_14, %c0_15], %31 {strides = array<i32>} : memref<1x3x512x640xf32, #tpu.memory_space<vmem>>, vector<1x1x512x640xf32>,
    return
  }
  func.func @transform_0(%arg0: i32, %arg1: i32) -> (i32, i32, i32) {
    %c0_i32 = arith.constant 0 : i32
    %c0_i32_0 = arith.constant 0 : i32
    return %arg0, %arg1, %c0_i32 : i32, i32, i32
  }
  func.func @transform_1(%arg0: i32, %arg1: i32) -> (i32, i32, i32, i32) {
    %c0_i32 = arith.constant 0 : i32
    %c0_i32_0 = arith.constant 0 : i32
    %c0_i32_1 = arith.constant 0 : i32
    return %arg0, %c0_i32, %arg1, %c0_i32_0 : i32, i32, i32, i32
  }
}

</mosaic_0001>

<bundles_post_ra>
// kernel: tpu_custom_call.1
= control target key start
LH: loop header
LB: loop body
LE: loop exit
PB: predicated region body
PF: predicated region fallthrough
CT: control target
= control target key end

     0   :  { %6 = vsyncpa [#allocation3], 0  ;;  %s8656_s0 = inlined_call_operand.hbm [shape: s32[2,512,640], index: 0, kind: input, shape index: {}]   ;;  %s8657_s1 = inlined_call_operand.hbm [shape: f32[2,3,512,640], index: 1, kind: output, shape index: {}]  }
   0x1   :  { %8 = vsyncpa [#allocation3 + $0x1], 0 }
   0x2   :  { %9 = vsyncpa [#allocation4], 0 }
   0x3   :  { %11 = vsyncpa [#allocation4 + $0x1], 0  ;;  %s6553_s6 = smov 0   ;;  %s6555_s7 = smov 0  }
   0x4   :  { %s6557_s8 = smov 0   ;;  %s6559_s9 = smov 0  }
   0x5   :  { %s6561_s10 = smov 0   ;;  %s6563_s11 = smov 0  }
   0x6 LB: > { %s5063_s12 = sadd.s32 4294967295, %s6535_s11   ;;  %s5064_s13 = sadd.s32 4294967294, %s6535_s11   ;;  %s6535_s11 = sphi %s6563_s11, %s17_s11   ;;  %s6531_s10 = sphi %s6561_s10, %s8672_s10   ;;  %s6527_s9 = sphi %s6559_s9, %s8671_s9   ;;  %s6523_s8 = sphi %s6557_s8, %s8670_s8   ;;  %s6519_s7 = sphi %s6555_s7, %s8669_s7   ;;  %s6515_s6 = sphi %s6553_s6, %s8668_s6  }
   0x7   : > { %s29_s14 = sadd.s32 1, %s6531_s10  ;;  %s38_s15 = sadd.s32 1, %s6523_s8 }
   0x8   : > { %p31_p0 = scmp.ge.s32.totalorder %s29_s14, 2  ;;  %p45_p1 = scmp.ne.s32.totalorder %s6523_s8, %s6519_s7 }
   0x9   : > { %p46_p2 = scmp.eq.s32.totalorder %s6535_s11, 0  ;;  %p51_p3 = scmp.ne.s32.totalorder %s6519_s7, %s6515_s6 }
   0xa   : > { %s8674_s14 = smov (%p31_p0, %s29_s14), 0  ;;  %p52_p5 = scmp.eq.s32.totalorder %s5063_s12, 0 }
   0xb   : > { %p6594_p4 = por %p46_p2, %p45_p1  ;;  %s33_s17 = ssub.s32 %s6531_s10, %s8674_s14 }
   0xc   : > { %p77_p6 = scmp.eq.s32.totalorder %s5063_s12, 1  ;;  %p36_p7 = scmp.eq.s32.totalorder %s33_s17, 0 }
   0xd   : > { %p6600_p8 = por %p52_p5, %p51_p3  ;;  %p83_p10 = scmp.eq.s32.totalorder %s5064_s13, 1 }
   0xe   : > { %p6604_p9 = por %p77_p6, %p45_p1  ;;  %p5729_p13 = scmp.lt.s32.totalorder %s6535_s11, 2 }
   0xf   : > { %s6609_s20 = scalar_select %p36_p7, %s6523_s8, %s38_s15  }
  0x10   : > { %s8661_s19 = scalar_select %p6604_p9, 1, 0 }
  0x11   : > { %p6611_p11 = por %p83_p10, %p51_p3  ;;  %s103_s22 = sand.u32 1, %s6523_s8  }
  0x12   : > { %s5712_s23 = smul.u32 2560, %s103_s22  ;;  %p6621_p0 = pnand %p5729_p13, %p6594_p4 }
  0x13   : > { %s8662_s21 = scalar_select %p6611_p11, 1, 0 }
  0x14   : > { %s5713_s24 = smul.u32 40960, %s6531_s10  ;;  %s107_s29 = scalar_lea.vmem [#allocation2], %s5712_s23 }
  0x15   : > { %s117_s30 = sshll.u32 %s107_s29, 4  ;;  %s6633_s2 = scalar_lea.sflag [#allocation3], %s103_s22  ;;  %s6630_s30 = int_to_ptr.vmem [resolvable:$true] %s117_s30 }
  0x16   : > { %s6628_s28 = scalar_lea.hbm %s8656_s0, %s5713_s24  ;;  %p6425_p3 = pneg %p6621_p0 }
  0x17   : > { %s6423_s3 = scalar_lea.hbm %s6628_s28, 40960  ;;  %s6428_s12 = scalar_lea.hbm %s8656_s0, 81920 }
  0x18   : > { %p6424_p2 = scmp.ne.s32.totalorder %s6628_s28, %s6423_s3  ;;  %p6429_p6 = scmp.lt.u32.totalorder %s6628_s28, %s8656_s0 }
  0x19   : > { %p6430_p7 = scmp.lt.u32.totalorder %s6428_s12, %s6423_s3  ;;  %p6432_p13 = scmp.lt.u32.totalorder %s6423_s3, %s6628_s28 }
  0x1a   : > { %p6426_p4 = pnand %p6425_p3, %p6424_p2 }
  0x1b   : > { %p6431_p10 = por %p6430_p7, %p6429_p6 }
  0x1c   : > { %p6427_p5 = pneg %p6426_p4 }
  0x1d   : > { %p6433_p12 = por %p6432_p13, %p6431_p10 }
  0x1f   : > { %p6434_p1 = pnand %p6433_p12, %p6427_p5 }
  0x21   : > { %6437 = shalt.err (!%p6434_p1)
}
  0x22   : > { %s6438_s16 = scalar_lea.vmem %s6630_s30, 40960  ;;  %s6537_s17 = smov [#allocation2]  }
  0x23   : > { %p6439_p2 = scmp.ne.s32.totalorder %s6630_s30, %s6438_s16  ;;  %s6443_s22 = sshll.u32 %s6537_s17, 4  ;;  %s6444_s22 = int_to_ptr.vmem [resolvable:$false] %s6443_s22 }
  0x24   : > { %s6445_s23 = scalar_lea.vmem %s6444_s22, 81920  ;;  %p6446_p9 = scmp.lt.s32.totalorder %s6630_s30, %s6444_s22 }
  0x25   : > { %p6441_p4 = pnand %p6439_p2, %p6425_p3  ;;  %p6447_p6 = scmp.lt.s32.totalorder %s6445_s23, %s6438_s16 }
  0x27   : > { %p6442_p11 = pneg %p6441_p4  ;;  %p6448_p7 = por %p6447_p6, %p6446_p9 }
  0x29   : > { %p6449_p10 = pnand %p6448_p7, %p6442_p11 }
  0x2b   : > { %6452 = shalt.err (!%p6449_p10)
}
  0x2c   : > { %s6538_s24 = smov 640   ;;  %s6539_s26 = smov 40  }
  0x2d   : > { %5724 = dma.hbm_to_vmem [thread:$0]  (!%p6621_p0), %s6628_s28, 40960, %s6630_s30, %s6633_s2, %s6538_s24, %s6538_s24, %s6539_s26  }
  0x2e   : > { %p125_p12 = scmp.lt.s32.totalorder %s6535_s11, 3  ;;  %p8664_p1 = scmp.ge.s32.totalorder %s6535_s11, 1 }
  0x30   : > { %p126_p3 = pnand %p8664_p1, %p125_p12 }
  0x31   : > { %s6665_s27 = sand.u32 (!%p126_p3), 1, %s6519_s7  }
  0x32   : > { %129 = sbr.rel (%p126_p3) target bundleno = 1047 (0x417), region = 24  ;;  %s132_s3 = scalar_lea.sflag (!%p126_p3), [#allocation3], %s6665_s27 }
  0x33   : > { %s5714_s29 = smul.u32 (!%p126_p3), 2560, %s6665_s27 }
  0x35   : > { %s6669_s4 = scalar_lea.vmem (!%p126_p3), [#allocation2], %s5714_s29 }
  0x39   : > { %6506 = dma.done.wait (%p6600_p8), %s132_s3, 40960  }
  0x3a   : > { %6508 = vsyncadd (%p6600_p8), %s132_s3, 4294926336  ;;  %v156_v0 = vld [vmem:[%s6669_s4] sm:$0xff]  ;;  %v157_v1 = vld [vmem:[%s6669_s4 + $0x8] sm:$0xff]  ;;  %s5715_s18 = smul.u32 7680, %s6665_s27  ;;  %s4960_s12 = scalar_lea.sflag [#allocation4], %s6665_s27 }
  0x3b   : > { %v158_v2 = vld [vmem:[%s6669_s4 + $0x10] sm:$0xff]  ;;  %v476_v3 = vshra.s32 %v156_v0, 16  ;;  %v477_v4 = vshra.s32 %v157_v1, 16  ;;  %v159_v6 = vld [vmem:[%s6669_s4 + $0x18] sm:$0xff]  ;;  %v160_v7 = vld [vmem:[%s6669_s4 + $0x20] sm:$0xff]  ;;  %s5716_s28 = smul.u32 122880, %s6527_s9 }
  0x3c   : > { %v478_v5 = vshra.s32 %v158_v2, 16  ;;  %v161_v8 = vld [vmem:[%s6669_s4 + $0x28] sm:$0xff]  ;;  %v479_v9 = vshra.s32 %v159_v6, 16  ;;  %v480_v10 = vshra.s32 %v160_v7, 16  ;;  %v162_v12 = vld [vmem:[%s6669_s4 + $0x30] sm:$0xff]  ;;  %v163_v13 = vld [vmem:[%s6669_s4 + $0x38] sm:$0xff] }
  0x3d   : > { %v481_v11 = vshra.s32 %v161_v8, 16  ;;  %v796_v14 = vand.u32 255, %v476_v3  ;;  %v797_v15 = vand.u32 255, %v477_v4  ;;  %v482_v17 = vshra.s32 %v162_v12, 16  ;;  %v164_v22 = vld [vmem:[%s6669_s4 + $0x40] sm:$0xff]  ;;  %v165_v27 = vld [vmem:[%s6669_s4 + $0x48] sm:$0xff]  ;;  %s8600_s5 = scalar_lea.hbm %s8657_s1, %s5716_s28 }
  0x3e   : > { %v798_v16 = vand.u32 255, %v478_v5  ;;  %v799_v18 = vand.u32 255, %v479_v9  ;;  %v800_v19 = vand.u32 255, %v480_v10  ;;  %v483_v21 = vshra.s32 %v163_v13, 16  ;;  %v166_v28 = vld [vmem:[%s6669_s4 + $0x50] sm:$0xff]  ;;  %v167_v29 = vld [vmem:[%s6669_s4 + $0x58] sm:$0xff] }
  0x3f   : > { %v801_v20 = vand.u32 255, %v481_v11  ;;  %v1116_v23 = vcvt.s32.f32 %v796_v14  ;;  %v1117_v24 = vcvt.s32.f32 %v797_v15  ;;  %v802_v26 = vand.u32 255, %v482_v17  ;;  %v168_v34 = vld [vmem:[%s6669_s4 + $0x60] sm:$0xff]  ;;  %v169_v35 = vld [vmem:[%s6669_s4 + $0x68] sm:$0xff]  ;;  %v170_v36 = vld [vmem:[%s6669_s4 + $0x70] sm:$0xff]  ;;  %s6693_s25 = scalar_lea.vmem [#allocation5], %s5715_s18 }
  0x40   : > { %v1118_v25 = vcvt.s32.f32 %v798_v16  ;;  %v1119_v30 = vcvt.s32.f32 %v799_v18  ;;  %v1120_v31 = vcvt.s32.f32 %v800_v19  ;;  %v803_v33 = vand.u32 255, %v483_v21  ;;  %v171_v49 = vld [vmem:[%s6669_s4 + $0x78] sm:$0xff]  ;;  %v172_v62 = vld [vmem:[%s6669_s4 + $0x80] sm:$0xff]  ;;  %v173_v3 = vld [vmem:[%s6669_s4 + $0x88] sm:$0xff]  ;;  %s4976_s30 = sshll.u32 %s6693_s25, 4  ;;  %p8665_p9 = scmp.ne.s32.totalorder %s8661_s19, 0  ;;  %s8602_s30 = int_to_ptr.vmem [resolvable:$true] %s4976_s30 }
  0x41   : > { %v1121_v32 = vcvt.s32.f32 %v801_v20  ;;  %v1437_v37 = vmul.f32 0.003921569, %v1116_v23  ;;  %v1438_v38 = vmul.f32 0.003921569, %v1117_v24  ;;  %v1122_v40 = vcvt.s32.f32 %v802_v26  ;;  %v174_v4 = vld [vmem:[%s6669_s4 + $0x90] sm:$0xff]  ;;  %v175_v5 = vld [vmem:[%s6669_s4 + $0x98] sm:$0xff] }
  0x42   : > { %v1439_v39 = vmul.f32 0.003921569, %v1118_v25  ;;  %v1440_v41 = vmul.f32 0.003921569, %v1119_v30  ;;  %v1441_v42 = vmul.f32 0.003921569, %v1120_v31  ;;  %v1123_v44 = vcvt.s32.f32 %v803_v33 }
  0x43   : > { %v1442_v43 = vmul.f32 0.003921569, %v1121_v32  ;;  %1757 = vst [vmem:[%s6693_s25] sm:$0xff] %v1437_v37  ;;  %1758 = vst [vmem:[%s6693_s25 + $0x8] sm:$0xff] %v1438_v38  ;;  %v1443_v45 = vmul.f32 0.003921569, %v1122_v40  ;;  %v484_v46 = vshra.s32 %v164_v22, 16 }
  0x44   : > { %1759 = vst [vmem:[%s6693_s25 + $0x10] sm:$0xff] %v1439_v39  ;;  %v485_v47 = vshra.s32 %v165_v27, 16  ;;  %v486_v48 = vshra.s32 %v166_v28, 16  ;;  %1760 = vst [vmem:[%s6693_s25 + $0x18] sm:$0xff] %v1440_v41  ;;  %v1444_v50 = vmul.f32 0.003921569, %v1123_v44 }
  0x45   : > { %1761 = vst [vmem:[%s6693_s25 + $0x20] sm:$0xff] %v1441_v42  ;;  %1762 = vst [vmem:[%s6693_s25 + $0x28] sm:$0xff] %v1442_v43  ;;  %v487_v51 = vshra.s32 %v167_v29, 16  ;;  %v488_v52 = vshra.s32 %v168_v34, 16  ;;  %v489_v53 = vshra.s32 %v169_v35, 16  ;;  %v804_v54 = vand.u32 255, %v484_v46 }
  0x46   : > { %1763 = vst [vmem:[%s6693_s25 + $0x30] sm:$0xff] %v1443_v45  ;;  %v805_v55 = vand.u32 255, %v485_v47  ;;  %v806_v56 = vand.u32 255, %v486_v48  ;;  %v490_v57 = vshra.s32 %v170_v36, 16  ;;  %1764 = vst [vmem:[%s6693_s25 + $0x38] sm:$0xff] %v1444_v50  ;;  %v491_v61 = vshra.s32 %v171_v49, 16 }
  0x47   : > { %v807_v58 = vand.u32 255, %v487_v51  ;;  %v808_v59 = vand.u32 255, %v488_v52  ;;  %v809_v60 = vand.u32 255, %v489_v53  ;;  %v1124_v63 = vcvt.s32.f32 %v804_v54  ;;  %v176_v10 = vld [vmem:[%s6669_s4 + $0xa0] sm:$0xff]  ;;  %v177_v11 = vld [vmem:[%s6669_s4 + $0xa8] sm:$0xff]  ;;  %v178_v12 = vld [vmem:[%s6669_s4 + $0xb0] sm:$0xff] }
  0x48   : > { %v1125_v0 = vcvt.s32.f32 %v805_v55  ;;  %v1126_v1 = vcvt.s32.f32 %v806_v56  ;;  %v810_v2 = vand.u32 255, %v490_v57  ;;  %v811_v9 = vand.u32 255, %v491_v61  ;;  %v179_v25 = vld [vmem:[%s6669_s4 + $0xb8] sm:$0xff]  ;;  %v180_v38 = vld [vmem:[%s6669_s4 + $0xc0] sm:$0xff]  ;;  %v181_v43 = vld [vmem:[%s6669_s4 + $0xc8] sm:$0xff]  ;;  %s6453_s13 = scalar_lea.vmem %s8602_s30, 122880 }
  0x49   : > { %v1127_v6 = vcvt.s32.f32 %v807_v58  ;;  %v1128_v7 = vcvt.s32.f32 %v808_v59  ;;  %v1129_v8 = vcvt.s32.f32 %v809_v60  ;;  %v1445_v13 = vmul.f32 0.003921569, %v1124_v63  ;;  %v182_v44 = vld [vmem:[%s6669_s4 + $0xd0] sm:$0xff]  ;;  %v183_v45 = vld [vmem:[%s6669_s4 + $0xd8] sm:$0xff]  ;;  %v184_v50 = vld [vmem:[%s6669_s4 + $0xe0] sm:$0xff]  ;;  %p6454_p8 = scmp.ne.s32.totalorder %s8602_s30, %s6453_s13  ;;  %s6540_s15 = smov [#allocation5]  }
  0x4a   : > { %v1446_v14 = vmul.f32 0.003921569, %v1125_v0  ;;  %v1447_v15 = vmul.f32 0.003921569, %v1126_v1  ;;  %v1130_v16 = vcvt.s32.f32 %v810_v2  ;;  %v1131_v20 = vcvt.s32.f32 %v811_v9  ;;  %v185_v51 = vld [vmem:[%s6669_s4 + $0xe8] sm:$0xff]  ;;  %v186_v52 = vld [vmem:[%s6669_s4 + $0xf0] sm:$0xff] }
  0x4b   : > { %v1448_v17 = vmul.f32 0.003921569, %v1127_v6  ;;  %v1449_v18 = vmul.f32 0.003921569, %v1128_v7  ;;  %v1450_v19 = vmul.f32 0.003921569, %v1129_v8  ;;  %p6455_p11 = pnand %p6454_p8, %p8665_p9 }
  0x4c   : > { %1765 = vst [vmem:[%s6693_s25 + $0x40] sm:$0xff] %v1445_v13  ;;  %1766 = vst [vmem:[%s6693_s25 + $0x48] sm:$0xff] %v1446_v14  ;;  %v1451_v21 = vmul.f32 0.003921569, %v1130_v16  ;;  %v492_v22 = vshra.s32 %v172_v62, 16  ;;  %v493_v23 = vshra.s32 %v173_v3, 16 }
  0x4d   : > { %1767 = vst [vmem:[%s6693_s25 + $0x50] sm:$0xff] %v1447_v15  ;;  %v494_v24 = vshra.s32 %v174_v4, 16  ;;  %1768 = vst [vmem:[%s6693_s25 + $0x58] sm:$0xff] %v1448_v17  ;;  %v1452_v26 = vmul.f32 0.003921569, %v1131_v20  ;;  %v495_v27 = vshra.s32 %v175_v5, 16  ;;  %p6456_p0 = pneg %p6455_p11 }
  0x4e   : > { %1769 = vst [vmem:[%s6693_s25 + $0x60] sm:$0xff] %v1449_v18  ;;  %1770 = vst [vmem:[%s6693_s25 + $0x68] sm:$0xff] %v1450_v19  ;;  %v496_v28 = vshra.s32 %v176_v10, 16  ;;  %v497_v29 = vshra.s32 %v177_v11, 16  ;;  %v812_v30 = vand.u32 255, %v492_v22  ;;  %v813_v31 = vand.u32 255, %v493_v23 }
  0x4f   : > { %1771 = vst [vmem:[%s6693_s25 + $0x70] sm:$0xff] %v1451_v21  ;;  %v814_v32 = vand.u32 255, %v494_v24  ;;  %v498_v33 = vshra.s32 %v178_v12, 16  ;;  %1772 = vst [vmem:[%s6693_s25 + $0x78] sm:$0xff] %v1452_v26  ;;  %v815_v34 = vand.u32 255, %v495_v27  ;;  %v499_v37 = vshra.s32 %v179_v25, 16 }
  0x50   : > { %v816_v35 = vand.u32 255, %v496_v28  ;;  %v817_v36 = vand.u32 255, %v497_v29  ;;  %v1132_v39 = vcvt.s32.f32 %v812_v30  ;;  %v1133_v40 = vcvt.s32.f32 %v813_v31  ;;  %v187_v1 = vld [vmem:[%s6669_s4 + $0xf8] sm:$0xff]  ;;  %v188_v14 = vld [vmem:[%s6669_s4 + $0x100] sm:$0xff]  ;;  %v189_v19 = vld [vmem:[%s6669_s4 + $0x108] sm:$0xff]  ;;  %s6457_s16 = sshll.u32 %s6540_s15, 4  ;;  %s6458_s16 = int_to_ptr.vmem [resolvable:$false] %s6457_s16 }
  0x51   : > { %v1134_v41 = vcvt.s32.f32 %v814_v32  ;;  %v818_v42 = vand.u32 255, %v498_v33  ;;  %v1135_v46 = vcvt.s32.f32 %v815_v34  ;;  %v819_v49 = vand.u32 255, %v499_v37  ;;  %v190_v20 = vld [vmem:[%s6669_s4 + $0x110] sm:$0xff]  ;;  %v191_v21 = vld [vmem:[%s6669_s4 + $0x118] sm:$0xff]  ;;  %v192_v26 = vld [vmem:[%s6669_s4 + $0x120] sm:$0xff]  ;;  %s6459_s17 = scalar_lea.vmem %s6458_s16, 245760  ;;  %p6460_p5 = scmp.lt.s32.totalorder %s8602_s30, %s6458_s16 }
  0x52   : > { %v1136_v47 = vcvt.s32.f32 %v816_v35  ;;  %v1137_v48 = vcvt.s32.f32 %v817_v36  ;;  %v1453_v53 = vmul.f32 0.003921569, %v1132_v39  ;;  %v1454_v54 = vmul.f32 0.003921569, %v1133_v40  ;;  %v193_v27 = vld [vmem:[%s6669_s4 + $0x128] sm:$0xff]  ;;  %v194_v28 = vld [vmem:[%s6669_s4 + $0x130] sm:$0xff]  ;;  %p6461_p13 = scmp.lt.s32.totalorder %s6459_s17, %s6453_s13 }
  0x53   : > { %v1455_v55 = vmul.f32 0.003921569, %v1134_v41  ;;  %v1138_v56 = vcvt.s32.f32 %v818_v42  ;;  %v1456_v57 = vmul.f32 0.003921569, %v1135_v46  ;;  %v1139_v60 = vcvt.s32.f32 %v819_v49  ;;  %v195_v41 = vld [vmem:[%s6669_s4 + $0x138] sm:$0xff] }
  0x54   : > { %v1457_v58 = vmul.f32 0.003921569, %v1136_v47  ;;  %v1458_v59 = vmul.f32 0.003921569, %v1137_v48  ;;  %1773 = vst [vmem:[%s6693_s25 + $0x80] sm:$0xff] %v1453_v53  ;;  %1774 = vst [vmem:[%s6693_s25 + $0x88] sm:$0xff] %v1454_v54  ;;  %p6462_p2 = por %p6461_p13, %p6460_p5 }
  0x55   : > { %1775 = vst [vmem:[%s6693_s25 + $0x90] sm:$0xff] %v1455_v55  ;;  %v1459_v61 = vmul.f32 0.003921569, %v1138_v56  ;;  %v500_v62 = vshra.s32 %v180_v38, 16  ;;  %v501_v63 = vshra.s32 %v181_v43, 16  ;;  %v502_v0 = vshra.s32 %v182_v44, 16 }
  0x56   : > { %1776 = vst [vmem:[%s6693_s25 + $0x98] sm:$0xff] %v1456_v57  ;;  %1777 = vst [vmem:[%s6693_s25 + $0xa0] sm:$0xff] %v1457_v58  ;;  %v1460_v2 = vmul.f32 0.003921569, %v1139_v60  ;;  %v503_v3 = vshra.s32 %v183_v45, 16  ;;  %v504_v4 = vshra.s32 %v184_v50, 16  ;;  %p6463_p4 = pnand %p6462_p2, %p6456_p0 }
  0x57   : > { %1778 = vst [vmem:[%s6693_s25 + $0xa8] sm:$0xff] %v1458_v59  ;;  %v505_v5 = vshra.s32 %v185_v51, 16  ;;  %1779 = vst [vmem:[%s6693_s25 + $0xb0] sm:$0xff] %v1459_v61  ;;  %v820_v6 = vand.u32 255, %v500_v62  ;;  %v821_v7 = vand.u32 255, %v501_v63  ;;  %v822_v8 = vand.u32 255, %v502_v0 }
  0x58   : > { %v506_v9 = vshra.s32 %v186_v52, 16  ;;  %1780 = vst [vmem:[%s6693_s25 + $0xb8] sm:$0xff] %v1460_v2  ;;  %v823_v10 = vand.u32 255, %v503_v3  ;;  %v824_v11 = vand.u32 255, %v504_v4  ;;  %v507_v13 = vshra.s32 %v187_v1, 16  ;;  %v196_v54 = vld [vmem:[%s6669_s4 + $0x140] sm:$0xff] }
  0x59   : > { %v825_v12 = vand.u32 255, %v505_v5  ;;  %v1140_v15 = vcvt.s32.f32 %v820_v6  ;;  %v1141_v16 = vcvt.s32.f32 %v821_v7  ;;  %v1142_v17 = vcvt.s32.f32 %v822_v8  ;;  %v197_v59 = vld [vmem:[%s6669_s4 + $0x148] sm:$0xff]  ;;  %v198_v60 = vld [vmem:[%s6669_s4 + $0x150] sm:$0xff]  ;;  %v199_v61 = vld [vmem:[%s6669_s4 + $0x158] sm:$0xff] }
  0x5a   : > { %v826_v18 = vand.u32 255, %v506_v9  ;;  %v1143_v22 = vcvt.s32.f32 %v823_v10  ;;  %v1144_v23 = vcvt.s32.f32 %v824_v11  ;;  %v827_v25 = vand.u32 255, %v507_v13  ;;  %v200_v2 = vld [vmem:[%s6669_s4 + $0x160] sm:$0xff]  ;;  %v201_v3 = vld [vmem:[%s6669_s4 + $0x168] sm:$0xff]  ;;  %v202_v4 = vld [vmem:[%s6669_s4 + $0x170] sm:$0xff] }
  0x5b   : > { %v1145_v24 = vcvt.s32.f32 %v825_v12  ;;  %v1461_v29 = vmul.f32 0.003921569, %v1140_v15  ;;  %v1462_v30 = vmul.f32 0.003921569, %v1141_v16  ;;  %v1463_v31 = vmul.f32 0.003921569, %v1142_v17 }
  0x5c   : > { %v1146_v32 = vcvt.s32.f32 %v826_v18  ;;  %v1464_v33 = vmul.f32 0.003921569, %v1143_v22  ;;  %v1465_v34 = vmul.f32 0.003921569, %v1144_v23  ;;  %v1147_v36 = vcvt.s32.f32 %v827_v25  ;;  %v203_v17 = vld [vmem:[%s6669_s4 + $0x178] sm:$0xff] }
  0x5d   : > { %v1466_v35 = vmul.f32 0.003921569, %v1145_v24  ;;  %1781 = vst [vmem:[%s6693_s25 + $0xc0] sm:$0xff] %v1461_v29  ;;  %1782 = vst [vmem:[%s6693_s25 + $0xc8] sm:$0xff] %v1462_v30  ;;  %v508_v38 = vshra.s32 %v188_v14, 16  ;;  %v509_v39 = vshra.s32 %v189_v19, 16 }
  0x5e   : > { %1783 = vst [vmem:[%s6693_s25 + $0xd0] sm:$0xff] %v1463_v31  ;;  %v1467_v37 = vmul.f32 0.003921569, %v1146_v32  ;;  %v510_v40 = vshra.s32 %v190_v20, 16  ;;  %1784 = vst [vmem:[%s6693_s25 + $0xd8] sm:$0xff] %v1464_v33  ;;  %v511_v43 = vshra.s32 %v191_v21, 16 }
  0x5f   : > { %1785 = vst [vmem:[%s6693_s25 + $0xe0] sm:$0xff] %v1465_v34  ;;  %1786 = vst [vmem:[%s6693_s25 + $0xe8] sm:$0xff] %v1466_v35  ;;  %v1468_v42 = vmul.f32 0.003921569, %v1147_v36  ;;  %v512_v44 = vshra.s32 %v192_v26, 16  ;;  %v513_v45 = vshra.s32 %v193_v27, 16 }
  0x60   : > { %1787 = vst [vmem:[%s6693_s25 + $0xf0] sm:$0xff] %v1467_v37  ;;  %v828_v46 = vand.u32 255, %v508_v38  ;;  %v829_v47 = vand.u32 255, %v509_v39  ;;  %v830_v48 = vand.u32 255, %v510_v40  ;;  %v514_v49 = vshra.s32 %v194_v28, 16  ;;  %v204_v30 = vld [vmem:[%s6669_s4 + $0x180] sm:$0xff] }
  0x61   : > { %1788 = vst [vmem:[%s6693_s25 + $0xf8] sm:$0xff] %v1468_v42  ;;  %v831_v50 = vand.u32 255, %v511_v43  ;;  %v832_v51 = vand.u32 255, %v512_v44  ;;  %v833_v52 = vand.u32 255, %v513_v45  ;;  %v515_v53 = vshra.s32 %v195_v41, 16  ;;  %v205_v35 = vld [vmem:[%s6669_s4 + $0x188] sm:$0xff] }
  0x62   : > { %v1148_v55 = vcvt.s32.f32 %v828_v46  ;;  %v1149_v56 = vcvt.s32.f32 %v829_v47  ;;  %v1150_v57 = vcvt.s32.f32 %v830_v48  ;;  %v834_v58 = vand.u32 255, %v514_v49  ;;  %v206_v36 = vld [vmem:[%s6669_s4 + $0x190] sm:$0xff]  ;;  %v207_v37 = vld [vmem:[%s6669_s4 + $0x198] sm:$0xff]  ;;  %v208_v42 = vld [vmem:[%s6669_s4 + $0x1a0] sm:$0xff] }
  0x63   : > { %v1151_v62 = vcvt.s32.f32 %v831_v50  ;;  %v1152_v63 = vcvt.s32.f32 %v832_v51  ;;  %v1153_v0 = vcvt.s32.f32 %v833_v52  ;;  %v835_v1 = vand.u32 255, %v515_v53  ;;  %v209_v43 = vld [vmem:[%s6669_s4 + $0x1a8] sm:$0xff]  ;;  %v210_v44 = vld [vmem:[%s6669_s4 + $0x1b0] sm:$0xff] }
  0x64   : > { %v1469_v5 = vmul.f32 0.003921569, %v1148_v55  ;;  %v1470_v6 = vmul.f32 0.003921569, %v1149_v56  ;;  %v1471_v7 = vmul.f32 0.003921569, %v1150_v57  ;;  %v1154_v8 = vcvt.s32.f32 %v834_v58 }
  0x65   : > { %v1472_v9 = vmul.f32 0.003921569, %v1151_v62  ;;  %v1473_v10 = vmul.f32 0.003921569, %v1152_v63  ;;  %v1474_v11 = vmul.f32 0.003921569, %v1153_v0  ;;  %v1155_v12 = vcvt.s32.f32 %v835_v1 }
  0x66   : > { %1789 = vst [vmem:[%s6693_s25 + $0x100] sm:$0xff] %v1469_v5  ;;  %1790 = vst [vmem:[%s6693_s25 + $0x108] sm:$0xff] %v1470_v6  ;;  %v1475_v13 = vmul.f32 0.003921569, %v1154_v8  ;;  %v516_v14 = vshra.s32 %v196_v54, 16  ;;  %v517_v15 = vshra.s32 %v197_v59, 16 }
  0x67   : > { %1791 = vst [vmem:[%s6693_s25 + $0x110] sm:$0xff] %v1471_v7  ;;  %v518_v16 = vshra.s32 %v198_v60, 16  ;;  %1792 = vst [vmem:[%s6693_s25 + $0x118] sm:$0xff] %v1472_v9  ;;  %v1476_v18 = vmul.f32 0.003921569, %v1155_v12  ;;  %v519_v19 = vshra.s32 %v199_v61, 16 }
  0x68   : > { %1793 = vst [vmem:[%s6693_s25 + $0x120] sm:$0xff] %v1473_v10  ;;  %1794 = vst [vmem:[%s6693_s25 + $0x128] sm:$0xff] %v1474_v11  ;;  %v520_v20 = vshra.s32 %v200_v2, 16  ;;  %v521_v21 = vshra.s32 %v201_v3, 16  ;;  %v836_v22 = vand.u32 255, %v516_v14  ;;  %v837_v23 = vand.u32 255, %v517_v15 }
  0x69   : > { %1795 = vst [vmem:[%s6693_s25 + $0x130] sm:$0xff] %v1475_v13  ;;  %v838_v24 = vand.u32 255, %v518_v16  ;;  %v522_v25 = vshra.s32 %v202_v4, 16  ;;  %1796 = vst [vmem:[%s6693_s25 + $0x138] sm:$0xff] %v1476_v18  ;;  %v839_v26 = vand.u32 255, %v519_v19  ;;  %v523_v29 = vshra.s32 %v203_v17, 16 }
  0x6a   : > { %v840_v27 = vand.u32 255, %v520_v20  ;;  %v841_v28 = vand.u32 255, %v521_v21  ;;  %v1156_v31 = vcvt.s32.f32 %v836_v22  ;;  %v1157_v32 = vcvt.s32.f32 %v837_v23  ;;  %v211_v57 = vld [vmem:[%s6669_s4 + $0x1b8] sm:$0xff]  ;;  %v212_v6 = vld [vmem:[%s6669_s4 + $0x1c0] sm:$0xff]  ;;  %v213_v11 = vld [vmem:[%s6669_s4 + $0x1c8] sm:$0xff] }
  0x6b   : > { %v1158_v33 = vcvt.s32.f32 %v838_v24  ;;  %v842_v34 = vand.u32 255, %v522_v25  ;;  %v1159_v38 = vcvt.s32.f32 %v839_v26  ;;  %v843_v41 = vand.u32 255, %v523_v29  ;;  %v214_v12 = vld [vmem:[%s6669_s4 + $0x1d0] sm:$0xff]  ;;  %v215_v13 = vld [vmem:[%s6669_s4 + $0x1d8] sm:$0xff]  ;;  %v216_v18 = vld [vmem:[%s6669_s4 + $0x1e0] sm:$0xff] }
  0x6c   : > { %v1160_v39 = vcvt.s32.f32 %v840_v27  ;;  %v1161_v40 = vcvt.s32.f32 %v841_v28  ;;  %v1477_v45 = vmul.f32 0.003921569, %v1156_v31  ;;  %v1478_v46 = vmul.f32 0.003921569, %v1157_v32  ;;  %v217_v19 = vld [vmem:[%s6669_s4 + $0x1e8] sm:$0xff]  ;;  %v218_v20 = vld [vmem:[%s6669_s4 + $0x1f0] sm:$0xff] }
  0x6d   : > { %v1479_v47 = vmul.f32 0.003921569, %v1158_v33  ;;  %v1162_v48 = vcvt.s32.f32 %v842_v34  ;;  %v1480_v49 = vmul.f32 0.003921569, %v1159_v38  ;;  %v1163_v52 = vcvt.s32.f32 %v843_v41  ;;  %v219_v33 = vld [vmem:[%s6669_s4 + $0x1f8] sm:$0xff] }
  0x6e   : > { %v1481_v50 = vmul.f32 0.003921569, %v1160_v39  ;;  %v1482_v51 = vmul.f32 0.003921569, %v1161_v40  ;;  %1797 = vst [vmem:[%s6693_s25 + $0x140] sm:$0xff] %v1477_v45  ;;  %1798 = vst [vmem:[%s6693_s25 + $0x148] sm:$0xff] %v1478_v46 }
  0x6f   : > { %1799 = vst [vmem:[%s6693_s25 + $0x150] sm:$0xff] %v1479_v47  ;;  %v1483_v53 = vmul.f32 0.003921569, %v1162_v48  ;;  %v524_v54 = vshra.s32 %v204_v30, 16  ;;  %v525_v55 = vshra.s32 %v205_v35, 16  ;;  %v526_v56 = vshra.s32 %v206_v36, 16 }
  0x70   : > { %1800 = vst [vmem:[%s6693_s25 + $0x158] sm:$0xff] %v1480_v49  ;;  %1801 = vst [vmem:[%s6693_s25 + $0x160] sm:$0xff] %v1481_v50  ;;  %v1484_v58 = vmul.f32 0.003921569, %v1163_v52  ;;  %v527_v59 = vshra.s32 %v207_v37, 16  ;;  %v528_v60 = vshra.s32 %v208_v42, 16 }
  0x71   : > { %1802 = vst [vmem:[%s6693_s25 + $0x168] sm:$0xff] %v1482_v51  ;;  %v529_v61 = vshra.s32 %v209_v43, 16  ;;  %1803 = vst [vmem:[%s6693_s25 + $0x170] sm:$0xff] %v1483_v53  ;;  %v844_v62 = vand.u32 255, %v524_v54  ;;  %v845_v63 = vand.u32 255, %v525_v55  ;;  %v846_v0 = vand.u32 255, %v526_v56 }
  0x72   : > { %v530_v1 = vshra.s32 %v210_v44, 16  ;;  %1804 = vst [vmem:[%s6693_s25 + $0x178] sm:$0xff] %v1484_v58  ;;  %v847_v2 = vand.u32 255, %v527_v59  ;;  %v848_v3 = vand.u32 255, %v528_v60  ;;  %v531_v5 = vshra.s32 %v211_v57, 16  ;;  %v220_v46 = vld [vmem:[%s6669_s4 + $0x200] sm:$0xff] }
  0x73   : > { %v849_v4 = vand.u32 255, %v529_v61  ;;  %v1164_v7 = vcvt.s32.f32 %v844_v62  ;;  %v1165_v8 = vcvt.s32.f32 %v845_v63  ;;  %v1166_v9 = vcvt.s32.f32 %v846_v0  ;;  %v221_v51 = vld [vmem:[%s6669_s4 + $0x208] sm:$0xff]  ;;  %v222_v52 = vld [vmem:[%s6669_s4 + $0x210] sm:$0xff]  ;;  %v223_v53 = vld [vmem:[%s6669_s4 + $0x218] sm:$0xff] }
  0x74   : > { %v850_v10 = vand.u32 255, %v530_v1  ;;  %v1167_v14 = vcvt.s32.f32 %v847_v2  ;;  %v1168_v15 = vcvt.s32.f32 %v848_v3  ;;  %v851_v17 = vand.u32 255, %v531_v5  ;;  %v224_v58 = vld [vmem:[%s6669_s4 + $0x220] sm:$0xff]  ;;  %v225_v59 = vld [vmem:[%s6669_s4 + $0x228] sm:$0xff]  ;;  %v226_v60 = vld [vmem:[%s6669_s4 + $0x230] sm:$0xff] }
  0x75   : > { %v1169_v16 = vcvt.s32.f32 %v849_v4  ;;  %v1485_v21 = vmul.f32 0.003921569, %v1164_v7  ;;  %v1486_v22 = vmul.f32 0.003921569, %v1165_v8  ;;  %v1487_v23 = vmul.f32 0.003921569, %v1166_v9 }
  0x76   : > { %v1170_v24 = vcvt.s32.f32 %v850_v10  ;;  %v1488_v25 = vmul.f32 0.003921569, %v1167_v14  ;;  %v1489_v26 = vmul.f32 0.003921569, %v1168_v15  ;;  %v1171_v28 = vcvt.s32.f32 %v851_v17  ;;  %v227_v9 = vld [vmem:[%s6669_s4 + $0x238] sm:$0xff] }
  0x77   : > { %v1490_v27 = vmul.f32 0.003921569, %v1169_v16  ;;  %1805 = vst [vmem:[%s6693_s25 + $0x180] sm:$0xff] %v1485_v21  ;;  %1806 = vst [vmem:[%s6693_s25 + $0x188] sm:$0xff] %v1486_v22  ;;  %v532_v30 = vshra.s32 %v212_v6, 16  ;;  %v533_v31 = vshra.s32 %v213_v11, 16 }
  0x78   : > { %1807 = vst [vmem:[%s6693_s25 + $0x190] sm:$0xff] %v1487_v23  ;;  %v1491_v29 = vmul.f32 0.003921569, %v1170_v24  ;;  %v534_v32 = vshra.s32 %v214_v12, 16  ;;  %1808 = vst [vmem:[%s6693_s25 + $0x198] sm:$0xff] %v1488_v25  ;;  %v535_v35 = vshra.s32 %v215_v13, 16 }
  0x79   : > { %1809 = vst [vmem:[%s6693_s25 + $0x1a0] sm:$0xff] %v1489_v26  ;;  %1810 = vst [vmem:[%s6693_s25 + $0x1a8] sm:$0xff] %v1490_v27  ;;  %v1492_v34 = vmul.f32 0.003921569, %v1171_v28  ;;  %v536_v36 = vshra.s32 %v216_v18, 16  ;;  %v537_v37 = vshra.s32 %v217_v19, 16 }
  0x7a   : > { %1811 = vst [vmem:[%s6693_s25 + $0x1b0] sm:$0xff] %v1491_v29  ;;  %v852_v38 = vand.u32 255, %v532_v30  ;;  %v853_v39 = vand.u32 255, %v533_v31  ;;  %v854_v40 = vand.u32 255, %v534_v32  ;;  %v538_v41 = vshra.s32 %v218_v20, 16  ;;  %v228_v22 = vld [vmem:[%s6669_s4 + $0x240] sm:$0xff] }
  0x7b   : > { %1812 = vst [vmem:[%s6693_s25 + $0x1b8] sm:$0xff] %v1492_v34  ;;  %v855_v42 = vand.u32 255, %v535_v35  ;;  %v856_v43 = vand.u32 255, %v536_v36  ;;  %v857_v44 = vand.u32 255, %v537_v37  ;;  %v539_v45 = vshra.s32 %v219_v33, 16  ;;  %v229_v27 = vld [vmem:[%s6669_s4 + $0x248] sm:$0xff] }
  0x7c   : > { %v1172_v47 = vcvt.s32.f32 %v852_v38  ;;  %v1173_v48 = vcvt.s32.f32 %v853_v39  ;;  %v1174_v49 = vcvt.s32.f32 %v854_v40  ;;  %v858_v50 = vand.u32 255, %v538_v41  ;;  %v230_v28 = vld [vmem:[%s6669_s4 + $0x250] sm:$0xff]  ;;  %v231_v29 = vld [vmem:[%s6669_s4 + $0x258] sm:$0xff]  ;;  %v232_v34 = vld [vmem:[%s6669_s4 + $0x260] sm:$0xff] }
  0x7d   : > { %v1175_v54 = vcvt.s32.f32 %v855_v42  ;;  %v1176_v55 = vcvt.s32.f32 %v856_v43  ;;  %v1177_v56 = vcvt.s32.f32 %v857_v44  ;;  %v859_v57 = vand.u32 255, %v539_v45  ;;  %v233_v35 = vld [vmem:[%s6669_s4 + $0x268] sm:$0xff]  ;;  %v234_v36 = vld [vmem:[%s6669_s4 + $0x270] sm:$0xff] }
  0x7e   : > { %v1493_v61 = vmul.f32 0.003921569, %v1172_v47  ;;  %v1494_v62 = vmul.f32 0.003921569, %v1173_v48  ;;  %v1495_v63 = vmul.f32 0.003921569, %v1174_v49  ;;  %v1178_v0 = vcvt.s32.f32 %v858_v50 }
  0x7f   : > { %v1496_v1 = vmul.f32 0.003921569, %v1175_v54  ;;  %v1497_v2 = vmul.f32 0.003921569, %v1176_v55  ;;  %v1498_v3 = vmul.f32 0.003921569, %v1177_v56  ;;  %v1179_v4 = vcvt.s32.f32 %v859_v57 }
  0x80   : > { %1813 = vst [vmem:[%s6693_s25 + $0x1c0] sm:$0xff] %v1493_v61  ;;  %1814 = vst [vmem:[%s6693_s25 + $0x1c8] sm:$0xff] %v1494_v62  ;;  %v1499_v5 = vmul.f32 0.003921569, %v1178_v0  ;;  %v540_v6 = vshra.s32 %v220_v46, 16  ;;  %v541_v7 = vshra.s32 %v221_v51, 16 }
  0x81   : > { %1815 = vst [vmem:[%s6693_s25 + $0x1d0] sm:$0xff] %v1495_v63  ;;  %v542_v8 = vshra.s32 %v222_v52, 16  ;;  %1816 = vst [vmem:[%s6693_s25 + $0x1d8] sm:$0xff] %v1496_v1  ;;  %v1500_v10 = vmul.f32 0.003921569, %v1179_v4  ;;  %v543_v11 = vshra.s32 %v223_v53, 16 }
  0x82   : > { %1817 = vst [vmem:[%s6693_s25 + $0x1e0] sm:$0xff] %v1497_v2  ;;  %1818 = vst [vmem:[%s6693_s25 + $0x1e8] sm:$0xff] %v1498_v3  ;;  %v544_v12 = vshra.s32 %v224_v58, 16  ;;  %v545_v13 = vshra.s32 %v225_v59, 16  ;;  %v860_v14 = vand.u32 255, %v540_v6  ;;  %v861_v15 = vand.u32 255, %v541_v7 }
  0x83   : > { %1819 = vst [vmem:[%s6693_s25 + $0x1f0] sm:$0xff] %v1499_v5  ;;  %v862_v16 = vand.u32 255, %v542_v8  ;;  %v546_v17 = vshra.s32 %v226_v60, 16  ;;  %1820 = vst [vmem:[%s6693_s25 + $0x1f8] sm:$0xff] %v1500_v10  ;;  %v863_v18 = vand.u32 255, %v543_v11  ;;  %v547_v21 = vshra.s32 %v227_v9, 16 }
  0x84   : > { %v864_v19 = vand.u32 255, %v544_v12  ;;  %v865_v20 = vand.u32 255, %v545_v13  ;;  %v1180_v23 = vcvt.s32.f32 %v860_v14  ;;  %v1181_v24 = vcvt.s32.f32 %v861_v15  ;;  %v235_v49 = vld [vmem:[%s6669_s4 + $0x278] sm:$0xff]  ;;  %v236_v62 = vld [vmem:[%s6669_s4 + $0x280] sm:$0xff]  ;;  %v237_v3 = vld [vmem:[%s6669_s4 + $0x288] sm:$0xff] }
  0x85   : > { %v1182_v25 = vcvt.s32.f32 %v862_v16  ;;  %v866_v26 = vand.u32 255, %v546_v17  ;;  %v1183_v30 = vcvt.s32.f32 %v863_v18  ;;  %v867_v33 = vand.u32 255, %v547_v21  ;;  %v238_v4 = vld [vmem:[%s6669_s4 + $0x290] sm:$0xff]  ;;  %v239_v5 = vld [vmem:[%s6669_s4 + $0x298] sm:$0xff]  ;;  %v240_v10 = vld [vmem:[%s6669_s4 + $0x2a0] sm:$0xff] }
  0x86   : > { %v1184_v31 = vcvt.s32.f32 %v864_v19  ;;  %v1185_v32 = vcvt.s32.f32 %v865_v20  ;;  %v1501_v37 = vmul.f32 0.003921569, %v1180_v23  ;;  %v1502_v38 = vmul.f32 0.003921569, %v1181_v24  ;;  %v241_v11 = vld [vmem:[%s6669_s4 + $0x2a8] sm:$0xff]  ;;  %v242_v12 = vld [vmem:[%s6669_s4 + $0x2b0] sm:$0xff] }
  0x87   : > { %v1503_v39 = vmul.f32 0.003921569, %v1182_v25  ;;  %v1186_v40 = vcvt.s32.f32 %v866_v26  ;;  %v1504_v41 = vmul.f32 0.003921569, %v1183_v30  ;;  %v1187_v44 = vcvt.s32.f32 %v867_v33  ;;  %v243_v25 = vld [vmem:[%s6669_s4 + $0x2b8] sm:$0xff] }
  0x88   : > { %v1505_v42 = vmul.f32 0.003921569, %v1184_v31  ;;  %v1506_v43 = vmul.f32 0.003921569, %v1185_v32  ;;  %1821 = vst [vmem:[%s6693_s25 + $0x200] sm:$0xff] %v1501_v37  ;;  %1822 = vst [vmem:[%s6693_s25 + $0x208] sm:$0xff] %v1502_v38 }
  0x89   : > { %1823 = vst [vmem:[%s6693_s25 + $0x210] sm:$0xff] %v1503_v39  ;;  %v1507_v45 = vmul.f32 0.003921569, %v1186_v40  ;;  %v548_v46 = vshra.s32 %v228_v22, 16  ;;  %v549_v47 = vshra.s32 %v229_v27, 16  ;;  %v550_v48 = vshra.s32 %v230_v28, 16 }
  0x8a   : > { %1824 = vst [vmem:[%s6693_s25 + $0x218] sm:$0xff] %v1504_v41  ;;  %1825 = vst [vmem:[%s6693_s25 + $0x220] sm:$0xff] %v1505_v42  ;;  %v1508_v50 = vmul.f32 0.003921569, %v1187_v44  ;;  %v551_v51 = vshra.s32 %v231_v29, 16  ;;  %v552_v52 = vshra.s32 %v232_v34, 16 }
  0x8b   : > { %1826 = vst [vmem:[%s6693_s25 + $0x228] sm:$0xff] %v1506_v43  ;;  %v553_v53 = vshra.s32 %v233_v35, 16  ;;  %1827 = vst [vmem:[%s6693_s25 + $0x230] sm:$0xff] %v1507_v45  ;;  %v868_v54 = vand.u32 255, %v548_v46  ;;  %v869_v55 = vand.u32 255, %v549_v47  ;;  %v870_v56 = vand.u32 255, %v550_v48 }
  0x8c   : > { %v554_v57 = vshra.s32 %v234_v36, 16  ;;  %1828 = vst [vmem:[%s6693_s25 + $0x238] sm:$0xff] %v1508_v50  ;;  %v871_v58 = vand.u32 255, %v551_v51  ;;  %v872_v59 = vand.u32 255, %v552_v52  ;;  %v555_v61 = vshra.s32 %v235_v49, 16  ;;  %v244_v38 = vld [vmem:[%s6669_s4 + $0x2c0] sm:$0xff] }
  0x8d   : > { %v873_v60 = vand.u32 255, %v553_v53  ;;  %v1188_v63 = vcvt.s32.f32 %v868_v54  ;;  %v1189_v0 = vcvt.s32.f32 %v869_v55  ;;  %v1190_v1 = vcvt.s32.f32 %v870_v56  ;;  %v245_v43 = vld [vmem:[%s6669_s4 + $0x2c8] sm:$0xff]  ;;  %v246_v44 = vld [vmem:[%s6669_s4 + $0x2d0] sm:$0xff]  ;;  %v247_v45 = vld [vmem:[%s6669_s4 + $0x2d8] sm:$0xff] }
  0x8e   : > { %v874_v2 = vand.u32 255, %v554_v57  ;;  %v1191_v6 = vcvt.s32.f32 %v871_v58  ;;  %v1192_v7 = vcvt.s32.f32 %v872_v59  ;;  %v875_v9 = vand.u32 255, %v555_v61  ;;  %v248_v50 = vld [vmem:[%s6669_s4 + $0x2e0] sm:$0xff]  ;;  %v249_v51 = vld [vmem:[%s6669_s4 + $0x2e8] sm:$0xff]  ;;  %v250_v52 = vld [vmem:[%s6669_s4 + $0x2f0] sm:$0xff] }
  0x8f   : > { %v1193_v8 = vcvt.s32.f32 %v873_v60  ;;  %v1509_v13 = vmul.f32 0.003921569, %v1188_v63  ;;  %v1510_v14 = vmul.f32 0.003921569, %v1189_v0  ;;  %v1511_v15 = vmul.f32 0.003921569, %v1190_v1 }
  0x90   : > { %v1194_v16 = vcvt.s32.f32 %v874_v2  ;;  %v1512_v17 = vmul.f32 0.003921569, %v1191_v6  ;;  %v1513_v18 = vmul.f32 0.003921569, %v1192_v7  ;;  %v1195_v20 = vcvt.s32.f32 %v875_v9  ;;  %v251_v1 = vld [vmem:[%s6669_s4 + $0x2f8] sm:$0xff] }
  0x91   : > { %v1514_v19 = vmul.f32 0.003921569, %v1193_v8  ;;  %1829 = vst [vmem:[%s6693_s25 + $0x240] sm:$0xff] %v1509_v13  ;;  %1830 = vst [vmem:[%s6693_s25 + $0x248] sm:$0xff] %v1510_v14  ;;  %v556_v22 = vshra.s32 %v236_v62, 16  ;;  %v557_v23 = vshra.s32 %v237_v3, 16 }
  0x92   : > { %1831 = vst [vmem:[%s6693_s25 + $0x250] sm:$0xff] %v1511_v15  ;;  %v1515_v21 = vmul.f32 0.003921569, %v1194_v16  ;;  %v558_v24 = vshra.s32 %v238_v4, 16  ;;  %1832 = vst [vmem:[%s6693_s25 + $0x258] sm:$0xff] %v1512_v17  ;;  %v559_v27 = vshra.s32 %v239_v5, 16 }
  0x93   : > { %1833 = vst [vmem:[%s6693_s25 + $0x260] sm:$0xff] %v1513_v18  ;;  %1834 = vst [vmem:[%s6693_s25 + $0x268] sm:$0xff] %v1514_v19  ;;  %v1516_v26 = vmul.f32 0.003921569, %v1195_v20  ;;  %v560_v28 = vshra.s32 %v240_v10, 16  ;;  %v561_v29 = vshra.s32 %v241_v11, 16 }
  0x94   : > { %1835 = vst [vmem:[%s6693_s25 + $0x270] sm:$0xff] %v1515_v21  ;;  %v876_v30 = vand.u32 255, %v556_v22  ;;  %v877_v31 = vand.u32 255, %v557_v23  ;;  %v878_v32 = vand.u32 255, %v558_v24  ;;  %v562_v33 = vshra.s32 %v242_v12, 16  ;;  %v252_v14 = vld [vmem:[%s6669_s4 + $0x300] sm:$0xff] }
  0x95   : > { %1836 = vst [vmem:[%s6693_s25 + $0x278] sm:$0xff] %v1516_v26  ;;  %v879_v34 = vand.u32 255, %v559_v27  ;;  %v880_v35 = vand.u32 255, %v560_v28  ;;  %v881_v36 = vand.u32 255, %v561_v29  ;;  %v563_v37 = vshra.s32 %v243_v25, 16  ;;  %v253_v19 = vld [vmem:[%s6669_s4 + $0x308] sm:$0xff] }
  0x96   : > { %v1196_v39 = vcvt.s32.f32 %v876_v30  ;;  %v1197_v40 = vcvt.s32.f32 %v877_v31  ;;  %v1198_v41 = vcvt.s32.f32 %v878_v32  ;;  %v882_v42 = vand.u32 255, %v562_v33  ;;  %v254_v20 = vld [vmem:[%s6669_s4 + $0x310] sm:$0xff]  ;;  %v255_v21 = vld [vmem:[%s6669_s4 + $0x318] sm:$0xff]  ;;  %v256_v26 = vld [vmem:[%s6669_s4 + $0x320] sm:$0xff] }
  0x97   : > { %v1199_v46 = vcvt.s32.f32 %v879_v34  ;;  %v1200_v47 = vcvt.s32.f32 %v880_v35  ;;  %v1201_v48 = vcvt.s32.f32 %v881_v36  ;;  %v883_v49 = vand.u32 255, %v563_v37  ;;  %v257_v27 = vld [vmem:[%s6669_s4 + $0x328] sm:$0xff]  ;;  %v258_v28 = vld [vmem:[%s6669_s4 + $0x330] sm:$0xff] }
  0x98   : > { %v1517_v53 = vmul.f32 0.003921569, %v1196_v39  ;;  %v1518_v54 = vmul.f32 0.003921569, %v1197_v40  ;;  %v1519_v55 = vmul.f32 0.003921569, %v1198_v41  ;;  %v1202_v56 = vcvt.s32.f32 %v882_v42 }
  0x99   : > { %v1520_v57 = vmul.f32 0.003921569, %v1199_v46  ;;  %v1521_v58 = vmul.f32 0.003921569, %v1200_v47  ;;  %v1522_v59 = vmul.f32 0.003921569, %v1201_v48  ;;  %v1203_v60 = vcvt.s32.f32 %v883_v49 }
  0x9a   : > { %1837 = vst [vmem:[%s6693_s25 + $0x280] sm:$0xff] %v1517_v53  ;;  %1838 = vst [vmem:[%s6693_s25 + $0x288] sm:$0xff] %v1518_v54  ;;  %v1523_v61 = vmul.f32 0.003921569, %v1202_v56  ;;  %v564_v62 = vshra.s32 %v244_v38, 16  ;;  %v565_v63 = vshra.s32 %v245_v43, 16 }
  0x9b   : > { %1839 = vst [vmem:[%s6693_s25 + $0x290] sm:$0xff] %v1519_v55  ;;  %v566_v0 = vshra.s32 %v246_v44, 16  ;;  %1840 = vst [vmem:[%s6693_s25 + $0x298] sm:$0xff] %v1520_v57  ;;  %v1524_v2 = vmul.f32 0.003921569, %v1203_v60  ;;  %v567_v3 = vshra.s32 %v247_v45, 16 }
  0x9c   : > { %1841 = vst [vmem:[%s6693_s25 + $0x2a0] sm:$0xff] %v1521_v58  ;;  %1842 = vst [vmem:[%s6693_s25 + $0x2a8] sm:$0xff] %v1522_v59  ;;  %v568_v4 = vshra.s32 %v248_v50, 16  ;;  %v569_v5 = vshra.s32 %v249_v51, 16  ;;  %v884_v6 = vand.u32 255, %v564_v62  ;;  %v885_v7 = vand.u32 255, %v565_v63 }
  0x9d   : > { %1843 = vst [vmem:[%s6693_s25 + $0x2b0] sm:$0xff] %v1523_v61  ;;  %v886_v8 = vand.u32 255, %v566_v0  ;;  %v570_v9 = vshra.s32 %v250_v52, 16  ;;  %1844 = vst [vmem:[%s6693_s25 + $0x2b8] sm:$0xff] %v1524_v2  ;;  %v887_v10 = vand.u32 255, %v567_v3  ;;  %v571_v13 = vshra.s32 %v251_v1, 16 }
  0x9e   : > { %v888_v11 = vand.u32 255, %v568_v4  ;;  %v889_v12 = vand.u32 255, %v569_v5  ;;  %v1204_v15 = vcvt.s32.f32 %v884_v6  ;;  %v1205_v16 = vcvt.s32.f32 %v885_v7  ;;  %v259_v41 = vld [vmem:[%s6669_s4 + $0x338] sm:$0xff]  ;;  %v260_v54 = vld [vmem:[%s6669_s4 + $0x340] sm:$0xff]  ;;  %v261_v59 = vld [vmem:[%s6669_s4 + $0x348] sm:$0xff] }
  0x9f   : > { %v1206_v17 = vcvt.s32.f32 %v886_v8  ;;  %v890_v18 = vand.u32 255, %v570_v9  ;;  %v1207_v22 = vcvt.s32.f32 %v887_v10  ;;  %v891_v25 = vand.u32 255, %v571_v13  ;;  %v262_v60 = vld [vmem:[%s6669_s4 + $0x350] sm:$0xff]  ;;  %v263_v61 = vld [vmem:[%s6669_s4 + $0x358] sm:$0xff]  ;;  %v264_v2 = vld [vmem:[%s6669_s4 + $0x360] sm:$0xff] }
  0xa0   : > { %v1208_v23 = vcvt.s32.f32 %v888_v11  ;;  %v1209_v24 = vcvt.s32.f32 %v889_v12  ;;  %v1525_v29 = vmul.f32 0.003921569, %v1204_v15  ;;  %v1526_v30 = vmul.f32 0.003921569, %v1205_v16  ;;  %v265_v3 = vld [vmem:[%s6669_s4 + $0x368] sm:$0xff]  ;;  %v266_v4 = vld [vmem:[%s6669_s4 + $0x370] sm:$0xff] }
  0xa1   : > { %v1527_v31 = vmul.f32 0.003921569, %v1206_v17  ;;  %v1210_v32 = vcvt.s32.f32 %v890_v18  ;;  %v1528_v33 = vmul.f32 0.003921569, %v1207_v22  ;;  %v1211_v36 = vcvt.s32.f32 %v891_v25  ;;  %v267_v17 = vld [vmem:[%s6669_s4 + $0x378] sm:$0xff] }
  0xa2   : > { %v1529_v34 = vmul.f32 0.003921569, %v1208_v23  ;;  %v1530_v35 = vmul.f32 0.003921569, %v1209_v24  ;;  %1845 = vst [vmem:[%s6693_s25 + $0x2c0] sm:$0xff] %v1525_v29  ;;  %1846 = vst [vmem:[%s6693_s25 + $0x2c8] sm:$0xff] %v1526_v30 }
  0xa3   : > { %1847 = vst [vmem:[%s6693_s25 + $0x2d0] sm:$0xff] %v1527_v31  ;;  %v1531_v37 = vmul.f32 0.003921569, %v1210_v32  ;;  %v572_v38 = vshra.s32 %v252_v14, 16  ;;  %v573_v39 = vshra.s32 %v253_v19, 16  ;;  %v574_v40 = vshra.s32 %v254_v20, 16 }
  0xa4   : > { %1848 = vst [vmem:[%s6693_s25 + $0x2d8] sm:$0xff] %v1528_v33  ;;  %1849 = vst [vmem:[%s6693_s25 + $0x2e0] sm:$0xff] %v1529_v34  ;;  %v1532_v42 = vmul.f32 0.003921569, %v1211_v36  ;;  %v575_v43 = vshra.s32 %v255_v21, 16  ;;  %v576_v44 = vshra.s32 %v256_v26, 16 }
  0xa5   : > { %1850 = vst [vmem:[%s6693_s25 + $0x2e8] sm:$0xff] %v1530_v35  ;;  %v577_v45 = vshra.s32 %v257_v27, 16  ;;  %1851 = vst [vmem:[%s6693_s25 + $0x2f0] sm:$0xff] %v1531_v37  ;;  %v892_v46 = vand.u32 255, %v572_v38  ;;  %v893_v47 = vand.u32 255, %v573_v39  ;;  %v894_v48 = vand.u32 255, %v574_v40 }
  0xa6   : > { %v578_v49 = vshra.s32 %v258_v28, 16  ;;  %1852 = vst [vmem:[%s6693_s25 + $0x2f8] sm:$0xff] %v1532_v42  ;;  %v895_v50 = vand.u32 255, %v575_v43  ;;  %v896_v51 = vand.u32 255, %v576_v44  ;;  %v579_v53 = vshra.s32 %v259_v41, 16  ;;  %v268_v30 = vld [vmem:[%s6669_s4 + $0x380] sm:$0xff] }
  0xa7   : > { %v897_v52 = vand.u32 255, %v577_v45  ;;  %v1212_v55 = vcvt.s32.f32 %v892_v46  ;;  %v1213_v56 = vcvt.s32.f32 %v893_v47  ;;  %v1214_v57 = vcvt.s32.f32 %v894_v48  ;;  %v269_v35 = vld [vmem:[%s6669_s4 + $0x388] sm:$0xff]  ;;  %v270_v36 = vld [vmem:[%s6669_s4 + $0x390] sm:$0xff]  ;;  %v271_v37 = vld [vmem:[%s6669_s4 + $0x398] sm:$0xff] }
  0xa8   : > { %v898_v58 = vand.u32 255, %v578_v49  ;;  %v1215_v62 = vcvt.s32.f32 %v895_v50  ;;  %v1216_v63 = vcvt.s32.f32 %v896_v51  ;;  %v899_v1 = vand.u32 255, %v579_v53  ;;  %v272_v42 = vld [vmem:[%s6669_s4 + $0x3a0] sm:$0xff]  ;;  %v273_v43 = vld [vmem:[%s6669_s4 + $0x3a8] sm:$0xff]  ;;  %v274_v44 = vld [vmem:[%s6669_s4 + $0x3b0] sm:$0xff] }
  0xa9   : > { %v1217_v0 = vcvt.s32.f32 %v897_v52  ;;  %v1533_v5 = vmul.f32 0.003921569, %v1212_v55  ;;  %v1534_v6 = vmul.f32 0.003921569, %v1213_v56  ;;  %v1535_v7 = vmul.f32 0.003921569, %v1214_v57 }
  0xaa   : > { %v1218_v8 = vcvt.s32.f32 %v898_v58  ;;  %v1536_v9 = vmul.f32 0.003921569, %v1215_v62  ;;  %v1537_v10 = vmul.f32 0.003921569, %v1216_v63  ;;  %v1219_v12 = vcvt.s32.f32 %v899_v1  ;;  %v275_v57 = vld [vmem:[%s6669_s4 + $0x3b8] sm:$0xff] }
  0xab   : > { %v1538_v11 = vmul.f32 0.003921569, %v1217_v0  ;;  %1853 = vst [vmem:[%s6693_s25 + $0x300] sm:$0xff] %v1533_v5  ;;  %1854 = vst [vmem:[%s6693_s25 + $0x308] sm:$0xff] %v1534_v6  ;;  %v580_v14 = vshra.s32 %v260_v54, 16  ;;  %v581_v15 = vshra.s32 %v261_v59, 16 }
  0xac   : > { %1855 = vst [vmem:[%s6693_s25 + $0x310] sm:$0xff] %v1535_v7  ;;  %v1539_v13 = vmul.f32 0.003921569, %v1218_v8  ;;  %v582_v16 = vshra.s32 %v262_v60, 16  ;;  %1856 = vst [vmem:[%s6693_s25 + $0x318] sm:$0xff] %v1536_v9  ;;  %v583_v19 = vshra.s32 %v263_v61, 16 }
  0xad   : > { %1857 = vst [vmem:[%s6693_s25 + $0x320] sm:$0xff] %v1537_v10  ;;  %1858 = vst [vmem:[%s6693_s25 + $0x328] sm:$0xff] %v1538_v11  ;;  %v1540_v18 = vmul.f32 0.003921569, %v1219_v12  ;;  %v584_v20 = vshra.s32 %v264_v2, 16  ;;  %v585_v21 = vshra.s32 %v265_v3, 16 }
  0xae   : > { %1859 = vst [vmem:[%s6693_s25 + $0x330] sm:$0xff] %v1539_v13  ;;  %v900_v22 = vand.u32 255, %v580_v14  ;;  %v901_v23 = vand.u32 255, %v581_v15  ;;  %v902_v24 = vand.u32 255, %v582_v16  ;;  %v586_v25 = vshra.s32 %v266_v4, 16  ;;  %v276_v6 = vld [vmem:[%s6669_s4 + $0x3c0] sm:$0xff] }
  0xaf   : > { %1860 = vst [vmem:[%s6693_s25 + $0x338] sm:$0xff] %v1540_v18  ;;  %v903_v26 = vand.u32 255, %v583_v19  ;;  %v904_v27 = vand.u32 255, %v584_v20  ;;  %v905_v28 = vand.u32 255, %v585_v21  ;;  %v587_v29 = vshra.s32 %v267_v17, 16  ;;  %v277_v11 = vld [vmem:[%s6669_s4 + $0x3c8] sm:$0xff] }
  0xb0   : > { %v1220_v31 = vcvt.s32.f32 %v900_v22  ;;  %v1221_v32 = vcvt.s32.f32 %v901_v23  ;;  %v1222_v33 = vcvt.s32.f32 %v902_v24  ;;  %v906_v34 = vand.u32 255, %v586_v25  ;;  %v278_v12 = vld [vmem:[%s6669_s4 + $0x3d0] sm:$0xff]  ;;  %v279_v13 = vld [vmem:[%s6669_s4 + $0x3d8] sm:$0xff]  ;;  %v280_v18 = vld [vmem:[%s6669_s4 + $0x3e0] sm:$0xff] }
  0xb1   : > { %v1223_v38 = vcvt.s32.f32 %v903_v26  ;;  %v1224_v39 = vcvt.s32.f32 %v904_v27  ;;  %v1225_v40 = vcvt.s32.f32 %v905_v28  ;;  %v907_v41 = vand.u32 255, %v587_v29  ;;  %v281_v19 = vld [vmem:[%s6669_s4 + $0x3e8] sm:$0xff]  ;;  %v282_v20 = vld [vmem:[%s6669_s4 + $0x3f0] sm:$0xff] }
  0xb2   : > { %v1541_v45 = vmul.f32 0.003921569, %v1220_v31  ;;  %v1542_v46 = vmul.f32 0.003921569, %v1221_v32  ;;  %v1543_v47 = vmul.f32 0.003921569, %v1222_v33  ;;  %v1226_v48 = vcvt.s32.f32 %v906_v34 }
  0xb3   : > { %v1544_v49 = vmul.f32 0.003921569, %v1223_v38  ;;  %v1545_v50 = vmul.f32 0.003921569, %v1224_v39  ;;  %v1546_v51 = vmul.f32 0.003921569, %v1225_v40  ;;  %v1227_v52 = vcvt.s32.f32 %v907_v41 }
  0xb4   : > { %1861 = vst [vmem:[%s6693_s25 + $0x340] sm:$0xff] %v1541_v45  ;;  %1862 = vst [vmem:[%s6693_s25 + $0x348] sm:$0xff] %v1542_v46  ;;  %v1547_v53 = vmul.f32 0.003921569, %v1226_v48  ;;  %v588_v54 = vshra.s32 %v268_v30, 16  ;;  %v589_v55 = vshra.s32 %v269_v35, 16 }
  0xb5   : > { %1863 = vst [vmem:[%s6693_s25 + $0x350] sm:$0xff] %v1543_v47  ;;  %v590_v56 = vshra.s32 %v270_v36, 16  ;;  %1864 = vst [vmem:[%s6693_s25 + $0x358] sm:$0xff] %v1544_v49  ;;  %v1548_v58 = vmul.f32 0.003921569, %v1227_v52  ;;  %v591_v59 = vshra.s32 %v271_v37, 16 }
  0xb6   : > { %1865 = vst [vmem:[%s6693_s25 + $0x360] sm:$0xff] %v1545_v50  ;;  %1866 = vst [vmem:[%s6693_s25 + $0x368] sm:$0xff] %v1546_v51  ;;  %v592_v60 = vshra.s32 %v272_v42, 16  ;;  %v593_v61 = vshra.s32 %v273_v43, 16  ;;  %v908_v62 = vand.u32 255, %v588_v54  ;;  %v909_v63 = vand.u32 255, %v589_v55 }
  0xb7   : > { %1867 = vst [vmem:[%s6693_s25 + $0x370] sm:$0xff] %v1547_v53  ;;  %v910_v0 = vand.u32 255, %v590_v56  ;;  %v594_v1 = vshra.s32 %v274_v44, 16  ;;  %1868 = vst [vmem:[%s6693_s25 + $0x378] sm:$0xff] %v1548_v58  ;;  %v911_v2 = vand.u32 255, %v591_v59  ;;  %v595_v5 = vshra.s32 %v275_v57, 16 }
  0xb8   : > { %v912_v3 = vand.u32 255, %v592_v60  ;;  %v913_v4 = vand.u32 255, %v593_v61  ;;  %v1228_v7 = vcvt.s32.f32 %v908_v62  ;;  %v1229_v8 = vcvt.s32.f32 %v909_v63  ;;  %v283_v33 = vld [vmem:[%s6669_s4 + $0x3f8] sm:$0xff]  ;;  %v284_v46 = vld [vmem:[%s6669_s4 + $0x400] sm:$0xff]  ;;  %v285_v51 = vld [vmem:[%s6669_s4 + $0x408] sm:$0xff] }
  0xb9   : > { %v1230_v9 = vcvt.s32.f32 %v910_v0  ;;  %v914_v10 = vand.u32 255, %v594_v1  ;;  %v1231_v14 = vcvt.s32.f32 %v911_v2  ;;  %v915_v17 = vand.u32 255, %v595_v5  ;;  %v286_v52 = vld [vmem:[%s6669_s4 + $0x410] sm:$0xff]  ;;  %v287_v53 = vld [vmem:[%s6669_s4 + $0x418] sm:$0xff]  ;;  %v288_v58 = vld [vmem:[%s6669_s4 + $0x420] sm:$0xff] }
  0xba   : > { %v1232_v15 = vcvt.s32.f32 %v912_v3  ;;  %v1233_v16 = vcvt.s32.f32 %v913_v4  ;;  %v1549_v21 = vmul.f32 0.003921569, %v1228_v7  ;;  %v1550_v22 = vmul.f32 0.003921569, %v1229_v8  ;;  %v289_v59 = vld [vmem:[%s6669_s4 + $0x428] sm:$0xff]  ;;  %v290_v60 = vld [vmem:[%s6669_s4 + $0x430] sm:$0xff] }
  0xbb   : > { %v1551_v23 = vmul.f32 0.003921569, %v1230_v9  ;;  %v1234_v24 = vcvt.s32.f32 %v914_v10  ;;  %v1552_v25 = vmul.f32 0.003921569, %v1231_v14  ;;  %v1235_v28 = vcvt.s32.f32 %v915_v17  ;;  %v291_v9 = vld [vmem:[%s6669_s4 + $0x438] sm:$0xff] }
  0xbc   : > { %v1553_v26 = vmul.f32 0.003921569, %v1232_v15  ;;  %v1554_v27 = vmul.f32 0.003921569, %v1233_v16  ;;  %1869 = vst [vmem:[%s6693_s25 + $0x380] sm:$0xff] %v1549_v21  ;;  %1870 = vst [vmem:[%s6693_s25 + $0x388] sm:$0xff] %v1550_v22 }
  0xbd   : > { %1871 = vst [vmem:[%s6693_s25 + $0x390] sm:$0xff] %v1551_v23  ;;  %v1555_v29 = vmul.f32 0.003921569, %v1234_v24  ;;  %v596_v30 = vshra.s32 %v276_v6, 16  ;;  %v597_v31 = vshra.s32 %v277_v11, 16  ;;  %v598_v32 = vshra.s32 %v278_v12, 16 }
  0xbe   : > { %1872 = vst [vmem:[%s6693_s25 + $0x398] sm:$0xff] %v1552_v25  ;;  %1873 = vst [vmem:[%s6693_s25 + $0x3a0] sm:$0xff] %v1553_v26  ;;  %v1556_v34 = vmul.f32 0.003921569, %v1235_v28  ;;  %v599_v35 = vshra.s32 %v279_v13, 16  ;;  %v600_v36 = vshra.s32 %v280_v18, 16 }
  0xbf   : > { %1874 = vst [vmem:[%s6693_s25 + $0x3a8] sm:$0xff] %v1554_v27  ;;  %v601_v37 = vshra.s32 %v281_v19, 16  ;;  %1875 = vst [vmem:[%s6693_s25 + $0x3b0] sm:$0xff] %v1555_v29  ;;  %v916_v38 = vand.u32 255, %v596_v30  ;;  %v917_v39 = vand.u32 255, %v597_v31  ;;  %v918_v40 = vand.u32 255, %v598_v32 }
  0xc0   : > { %v602_v41 = vshra.s32 %v282_v20, 16  ;;  %1876 = vst [vmem:[%s6693_s25 + $0x3b8] sm:$0xff] %v1556_v34  ;;  %v919_v42 = vand.u32 255, %v599_v35  ;;  %v920_v43 = vand.u32 255, %v600_v36  ;;  %v603_v45 = vshra.s32 %v283_v33, 16  ;;  %v292_v22 = vld [vmem:[%s6669_s4 + $0x440] sm:$0xff] }
  0xc1   : > { %v921_v44 = vand.u32 255, %v601_v37  ;;  %v1236_v47 = vcvt.s32.f32 %v916_v38  ;;  %v1237_v48 = vcvt.s32.f32 %v917_v39  ;;  %v1238_v49 = vcvt.s32.f32 %v918_v40  ;;  %v293_v27 = vld [vmem:[%s6669_s4 + $0x448] sm:$0xff]  ;;  %v294_v28 = vld [vmem:[%s6669_s4 + $0x450] sm:$0xff]  ;;  %v295_v29 = vld [vmem:[%s6669_s4 + $0x458] sm:$0xff] }
  0xc2   : > { %v922_v50 = vand.u32 255, %v602_v41  ;;  %v1239_v54 = vcvt.s32.f32 %v919_v42  ;;  %v1240_v55 = vcvt.s32.f32 %v920_v43  ;;  %v923_v57 = vand.u32 255, %v603_v45  ;;  %v296_v34 = vld [vmem:[%s6669_s4 + $0x460] sm:$0xff]  ;;  %v297_v35 = vld [vmem:[%s6669_s4 + $0x468] sm:$0xff]  ;;  %v298_v36 = vld [vmem:[%s6669_s4 + $0x470] sm:$0xff] }
  0xc3   : > { %v1241_v56 = vcvt.s32.f32 %v921_v44  ;;  %v1557_v61 = vmul.f32 0.003921569, %v1236_v47  ;;  %v1558_v62 = vmul.f32 0.003921569, %v1237_v48  ;;  %v1559_v63 = vmul.f32 0.003921569, %v1238_v49 }
  0xc4   : > { %v1242_v0 = vcvt.s32.f32 %v922_v50  ;;  %v1560_v1 = vmul.f32 0.003921569, %v1239_v54  ;;  %v1561_v2 = vmul.f32 0.003921569, %v1240_v55  ;;  %v1243_v4 = vcvt.s32.f32 %v923_v57  ;;  %v299_v49 = vld [vmem:[%s6669_s4 + $0x478] sm:$0xff] }
  0xc5   : > { %v1562_v3 = vmul.f32 0.003921569, %v1241_v56  ;;  %1877 = vst [vmem:[%s6693_s25 + $0x3c0] sm:$0xff] %v1557_v61  ;;  %1878 = vst [vmem:[%s6693_s25 + $0x3c8] sm:$0xff] %v1558_v62  ;;  %v604_v6 = vshra.s32 %v284_v46, 16  ;;  %v605_v7 = vshra.s32 %v285_v51, 16 }
  0xc6   : > { %1879 = vst [vmem:[%s6693_s25 + $0x3d0] sm:$0xff] %v1559_v63  ;;  %v1563_v5 = vmul.f32 0.003921569, %v1242_v0  ;;  %v606_v8 = vshra.s32 %v286_v52, 16  ;;  %1880 = vst [vmem:[%s6693_s25 + $0x3d8] sm:$0xff] %v1560_v1  ;;  %v607_v11 = vshra.s32 %v287_v53, 16 }
  0xc7   : > { %1881 = vst [vmem:[%s6693_s25 + $0x3e0] sm:$0xff] %v1561_v2  ;;  %1882 = vst [vmem:[%s6693_s25 + $0x3e8] sm:$0xff] %v1562_v3  ;;  %v1564_v10 = vmul.f32 0.003921569, %v1243_v4  ;;  %v608_v12 = vshra.s32 %v288_v58, 16  ;;  %v609_v13 = vshra.s32 %v289_v59, 16 }
  0xc8   : > { %1883 = vst [vmem:[%s6693_s25 + $0x3f0] sm:$0xff] %v1563_v5  ;;  %v924_v14 = vand.u32 255, %v604_v6  ;;  %v925_v15 = vand.u32 255, %v605_v7  ;;  %v926_v16 = vand.u32 255, %v606_v8  ;;  %v610_v17 = vshra.s32 %v290_v60, 16  ;;  %v300_v62 = vld [vmem:[%s6669_s4 + $0x480] sm:$0xff] }
  0xc9   : > { %1884 = vst [vmem:[%s6693_s25 + $0x3f8] sm:$0xff] %v1564_v10  ;;  %v927_v18 = vand.u32 255, %v607_v11  ;;  %v928_v19 = vand.u32 255, %v608_v12  ;;  %v929_v20 = vand.u32 255, %v609_v13  ;;  %v611_v21 = vshra.s32 %v291_v9, 16  ;;  %v301_v3 = vld [vmem:[%s6669_s4 + $0x488] sm:$0xff] }
  0xca   : > { %v1244_v23 = vcvt.s32.f32 %v924_v14  ;;  %v1245_v24 = vcvt.s32.f32 %v925_v15  ;;  %v1246_v25 = vcvt.s32.f32 %v926_v16  ;;  %v930_v26 = vand.u32 255, %v610_v17  ;;  %v302_v4 = vld [vmem:[%s6669_s4 + $0x490] sm:$0xff]  ;;  %v303_v5 = vld [vmem:[%s6669_s4 + $0x498] sm:$0xff]  ;;  %v304_v10 = vld [vmem:[%s6669_s4 + $0x4a0] sm:$0xff] }
  0xcb   : > { %v1247_v30 = vcvt.s32.f32 %v927_v18  ;;  %v1248_v31 = vcvt.s32.f32 %v928_v19  ;;  %v1249_v32 = vcvt.s32.f32 %v929_v20  ;;  %v931_v33 = vand.u32 255, %v611_v21  ;;  %v305_v11 = vld [vmem:[%s6669_s4 + $0x4a8] sm:$0xff]  ;;  %v306_v12 = vld [vmem:[%s6669_s4 + $0x4b0] sm:$0xff] }
  0xcc   : > { %v1565_v37 = vmul.f32 0.003921569, %v1244_v23  ;;  %v1566_v38 = vmul.f32 0.003921569, %v1245_v24  ;;  %v1567_v39 = vmul.f32 0.003921569, %v1246_v25  ;;  %v1250_v40 = vcvt.s32.f32 %v930_v26 }
  0xcd   : > { %v1568_v41 = vmul.f32 0.003921569, %v1247_v30  ;;  %v1569_v42 = vmul.f32 0.003921569, %v1248_v31  ;;  %v1570_v43 = vmul.f32 0.003921569, %v1249_v32  ;;  %v1251_v44 = vcvt.s32.f32 %v931_v33 }
  0xce   : > { %1885 = vst [vmem:[%s6693_s25 + $0x400] sm:$0xff] %v1565_v37  ;;  %1886 = vst [vmem:[%s6693_s25 + $0x408] sm:$0xff] %v1566_v38  ;;  %v1571_v45 = vmul.f32 0.003921569, %v1250_v40  ;;  %v612_v46 = vshra.s32 %v292_v22, 16  ;;  %v613_v47 = vshra.s32 %v293_v27, 16 }
  0xcf   : > { %1887 = vst [vmem:[%s6693_s25 + $0x410] sm:$0xff] %v1567_v39  ;;  %v614_v48 = vshra.s32 %v294_v28, 16  ;;  %1888 = vst [vmem:[%s6693_s25 + $0x418] sm:$0xff] %v1568_v41  ;;  %v1572_v50 = vmul.f32 0.003921569, %v1251_v44  ;;  %v615_v51 = vshra.s32 %v295_v29, 16 }
  0xd0   : > { %1889 = vst [vmem:[%s6693_s25 + $0x420] sm:$0xff] %v1569_v42  ;;  %1890 = vst [vmem:[%s6693_s25 + $0x428] sm:$0xff] %v1570_v43  ;;  %v616_v52 = vshra.s32 %v296_v34, 16  ;;  %v617_v53 = vshra.s32 %v297_v35, 16  ;;  %v932_v54 = vand.u32 255, %v612_v46  ;;  %v933_v55 = vand.u32 255, %v613_v47 }
  0xd1   : > { %1891 = vst [vmem:[%s6693_s25 + $0x430] sm:$0xff] %v1571_v45  ;;  %v934_v56 = vand.u32 255, %v614_v48  ;;  %v618_v57 = vshra.s32 %v298_v36, 16  ;;  %1892 = vst [vmem:[%s6693_s25 + $0x438] sm:$0xff] %v1572_v50  ;;  %v935_v58 = vand.u32 255, %v615_v51  ;;  %v619_v61 = vshra.s32 %v299_v49, 16 }
  0xd2   : > { %v936_v59 = vand.u32 255, %v616_v52  ;;  %v937_v60 = vand.u32 255, %v617_v53  ;;  %v1252_v63 = vcvt.s32.f32 %v932_v54  ;;  %v1253_v0 = vcvt.s32.f32 %v933_v55  ;;  %v307_v25 = vld [vmem:[%s6669_s4 + $0x4b8] sm:$0xff]  ;;  %v308_v38 = vld [vmem:[%s6669_s4 + $0x4c0] sm:$0xff]  ;;  %v309_v43 = vld [vmem:[%s6669_s4 + $0x4c8] sm:$0xff] }
  0xd3   : > { %v1254_v1 = vcvt.s32.f32 %v934_v56  ;;  %v938_v2 = vand.u32 255, %v618_v57  ;;  %v1255_v6 = vcvt.s32.f32 %v935_v58  ;;  %v939_v9 = vand.u32 255, %v619_v61  ;;  %v310_v44 = vld [vmem:[%s6669_s4 + $0x4d0] sm:$0xff]  ;;  %v311_v45 = vld [vmem:[%s6669_s4 + $0x4d8] sm:$0xff]  ;;  %v312_v50 = vld [vmem:[%s6669_s4 + $0x4e0] sm:$0xff] }
  0xd4   : > { %v1256_v7 = vcvt.s32.f32 %v936_v59  ;;  %v1257_v8 = vcvt.s32.f32 %v937_v60  ;;  %v1573_v13 = vmul.f32 0.003921569, %v1252_v63  ;;  %v1574_v14 = vmul.f32 0.003921569, %v1253_v0  ;;  %v313_v51 = vld [vmem:[%s6669_s4 + $0x4e8] sm:$0xff]  ;;  %v314_v52 = vld [vmem:[%s6669_s4 + $0x4f0] sm:$0xff] }
  0xd5   : > { %v1575_v15 = vmul.f32 0.003921569, %v1254_v1  ;;  %v1258_v16 = vcvt.s32.f32 %v938_v2  ;;  %v1576_v17 = vmul.f32 0.003921569, %v1255_v6  ;;  %v1259_v20 = vcvt.s32.f32 %v939_v9  ;;  %v315_v1 = vld [vmem:[%s6669_s4 + $0x4f8] sm:$0xff] }
  0xd6   : > { %v1577_v18 = vmul.f32 0.003921569, %v1256_v7  ;;  %v1578_v19 = vmul.f32 0.003921569, %v1257_v8  ;;  %1893 = vst [vmem:[%s6693_s25 + $0x440] sm:$0xff] %v1573_v13  ;;  %1894 = vst [vmem:[%s6693_s25 + $0x448] sm:$0xff] %v1574_v14 }
  0xd7   : > { %1895 = vst [vmem:[%s6693_s25 + $0x450] sm:$0xff] %v1575_v15  ;;  %v1579_v21 = vmul.f32 0.003921569, %v1258_v16  ;;  %v620_v22 = vshra.s32 %v300_v62, 16  ;;  %v621_v23 = vshra.s32 %v301_v3, 16  ;;  %v622_v24 = vshra.s32 %v302_v4, 16 }
  0xd8   : > { %1896 = vst [vmem:[%s6693_s25 + $0x458] sm:$0xff] %v1576_v17  ;;  %1897 = vst [vmem:[%s6693_s25 + $0x460] sm:$0xff] %v1577_v18  ;;  %v1580_v26 = vmul.f32 0.003921569, %v1259_v20  ;;  %v623_v27 = vshra.s32 %v303_v5, 16  ;;  %v624_v28 = vshra.s32 %v304_v10, 16 }
  0xd9   : > { %1898 = vst [vmem:[%s6693_s25 + $0x468] sm:$0xff] %v1578_v19  ;;  %v625_v29 = vshra.s32 %v305_v11, 16  ;;  %1899 = vst [vmem:[%s6693_s25 + $0x470] sm:$0xff] %v1579_v21  ;;  %v940_v30 = vand.u32 255, %v620_v22  ;;  %v941_v31 = vand.u32 255, %v621_v23  ;;  %v942_v32 = vand.u32 255, %v622_v24 }
  0xda   : > { %v626_v33 = vshra.s32 %v306_v12, 16  ;;  %1900 = vst [vmem:[%s6693_s25 + $0x478] sm:$0xff] %v1580_v26  ;;  %v943_v34 = vand.u32 255, %v623_v27  ;;  %v944_v35 = vand.u32 255, %v624_v28  ;;  %v627_v37 = vshra.s32 %v307_v25, 16  ;;  %v316_v14 = vld [vmem:[%s6669_s4 + $0x500] sm:$0xff] }
  0xdb   : > { %v945_v36 = vand.u32 255, %v625_v29  ;;  %v1260_v39 = vcvt.s32.f32 %v940_v30  ;;  %v1261_v40 = vcvt.s32.f32 %v941_v31  ;;  %v1262_v41 = vcvt.s32.f32 %v942_v32  ;;  %v317_v19 = vld [vmem:[%s6669_s4 + $0x508] sm:$0xff]  ;;  %v318_v20 = vld [vmem:[%s6669_s4 + $0x510] sm:$0xff]  ;;  %v319_v21 = vld [vmem:[%s6669_s4 + $0x518] sm:$0xff] }
  0xdc   : > { %v946_v42 = vand.u32 255, %v626_v33  ;;  %v1263_v46 = vcvt.s32.f32 %v943_v34  ;;  %v1264_v47 = vcvt.s32.f32 %v944_v35  ;;  %v947_v49 = vand.u32 255, %v627_v37  ;;  %v320_v26 = vld [vmem:[%s6669_s4 + $0x520] sm:$0xff]  ;;  %v321_v27 = vld [vmem:[%s6669_s4 + $0x528] sm:$0xff]  ;;  %v322_v28 = vld [vmem:[%s6669_s4 + $0x530] sm:$0xff] }
  0xdd   : > { %v1265_v48 = vcvt.s32.f32 %v945_v36  ;;  %v1581_v53 = vmul.f32 0.003921569, %v1260_v39  ;;  %v1582_v54 = vmul.f32 0.003921569, %v1261_v40  ;;  %v1583_v55 = vmul.f32 0.003921569, %v1262_v41 }
  0xde   : > { %v1266_v56 = vcvt.s32.f32 %v946_v42  ;;  %v1584_v57 = vmul.f32 0.003921569, %v1263_v46  ;;  %v1585_v58 = vmul.f32 0.003921569, %v1264_v47  ;;  %v1267_v60 = vcvt.s32.f32 %v947_v49  ;;  %v323_v41 = vld [vmem:[%s6669_s4 + $0x538] sm:$0xff] }
  0xdf   : > { %v1586_v59 = vmul.f32 0.003921569, %v1265_v48  ;;  %1901 = vst [vmem:[%s6693_s25 + $0x480] sm:$0xff] %v1581_v53  ;;  %1902 = vst [vmem:[%s6693_s25 + $0x488] sm:$0xff] %v1582_v54  ;;  %v628_v62 = vshra.s32 %v308_v38, 16  ;;  %v629_v63 = vshra.s32 %v309_v43, 16 }
  0xe0   : > { %1903 = vst [vmem:[%s6693_s25 + $0x490] sm:$0xff] %v1583_v55  ;;  %v1587_v61 = vmul.f32 0.003921569, %v1266_v56  ;;  %v630_v0 = vshra.s32 %v310_v44, 16  ;;  %1904 = vst [vmem:[%s6693_s25 + $0x498] sm:$0xff] %v1584_v57  ;;  %v631_v3 = vshra.s32 %v311_v45, 16 }
  0xe1   : > { %1905 = vst [vmem:[%s6693_s25 + $0x4a0] sm:$0xff] %v1585_v58  ;;  %1906 = vst [vmem:[%s6693_s25 + $0x4a8] sm:$0xff] %v1586_v59  ;;  %v1588_v2 = vmul.f32 0.003921569, %v1267_v60  ;;  %v632_v4 = vshra.s32 %v312_v50, 16  ;;  %v633_v5 = vshra.s32 %v313_v51, 16 }
  0xe2   : > { %1907 = vst [vmem:[%s6693_s25 + $0x4b0] sm:$0xff] %v1587_v61  ;;  %v948_v6 = vand.u32 255, %v628_v62  ;;  %v949_v7 = vand.u32 255, %v629_v63  ;;  %v950_v8 = vand.u32 255, %v630_v0  ;;  %v634_v9 = vshra.s32 %v314_v52, 16  ;;  %v324_v54 = vld [vmem:[%s6669_s4 + $0x540] sm:$0xff] }
  0xe3   : > { %1908 = vst [vmem:[%s6693_s25 + $0x4b8] sm:$0xff] %v1588_v2  ;;  %v951_v10 = vand.u32 255, %v631_v3  ;;  %v952_v11 = vand.u32 255, %v632_v4  ;;  %v953_v12 = vand.u32 255, %v633_v5  ;;  %v635_v13 = vshra.s32 %v315_v1, 16  ;;  %v325_v59 = vld [vmem:[%s6669_s4 + $0x548] sm:$0xff] }
  0xe4   : > { %v1268_v15 = vcvt.s32.f32 %v948_v6  ;;  %v1269_v16 = vcvt.s32.f32 %v949_v7  ;;  %v1270_v17 = vcvt.s32.f32 %v950_v8  ;;  %v954_v18 = vand.u32 255, %v634_v9  ;;  %v326_v60 = vld [vmem:[%s6669_s4 + $0x550] sm:$0xff]  ;;  %v327_v61 = vld [vmem:[%s6669_s4 + $0x558] sm:$0xff]  ;;  %v328_v2 = vld [vmem:[%s6669_s4 + $0x560] sm:$0xff] }
  0xe5   : > { %v1271_v22 = vcvt.s32.f32 %v951_v10  ;;  %v1272_v23 = vcvt.s32.f32 %v952_v11  ;;  %v1273_v24 = vcvt.s32.f32 %v953_v12  ;;  %v955_v25 = vand.u32 255, %v635_v13  ;;  %v329_v3 = vld [vmem:[%s6669_s4 + $0x568] sm:$0xff]  ;;  %v330_v4 = vld [vmem:[%s6669_s4 + $0x570] sm:$0xff] }
  0xe6   : > { %v1589_v29 = vmul.f32 0.003921569, %v1268_v15  ;;  %v1590_v30 = vmul.f32 0.003921569, %v1269_v16  ;;  %v1591_v31 = vmul.f32 0.003921569, %v1270_v17  ;;  %v1274_v32 = vcvt.s32.f32 %v954_v18 }
  0xe7   : > { %v1592_v33 = vmul.f32 0.003921569, %v1271_v22  ;;  %v1593_v34 = vmul.f32 0.003921569, %v1272_v23  ;;  %v1594_v35 = vmul.f32 0.003921569, %v1273_v24  ;;  %v1275_v36 = vcvt.s32.f32 %v955_v25 }
  0xe8   : > { %1909 = vst [vmem:[%s6693_s25 + $0x4c0] sm:$0xff] %v1589_v29  ;;  %1910 = vst [vmem:[%s6693_s25 + $0x4c8] sm:$0xff] %v1590_v30  ;;  %v1595_v37 = vmul.f32 0.003921569, %v1274_v32  ;;  %v636_v38 = vshra.s32 %v316_v14, 16  ;;  %v637_v39 = vshra.s32 %v317_v19, 16 }
  0xe9   : > { %1911 = vst [vmem:[%s6693_s25 + $0x4d0] sm:$0xff] %v1591_v31  ;;  %v638_v40 = vshra.s32 %v318_v20, 16  ;;  %1912 = vst [vmem:[%s6693_s25 + $0x4d8] sm:$0xff] %v1592_v33  ;;  %v1596_v42 = vmul.f32 0.003921569, %v1275_v36  ;;  %v639_v43 = vshra.s32 %v319_v21, 16 }
  0xea   : > { %1913 = vst [vmem:[%s6693_s25 + $0x4e0] sm:$0xff] %v1593_v34  ;;  %1914 = vst [vmem:[%s6693_s25 + $0x4e8] sm:$0xff] %v1594_v35  ;;  %v640_v44 = vshra.s32 %v320_v26, 16  ;;  %v641_v45 = vshra.s32 %v321_v27, 16  ;;  %v956_v46 = vand.u32 255, %v636_v38  ;;  %v957_v47 = vand.u32 255, %v637_v39 }
  0xeb   : > { %1915 = vst [vmem:[%s6693_s25 + $0x4f0] sm:$0xff] %v1595_v37  ;;  %v958_v48 = vand.u32 255, %v638_v40  ;;  %v642_v49 = vshra.s32 %v322_v28, 16  ;;  %1916 = vst [vmem:[%s6693_s25 + $0x4f8] sm:$0xff] %v1596_v42  ;;  %v959_v50 = vand.u32 255, %v639_v43  ;;  %v643_v53 = vshra.s32 %v323_v41, 16 }
  0xec   : > { %v960_v51 = vand.u32 255, %v640_v44  ;;  %v961_v52 = vand.u32 255, %v641_v45  ;;  %v1276_v55 = vcvt.s32.f32 %v956_v46  ;;  %v1277_v56 = vcvt.s32.f32 %v957_v47  ;;  %v331_v17 = vld [vmem:[%s6669_s4 + $0x578] sm:$0xff]  ;;  %v332_v30 = vld [vmem:[%s6669_s4 + $0x580] sm:$0xff]  ;;  %v333_v35 = vld [vmem:[%s6669_s4 + $0x588] sm:$0xff] }
  0xed   : > { %v1278_v57 = vcvt.s32.f32 %v958_v48  ;;  %v962_v58 = vand.u32 255, %v642_v49  ;;  %v1279_v62 = vcvt.s32.f32 %v959_v50  ;;  %v963_v1 = vand.u32 255, %v643_v53  ;;  %v334_v36 = vld [vmem:[%s6669_s4 + $0x590] sm:$0xff]  ;;  %v335_v37 = vld [vmem:[%s6669_s4 + $0x598] sm:$0xff]  ;;  %v336_v42 = vld [vmem:[%s6669_s4 + $0x5a0] sm:$0xff] }
  0xee   : > { %v1280_v63 = vcvt.s32.f32 %v960_v51  ;;  %v1281_v0 = vcvt.s32.f32 %v961_v52  ;;  %v1597_v5 = vmul.f32 0.003921569, %v1276_v55  ;;  %v1598_v6 = vmul.f32 0.003921569, %v1277_v56  ;;  %v337_v43 = vld [vmem:[%s6669_s4 + $0x5a8] sm:$0xff]  ;;  %v338_v44 = vld [vmem:[%s6669_s4 + $0x5b0] sm:$0xff] }
  0xef   : > { %v1599_v7 = vmul.f32 0.003921569, %v1278_v57  ;;  %v1282_v8 = vcvt.s32.f32 %v962_v58  ;;  %v1600_v9 = vmul.f32 0.003921569, %v1279_v62  ;;  %v1283_v12 = vcvt.s32.f32 %v963_v1  ;;  %v339_v57 = vld [vmem:[%s6669_s4 + $0x5b8] sm:$0xff] }
  0xf0   : > { %v1601_v10 = vmul.f32 0.003921569, %v1280_v63  ;;  %v1602_v11 = vmul.f32 0.003921569, %v1281_v0  ;;  %1917 = vst [vmem:[%s6693_s25 + $0x500] sm:$0xff] %v1597_v5  ;;  %1918 = vst [vmem:[%s6693_s25 + $0x508] sm:$0xff] %v1598_v6 }
  0xf1   : > { %1919 = vst [vmem:[%s6693_s25 + $0x510] sm:$0xff] %v1599_v7  ;;  %v1603_v13 = vmul.f32 0.003921569, %v1282_v8  ;;  %v644_v14 = vshra.s32 %v324_v54, 16  ;;  %v645_v15 = vshra.s32 %v325_v59, 16  ;;  %v646_v16 = vshra.s32 %v326_v60, 16 }
  0xf2   : > { %1920 = vst [vmem:[%s6693_s25 + $0x518] sm:$0xff] %v1600_v9  ;;  %1921 = vst [vmem:[%s6693_s25 + $0x520] sm:$0xff] %v1601_v10  ;;  %v1604_v18 = vmul.f32 0.003921569, %v1283_v12  ;;  %v647_v19 = vshra.s32 %v327_v61, 16  ;;  %v648_v20 = vshra.s32 %v328_v2, 16 }
  0xf3   : > { %1922 = vst [vmem:[%s6693_s25 + $0x528] sm:$0xff] %v1602_v11  ;;  %v649_v21 = vshra.s32 %v329_v3, 16  ;;  %1923 = vst [vmem:[%s6693_s25 + $0x530] sm:$0xff] %v1603_v13  ;;  %v964_v22 = vand.u32 255, %v644_v14  ;;  %v965_v23 = vand.u32 255, %v645_v15  ;;  %v966_v24 = vand.u32 255, %v646_v16 }
  0xf4   : > { %v650_v25 = vshra.s32 %v330_v4, 16  ;;  %1924 = vst [vmem:[%s6693_s25 + $0x538] sm:$0xff] %v1604_v18  ;;  %v967_v26 = vand.u32 255, %v647_v19  ;;  %v968_v27 = vand.u32 255, %v648_v20  ;;  %v651_v29 = vshra.s32 %v331_v17, 16  ;;  %v340_v6 = vld [vmem:[%s6669_s4 + $0x5c0] sm:$0xff] }
  0xf5   : > { %v969_v28 = vand.u32 255, %v649_v21  ;;  %v1284_v31 = vcvt.s32.f32 %v964_v22  ;;  %v1285_v32 = vcvt.s32.f32 %v965_v23  ;;  %v1286_v33 = vcvt.s32.f32 %v966_v24  ;;  %v341_v11 = vld [vmem:[%s6669_s4 + $0x5c8] sm:$0xff]  ;;  %v342_v12 = vld [vmem:[%s6669_s4 + $0x5d0] sm:$0xff]  ;;  %v343_v13 = vld [vmem:[%s6669_s4 + $0x5d8] sm:$0xff] }
  0xf6   : > { %v970_v34 = vand.u32 255, %v650_v25  ;;  %v1287_v38 = vcvt.s32.f32 %v967_v26  ;;  %v1288_v39 = vcvt.s32.f32 %v968_v27  ;;  %v971_v41 = vand.u32 255, %v651_v29  ;;  %v344_v18 = vld [vmem:[%s6669_s4 + $0x5e0] sm:$0xff]  ;;  %v345_v19 = vld [vmem:[%s6669_s4 + $0x5e8] sm:$0xff]  ;;  %v346_v20 = vld [vmem:[%s6669_s4 + $0x5f0] sm:$0xff] }
  0xf7   : > { %v1289_v40 = vcvt.s32.f32 %v969_v28  ;;  %v1605_v45 = vmul.f32 0.003921569, %v1284_v31  ;;  %v1606_v46 = vmul.f32 0.003921569, %v1285_v32  ;;  %v1607_v47 = vmul.f32 0.003921569, %v1286_v33 }
  0xf8   : > { %v1290_v48 = vcvt.s32.f32 %v970_v34  ;;  %v1608_v49 = vmul.f32 0.003921569, %v1287_v38  ;;  %v1609_v50 = vmul.f32 0.003921569, %v1288_v39  ;;  %v1291_v52 = vcvt.s32.f32 %v971_v41  ;;  %v347_v33 = vld [vmem:[%s6669_s4 + $0x5f8] sm:$0xff] }
  0xf9   : > { %v1610_v51 = vmul.f32 0.003921569, %v1289_v40  ;;  %1925 = vst [vmem:[%s6693_s25 + $0x540] sm:$0xff] %v1605_v45  ;;  %1926 = vst [vmem:[%s6693_s25 + $0x548] sm:$0xff] %v1606_v46  ;;  %v652_v54 = vshra.s32 %v332_v30, 16  ;;  %v653_v55 = vshra.s32 %v333_v35, 16 }
  0xfa   : > { %1927 = vst [vmem:[%s6693_s25 + $0x550] sm:$0xff] %v1607_v47  ;;  %v1611_v53 = vmul.f32 0.003921569, %v1290_v48  ;;  %v654_v56 = vshra.s32 %v334_v36, 16  ;;  %1928 = vst [vmem:[%s6693_s25 + $0x558] sm:$0xff] %v1608_v49  ;;  %v655_v59 = vshra.s32 %v335_v37, 16 }
  0xfb   : > { %1929 = vst [vmem:[%s6693_s25 + $0x560] sm:$0xff] %v1609_v50  ;;  %1930 = vst [vmem:[%s6693_s25 + $0x568] sm:$0xff] %v1610_v51  ;;  %v1612_v58 = vmul.f32 0.003921569, %v1291_v52  ;;  %v656_v60 = vshra.s32 %v336_v42, 16  ;;  %v657_v61 = vshra.s32 %v337_v43, 16 }
  0xfc   : > { %1931 = vst [vmem:[%s6693_s25 + $0x570] sm:$0xff] %v1611_v53  ;;  %v972_v62 = vand.u32 255, %v652_v54  ;;  %v973_v63 = vand.u32 255, %v653_v55  ;;  %v974_v0 = vand.u32 255, %v654_v56  ;;  %v658_v1 = vshra.s32 %v338_v44, 16  ;;  %v348_v46 = vld [vmem:[%s6669_s4 + $0x600] sm:$0xff] }
  0xfd   : > { %1932 = vst [vmem:[%s6693_s25 + $0x578] sm:$0xff] %v1612_v58  ;;  %v975_v2 = vand.u32 255, %v655_v59  ;;  %v976_v3 = vand.u32 255, %v656_v60  ;;  %v977_v4 = vand.u32 255, %v657_v61  ;;  %v659_v5 = vshra.s32 %v339_v57, 16  ;;  %v349_v51 = vld [vmem:[%s6669_s4 + $0x608] sm:$0xff] }
  0xfe   : > { %v1292_v7 = vcvt.s32.f32 %v972_v62  ;;  %v1293_v8 = vcvt.s32.f32 %v973_v63  ;;  %v1294_v9 = vcvt.s32.f32 %v974_v0  ;;  %v978_v10 = vand.u32 255, %v658_v1  ;;  %v350_v52 = vld [vmem:[%s6669_s4 + $0x610] sm:$0xff]  ;;  %v351_v53 = vld [vmem:[%s6669_s4 + $0x618] sm:$0xff]  ;;  %v352_v58 = vld [vmem:[%s6669_s4 + $0x620] sm:$0xff] }
  0xff   : > { %v1295_v14 = vcvt.s32.f32 %v975_v2  ;;  %v1296_v15 = vcvt.s32.f32 %v976_v3  ;;  %v1297_v16 = vcvt.s32.f32 %v977_v4  ;;  %v979_v17 = vand.u32 255, %v659_v5  ;;  %v353_v59 = vld [vmem:[%s6669_s4 + $0x628] sm:$0xff]  ;;  %v354_v60 = vld [vmem:[%s6669_s4 + $0x630] sm:$0xff] }
 0x100   : > { %v1613_v21 = vmul.f32 0.003921569, %v1292_v7  ;;  %v1614_v22 = vmul.f32 0.003921569, %v1293_v8  ;;  %v1615_v23 = vmul.f32 0.003921569, %v1294_v9  ;;  %v1298_v24 = vcvt.s32.f32 %v978_v10 }
 0x101   : > { %v1616_v25 = vmul.f32 0.003921569, %v1295_v14  ;;  %v1617_v26 = vmul.f32 0.003921569, %v1296_v15  ;;  %v1618_v27 = vmul.f32 0.003921569, %v1297_v16  ;;  %v1299_v28 = vcvt.s32.f32 %v979_v17 }
 0x102   : > { %1933 = vst [vmem:[%s6693_s25 + $0x580] sm:$0xff] %v1613_v21  ;;  %1934 = vst [vmem:[%s6693_s25 + $0x588] sm:$0xff] %v1614_v22  ;;  %v1619_v29 = vmul.f32 0.003921569, %v1298_v24  ;;  %v660_v30 = vshra.s32 %v340_v6, 16  ;;  %v661_v31 = vshra.s32 %v341_v11, 16 }
 0x103   : > { %1935 = vst [vmem:[%s6693_s25 + $0x590] sm:$0xff] %v1615_v23  ;;  %v662_v32 = vshra.s32 %v342_v12, 16  ;;  %1936 = vst [vmem:[%s6693_s25 + $0x598] sm:$0xff] %v1616_v25  ;;  %v1620_v34 = vmul.f32 0.003921569, %v1299_v28  ;;  %v663_v35 = vshra.s32 %v343_v13, 16 }
 0x104   : > { %1937 = vst [vmem:[%s6693_s25 + $0x5a0] sm:$0xff] %v1617_v26  ;;  %1938 = vst [vmem:[%s6693_s25 + $0x5a8] sm:$0xff] %v1618_v27  ;;  %v664_v36 = vshra.s32 %v344_v18, 16  ;;  %v665_v37 = vshra.s32 %v345_v19, 16  ;;  %v980_v38 = vand.u32 255, %v660_v30  ;;  %v981_v39 = vand.u32 255, %v661_v31 }
 0x105   : > { %1939 = vst [vmem:[%s6693_s25 + $0x5b0] sm:$0xff] %v1619_v29  ;;  %v982_v40 = vand.u32 255, %v662_v32  ;;  %v666_v41 = vshra.s32 %v346_v20, 16  ;;  %1940 = vst [vmem:[%s6693_s25 + $0x5b8] sm:$0xff] %v1620_v34  ;;  %v983_v42 = vand.u32 255, %v663_v35  ;;  %v667_v45 = vshra.s32 %v347_v33, 16 }
 0x106   : > { %v984_v43 = vand.u32 255, %v664_v36  ;;  %v985_v44 = vand.u32 255, %v665_v37  ;;  %v1300_v47 = vcvt.s32.f32 %v980_v38  ;;  %v1301_v48 = vcvt.s32.f32 %v981_v39  ;;  %v355_v9 = vld [vmem:[%s6669_s4 + $0x638] sm:$0xff]  ;;  %v356_v22 = vld [vmem:[%s6669_s4 + $0x640] sm:$0xff]  ;;  %v357_v27 = vld [vmem:[%s6669_s4 + $0x648] sm:$0xff] }
 0x107   : > { %v1302_v49 = vcvt.s32.f32 %v982_v40  ;;  %v986_v50 = vand.u32 255, %v666_v41  ;;  %v1303_v54 = vcvt.s32.f32 %v983_v42  ;;  %v987_v57 = vand.u32 255, %v667_v45  ;;  %v358_v28 = vld [vmem:[%s6669_s4 + $0x650] sm:$0xff]  ;;  %v359_v29 = vld [vmem:[%s6669_s4 + $0x658] sm:$0xff]  ;;  %v360_v34 = vld [vmem:[%s6669_s4 + $0x660] sm:$0xff] }
 0x108   : > { %v1304_v55 = vcvt.s32.f32 %v984_v43  ;;  %v1305_v56 = vcvt.s32.f32 %v985_v44  ;;  %v1621_v61 = vmul.f32 0.003921569, %v1300_v47  ;;  %v1622_v62 = vmul.f32 0.003921569, %v1301_v48  ;;  %v361_v35 = vld [vmem:[%s6669_s4 + $0x668] sm:$0xff]  ;;  %v362_v36 = vld [vmem:[%s6669_s4 + $0x670] sm:$0xff] }
 0x109   : > { %v1623_v63 = vmul.f32 0.003921569, %v1302_v49  ;;  %v1306_v0 = vcvt.s32.f32 %v986_v50  ;;  %v1624_v1 = vmul.f32 0.003921569, %v1303_v54  ;;  %v1307_v4 = vcvt.s32.f32 %v987_v57  ;;  %v363_v49 = vld [vmem:[%s6669_s4 + $0x678] sm:$0xff] }
 0x10a   : > { %v1625_v2 = vmul.f32 0.003921569, %v1304_v55  ;;  %v1626_v3 = vmul.f32 0.003921569, %v1305_v56  ;;  %1941 = vst [vmem:[%s6693_s25 + $0x5c0] sm:$0xff] %v1621_v61  ;;  %1942 = vst [vmem:[%s6693_s25 + $0x5c8] sm:$0xff] %v1622_v62 }
 0x10b   : > { %1943 = vst [vmem:[%s6693_s25 + $0x5d0] sm:$0xff] %v1623_v63  ;;  %v1627_v5 = vmul.f32 0.003921569, %v1306_v0  ;;  %v668_v6 = vshra.s32 %v348_v46, 16  ;;  %v669_v7 = vshra.s32 %v349_v51, 16  ;;  %v670_v8 = vshra.s32 %v350_v52, 16 }
 0x10c   : > { %1944 = vst [vmem:[%s6693_s25 + $0x5d8] sm:$0xff] %v1624_v1  ;;  %1945 = vst [vmem:[%s6693_s25 + $0x5e0] sm:$0xff] %v1625_v2  ;;  %v1628_v10 = vmul.f32 0.003921569, %v1307_v4  ;;  %v671_v11 = vshra.s32 %v351_v53, 16  ;;  %v672_v12 = vshra.s32 %v352_v58, 16 }
 0x10d   : > { %1946 = vst [vmem:[%s6693_s25 + $0x5e8] sm:$0xff] %v1626_v3  ;;  %v673_v13 = vshra.s32 %v353_v59, 16  ;;  %1947 = vst [vmem:[%s6693_s25 + $0x5f0] sm:$0xff] %v1627_v5  ;;  %v988_v14 = vand.u32 255, %v668_v6  ;;  %v989_v15 = vand.u32 255, %v669_v7  ;;  %v990_v16 = vand.u32 255, %v670_v8 }
 0x10e   : > { %v674_v17 = vshra.s32 %v354_v60, 16  ;;  %1948 = vst [vmem:[%s6693_s25 + $0x5f8] sm:$0xff] %v1628_v10  ;;  %v991_v18 = vand.u32 255, %v671_v11  ;;  %v992_v19 = vand.u32 255, %v672_v12  ;;  %v675_v21 = vshra.s32 %v355_v9, 16  ;;  %v364_v62 = vld [vmem:[%s6669_s4 + $0x680] sm:$0xff] }
 0x10f   : > { %v993_v20 = vand.u32 255, %v673_v13  ;;  %v1308_v23 = vcvt.s32.f32 %v988_v14  ;;  %v1309_v24 = vcvt.s32.f32 %v989_v15  ;;  %v1310_v25 = vcvt.s32.f32 %v990_v16  ;;  %v365_v3 = vld [vmem:[%s6669_s4 + $0x688] sm:$0xff]  ;;  %v366_v4 = vld [vmem:[%s6669_s4 + $0x690] sm:$0xff]  ;;  %v367_v5 = vld [vmem:[%s6669_s4 + $0x698] sm:$0xff] }
 0x110   : > { %v994_v26 = vand.u32 255, %v674_v17  ;;  %v1311_v30 = vcvt.s32.f32 %v991_v18  ;;  %v1312_v31 = vcvt.s32.f32 %v992_v19  ;;  %v995_v33 = vand.u32 255, %v675_v21  ;;  %v368_v10 = vld [vmem:[%s6669_s4 + $0x6a0] sm:$0xff]  ;;  %v369_v11 = vld [vmem:[%s6669_s4 + $0x6a8] sm:$0xff]  ;;  %v370_v12 = vld [vmem:[%s6669_s4 + $0x6b0] sm:$0xff] }
 0x111   : > { %v1313_v32 = vcvt.s32.f32 %v993_v20  ;;  %v1629_v37 = vmul.f32 0.003921569, %v1308_v23  ;;  %v1630_v38 = vmul.f32 0.003921569, %v1309_v24  ;;  %v1631_v39 = vmul.f32 0.003921569, %v1310_v25 }
 0x112   : > { %v1314_v40 = vcvt.s32.f32 %v994_v26  ;;  %v1632_v41 = vmul.f32 0.003921569, %v1311_v30  ;;  %v1633_v42 = vmul.f32 0.003921569, %v1312_v31  ;;  %v1315_v44 = vcvt.s32.f32 %v995_v33  ;;  %v371_v25 = vld [vmem:[%s6669_s4 + $0x6b8] sm:$0xff] }
 0x113   : > { %v1634_v43 = vmul.f32 0.003921569, %v1313_v32  ;;  %1949 = vst [vmem:[%s6693_s25 + $0x600] sm:$0xff] %v1629_v37  ;;  %1950 = vst [vmem:[%s6693_s25 + $0x608] sm:$0xff] %v1630_v38  ;;  %v676_v46 = vshra.s32 %v356_v22, 16  ;;  %v677_v47 = vshra.s32 %v357_v27, 16 }
 0x114   : > { %1951 = vst [vmem:[%s6693_s25 + $0x610] sm:$0xff] %v1631_v39  ;;  %v1635_v45 = vmul.f32 0.003921569, %v1314_v40  ;;  %v678_v48 = vshra.s32 %v358_v28, 16  ;;  %1952 = vst [vmem:[%s6693_s25 + $0x618] sm:$0xff] %v1632_v41  ;;  %v679_v51 = vshra.s32 %v359_v29, 16 }
 0x115   : > { %1953 = vst [vmem:[%s6693_s25 + $0x620] sm:$0xff] %v1633_v42  ;;  %1954 = vst [vmem:[%s6693_s25 + $0x628] sm:$0xff] %v1634_v43  ;;  %v1636_v50 = vmul.f32 0.003921569, %v1315_v44  ;;  %v680_v52 = vshra.s32 %v360_v34, 16  ;;  %v681_v53 = vshra.s32 %v361_v35, 16 }
 0x116   : > { %1955 = vst [vmem:[%s6693_s25 + $0x630] sm:$0xff] %v1635_v45  ;;  %v996_v54 = vand.u32 255, %v676_v46  ;;  %v997_v55 = vand.u32 255, %v677_v47  ;;  %v998_v56 = vand.u32 255, %v678_v48  ;;  %v682_v57 = vshra.s32 %v362_v36, 16  ;;  %v372_v38 = vld [vmem:[%s6669_s4 + $0x6c0] sm:$0xff] }
 0x117   : > { %1956 = vst [vmem:[%s6693_s25 + $0x638] sm:$0xff] %v1636_v50  ;;  %v999_v58 = vand.u32 255, %v679_v51  ;;  %v1000_v59 = vand.u32 255, %v680_v52  ;;  %v1001_v60 = vand.u32 255, %v681_v53  ;;  %v683_v61 = vshra.s32 %v363_v49, 16  ;;  %v373_v43 = vld [vmem:[%s6669_s4 + $0x6c8] sm:$0xff] }
 0x118   : > { %v1316_v63 = vcvt.s32.f32 %v996_v54  ;;  %v1317_v0 = vcvt.s32.f32 %v997_v55  ;;  %v1318_v1 = vcvt.s32.f32 %v998_v56  ;;  %v1002_v2 = vand.u32 255, %v682_v57  ;;  %v374_v44 = vld [vmem:[%s6669_s4 + $0x6d0] sm:$0xff]  ;;  %v375_v45 = vld [vmem:[%s6669_s4 + $0x6d8] sm:$0xff]  ;;  %v376_v50 = vld [vmem:[%s6669_s4 + $0x6e0] sm:$0xff] }
 0x119   : > { %v1319_v6 = vcvt.s32.f32 %v999_v58  ;;  %v1320_v7 = vcvt.s32.f32 %v1000_v59  ;;  %v1321_v8 = vcvt.s32.f32 %v1001_v60  ;;  %v1003_v9 = vand.u32 255, %v683_v61  ;;  %v377_v51 = vld [vmem:[%s6669_s4 + $0x6e8] sm:$0xff]  ;;  %v378_v52 = vld [vmem:[%s6669_s4 + $0x6f0] sm:$0xff] }
 0x11a   : > { %v1637_v13 = vmul.f32 0.003921569, %v1316_v63  ;;  %v1638_v14 = vmul.f32 0.003921569, %v1317_v0  ;;  %v1639_v15 = vmul.f32 0.003921569, %v1318_v1  ;;  %v1322_v16 = vcvt.s32.f32 %v1002_v2 }
 0x11b   : > { %v1640_v17 = vmul.f32 0.003921569, %v1319_v6  ;;  %v1641_v18 = vmul.f32 0.003921569, %v1320_v7  ;;  %v1642_v19 = vmul.f32 0.003921569, %v1321_v8  ;;  %v1323_v20 = vcvt.s32.f32 %v1003_v9 }
 0x11c   : > { %1957 = vst [vmem:[%s6693_s25 + $0x640] sm:$0xff] %v1637_v13  ;;  %1958 = vst [vmem:[%s6693_s25 + $0x648] sm:$0xff] %v1638_v14  ;;  %v1643_v21 = vmul.f32 0.003921569, %v1322_v16  ;;  %v684_v22 = vshra.s32 %v364_v62, 16  ;;  %v685_v23 = vshra.s32 %v365_v3, 16 }
 0x11d   : > { %1959 = vst [vmem:[%s6693_s25 + $0x650] sm:$0xff] %v1639_v15  ;;  %v686_v24 = vshra.s32 %v366_v4, 16  ;;  %1960 = vst [vmem:[%s6693_s25 + $0x658] sm:$0xff] %v1640_v17  ;;  %v1644_v26 = vmul.f32 0.003921569, %v1323_v20  ;;  %v687_v27 = vshra.s32 %v367_v5, 16 }
 0x11e   : > { %1961 = vst [vmem:[%s6693_s25 + $0x660] sm:$0xff] %v1641_v18  ;;  %1962 = vst [vmem:[%s6693_s25 + $0x668] sm:$0xff] %v1642_v19  ;;  %v688_v28 = vshra.s32 %v368_v10, 16  ;;  %v689_v29 = vshra.s32 %v369_v11, 16  ;;  %v1004_v30 = vand.u32 255, %v684_v22  ;;  %v1005_v31 = vand.u32 255, %v685_v23 }
 0x11f   : > { %1963 = vst [vmem:[%s6693_s25 + $0x670] sm:$0xff] %v1643_v21  ;;  %v1006_v32 = vand.u32 255, %v686_v24  ;;  %v690_v33 = vshra.s32 %v370_v12, 16  ;;  %1964 = vst [vmem:[%s6693_s25 + $0x678] sm:$0xff] %v1644_v26  ;;  %v1007_v34 = vand.u32 255, %v687_v27  ;;  %v691_v37 = vshra.s32 %v371_v25, 16 }
 0x120   : > { %v1008_v35 = vand.u32 255, %v688_v28  ;;  %v1009_v36 = vand.u32 255, %v689_v29  ;;  %v1324_v39 = vcvt.s32.f32 %v1004_v30  ;;  %v1325_v40 = vcvt.s32.f32 %v1005_v31  ;;  %v379_v1 = vld [vmem:[%s6669_s4 + $0x6f8] sm:$0xff]  ;;  %v380_v14 = vld [vmem:[%s6669_s4 + $0x700] sm:$0xff]  ;;  %v381_v19 = vld [vmem:[%s6669_s4 + $0x708] sm:$0xff] }
 0x121   : > { %v1326_v41 = vcvt.s32.f32 %v1006_v32  ;;  %v1010_v42 = vand.u32 255, %v690_v33  ;;  %v1327_v46 = vcvt.s32.f32 %v1007_v34  ;;  %v1011_v49 = vand.u32 255, %v691_v37  ;;  %v382_v20 = vld [vmem:[%s6669_s4 + $0x710] sm:$0xff]  ;;  %v383_v21 = vld [vmem:[%s6669_s4 + $0x718] sm:$0xff]  ;;  %v384_v26 = vld [vmem:[%s6669_s4 + $0x720] sm:$0xff] }
 0x122   : > { %v1328_v47 = vcvt.s32.f32 %v1008_v35  ;;  %v1329_v48 = vcvt.s32.f32 %v1009_v36  ;;  %v1645_v53 = vmul.f32 0.003921569, %v1324_v39  ;;  %v1646_v54 = vmul.f32 0.003921569, %v1325_v40  ;;  %v385_v27 = vld [vmem:[%s6669_s4 + $0x728] sm:$0xff]  ;;  %v386_v28 = vld [vmem:[%s6669_s4 + $0x730] sm:$0xff] }
 0x123   : > { %v1647_v55 = vmul.f32 0.003921569, %v1326_v41  ;;  %v1330_v56 = vcvt.s32.f32 %v1010_v42  ;;  %v1648_v57 = vmul.f32 0.003921569, %v1327_v46  ;;  %v1331_v60 = vcvt.s32.f32 %v1011_v49  ;;  %v387_v41 = vld [vmem:[%s6669_s4 + $0x738] sm:$0xff] }
 0x124   : > { %v1649_v58 = vmul.f32 0.003921569, %v1328_v47  ;;  %v1650_v59 = vmul.f32 0.003921569, %v1329_v48  ;;  %1965 = vst [vmem:[%s6693_s25 + $0x680] sm:$0xff] %v1645_v53  ;;  %1966 = vst [vmem:[%s6693_s25 + $0x688] sm:$0xff] %v1646_v54 }
 0x125   : > { %1967 = vst [vmem:[%s6693_s25 + $0x690] sm:$0xff] %v1647_v55  ;;  %v1651_v61 = vmul.f32 0.003921569, %v1330_v56  ;;  %v692_v62 = vshra.s32 %v372_v38, 16  ;;  %v693_v63 = vshra.s32 %v373_v43, 16  ;;  %v694_v0 = vshra.s32 %v374_v44, 16 }
 0x126   : > { %1968 = vst [vmem:[%s6693_s25 + $0x698] sm:$0xff] %v1648_v57  ;;  %1969 = vst [vmem:[%s6693_s25 + $0x6a0] sm:$0xff] %v1649_v58  ;;  %v1652_v2 = vmul.f32 0.003921569, %v1331_v60  ;;  %v695_v3 = vshra.s32 %v375_v45, 16  ;;  %v696_v4 = vshra.s32 %v376_v50, 16 }
 0x127   : > { %1970 = vst [vmem:[%s6693_s25 + $0x6a8] sm:$0xff] %v1650_v59  ;;  %v697_v5 = vshra.s32 %v377_v51, 16  ;;  %1971 = vst [vmem:[%s6693_s25 + $0x6b0] sm:$0xff] %v1651_v61  ;;  %v1012_v6 = vand.u32 255, %v692_v62  ;;  %v1013_v7 = vand.u32 255, %v693_v63  ;;  %v1014_v8 = vand.u32 255, %v694_v0 }
 0x128   : > { %v698_v9 = vshra.s32 %v378_v52, 16  ;;  %1972 = vst [vmem:[%s6693_s25 + $0x6b8] sm:$0xff] %v1652_v2  ;;  %v1015_v10 = vand.u32 255, %v695_v3  ;;  %v1016_v11 = vand.u32 255, %v696_v4  ;;  %v699_v13 = vshra.s32 %v379_v1, 16  ;;  %v388_v54 = vld [vmem:[%s6669_s4 + $0x740] sm:$0xff] }
 0x129   : > { %v1017_v12 = vand.u32 255, %v697_v5  ;;  %v1332_v15 = vcvt.s32.f32 %v1012_v6  ;;  %v1333_v16 = vcvt.s32.f32 %v1013_v7  ;;  %v1334_v17 = vcvt.s32.f32 %v1014_v8  ;;  %v389_v59 = vld [vmem:[%s6669_s4 + $0x748] sm:$0xff]  ;;  %v390_v60 = vld [vmem:[%s6669_s4 + $0x750] sm:$0xff]  ;;  %v391_v61 = vld [vmem:[%s6669_s4 + $0x758] sm:$0xff] }
 0x12a   : > { %v1018_v18 = vand.u32 255, %v698_v9  ;;  %v1335_v22 = vcvt.s32.f32 %v1015_v10  ;;  %v1336_v23 = vcvt.s32.f32 %v1016_v11  ;;  %v1019_v25 = vand.u32 255, %v699_v13  ;;  %v392_v2 = vld [vmem:[%s6669_s4 + $0x760] sm:$0xff]  ;;  %v393_v3 = vld [vmem:[%s6669_s4 + $0x768] sm:$0xff]  ;;  %v394_v4 = vld [vmem:[%s6669_s4 + $0x770] sm:$0xff] }
 0x12b   : > { %v1337_v24 = vcvt.s32.f32 %v1017_v12  ;;  %v1653_v29 = vmul.f32 0.003921569, %v1332_v15  ;;  %v1654_v30 = vmul.f32 0.003921569, %v1333_v16  ;;  %v1655_v31 = vmul.f32 0.003921569, %v1334_v17 }
 0x12c   : > { %v1338_v32 = vcvt.s32.f32 %v1018_v18  ;;  %v1656_v33 = vmul.f32 0.003921569, %v1335_v22  ;;  %v1657_v34 = vmul.f32 0.003921569, %v1336_v23  ;;  %v1339_v36 = vcvt.s32.f32 %v1019_v25  ;;  %v395_v17 = vld [vmem:[%s6669_s4 + $0x778] sm:$0xff] }
 0x12d   : > { %v1658_v35 = vmul.f32 0.003921569, %v1337_v24  ;;  %1973 = vst [vmem:[%s6693_s25 + $0x6c0] sm:$0xff] %v1653_v29  ;;  %1974 = vst [vmem:[%s6693_s25 + $0x6c8] sm:$0xff] %v1654_v30  ;;  %v700_v38 = vshra.s32 %v380_v14, 16  ;;  %v701_v39 = vshra.s32 %v381_v19, 16 }
 0x12e   : > { %1975 = vst [vmem:[%s6693_s25 + $0x6d0] sm:$0xff] %v1655_v31  ;;  %v1659_v37 = vmul.f32 0.003921569, %v1338_v32  ;;  %v702_v40 = vshra.s32 %v382_v20, 16  ;;  %1976 = vst [vmem:[%s6693_s25 + $0x6d8] sm:$0xff] %v1656_v33  ;;  %v703_v43 = vshra.s32 %v383_v21, 16 }
 0x12f   : > { %1977 = vst [vmem:[%s6693_s25 + $0x6e0] sm:$0xff] %v1657_v34  ;;  %1978 = vst [vmem:[%s6693_s25 + $0x6e8] sm:$0xff] %v1658_v35  ;;  %v1660_v42 = vmul.f32 0.003921569, %v1339_v36  ;;  %v704_v44 = vshra.s32 %v384_v26, 16  ;;  %v705_v45 = vshra.s32 %v385_v27, 16 }
 0x130   : > { %1979 = vst [vmem:[%s6693_s25 + $0x6f0] sm:$0xff] %v1659_v37  ;;  %v1020_v46 = vand.u32 255, %v700_v38  ;;  %v1021_v47 = vand.u32 255, %v701_v39  ;;  %v1022_v48 = vand.u32 255, %v702_v40  ;;  %v706_v49 = vshra.s32 %v386_v28, 16  ;;  %v396_v30 = vld [vmem:[%s6669_s4 + $0x780] sm:$0xff] }
 0x131   : > { %1980 = vst [vmem:[%s6693_s25 + $0x6f8] sm:$0xff] %v1660_v42  ;;  %v1023_v50 = vand.u32 255, %v703_v43  ;;  %v1024_v51 = vand.u32 255, %v704_v44  ;;  %v1025_v52 = vand.u32 255, %v705_v45  ;;  %v707_v53 = vshra.s32 %v387_v41, 16  ;;  %v397_v35 = vld [vmem:[%s6669_s4 + $0x788] sm:$0xff] }
 0x132   : > { %v1340_v55 = vcvt.s32.f32 %v1020_v46  ;;  %v1341_v56 = vcvt.s32.f32 %v1021_v47  ;;  %v1342_v57 = vcvt.s32.f32 %v1022_v48  ;;  %v1026_v58 = vand.u32 255, %v706_v49  ;;  %v398_v36 = vld [vmem:[%s6669_s4 + $0x790] sm:$0xff]  ;;  %v399_v37 = vld [vmem:[%s6669_s4 + $0x798] sm:$0xff]  ;;  %v400_v42 = vld [vmem:[%s6669_s4 + $0x7a0] sm:$0xff] }
 0x133   : > { %v1343_v62 = vcvt.s32.f32 %v1023_v50  ;;  %v1344_v63 = vcvt.s32.f32 %v1024_v51  ;;  %v1345_v0 = vcvt.s32.f32 %v1025_v52  ;;  %v1027_v1 = vand.u32 255, %v707_v53  ;;  %v401_v43 = vld [vmem:[%s6669_s4 + $0x7a8] sm:$0xff]  ;;  %v402_v44 = vld [vmem:[%s6669_s4 + $0x7b0] sm:$0xff] }
 0x134   : > { %v1661_v5 = vmul.f32 0.003921569, %v1340_v55  ;;  %v1662_v6 = vmul.f32 0.003921569, %v1341_v56  ;;  %v1663_v7 = vmul.f32 0.003921569, %v1342_v57  ;;  %v1346_v8 = vcvt.s32.f32 %v1026_v58 }
 0x135   : > { %v1664_v9 = vmul.f32 0.003921569, %v1343_v62  ;;  %v1665_v10 = vmul.f32 0.003921569, %v1344_v63  ;;  %v1666_v11 = vmul.f32 0.003921569, %v1345_v0  ;;  %v1347_v12 = vcvt.s32.f32 %v1027_v1 }
 0x136   : > { %1981 = vst [vmem:[%s6693_s25 + $0x700] sm:$0xff] %v1661_v5  ;;  %1982 = vst [vmem:[%s6693_s25 + $0x708] sm:$0xff] %v1662_v6  ;;  %v1667_v13 = vmul.f32 0.003921569, %v1346_v8  ;;  %v708_v14 = vshra.s32 %v388_v54, 16  ;;  %v709_v15 = vshra.s32 %v389_v59, 16 }
 0x137   : > { %1983 = vst [vmem:[%s6693_s25 + $0x710] sm:$0xff] %v1663_v7  ;;  %v710_v16 = vshra.s32 %v390_v60, 16  ;;  %1984 = vst [vmem:[%s6693_s25 + $0x718] sm:$0xff] %v1664_v9  ;;  %v1668_v18 = vmul.f32 0.003921569, %v1347_v12  ;;  %v711_v19 = vshra.s32 %v391_v61, 16 }
 0x138   : > { %1985 = vst [vmem:[%s6693_s25 + $0x720] sm:$0xff] %v1665_v10  ;;  %1986 = vst [vmem:[%s6693_s25 + $0x728] sm:$0xff] %v1666_v11  ;;  %v712_v20 = vshra.s32 %v392_v2, 16  ;;  %v713_v21 = vshra.s32 %v393_v3, 16  ;;  %v1028_v22 = vand.u32 255, %v708_v14  ;;  %v1029_v23 = vand.u32 255, %v709_v15 }
 0x139   : > { %1987 = vst [vmem:[%s6693_s25 + $0x730] sm:$0xff] %v1667_v13  ;;  %v1030_v24 = vand.u32 255, %v710_v16  ;;  %v714_v25 = vshra.s32 %v394_v4, 16  ;;  %1988 = vst [vmem:[%s6693_s25 + $0x738] sm:$0xff] %v1668_v18  ;;  %v1031_v26 = vand.u32 255, %v711_v19  ;;  %v715_v29 = vshra.s32 %v395_v17, 16 }
 0x13a   : > { %v1032_v27 = vand.u32 255, %v712_v20  ;;  %v1033_v28 = vand.u32 255, %v713_v21  ;;  %v1348_v31 = vcvt.s32.f32 %v1028_v22  ;;  %v1349_v32 = vcvt.s32.f32 %v1029_v23  ;;  %v403_v57 = vld [vmem:[%s6669_s4 + $0x7b8] sm:$0xff]  ;;  %v404_v6 = vld [vmem:[%s6669_s4 + $0x7c0] sm:$0xff]  ;;  %v405_v11 = vld [vmem:[%s6669_s4 + $0x7c8] sm:$0xff] }
 0x13b   : > { %v1350_v33 = vcvt.s32.f32 %v1030_v24  ;;  %v1034_v34 = vand.u32 255, %v714_v25  ;;  %v1351_v38 = vcvt.s32.f32 %v1031_v26  ;;  %v1035_v41 = vand.u32 255, %v715_v29  ;;  %v406_v12 = vld [vmem:[%s6669_s4 + $0x7d0] sm:$0xff]  ;;  %v407_v13 = vld [vmem:[%s6669_s4 + $0x7d8] sm:$0xff]  ;;  %v408_v18 = vld [vmem:[%s6669_s4 + $0x7e0] sm:$0xff] }
 0x13c   : > { %v1352_v39 = vcvt.s32.f32 %v1032_v27  ;;  %v1353_v40 = vcvt.s32.f32 %v1033_v28  ;;  %v1669_v45 = vmul.f32 0.003921569, %v1348_v31  ;;  %v1670_v46 = vmul.f32 0.003921569, %v1349_v32  ;;  %v409_v19 = vld [vmem:[%s6669_s4 + $0x7e8] sm:$0xff]  ;;  %v410_v20 = vld [vmem:[%s6669_s4 + $0x7f0] sm:$0xff] }
 0x13d   : > { %v1671_v47 = vmul.f32 0.003921569, %v1350_v33  ;;  %v1354_v48 = vcvt.s32.f32 %v1034_v34  ;;  %v1672_v49 = vmul.f32 0.003921569, %v1351_v38  ;;  %v1355_v52 = vcvt.s32.f32 %v1035_v41  ;;  %v411_v33 = vld [vmem:[%s6669_s4 + $0x7f8] sm:$0xff] }
 0x13e   : > { %v1673_v50 = vmul.f32 0.003921569, %v1352_v39  ;;  %v1674_v51 = vmul.f32 0.003921569, %v1353_v40  ;;  %1989 = vst [vmem:[%s6693_s25 + $0x740] sm:$0xff] %v1669_v45  ;;  %1990 = vst [vmem:[%s6693_s25 + $0x748] sm:$0xff] %v1670_v46 }
 0x13f   : > { %1991 = vst [vmem:[%s6693_s25 + $0x750] sm:$0xff] %v1671_v47  ;;  %v1675_v53 = vmul.f32 0.003921569, %v1354_v48  ;;  %v716_v54 = vshra.s32 %v396_v30, 16  ;;  %v717_v55 = vshra.s32 %v397_v35, 16  ;;  %v718_v56 = vshra.s32 %v398_v36, 16 }
 0x140   : > { %1992 = vst [vmem:[%s6693_s25 + $0x758] sm:$0xff] %v1672_v49  ;;  %1993 = vst [vmem:[%s6693_s25 + $0x760] sm:$0xff] %v1673_v50  ;;  %v1676_v58 = vmul.f32 0.003921569, %v1355_v52  ;;  %v719_v59 = vshra.s32 %v399_v37, 16  ;;  %v720_v60 = vshra.s32 %v400_v42, 16 }
 0x141   : > { %1994 = vst [vmem:[%s6693_s25 + $0x768] sm:$0xff] %v1674_v51  ;;  %v721_v61 = vshra.s32 %v401_v43, 16  ;;  %1995 = vst [vmem:[%s6693_s25 + $0x770] sm:$0xff] %v1675_v53  ;;  %v1036_v62 = vand.u32 255, %v716_v54  ;;  %v1037_v63 = vand.u32 255, %v717_v55  ;;  %v1038_v0 = vand.u32 255, %v718_v56 }
 0x142   : > { %v722_v1 = vshra.s32 %v402_v44, 16  ;;  %1996 = vst [vmem:[%s6693_s25 + $0x778] sm:$0xff] %v1676_v58  ;;  %v1039_v2 = vand.u32 255, %v719_v59  ;;  %v1040_v3 = vand.u32 255, %v720_v60  ;;  %v723_v5 = vshra.s32 %v403_v57, 16  ;;  %v412_v46 = vld [vmem:[%s6669_s4 + $0x800] sm:$0xff] }
 0x143   : > { %v1041_v4 = vand.u32 255, %v721_v61  ;;  %v1356_v7 = vcvt.s32.f32 %v1036_v62  ;;  %v1357_v8 = vcvt.s32.f32 %v1037_v63  ;;  %v1358_v9 = vcvt.s32.f32 %v1038_v0  ;;  %v413_v51 = vld [vmem:[%s6669_s4 + $0x808] sm:$0xff]  ;;  %v414_v52 = vld [vmem:[%s6669_s4 + $0x810] sm:$0xff]  ;;  %v415_v53 = vld [vmem:[%s6669_s4 + $0x818] sm:$0xff] }
 0x144   : > { %v1042_v10 = vand.u32 255, %v722_v1  ;;  %v1359_v14 = vcvt.s32.f32 %v1039_v2  ;;  %v1360_v15 = vcvt.s32.f32 %v1040_v3  ;;  %v1043_v17 = vand.u32 255, %v723_v5  ;;  %v416_v58 = vld [vmem:[%s6669_s4 + $0x820] sm:$0xff]  ;;  %v417_v59 = vld [vmem:[%s6669_s4 + $0x828] sm:$0xff]  ;;  %v418_v60 = vld [vmem:[%s6669_s4 + $0x830] sm:$0xff] }
 0x145   : > { %v1361_v16 = vcvt.s32.f32 %v1041_v4  ;;  %v1677_v21 = vmul.f32 0.003921569, %v1356_v7  ;;  %v1678_v22 = vmul.f32 0.003921569, %v1357_v8  ;;  %v1679_v23 = vmul.f32 0.003921569, %v1358_v9 }
 0x146   : > { %v1362_v24 = vcvt.s32.f32 %v1042_v10  ;;  %v1680_v25 = vmul.f32 0.003921569, %v1359_v14  ;;  %v1681_v26 = vmul.f32 0.003921569, %v1360_v15  ;;  %v1363_v28 = vcvt.s32.f32 %v1043_v17  ;;  %v419_v9 = vld [vmem:[%s6669_s4 + $0x838] sm:$0xff] }
 0x147   : > { %v1682_v27 = vmul.f32 0.003921569, %v1361_v16  ;;  %1997 = vst [vmem:[%s6693_s25 + $0x780] sm:$0xff] %v1677_v21  ;;  %1998 = vst [vmem:[%s6693_s25 + $0x788] sm:$0xff] %v1678_v22  ;;  %v724_v30 = vshra.s32 %v404_v6, 16  ;;  %v725_v31 = vshra.s32 %v405_v11, 16 }
 0x148   : > { %1999 = vst [vmem:[%s6693_s25 + $0x790] sm:$0xff] %v1679_v23  ;;  %v1683_v29 = vmul.f32 0.003921569, %v1362_v24  ;;  %v726_v32 = vshra.s32 %v406_v12, 16  ;;  %2000 = vst [vmem:[%s6693_s25 + $0x798] sm:$0xff] %v1680_v25  ;;  %v727_v35 = vshra.s32 %v407_v13, 16 }
 0x149   : > { %2001 = vst [vmem:[%s6693_s25 + $0x7a0] sm:$0xff] %v1681_v26  ;;  %2002 = vst [vmem:[%s6693_s25 + $0x7a8] sm:$0xff] %v1682_v27  ;;  %v1684_v34 = vmul.f32 0.003921569, %v1363_v28  ;;  %v728_v36 = vshra.s32 %v408_v18, 16  ;;  %v729_v37 = vshra.s32 %v409_v19, 16 }
 0x14a   : > { %2003 = vst [vmem:[%s6693_s25 + $0x7b0] sm:$0xff] %v1683_v29  ;;  %v1044_v38 = vand.u32 255, %v724_v30  ;;  %v1045_v39 = vand.u32 255, %v725_v31  ;;  %v1046_v40 = vand.u32 255, %v726_v32  ;;  %v730_v41 = vshra.s32 %v410_v20, 16  ;;  %v420_v22 = vld [vmem:[%s6669_s4 + $0x840] sm:$0xff] }
 0x14b   : > { %2004 = vst [vmem:[%s6693_s25 + $0x7b8] sm:$0xff] %v1684_v34  ;;  %v1047_v42 = vand.u32 255, %v727_v35  ;;  %v1048_v43 = vand.u32 255, %v728_v36  ;;  %v1049_v44 = vand.u32 255, %v729_v37  ;;  %v731_v45 = vshra.s32 %v411_v33, 16  ;;  %v421_v27 = vld [vmem:[%s6669_s4 + $0x848] sm:$0xff] }
 0x14c   : > { %v1364_v47 = vcvt.s32.f32 %v1044_v38  ;;  %v1365_v48 = vcvt.s32.f32 %v1045_v39  ;;  %v1366_v49 = vcvt.s32.f32 %v1046_v40  ;;  %v1050_v50 = vand.u32 255, %v730_v41  ;;  %v422_v28 = vld [vmem:[%s6669_s4 + $0x850] sm:$0xff]  ;;  %v423_v29 = vld [vmem:[%s6669_s4 + $0x858] sm:$0xff]  ;;  %v424_v34 = vld [vmem:[%s6669_s4 + $0x860] sm:$0xff] }
 0x14d   : > { %v1367_v54 = vcvt.s32.f32 %v1047_v42  ;;  %v1368_v55 = vcvt.s32.f32 %v1048_v43  ;;  %v1369_v56 = vcvt.s32.f32 %v1049_v44  ;;  %v1051_v57 = vand.u32 255, %v731_v45  ;;  %v425_v35 = vld [vmem:[%s6669_s4 + $0x868] sm:$0xff]  ;;  %v426_v36 = vld [vmem:[%s6669_s4 + $0x870] sm:$0xff] }
 0x14e   : > { %v1685_v61 = vmul.f32 0.003921569, %v1364_v47  ;;  %v1686_v62 = vmul.f32 0.003921569, %v1365_v48  ;;  %v1687_v63 = vmul.f32 0.003921569, %v1366_v49  ;;  %v1370_v0 = vcvt.s32.f32 %v1050_v50 }
 0x14f   : > { %v1688_v1 = vmul.f32 0.003921569, %v1367_v54  ;;  %v1689_v2 = vmul.f32 0.003921569, %v1368_v55  ;;  %v1690_v3 = vmul.f32 0.003921569, %v1369_v56  ;;  %v1371_v4 = vcvt.s32.f32 %v1051_v57 }
 0x150   : > { %2005 = vst [vmem:[%s6693_s25 + $0x7c0] sm:$0xff] %v1685_v61  ;;  %2006 = vst [vmem:[%s6693_s25 + $0x7c8] sm:$0xff] %v1686_v62  ;;  %v1691_v5 = vmul.f32 0.003921569, %v1370_v0  ;;  %v732_v6 = vshra.s32 %v412_v46, 16  ;;  %v733_v7 = vshra.s32 %v413_v51, 16 }
 0x151   : > { %2007 = vst [vmem:[%s6693_s25 + $0x7d0] sm:$0xff] %v1687_v63  ;;  %v734_v8 = vshra.s32 %v414_v52, 16  ;;  %2008 = vst [vmem:[%s6693_s25 + $0x7d8] sm:$0xff] %v1688_v1  ;;  %v1692_v10 = vmul.f32 0.003921569, %v1371_v4  ;;  %v735_v11 = vshra.s32 %v415_v53, 16 }
 0x152   : > { %2009 = vst [vmem:[%s6693_s25 + $0x7e0] sm:$0xff] %v1689_v2  ;;  %2010 = vst [vmem:[%s6693_s25 + $0x7e8] sm:$0xff] %v1690_v3  ;;  %v736_v12 = vshra.s32 %v416_v58, 16  ;;  %v737_v13 = vshra.s32 %v417_v59, 16  ;;  %v1052_v14 = vand.u32 255, %v732_v6  ;;  %v1053_v15 = vand.u32 255, %v733_v7 }
 0x153   : > { %2011 = vst [vmem:[%s6693_s25 + $0x7f0] sm:$0xff] %v1691_v5  ;;  %v1054_v16 = vand.u32 255, %v734_v8  ;;  %v738_v17 = vshra.s32 %v418_v60, 16  ;;  %2012 = vst [vmem:[%s6693_s25 + $0x7f8] sm:$0xff] %v1692_v10  ;;  %v1055_v18 = vand.u32 255, %v735_v11  ;;  %v739_v21 = vshra.s32 %v419_v9, 16 }
 0x154   : > { %v1056_v19 = vand.u32 255, %v736_v12  ;;  %v1057_v20 = vand.u32 255, %v737_v13  ;;  %v1372_v23 = vcvt.s32.f32 %v1052_v14  ;;  %v1373_v24 = vcvt.s32.f32 %v1053_v15  ;;  %v427_v49 = vld [vmem:[%s6669_s4 + $0x878] sm:$0xff]  ;;  %v428_v62 = vld [vmem:[%s6669_s4 + $0x880] sm:$0xff]  ;;  %v429_v3 = vld [vmem:[%s6669_s4 + $0x888] sm:$0xff] }
 0x155   : > { %v1374_v25 = vcvt.s32.f32 %v1054_v16  ;;  %v1058_v26 = vand.u32 255, %v738_v17  ;;  %v1375_v30 = vcvt.s32.f32 %v1055_v18  ;;  %v1059_v33 = vand.u32 255, %v739_v21  ;;  %v430_v4 = vld [vmem:[%s6669_s4 + $0x890] sm:$0xff]  ;;  %v431_v5 = vld [vmem:[%s6669_s4 + $0x898] sm:$0xff]  ;;  %v432_v10 = vld [vmem:[%s6669_s4 + $0x8a0] sm:$0xff] }
 0x156   : > { %v1376_v31 = vcvt.s32.f32 %v1056_v19  ;;  %v1377_v32 = vcvt.s32.f32 %v1057_v20  ;;  %v1693_v37 = vmul.f32 0.003921569, %v1372_v23  ;;  %v1694_v38 = vmul.f32 0.003921569, %v1373_v24  ;;  %v433_v11 = vld [vmem:[%s6669_s4 + $0x8a8] sm:$0xff]  ;;  %v434_v12 = vld [vmem:[%s6669_s4 + $0x8b0] sm:$0xff] }
 0x157   : > { %v1695_v39 = vmul.f32 0.003921569, %v1374_v25  ;;  %v1378_v40 = vcvt.s32.f32 %v1058_v26  ;;  %v1696_v41 = vmul.f32 0.003921569, %v1375_v30  ;;  %v1379_v44 = vcvt.s32.f32 %v1059_v33  ;;  %v435_v25 = vld [vmem:[%s6669_s4 + $0x8b8] sm:$0xff] }
 0x158   : > { %v1697_v42 = vmul.f32 0.003921569, %v1376_v31  ;;  %v1698_v43 = vmul.f32 0.003921569, %v1377_v32  ;;  %2013 = vst [vmem:[%s6693_s25 + $0x800] sm:$0xff] %v1693_v37  ;;  %2014 = vst [vmem:[%s6693_s25 + $0x808] sm:$0xff] %v1694_v38 }
 0x159   : > { %2015 = vst [vmem:[%s6693_s25 + $0x810] sm:$0xff] %v1695_v39  ;;  %v1699_v45 = vmul.f32 0.003921569, %v1378_v40  ;;  %v740_v46 = vshra.s32 %v420_v22, 16  ;;  %v741_v47 = vshra.s32 %v421_v27, 16  ;;  %v742_v48 = vshra.s32 %v422_v28, 16 }
 0x15a   : > { %2016 = vst [vmem:[%s6693_s25 + $0x818] sm:$0xff] %v1696_v41  ;;  %2017 = vst [vmem:[%s6693_s25 + $0x820] sm:$0xff] %v1697_v42  ;;  %v1700_v50 = vmul.f32 0.003921569, %v1379_v44  ;;  %v743_v51 = vshra.s32 %v423_v29, 16  ;;  %v744_v52 = vshra.s32 %v424_v34, 16 }
 0x15b   : > { %2018 = vst [vmem:[%s6693_s25 + $0x828] sm:$0xff] %v1698_v43  ;;  %v745_v53 = vshra.s32 %v425_v35, 16  ;;  %2019 = vst [vmem:[%s6693_s25 + $0x830] sm:$0xff] %v1699_v45  ;;  %v1060_v54 = vand.u32 255, %v740_v46  ;;  %v1061_v55 = vand.u32 255, %v741_v47  ;;  %v1062_v56 = vand.u32 255, %v742_v48 }
 0x15c   : > { %v746_v57 = vshra.s32 %v426_v36, 16  ;;  %2020 = vst [vmem:[%s6693_s25 + $0x838] sm:$0xff] %v1700_v50  ;;  %v1063_v58 = vand.u32 255, %v743_v51  ;;  %v1064_v59 = vand.u32 255, %v744_v52  ;;  %v747_v61 = vshra.s32 %v427_v49, 16  ;;  %v436_v38 = vld [vmem:[%s6669_s4 + $0x8c0] sm:$0xff] }
 0x15d   : > { %v1065_v60 = vand.u32 255, %v745_v53  ;;  %v1380_v63 = vcvt.s32.f32 %v1060_v54  ;;  %v1381_v0 = vcvt.s32.f32 %v1061_v55  ;;  %v1382_v1 = vcvt.s32.f32 %v1062_v56  ;;  %v437_v43 = vld [vmem:[%s6669_s4 + $0x8c8] sm:$0xff]  ;;  %v438_v44 = vld [vmem:[%s6669_s4 + $0x8d0] sm:$0xff]  ;;  %v439_v45 = vld [vmem:[%s6669_s4 + $0x8d8] sm:$0xff] }
 0x15e   : > { %v1066_v2 = vand.u32 255, %v746_v57  ;;  %v1383_v6 = vcvt.s32.f32 %v1063_v58  ;;  %v1384_v7 = vcvt.s32.f32 %v1064_v59  ;;  %v1067_v9 = vand.u32 255, %v747_v61  ;;  %v440_v50 = vld [vmem:[%s6669_s4 + $0x8e0] sm:$0xff]  ;;  %v441_v51 = vld [vmem:[%s6669_s4 + $0x8e8] sm:$0xff]  ;;  %v442_v52 = vld [vmem:[%s6669_s4 + $0x8f0] sm:$0xff] }
 0x15f   : > { %v1385_v8 = vcvt.s32.f32 %v1065_v60  ;;  %v1701_v13 = vmul.f32 0.003921569, %v1380_v63  ;;  %v1702_v14 = vmul.f32 0.003921569, %v1381_v0  ;;  %v1703_v15 = vmul.f32 0.003921569, %v1382_v1 }
 0x160   : > { %v1386_v16 = vcvt.s32.f32 %v1066_v2  ;;  %v1704_v17 = vmul.f32 0.003921569, %v1383_v6  ;;  %v1705_v18 = vmul.f32 0.003921569, %v1384_v7  ;;  %v1387_v20 = vcvt.s32.f32 %v1067_v9  ;;  %v443_v1 = vld [vmem:[%s6669_s4 + $0x8f8] sm:$0xff] }
 0x161   : > { %v1706_v19 = vmul.f32 0.003921569, %v1385_v8  ;;  %2021 = vst [vmem:[%s6693_s25 + $0x840] sm:$0xff] %v1701_v13  ;;  %2022 = vst [vmem:[%s6693_s25 + $0x848] sm:$0xff] %v1702_v14  ;;  %v748_v22 = vshra.s32 %v428_v62, 16  ;;  %v749_v23 = vshra.s32 %v429_v3, 16 }
 0x162   : > { %2023 = vst [vmem:[%s6693_s25 + $0x850] sm:$0xff] %v1703_v15  ;;  %v1707_v21 = vmul.f32 0.003921569, %v1386_v16  ;;  %v750_v24 = vshra.s32 %v430_v4, 16  ;;  %2024 = vst [vmem:[%s6693_s25 + $0x858] sm:$0xff] %v1704_v17  ;;  %v751_v27 = vshra.s32 %v431_v5, 16 }
 0x163   : > { %2025 = vst [vmem:[%s6693_s25 + $0x860] sm:$0xff] %v1705_v18  ;;  %2026 = vst [vmem:[%s6693_s25 + $0x868] sm:$0xff] %v1706_v19  ;;  %v1708_v26 = vmul.f32 0.003921569, %v1387_v20  ;;  %v752_v28 = vshra.s32 %v432_v10, 16  ;;  %v753_v29 = vshra.s32 %v433_v11, 16 }
 0x164   : > { %2027 = vst [vmem:[%s6693_s25 + $0x870] sm:$0xff] %v1707_v21  ;;  %v1068_v30 = vand.u32 255, %v748_v22  ;;  %v1069_v31 = vand.u32 255, %v749_v23  ;;  %v1070_v32 = vand.u32 255, %v750_v24  ;;  %v754_v33 = vshra.s32 %v434_v12, 16  ;;  %v444_v14 = vld [vmem:[%s6669_s4 + $0x900] sm:$0xff] }
 0x165   : > { %2028 = vst [vmem:[%s6693_s25 + $0x878] sm:$0xff] %v1708_v26  ;;  %v1071_v34 = vand.u32 255, %v751_v27  ;;  %v1072_v35 = vand.u32 255, %v752_v28  ;;  %v1073_v36 = vand.u32 255, %v753_v29  ;;  %v755_v37 = vshra.s32 %v435_v25, 16  ;;  %v445_v19 = vld [vmem:[%s6669_s4 + $0x908] sm:$0xff] }
 0x166   : > { %v1388_v39 = vcvt.s32.f32 %v1068_v30  ;;  %v1389_v40 = vcvt.s32.f32 %v1069_v31  ;;  %v1390_v41 = vcvt.s32.f32 %v1070_v32  ;;  %v1074_v42 = vand.u32 255, %v754_v33  ;;  %v446_v20 = vld [vmem:[%s6669_s4 + $0x910] sm:$0xff]  ;;  %v447_v21 = vld [vmem:[%s6669_s4 + $0x918] sm:$0xff]  ;;  %v448_v26 = vld [vmem:[%s6669_s4 + $0x920] sm:$0xff] }
 0x167   : > { %v1391_v46 = vcvt.s32.f32 %v1071_v34  ;;  %v1392_v47 = vcvt.s32.f32 %v1072_v35  ;;  %v1393_v48 = vcvt.s32.f32 %v1073_v36  ;;  %v1075_v49 = vand.u32 255, %v755_v37  ;;  %v449_v27 = vld [vmem:[%s6669_s4 + $0x928] sm:$0xff]  ;;  %v450_v28 = vld [vmem:[%s6669_s4 + $0x930] sm:$0xff] }
 0x168   : > { %v1709_v53 = vmul.f32 0.003921569, %v1388_v39  ;;  %v1710_v54 = vmul.f32 0.003921569, %v1389_v40  ;;  %v1711_v55 = vmul.f32 0.003921569, %v1390_v41  ;;  %v1394_v56 = vcvt.s32.f32 %v1074_v42 }
 0x169   : > { %v1712_v57 = vmul.f32 0.003921569, %v1391_v46  ;;  %v1713_v58 = vmul.f32 0.003921569, %v1392_v47  ;;  %v1714_v59 = vmul.f32 0.003921569, %v1393_v48  ;;  %v1395_v60 = vcvt.s32.f32 %v1075_v49 }
 0x16a   : > { %2029 = vst [vmem:[%s6693_s25 + $0x880] sm:$0xff] %v1709_v53  ;;  %2030 = vst [vmem:[%s6693_s25 + $0x888] sm:$0xff] %v1710_v54  ;;  %v1715_v61 = vmul.f32 0.003921569, %v1394_v56  ;;  %v756_v62 = vshra.s32 %v436_v38, 16  ;;  %v757_v63 = vshra.s32 %v437_v43, 16 }
 0x16b   : > { %2031 = vst [vmem:[%s6693_s25 + $0x890] sm:$0xff] %v1711_v55  ;;  %v758_v0 = vshra.s32 %v438_v44, 16  ;;  %2032 = vst [vmem:[%s6693_s25 + $0x898] sm:$0xff] %v1712_v57  ;;  %v1716_v2 = vmul.f32 0.003921569, %v1395_v60  ;;  %v759_v3 = vshra.s32 %v439_v45, 16 }
 0x16c   : > { %2033 = vst [vmem:[%s6693_s25 + $0x8a0] sm:$0xff] %v1713_v58  ;;  %2034 = vst [vmem:[%s6693_s25 + $0x8a8] sm:$0xff] %v1714_v59  ;;  %v760_v4 = vshra.s32 %v440_v50, 16  ;;  %v761_v5 = vshra.s32 %v441_v51, 16  ;;  %v1076_v6 = vand.u32 255, %v756_v62  ;;  %v1077_v7 = vand.u32 255, %v757_v63 }
 0x16d   : > { %2035 = vst [vmem:[%s6693_s25 + $0x8b0] sm:$0xff] %v1715_v61  ;;  %v1078_v8 = vand.u32 255, %v758_v0  ;;  %v762_v9 = vshra.s32 %v442_v52, 16  ;;  %2036 = vst [vmem:[%s6693_s25 + $0x8b8] sm:$0xff] %v1716_v2  ;;  %v1079_v10 = vand.u32 255, %v759_v3  ;;  %v763_v13 = vshra.s32 %v443_v1, 16 }
 0x16e   : > { %v1080_v11 = vand.u32 255, %v760_v4  ;;  %v1081_v12 = vand.u32 255, %v761_v5  ;;  %v1396_v15 = vcvt.s32.f32 %v1076_v6  ;;  %v1397_v16 = vcvt.s32.f32 %v1077_v7  ;;  %v451_v41 = vld [vmem:[%s6669_s4 + $0x938] sm:$0xff]  ;;  %v452_v54 = vld [vmem:[%s6669_s4 + $0x940] sm:$0xff]  ;;  %v453_v59 = vld [vmem:[%s6669_s4 + $0x948] sm:$0xff] }
 0x16f   : > { %v1398_v17 = vcvt.s32.f32 %v1078_v8  ;;  %v1082_v18 = vand.u32 255, %v762_v9  ;;  %v1399_v22 = vcvt.s32.f32 %v1079_v10  ;;  %v1083_v25 = vand.u32 255, %v763_v13  ;;  %v454_v60 = vld [vmem:[%s6669_s4 + $0x950] sm:$0xff]  ;;  %v455_v61 = vld [vmem:[%s6669_s4 + $0x958] sm:$0xff]  ;;  %v456_v2 = vld [vmem:[%s6669_s4 + $0x960] sm:$0xff] }
 0x170   : > { %v1400_v23 = vcvt.s32.f32 %v1080_v11  ;;  %v1401_v24 = vcvt.s32.f32 %v1081_v12  ;;  %v1717_v29 = vmul.f32 0.003921569, %v1396_v15  ;;  %v1718_v30 = vmul.f32 0.003921569, %v1397_v16  ;;  %v457_v3 = vld [vmem:[%s6669_s4 + $0x968] sm:$0xff]  ;;  %v458_v4 = vld [vmem:[%s6669_s4 + $0x970] sm:$0xff] }
 0x171   : > { %v1719_v31 = vmul.f32 0.003921569, %v1398_v17  ;;  %v1402_v32 = vcvt.s32.f32 %v1082_v18  ;;  %v1720_v33 = vmul.f32 0.003921569, %v1399_v22  ;;  %v1403_v36 = vcvt.s32.f32 %v1083_v25  ;;  %v459_v17 = vld [vmem:[%s6669_s4 + $0x978] sm:$0xff] }
 0x172   : > { %v1721_v34 = vmul.f32 0.003921569, %v1400_v23  ;;  %v1722_v35 = vmul.f32 0.003921569, %v1401_v24  ;;  %2037 = vst [vmem:[%s6693_s25 + $0x8c0] sm:$0xff] %v1717_v29  ;;  %2038 = vst [vmem:[%s6693_s25 + $0x8c8] sm:$0xff] %v1718_v30 }
 0x173   : > { %2039 = vst [vmem:[%s6693_s25 + $0x8d0] sm:$0xff] %v1719_v31  ;;  %v1723_v37 = vmul.f32 0.003921569, %v1402_v32  ;;  %v764_v38 = vshra.s32 %v444_v14, 16  ;;  %v765_v39 = vshra.s32 %v445_v19, 16  ;;  %v766_v40 = vshra.s32 %v446_v20, 16 }
 0x174   : > { %2040 = vst [vmem:[%s6693_s25 + $0x8d8] sm:$0xff] %v1720_v33  ;;  %2041 = vst [vmem:[%s6693_s25 + $0x8e0] sm:$0xff] %v1721_v34  ;;  %v1724_v42 = vmul.f32 0.003921569, %v1403_v36  ;;  %v767_v43 = vshra.s32 %v447_v21, 16  ;;  %v768_v44 = vshra.s32 %v448_v26, 16 }
 0x175   : > { %2042 = vst [vmem:[%s6693_s25 + $0x8e8] sm:$0xff] %v1722_v35  ;;  %v769_v45 = vshra.s32 %v449_v27, 16  ;;  %2043 = vst [vmem:[%s6693_s25 + $0x8f0] sm:$0xff] %v1723_v37  ;;  %v1084_v46 = vand.u32 255, %v764_v38  ;;  %v1085_v47 = vand.u32 255, %v765_v39  ;;  %v1086_v48 = vand.u32 255, %v766_v40 }
 0x176   : > { %v770_v49 = vshra.s32 %v450_v28, 16  ;;  %2044 = vst [vmem:[%s6693_s25 + $0x8f8] sm:$0xff] %v1724_v42  ;;  %v1087_v50 = vand.u32 255, %v767_v43  ;;  %v1088_v51 = vand.u32 255, %v768_v44  ;;  %v771_v53 = vshra.s32 %v451_v41, 16  ;;  %v460_v30 = vld [vmem:[%s6669_s4 + $0x980] sm:$0xff] }
 0x177   : > { %v1089_v52 = vand.u32 255, %v769_v45  ;;  %v1404_v55 = vcvt.s32.f32 %v1084_v46  ;;  %v1405_v56 = vcvt.s32.f32 %v1085_v47  ;;  %v1406_v57 = vcvt.s32.f32 %v1086_v48  ;;  %v461_v35 = vld [vmem:[%s6669_s4 + $0x988] sm:$0xff]  ;;  %v462_v36 = vld [vmem:[%s6669_s4 + $0x990] sm:$0xff]  ;;  %v463_v37 = vld [vmem:[%s6669_s4 + $0x998] sm:$0xff] }
 0x178   : > { %v1090_v58 = vand.u32 255, %v770_v49  ;;  %v1407_v62 = vcvt.s32.f32 %v1087_v50  ;;  %v1408_v63 = vcvt.s32.f32 %v1088_v51  ;;  %v1091_v1 = vand.u32 255, %v771_v53  ;;  %v464_v42 = vld [vmem:[%s6669_s4 + $0x9a0] sm:$0xff]  ;;  %v465_v43 = vld [vmem:[%s6669_s4 + $0x9a8] sm:$0xff]  ;;  %v466_v44 = vld [vmem:[%s6669_s4 + $0x9b0] sm:$0xff] }
 0x179   : > { %v1409_v0 = vcvt.s32.f32 %v1089_v52  ;;  %v1725_v5 = vmul.f32 0.003921569, %v1404_v55  ;;  %v1726_v6 = vmul.f32 0.003921569, %v1405_v56  ;;  %v1727_v7 = vmul.f32 0.003921569, %v1406_v57 }
 0x17a   : > { %v1410_v8 = vcvt.s32.f32 %v1090_v58  ;;  %v1728_v9 = vmul.f32 0.003921569, %v1407_v62  ;;  %v1729_v10 = vmul.f32 0.003921569, %v1408_v63  ;;  %v1411_v12 = vcvt.s32.f32 %v1091_v1  ;;  %v467_v57 = vld [vmem:[%s6669_s4 + $0x9b8] sm:$0xff] }
 0x17b   : > { %v1730_v11 = vmul.f32 0.003921569, %v1409_v0  ;;  %2045 = vst [vmem:[%s6693_s25 + $0x900] sm:$0xff] %v1725_v5  ;;  %2046 = vst [vmem:[%s6693_s25 + $0x908] sm:$0xff] %v1726_v6  ;;  %v772_v14 = vshra.s32 %v452_v54, 16  ;;  %v773_v15 = vshra.s32 %v453_v59, 16 }
 0x17c   : > { %2047 = vst [vmem:[%s6693_s25 + $0x910] sm:$0xff] %v1727_v7  ;;  %v1731_v13 = vmul.f32 0.003921569, %v1410_v8  ;;  %v774_v16 = vshra.s32 %v454_v60, 16  ;;  %2048 = vst [vmem:[%s6693_s25 + $0x918] sm:$0xff] %v1728_v9  ;;  %v775_v19 = vshra.s32 %v455_v61, 16 }
 0x17d   : > { %2049 = vst [vmem:[%s6693_s25 + $0x920] sm:$0xff] %v1729_v10  ;;  %2050 = vst [vmem:[%s6693_s25 + $0x928] sm:$0xff] %v1730_v11  ;;  %v1732_v18 = vmul.f32 0.003921569, %v1411_v12  ;;  %v776_v20 = vshra.s32 %v456_v2, 16  ;;  %v777_v21 = vshra.s32 %v457_v3, 16 }
 0x17e   : > { %2051 = vst [vmem:[%s6693_s25 + $0x930] sm:$0xff] %v1731_v13  ;;  %v1092_v22 = vand.u32 255, %v772_v14  ;;  %v1093_v23 = vand.u32 255, %v773_v15  ;;  %v1094_v24 = vand.u32 255, %v774_v16  ;;  %v778_v25 = vshra.s32 %v458_v4, 16  ;;  %v468_v6 = vld [vmem:[%s6669_s4 + $0x9c0] sm:$0xff] }
 0x17f   : > { %2052 = vst [vmem:[%s6693_s25 + $0x938] sm:$0xff] %v1732_v18  ;;  %v1095_v26 = vand.u32 255, %v775_v19  ;;  %v1096_v27 = vand.u32 255, %v776_v20  ;;  %v1097_v28 = vand.u32 255, %v777_v21  ;;  %v779_v29 = vshra.s32 %v459_v17, 16  ;;  %v469_v11 = vld [vmem:[%s6669_s4 + $0x9c8] sm:$0xff] }
 0x180   : > { %v1412_v31 = vcvt.s32.f32 %v1092_v22  ;;  %v1413_v32 = vcvt.s32.f32 %v1093_v23  ;;  %v1414_v33 = vcvt.s32.f32 %v1094_v24  ;;  %v1098_v34 = vand.u32 255, %v778_v25  ;;  %v470_v12 = vld [vmem:[%s6669_s4 + $0x9d0] sm:$0xff]  ;;  %v471_v13 = vld [vmem:[%s6669_s4 + $0x9d8] sm:$0xff]  ;;  %v472_v18 = vld [vmem:[%s6669_s4 + $0x9e0] sm:$0xff] }
 0x181   : > { %v1415_v38 = vcvt.s32.f32 %v1095_v26  ;;  %v1416_v39 = vcvt.s32.f32 %v1096_v27  ;;  %v1417_v40 = vcvt.s32.f32 %v1097_v28  ;;  %v1099_v41 = vand.u32 255, %v779_v29  ;;  %v473_v19 = vld [vmem:[%s6669_s4 + $0x9e8] sm:$0xff]  ;;  %v474_v20 = vld [vmem:[%s6669_s4 + $0x9f0] sm:$0xff] }
 0x182   : > { %v1733_v45 = vmul.f32 0.003921569, %v1412_v31  ;;  %v1734_v46 = vmul.f32 0.003921569, %v1413_v32  ;;  %v1735_v47 = vmul.f32 0.003921569, %v1414_v33  ;;  %v1418_v48 = vcvt.s32.f32 %v1098_v34 }
 0x183   : > { %v1736_v49 = vmul.f32 0.003921569, %v1415_v38  ;;  %v1737_v50 = vmul.f32 0.003921569, %v1416_v39  ;;  %v1738_v51 = vmul.f32 0.003921569, %v1417_v40  ;;  %v1419_v52 = vcvt.s32.f32 %v1099_v41 }
 0x184   : > { %2053 = vst [vmem:[%s6693_s25 + $0x940] sm:$0xff] %v1733_v45  ;;  %2054 = vst [vmem:[%s6693_s25 + $0x948] sm:$0xff] %v1734_v46  ;;  %v1739_v53 = vmul.f32 0.003921569, %v1418_v48  ;;  %v780_v54 = vshra.s32 %v460_v30, 16  ;;  %v781_v55 = vshra.s32 %v461_v35, 16 }
 0x185   : > { %2055 = vst [vmem:[%s6693_s25 + $0x950] sm:$0xff] %v1735_v47  ;;  %v782_v56 = vshra.s32 %v462_v36, 16  ;;  %2056 = vst [vmem:[%s6693_s25 + $0x958] sm:$0xff] %v1736_v49  ;;  %v1740_v58 = vmul.f32 0.003921569, %v1419_v52  ;;  %v783_v59 = vshra.s32 %v463_v37, 16 }
 0x186   : > { %2057 = vst [vmem:[%s6693_s25 + $0x960] sm:$0xff] %v1737_v50  ;;  %2058 = vst [vmem:[%s6693_s25 + $0x968] sm:$0xff] %v1738_v51  ;;  %v784_v60 = vshra.s32 %v464_v42, 16  ;;  %v785_v61 = vshra.s32 %v465_v43, 16  ;;  %v1100_v62 = vand.u32 255, %v780_v54  ;;  %v1101_v63 = vand.u32 255, %v781_v55 }
 0x187   : > { %2059 = vst [vmem:[%s6693_s25 + $0x970] sm:$0xff] %v1739_v53  ;;  %v1102_v0 = vand.u32 255, %v782_v56  ;;  %v786_v1 = vshra.s32 %v466_v44, 16  ;;  %2060 = vst [vmem:[%s6693_s25 + $0x978] sm:$0xff] %v1740_v58  ;;  %v1103_v2 = vand.u32 255, %v783_v59  ;;  %v787_v5 = vshra.s32 %v467_v57, 16 }
 0x188   : > { %v1104_v3 = vand.u32 255, %v784_v60  ;;  %v1105_v4 = vand.u32 255, %v785_v61  ;;  %v1420_v7 = vcvt.s32.f32 %v1100_v62  ;;  %v1421_v8 = vcvt.s32.f32 %v1101_v63  ;;  %v475_v33 = vld [vmem:[%s6669_s4 + $0x9f8] sm:$0xff]  ;;  %v5783_v63 = vld [vmem:[%s6669_s4] sm:$0xff] }
 0x189   : > { %v1422_v9 = vcvt.s32.f32 %v1102_v0  ;;  %v1106_v10 = vand.u32 255, %v786_v1  ;;  %v1423_v14 = vcvt.s32.f32 %v1103_v2  ;;  %v1107_v17 = vand.u32 255, %v787_v5  ;;  %v5784_v1 = vld [vmem:[%s6669_s4 + $0x8] sm:$0xff] }
 0x18a   : > { %v1424_v15 = vcvt.s32.f32 %v1104_v3  ;;  %v1425_v16 = vcvt.s32.f32 %v1105_v4  ;;  %v1741_v21 = vmul.f32 0.003921569, %v1420_v7  ;;  %v1742_v22 = vmul.f32 0.003921569, %v1421_v8  ;;  %v5785_v3 = vld [vmem:[%s6669_s4 + $0x10] sm:$0xff]  ;;  %v5787_v8 = vld [vmem:[%s6669_s4 + $0x20] sm:$0xff] }
 0x18b   : > { %v1743_v23 = vmul.f32 0.003921569, %v1422_v9  ;;  %v1426_v24 = vcvt.s32.f32 %v1106_v10  ;;  %v1744_v25 = vmul.f32 0.003921569, %v1423_v14  ;;  %v1427_v28 = vcvt.s32.f32 %v1107_v17  ;;  %v5788_v10 = vld [vmem:[%s6669_s4 + $0x28] sm:$0xff] }
 0x18c   : > { %v1745_v26 = vmul.f32 0.003921569, %v1424_v15  ;;  %v1746_v27 = vmul.f32 0.003921569, %v1425_v16  ;;  %2061 = vst [vmem:[%s6693_s25 + $0x980] sm:$0xff] %v1741_v21  ;;  %2062 = vst [vmem:[%s6693_s25 + $0x988] sm:$0xff] %v1742_v22 }
 0x18d   : > { %2063 = vst [vmem:[%s6693_s25 + $0x990] sm:$0xff] %v1743_v23  ;;  %v1747_v29 = vmul.f32 0.003921569, %v1426_v24  ;;  %v788_v30 = vshra.s32 %v468_v6, 16  ;;  %v789_v31 = vshra.s32 %v469_v11, 16  ;;  %v790_v32 = vshra.s32 %v470_v12, 16 }
 0x18e   : > { %2064 = vst [vmem:[%s6693_s25 + $0x998] sm:$0xff] %v1744_v25  ;;  %2065 = vst [vmem:[%s6693_s25 + $0x9a0] sm:$0xff] %v1745_v26  ;;  %v1748_v34 = vmul.f32 0.003921569, %v1427_v28  ;;  %v791_v35 = vshra.s32 %v471_v13, 16  ;;  %v792_v36 = vshra.s32 %v472_v18, 16 }
 0x18f   : > { %2066 = vst [vmem:[%s6693_s25 + $0x9a8] sm:$0xff] %v1746_v27  ;;  %v793_v37 = vshra.s32 %v473_v19, 16  ;;  %2067 = vst [vmem:[%s6693_s25 + $0x9b0] sm:$0xff] %v1747_v29  ;;  %v1108_v38 = vand.u32 255, %v788_v30  ;;  %v1109_v39 = vand.u32 255, %v789_v31  ;;  %v1110_v40 = vand.u32 255, %v790_v32 }
 0x190   : > { %v794_v41 = vshra.s32 %v474_v20, 16  ;;  %2068 = vst [vmem:[%s6693_s25 + $0x9b8] sm:$0xff] %v1748_v34  ;;  %v1111_v42 = vand.u32 255, %v791_v35  ;;  %v1112_v43 = vand.u32 255, %v792_v36  ;;  %v795_v45 = vshra.s32 %v475_v33, 16  ;;  %v5786_v6 = vld [vmem:[%s6669_s4 + $0x18] sm:$0xff] }
 0x191   : > { %v1113_v44 = vand.u32 255, %v793_v37  ;;  %v1428_v46 = vcvt.s32.f32 %v1108_v38  ;;  %v1429_v47 = vcvt.s32.f32 %v1109_v39  ;;  %v1430_v48 = vcvt.s32.f32 %v1110_v40  ;;  %v5789_v15 = vld [vmem:[%s6669_s4 + $0x30] sm:$0xff]  ;;  %v5790_v20 = vld [vmem:[%s6669_s4 + $0x38] sm:$0xff]  ;;  %v5791_v39 = vld [vmem:[%s6669_s4 + $0x40] sm:$0xff] }
 0x192   : > { %v1114_v49 = vand.u32 255, %v794_v41  ;;  %v1431_v50 = vcvt.s32.f32 %v1111_v42  ;;  %v1432_v51 = vcvt.s32.f32 %v1112_v43  ;;  %v1115_v53 = vand.u32 255, %v795_v45  ;;  %v5792_v41 = vld [vmem:[%s6669_s4 + $0x48] sm:$0xff]  ;;  %v5793_v43 = vld [vmem:[%s6669_s4 + $0x50] sm:$0xff] }
 0x193   : > { %v1433_v52 = vcvt.s32.f32 %v1113_v44  ;;  %v1749_v54 = vmul.f32 0.003921569, %v1428_v46  ;;  %v1750_v55 = vmul.f32 0.003921569, %v1429_v47  ;;  %v1751_v56 = vmul.f32 0.003921569, %v1430_v48 }
 0x194   : > { %v1434_v57 = vcvt.s32.f32 %v1114_v49  ;;  %v1752_v58 = vmul.f32 0.003921569, %v1431_v50  ;;  %v1753_v59 = vmul.f32 0.003921569, %v1432_v51  ;;  %v1435_v61 = vcvt.s32.f32 %v1115_v53  ;;  %v5794_v46 = vld [vmem:[%s6669_s4 + $0x58] sm:$0xff]  ;;  %v5795_v48 = vld [vmem:[%s6669_s4 + $0x60] sm:$0xff] }
 0x195   : > { %v1754_v60 = vmul.f32 0.003921569, %v1433_v52  ;;  %2069 = vst [vmem:[%s6693_s25 + $0x9c0] sm:$0xff] %v1749_v54  ;;  %2070 = vst [vmem:[%s6693_s25 + $0x9c8] sm:$0xff] %v1750_v55  ;;  %v2077_v0 = vshra.s32 %v5783_v63, 8  ;;  %v2078_v2 = vshra.s32 %v5784_v1, 8 }
 0x196   : > { %2071 = vst [vmem:[%s6693_s25 + $0x9d0] sm:$0xff] %v1751_v56  ;;  %v1755_v62 = vmul.f32 0.003921569, %v1434_v57  ;;  %v2079_v4 = vshra.s32 %v5785_v3, 8  ;;  %2072 = vst [vmem:[%s6693_s25 + $0x9d8] sm:$0xff] %v1752_v58  ;;  %v2080_v7 = vshra.s32 %v5786_v6, 8 }
 0x197   : > { %2073 = vst [vmem:[%s6693_s25 + $0x9e0] sm:$0xff] %v1753_v59  ;;  %2074 = vst [vmem:[%s6693_s25 + $0x9e8] sm:$0xff] %v1754_v60  ;;  %v1756_v5 = vmul.f32 0.003921569, %v1435_v61  ;;  %v2081_v9 = vshra.s32 %v5787_v8, 8  ;;  %v2082_v11 = vshra.s32 %v5788_v10, 8 }
 0x198   : > { %2075 = vst [vmem:[%s6693_s25 + $0x9f0] sm:$0xff] %v1755_v62  ;;  %v2397_v12 = vand.u32 255, %v2077_v0  ;;  %v2398_v13 = vand.u32 255, %v2078_v2  ;;  %v2399_v14 = vand.u32 255, %v2079_v4  ;;  %v2083_v16 = vshra.s32 %v5789_v15, 8  ;;  %v5796_v50 = vld [vmem:[%s6669_s4 + $0x68] sm:$0xff] }
 0x199   : > { %2076 = vst [vmem:[%s6693_s25 + $0x9f8] sm:$0xff] %v1756_v5  ;;  %v2400_v17 = vand.u32 255, %v2080_v7  ;;  %v2401_v18 = vand.u32 255, %v2081_v9  ;;  %v2402_v19 = vand.u32 255, %v2082_v11  ;;  %v2084_v21 = vshra.s32 %v5790_v20, 8  ;;  %v5797_v55 = vld [vmem:[%s6669_s4 + $0x70] sm:$0xff] }
 0x19a   : > { %v2717_v22 = vcvt.s32.f32 %v2397_v12  ;;  %v2718_v23 = vcvt.s32.f32 %v2398_v13  ;;  %v2719_v24 = vcvt.s32.f32 %v2399_v14  ;;  %v2403_v25 = vand.u32 255, %v2083_v16  ;;  %v5798_v60 = vld [vmem:[%s6669_s4 + $0x78] sm:$0xff]  ;;  %v5799_v15 = vld [vmem:[%s6669_s4 + $0x80] sm:$0xff] }
 0x19b   : > { %v2720_v26 = vcvt.s32.f32 %v2400_v17  ;;  %v2721_v27 = vcvt.s32.f32 %v2401_v18  ;;  %v2722_v28 = vcvt.s32.f32 %v2402_v19  ;;  %v2404_v29 = vand.u32 255, %v2084_v21  ;;  %v5800_v17 = vld [vmem:[%s6669_s4 + $0x88] sm:$0xff]  ;;  %v5801_v19 = vld [vmem:[%s6669_s4 + $0x90] sm:$0xff] }
 0x19c   : > { %v3037_v30 = vmul.f32 0.003921569, %v2717_v22  ;;  %v3038_v31 = vmul.f32 0.003921569, %v2718_v23  ;;  %v3039_v32 = vmul.f32 0.003921569, %v2719_v24  ;;  %v2723_v33 = vcvt.s32.f32 %v2403_v25 }
 0x19d   : > { %v3040_v34 = vmul.f32 0.003921569, %v2720_v26  ;;  %v3041_v35 = vmul.f32 0.003921569, %v2721_v27  ;;  %v3042_v36 = vmul.f32 0.003921569, %v2722_v28  ;;  %v2724_v37 = vcvt.s32.f32 %v2404_v29 }
 0x19e   : > { %5069 = vst [vmem:[%s6693_s25 + $0xa00] sm:$0xff] %v3037_v30  ;;  %5070 = vst [vmem:[%s6693_s25 + $0xa08] sm:$0xff] %v3038_v31  ;;  %v3043_v38 = vmul.f32 0.003921569, %v2723_v33  ;;  %v2085_v40 = vshra.s32 %v5791_v39, 8  ;;  %v2086_v42 = vshra.s32 %v5792_v41, 8 }
 0x19f   : > { %5071 = vst [vmem:[%s6693_s25 + $0xa10] sm:$0xff] %v3039_v32  ;;  %v2087_v44 = vshra.s32 %v5793_v43, 8  ;;  %5072 = vst [vmem:[%s6693_s25 + $0xa18] sm:$0xff] %v3040_v34  ;;  %v3044_v45 = vmul.f32 0.003921569, %v2724_v37  ;;  %v2088_v47 = vshra.s32 %v5794_v46, 8 }
 0x1a0   : > { %5073 = vst [vmem:[%s6693_s25 + $0xa20] sm:$0xff] %v3041_v35  ;;  %5074 = vst [vmem:[%s6693_s25 + $0xa28] sm:$0xff] %v3042_v36  ;;  %v2089_v49 = vshra.s32 %v5795_v48, 8  ;;  %v2090_v51 = vshra.s32 %v5796_v50, 8  ;;  %v2405_v52 = vand.u32 255, %v2085_v40  ;;  %v2406_v53 = vand.u32 255, %v2086_v42 }
 0x1a1   : > { %5075 = vst [vmem:[%s6693_s25 + $0xa30] sm:$0xff] %v3043_v38  ;;  %v2407_v54 = vand.u32 255, %v2087_v44  ;;  %v2091_v56 = vshra.s32 %v5797_v55, 8  ;;  %5076 = vst [vmem:[%s6693_s25 + $0xa38] sm:$0xff] %v3044_v45  ;;  %v2408_v57 = vand.u32 255, %v2088_v47  ;;  %v2092_v61 = vshra.s32 %v5798_v60, 8 }
 0x1a2   : > { %v2409_v58 = vand.u32 255, %v2089_v49  ;;  %v2410_v59 = vand.u32 255, %v2090_v51  ;;  %v2725_v62 = vcvt.s32.f32 %v2405_v52  ;;  %v2726_v63 = vcvt.s32.f32 %v2406_v53  ;;  %v5802_v22 = vld [vmem:[%s6669_s4 + $0x98] sm:$0xff]  ;;  %v5803_v24 = vld [vmem:[%s6669_s4 + $0xa0] sm:$0xff]  ;;  %v5804_v26 = vld [vmem:[%s6669_s4 + $0xa8] sm:$0xff] }
 0x1a3   : > { %v2727_v0 = vcvt.s32.f32 %v2407_v54  ;;  %v2411_v1 = vand.u32 255, %v2091_v56  ;;  %v2728_v2 = vcvt.s32.f32 %v2408_v57  ;;  %v2412_v5 = vand.u32 255, %v2092_v61  ;;  %v5805_v31 = vld [vmem:[%s6669_s4 + $0xb0] sm:$0xff]  ;;  %v5806_v36 = vld [vmem:[%s6669_s4 + $0xb8] sm:$0xff]  ;;  %v5807_v55 = vld [vmem:[%s6669_s4 + $0xc0] sm:$0xff] }
 0x1a4   : > { %v2729_v3 = vcvt.s32.f32 %v2409_v58  ;;  %v2730_v4 = vcvt.s32.f32 %v2410_v59  ;;  %v3045_v6 = vmul.f32 0.003921569, %v2725_v62  ;;  %v3046_v7 = vmul.f32 0.003921569, %v2726_v63  ;;  %v5808_v57 = vld [vmem:[%s6669_s4 + $0xc8] sm:$0xff]  ;;  %v5809_v59 = vld [vmem:[%s6669_s4 + $0xd0] sm:$0xff] }
 0x1a5   : > { %v3047_v8 = vmul.f32 0.003921569, %v2727_v0  ;;  %v2731_v9 = vcvt.s32.f32 %v2411_v1  ;;  %v3048_v10 = vmul.f32 0.003921569, %v2728_v2  ;;  %v2732_v13 = vcvt.s32.f32 %v2412_v5  ;;  %v5810_v62 = vld [vmem:[%s6669_s4 + $0xd8] sm:$0xff]  ;;  %v5811_v0 = vld [vmem:[%s6669_s4 + $0xe0] sm:$0xff] }
 0x1a6   : > { %v3049_v11 = vmul.f32 0.003921569, %v2729_v3  ;;  %v3050_v12 = vmul.f32 0.003921569, %v2730_v4  ;;  %5077 = vst [vmem:[%s6693_s25 + $0xa40] sm:$0xff] %v3045_v6  ;;  %5078 = vst [vmem:[%s6693_s25 + $0xa48] sm:$0xff] %v3046_v7 }
 0x1a7   : > { %5079 = vst [vmem:[%s6693_s25 + $0xa50] sm:$0xff] %v3047_v8  ;;  %v3051_v14 = vmul.f32 0.003921569, %v2731_v9  ;;  %v2093_v16 = vshra.s32 %v5799_v15, 8  ;;  %v2094_v18 = vshra.s32 %v5800_v17, 8  ;;  %v2095_v20 = vshra.s32 %v5801_v19, 8 }
 0x1a8   : > { %5080 = vst [vmem:[%s6693_s25 + $0xa58] sm:$0xff] %v3048_v10  ;;  %5081 = vst [vmem:[%s6693_s25 + $0xa60] sm:$0xff] %v3049_v11  ;;  %v3052_v21 = vmul.f32 0.003921569, %v2732_v13  ;;  %v2096_v23 = vshra.s32 %v5802_v22, 8  ;;  %v2097_v25 = vshra.s32 %v5803_v24, 8 }
 0x1a9   : > { %5082 = vst [vmem:[%s6693_s25 + $0xa68] sm:$0xff] %v3050_v12  ;;  %v2098_v27 = vshra.s32 %v5804_v26, 8  ;;  %5083 = vst [vmem:[%s6693_s25 + $0xa70] sm:$0xff] %v3051_v14  ;;  %v2413_v28 = vand.u32 255, %v2093_v16  ;;  %v2414_v29 = vand.u32 255, %v2094_v18  ;;  %v2415_v30 = vand.u32 255, %v2095_v20 }
 0x1aa   : > { %v2099_v32 = vshra.s32 %v5805_v31, 8  ;;  %5084 = vst [vmem:[%s6693_s25 + $0xa78] sm:$0xff] %v3052_v21  ;;  %v2416_v33 = vand.u32 255, %v2096_v23  ;;  %v2417_v34 = vand.u32 255, %v2097_v25  ;;  %v2100_v37 = vshra.s32 %v5806_v36, 8  ;;  %v5812_v2 = vld [vmem:[%s6669_s4 + $0xe8] sm:$0xff] }
 0x1ab   : > { %v2418_v35 = vand.u32 255, %v2098_v27  ;;  %v2733_v38 = vcvt.s32.f32 %v2413_v28  ;;  %v2734_v39 = vcvt.s32.f32 %v2414_v29  ;;  %v2735_v40 = vcvt.s32.f32 %v2415_v30  ;;  %v5813_v7 = vld [vmem:[%s6669_s4 + $0xf0] sm:$0xff]  ;;  %v5814_v12 = vld [vmem:[%s6669_s4 + $0xf8] sm:$0xff]  ;;  %v5815_v31 = vld [vmem:[%s6669_s4 + $0x100] sm:$0xff] }
 0x1ac   : > { %v2419_v41 = vand.u32 255, %v2099_v32  ;;  %v2736_v42 = vcvt.s32.f32 %v2416_v33  ;;  %v2737_v43 = vcvt.s32.f32 %v2417_v34  ;;  %v2420_v45 = vand.u32 255, %v2100_v37  ;;  %v5816_v33 = vld [vmem:[%s6669_s4 + $0x108] sm:$0xff] }
 0x1ad   : > { %v2738_v44 = vcvt.s32.f32 %v2418_v35  ;;  %v3053_v46 = vmul.f32 0.003921569, %v2733_v38  ;;  %v3054_v47 = vmul.f32 0.003921569, %v2734_v39  ;;  %v3055_v48 = vmul.f32 0.003921569, %v2735_v40 }
 0x1ae   : > { %v2739_v49 = vcvt.s32.f32 %v2419_v41  ;;  %v3056_v50 = vmul.f32 0.003921569, %v2736_v42  ;;  %v3057_v51 = vmul.f32 0.003921569, %v2737_v43  ;;  %v2740_v53 = vcvt.s32.f32 %v2420_v45  ;;  %v5817_v35 = vld [vmem:[%s6669_s4 + $0x110] sm:$0xff]  ;;  %v5818_v38 = vld [vmem:[%s6669_s4 + $0x118] sm:$0xff] }
 0x1af   : > { %v3058_v52 = vmul.f32 0.003921569, %v2738_v44  ;;  %5085 = vst [vmem:[%s6693_s25 + $0xa80] sm:$0xff] %v3053_v46  ;;  %5086 = vst [vmem:[%s6693_s25 + $0xa88] sm:$0xff] %v3054_v47  ;;  %v2101_v56 = vshra.s32 %v5807_v55, 8  ;;  %v2102_v58 = vshra.s32 %v5808_v57, 8 }
 0x1b0   : > { %5087 = vst [vmem:[%s6693_s25 + $0xa90] sm:$0xff] %v3055_v48  ;;  %v3059_v54 = vmul.f32 0.003921569, %v2739_v49  ;;  %v2103_v60 = vshra.s32 %v5809_v59, 8  ;;  %5088 = vst [vmem:[%s6693_s25 + $0xa98] sm:$0xff] %v3056_v50  ;;  %v2104_v63 = vshra.s32 %v5810_v62, 8 }
 0x1b1   : > { %5089 = vst [vmem:[%s6693_s25 + $0xaa0] sm:$0xff] %v3057_v51  ;;  %5090 = vst [vmem:[%s6693_s25 + $0xaa8] sm:$0xff] %v3058_v52  ;;  %v3060_v61 = vmul.f32 0.003921569, %v2740_v53  ;;  %v2105_v1 = vshra.s32 %v5811_v0, 8  ;;  %v2106_v3 = vshra.s32 %v5812_v2, 8 }
 0x1b2   : > { %5091 = vst [vmem:[%s6693_s25 + $0xab0] sm:$0xff] %v3059_v54  ;;  %v2421_v4 = vand.u32 255, %v2101_v56  ;;  %v2422_v5 = vand.u32 255, %v2102_v58  ;;  %v2423_v6 = vand.u32 255, %v2103_v60  ;;  %v2107_v8 = vshra.s32 %v5813_v7, 8  ;;  %v5819_v40 = vld [vmem:[%s6669_s4 + $0x120] sm:$0xff] }
 0x1b3   : > { %5092 = vst [vmem:[%s6693_s25 + $0xab8] sm:$0xff] %v3060_v61  ;;  %v2424_v9 = vand.u32 255, %v2104_v63  ;;  %v2425_v10 = vand.u32 255, %v2105_v1  ;;  %v2426_v11 = vand.u32 255, %v2106_v3  ;;  %v2108_v13 = vshra.s32 %v5814_v12, 8  ;;  %v5820_v42 = vld [vmem:[%s6669_s4 + $0x128] sm:$0xff] }
 0x1b4   : > { %v2741_v14 = vcvt.s32.f32 %v2421_v4  ;;  %v2742_v15 = vcvt.s32.f32 %v2422_v5  ;;  %v2743_v16 = vcvt.s32.f32 %v2423_v6  ;;  %v2427_v17 = vand.u32 255, %v2107_v8  ;;  %v5821_v47 = vld [vmem:[%s6669_s4 + $0x130] sm:$0xff]  ;;  %v5822_v52 = vld [vmem:[%s6669_s4 + $0x138] sm:$0xff]  ;;  %v5823_v7 = vld [vmem:[%s6669_s4 + $0x140] sm:$0xff] }
 0x1b5   : > { %v2744_v18 = vcvt.s32.f32 %v2424_v9  ;;  %v2745_v19 = vcvt.s32.f32 %v2425_v10  ;;  %v2746_v20 = vcvt.s32.f32 %v2426_v11  ;;  %v2428_v21 = vand.u32 255, %v2108_v13  ;;  %v5824_v9 = vld [vmem:[%s6669_s4 + $0x148] sm:$0xff]  ;;  %v5825_v11 = vld [vmem:[%s6669_s4 + $0x150] sm:$0xff] }
 0x1b6   : > { %v3061_v22 = vmul.f32 0.003921569, %v2741_v14  ;;  %v3062_v23 = vmul.f32 0.003921569, %v2742_v15  ;;  %v3063_v24 = vmul.f32 0.003921569, %v2743_v16  ;;  %v2747_v25 = vcvt.s32.f32 %v2427_v17 }
 0x1b7   : > { %v3064_v26 = vmul.f32 0.003921569, %v2744_v18  ;;  %v3065_v27 = vmul.f32 0.003921569, %v2745_v19  ;;  %v3066_v28 = vmul.f32 0.003921569, %v2746_v20  ;;  %v2748_v29 = vcvt.s32.f32 %v2428_v21 }
 0x1b8   : > { %5093 = vst [vmem:[%s6693_s25 + $0xac0] sm:$0xff] %v3061_v22  ;;  %5094 = vst [vmem:[%s6693_s25 + $0xac8] sm:$0xff] %v3062_v23  ;;  %v3067_v30 = vmul.f32 0.003921569, %v2747_v25  ;;  %v2109_v32 = vshra.s32 %v5815_v31, 8  ;;  %v2110_v34 = vshra.s32 %v5816_v33, 8 }
 0x1b9   : > { %5095 = vst [vmem:[%s6693_s25 + $0xad0] sm:$0xff] %v3063_v24  ;;  %v2111_v36 = vshra.s32 %v5817_v35, 8  ;;  %5096 = vst [vmem:[%s6693_s25 + $0xad8] sm:$0xff] %v3064_v26  ;;  %v3068_v37 = vmul.f32 0.003921569, %v2748_v29  ;;  %v2112_v39 = vshra.s32 %v5818_v38, 8 }
 0x1ba   : > { %5097 = vst [vmem:[%s6693_s25 + $0xae0] sm:$0xff] %v3065_v27  ;;  %5098 = vst [vmem:[%s6693_s25 + $0xae8] sm:$0xff] %v3066_v28  ;;  %v2113_v41 = vshra.s32 %v5819_v40, 8  ;;  %v2114_v43 = vshra.s32 %v5820_v42, 8  ;;  %v2429_v44 = vand.u32 255, %v2109_v32  ;;  %v2430_v45 = vand.u32 255, %v2110_v34 }
 0x1bb   : > { %5099 = vst [vmem:[%s6693_s25 + $0xaf0] sm:$0xff] %v3067_v30  ;;  %v2431_v46 = vand.u32 255, %v2111_v36  ;;  %v2115_v48 = vshra.s32 %v5821_v47, 8  ;;  %5100 = vst [vmem:[%s6693_s25 + $0xaf8] sm:$0xff] %v3068_v37  ;;  %v2432_v49 = vand.u32 255, %v2112_v39  ;;  %v2116_v53 = vshra.s32 %v5822_v52, 8 }
 0x1bc   : > { %v2433_v50 = vand.u32 255, %v2113_v41  ;;  %v2434_v51 = vand.u32 255, %v2114_v43  ;;  %v2749_v54 = vcvt.s32.f32 %v2429_v44  ;;  %v2750_v55 = vcvt.s32.f32 %v2430_v45  ;;  %v5826_v14 = vld [vmem:[%s6669_s4 + $0x158] sm:$0xff]  ;;  %v5827_v16 = vld [vmem:[%s6669_s4 + $0x160] sm:$0xff]  ;;  %v5828_v18 = vld [vmem:[%s6669_s4 + $0x168] sm:$0xff] }
 0x1bd   : > { %v2751_v56 = vcvt.s32.f32 %v2431_v46  ;;  %v2435_v57 = vand.u32 255, %v2115_v48  ;;  %v2752_v58 = vcvt.s32.f32 %v2432_v49  ;;  %v2436_v61 = vand.u32 255, %v2116_v53  ;;  %v5829_v23 = vld [vmem:[%s6669_s4 + $0x170] sm:$0xff]  ;;  %v5830_v28 = vld [vmem:[%s6669_s4 + $0x178] sm:$0xff]  ;;  %v5831_v47 = vld [vmem:[%s6669_s4 + $0x180] sm:$0xff] }
 0x1be   : > { %v2753_v59 = vcvt.s32.f32 %v2433_v50  ;;  %v2754_v60 = vcvt.s32.f32 %v2434_v51  ;;  %v3069_v62 = vmul.f32 0.003921569, %v2749_v54  ;;  %v3070_v63 = vmul.f32 0.003921569, %v2750_v55  ;;  %v5832_v49 = vld [vmem:[%s6669_s4 + $0x188] sm:$0xff]  ;;  %v5833_v51 = vld [vmem:[%s6669_s4 + $0x190] sm:$0xff] }
 0x1bf   : > { %v3071_v0 = vmul.f32 0.003921569, %v2751_v56  ;;  %v2755_v1 = vcvt.s32.f32 %v2435_v57  ;;  %v3072_v2 = vmul.f32 0.003921569, %v2752_v58  ;;  %v2756_v5 = vcvt.s32.f32 %v2436_v61  ;;  %v5834_v54 = vld [vmem:[%s6669_s4 + $0x198] sm:$0xff]  ;;  %v5835_v56 = vld [vmem:[%s6669_s4 + $0x1a0] sm:$0xff] }
 0x1c0   : > { %v3073_v3 = vmul.f32 0.003921569, %v2753_v59  ;;  %v3074_v4 = vmul.f32 0.003921569, %v2754_v60  ;;  %5101 = vst [vmem:[%s6693_s25 + $0xb00] sm:$0xff] %v3069_v62  ;;  %5102 = vst [vmem:[%s6693_s25 + $0xb08] sm:$0xff] %v3070_v63 }
 0x1c1   : > { %5103 = vst [vmem:[%s6693_s25 + $0xb10] sm:$0xff] %v3071_v0  ;;  %v3075_v6 = vmul.f32 0.003921569, %v2755_v1  ;;  %v2117_v8 = vshra.s32 %v5823_v7, 8  ;;  %v2118_v10 = vshra.s32 %v5824_v9, 8  ;;  %v2119_v12 = vshra.s32 %v5825_v11, 8 }
 0x1c2   : > { %5104 = vst [vmem:[%s6693_s25 + $0xb18] sm:$0xff] %v3072_v2  ;;  %5105 = vst [vmem:[%s6693_s25 + $0xb20] sm:$0xff] %v3073_v3  ;;  %v3076_v13 = vmul.f32 0.003921569, %v2756_v5  ;;  %v2120_v15 = vshra.s32 %v5826_v14, 8  ;;  %v2121_v17 = vshra.s32 %v5827_v16, 8 }
 0x1c3   : > { %5106 = vst [vmem:[%s6693_s25 + $0xb28] sm:$0xff] %v3074_v4  ;;  %v2122_v19 = vshra.s32 %v5828_v18, 8  ;;  %5107 = vst [vmem:[%s6693_s25 + $0xb30] sm:$0xff] %v3075_v6  ;;  %v2437_v20 = vand.u32 255, %v2117_v8  ;;  %v2438_v21 = vand.u32 255, %v2118_v10  ;;  %v2439_v22 = vand.u32 255, %v2119_v12 }
 0x1c4   : > { %v2123_v24 = vshra.s32 %v5829_v23, 8  ;;  %5108 = vst [vmem:[%s6693_s25 + $0xb38] sm:$0xff] %v3076_v13  ;;  %v2440_v25 = vand.u32 255, %v2120_v15  ;;  %v2441_v26 = vand.u32 255, %v2121_v17  ;;  %v2124_v29 = vshra.s32 %v5830_v28, 8  ;;  %v5836_v58 = vld [vmem:[%s6669_s4 + $0x1a8] sm:$0xff] }
 0x1c5   : > { %v2442_v27 = vand.u32 255, %v2122_v19  ;;  %v2757_v30 = vcvt.s32.f32 %v2437_v20  ;;  %v2758_v31 = vcvt.s32.f32 %v2438_v21  ;;  %v2759_v32 = vcvt.s32.f32 %v2439_v22  ;;  %v5837_v63 = vld [vmem:[%s6669_s4 + $0x1b0] sm:$0xff]  ;;  %v5838_v4 = vld [vmem:[%s6669_s4 + $0x1b8] sm:$0xff]  ;;  %v5839_v23 = vld [vmem:[%s6669_s4 + $0x1c0] sm:$0xff] }
 0x1c6   : > { %v2443_v33 = vand.u32 255, %v2123_v24  ;;  %v2760_v34 = vcvt.s32.f32 %v2440_v25  ;;  %v2761_v35 = vcvt.s32.f32 %v2441_v26  ;;  %v2444_v37 = vand.u32 255, %v2124_v29  ;;  %v5840_v25 = vld [vmem:[%s6669_s4 + $0x1c8] sm:$0xff] }
 0x1c7   : > { %v2762_v36 = vcvt.s32.f32 %v2442_v27  ;;  %v3077_v38 = vmul.f32 0.003921569, %v2757_v30  ;;  %v3078_v39 = vmul.f32 0.003921569, %v2758_v31  ;;  %v3079_v40 = vmul.f32 0.003921569, %v2759_v32 }
 0x1c8   : > { %v2763_v41 = vcvt.s32.f32 %v2443_v33  ;;  %v3080_v42 = vmul.f32 0.003921569, %v2760_v34  ;;  %v3081_v43 = vmul.f32 0.003921569, %v2761_v35  ;;  %v2764_v45 = vcvt.s32.f32 %v2444_v37  ;;  %v5841_v27 = vld [vmem:[%s6669_s4 + $0x1d0] sm:$0xff]  ;;  %v5842_v30 = vld [vmem:[%s6669_s4 + $0x1d8] sm:$0xff] }
 0x1c9   : > { %v3082_v44 = vmul.f32 0.003921569, %v2762_v36  ;;  %5109 = vst [vmem:[%s6693_s25 + $0xb40] sm:$0xff] %v3077_v38  ;;  %5110 = vst [vmem:[%s6693_s25 + $0xb48] sm:$0xff] %v3078_v39  ;;  %v2125_v48 = vshra.s32 %v5831_v47, 8  ;;  %v2126_v50 = vshra.s32 %v5832_v49, 8 }
 0x1ca   : > { %5111 = vst [vmem:[%s6693_s25 + $0xb50] sm:$0xff] %v3079_v40  ;;  %v3083_v46 = vmul.f32 0.003921569, %v2763_v41  ;;  %v2127_v52 = vshra.s32 %v5833_v51, 8  ;;  %5112 = vst [vmem:[%s6693_s25 + $0xb58] sm:$0xff] %v3080_v42  ;;  %v2128_v55 = vshra.s32 %v5834_v54, 8 }
 0x1cb   : > { %5113 = vst [vmem:[%s6693_s25 + $0xb60] sm:$0xff] %v3081_v43  ;;  %5114 = vst [vmem:[%s6693_s25 + $0xb68] sm:$0xff] %v3082_v44  ;;  %v3084_v53 = vmul.f32 0.003921569, %v2764_v45  ;;  %v2129_v57 = vshra.s32 %v5835_v56, 8  ;;  %v2130_v59 = vshra.s32 %v5836_v58, 8 }
 0x1cc   : > { %5115 = vst [vmem:[%s6693_s25 + $0xb70] sm:$0xff] %v3083_v46  ;;  %v2445_v60 = vand.u32 255, %v2125_v48  ;;  %v2446_v61 = vand.u32 255, %v2126_v50  ;;  %v2447_v62 = vand.u32 255, %v2127_v52  ;;  %v2131_v0 = vshra.s32 %v5837_v63, 8  ;;  %v5843_v32 = vld [vmem:[%s6669_s4 + $0x1e0] sm:$0xff] }
 0x1cd   : > { %5116 = vst [vmem:[%s6693_s25 + $0xb78] sm:$0xff] %v3084_v53  ;;  %v2448_v1 = vand.u32 255, %v2128_v55  ;;  %v2449_v2 = vand.u32 255, %v2129_v57  ;;  %v2450_v3 = vand.u32 255, %v2130_v59  ;;  %v2132_v5 = vshra.s32 %v5838_v4, 8  ;;  %v5844_v34 = vld [vmem:[%s6669_s4 + $0x1e8] sm:$0xff] }
 0x1ce   : > { %v2765_v6 = vcvt.s32.f32 %v2445_v60  ;;  %v2766_v7 = vcvt.s32.f32 %v2446_v61  ;;  %v2767_v8 = vcvt.s32.f32 %v2447_v62  ;;  %v2451_v9 = vand.u32 255, %v2131_v0  ;;  %v5845_v39 = vld [vmem:[%s6669_s4 + $0x1f0] sm:$0xff]  ;;  %v5846_v44 = vld [vmem:[%s6669_s4 + $0x1f8] sm:$0xff]  ;;  %v5847_v63 = vld [vmem:[%s6669_s4 + $0x200] sm:$0xff] }
 0x1cf   : > { %v2768_v10 = vcvt.s32.f32 %v2448_v1  ;;  %v2769_v11 = vcvt.s32.f32 %v2449_v2  ;;  %v2770_v12 = vcvt.s32.f32 %v2450_v3  ;;  %v2452_v13 = vand.u32 255, %v2132_v5  ;;  %v5848_v1 = vld [vmem:[%s6669_s4 + $0x208] sm:$0xff]  ;;  %v5849_v3 = vld [vmem:[%s6669_s4 + $0x210] sm:$0xff] }
 0x1d0   : > { %v3085_v14 = vmul.f32 0.003921569, %v2765_v6  ;;  %v3086_v15 = vmul.f32 0.003921569, %v2766_v7  ;;  %v3087_v16 = vmul.f32 0.003921569, %v2767_v8  ;;  %v2771_v17 = vcvt.s32.f32 %v2451_v9 }
 0x1d1   : > { %v3088_v18 = vmul.f32 0.003921569, %v2768_v10  ;;  %v3089_v19 = vmul.f32 0.003921569, %v2769_v11  ;;  %v3090_v20 = vmul.f32 0.003921569, %v2770_v12  ;;  %v2772_v21 = vcvt.s32.f32 %v2452_v13 }
 0x1d2   : > { %5117 = vst [vmem:[%s6693_s25 + $0xb80] sm:$0xff] %v3085_v14  ;;  %5118 = vst [vmem:[%s6693_s25 + $0xb88] sm:$0xff] %v3086_v15  ;;  %v3091_v22 = vmul.f32 0.003921569, %v2771_v17  ;;  %v2133_v24 = vshra.s32 %v5839_v23, 8  ;;  %v2134_v26 = vshra.s32 %v5840_v25, 8 }
 0x1d3   : > { %5119 = vst [vmem:[%s6693_s25 + $0xb90] sm:$0xff] %v3087_v16  ;;  %v2135_v28 = vshra.s32 %v5841_v27, 8  ;;  %5120 = vst [vmem:[%s6693_s25 + $0xb98] sm:$0xff] %v3088_v18  ;;  %v3092_v29 = vmul.f32 0.003921569, %v2772_v21  ;;  %v2136_v31 = vshra.s32 %v5842_v30, 8 }
 0x1d4   : > { %5121 = vst [vmem:[%s6693_s25 + $0xba0] sm:$0xff] %v3089_v19  ;;  %5122 = vst [vmem:[%s6693_s25 + $0xba8] sm:$0xff] %v3090_v20  ;;  %v2137_v33 = vshra.s32 %v5843_v32, 8  ;;  %v2138_v35 = vshra.s32 %v5844_v34, 8  ;;  %v2453_v36 = vand.u32 255, %v2133_v24  ;;  %v2454_v37 = vand.u32 255, %v2134_v26 }
 0x1d5   : > { %5123 = vst [vmem:[%s6693_s25 + $0xbb0] sm:$0xff] %v3091_v22  ;;  %v2455_v38 = vand.u32 255, %v2135_v28  ;;  %v2139_v40 = vshra.s32 %v5845_v39, 8  ;;  %5124 = vst [vmem:[%s6693_s25 + $0xbb8] sm:$0xff] %v3092_v29  ;;  %v2456_v41 = vand.u32 255, %v2136_v31  ;;  %v2140_v45 = vshra.s32 %v5846_v44, 8 }
 0x1d6   : > { %v2457_v42 = vand.u32 255, %v2137_v33  ;;  %v2458_v43 = vand.u32 255, %v2138_v35  ;;  %v2773_v46 = vcvt.s32.f32 %v2453_v36  ;;  %v2774_v47 = vcvt.s32.f32 %v2454_v37  ;;  %v5850_v6 = vld [vmem:[%s6669_s4 + $0x218] sm:$0xff]  ;;  %v5851_v8 = vld [vmem:[%s6669_s4 + $0x220] sm:$0xff]  ;;  %v5852_v10 = vld [vmem:[%s6669_s4 + $0x228] sm:$0xff] }
 0x1d7   : > { %v2775_v48 = vcvt.s32.f32 %v2455_v38  ;;  %v2459_v49 = vand.u32 255, %v2139_v40  ;;  %v2776_v50 = vcvt.s32.f32 %v2456_v41  ;;  %v2460_v53 = vand.u32 255, %v2140_v45  ;;  %v5853_v15 = vld [vmem:[%s6669_s4 + $0x230] sm:$0xff]  ;;  %v5854_v20 = vld [vmem:[%s6669_s4 + $0x238] sm:$0xff]  ;;  %v5855_v39 = vld [vmem:[%s6669_s4 + $0x240] sm:$0xff] }
 0x1d8   : > { %v2777_v51 = vcvt.s32.f32 %v2457_v42  ;;  %v2778_v52 = vcvt.s32.f32 %v2458_v43  ;;  %v3093_v54 = vmul.f32 0.003921569, %v2773_v46  ;;  %v3094_v55 = vmul.f32 0.003921569, %v2774_v47  ;;  %v5856_v41 = vld [vmem:[%s6669_s4 + $0x248] sm:$0xff]  ;;  %v5857_v43 = vld [vmem:[%s6669_s4 + $0x250] sm:$0xff] }
 0x1d9   : > { %v3095_v56 = vmul.f32 0.003921569, %v2775_v48  ;;  %v2779_v57 = vcvt.s32.f32 %v2459_v49  ;;  %v3096_v58 = vmul.f32 0.003921569, %v2776_v50  ;;  %v2780_v61 = vcvt.s32.f32 %v2460_v53  ;;  %v5858_v46 = vld [vmem:[%s6669_s4 + $0x258] sm:$0xff]  ;;  %v5859_v48 = vld [vmem:[%s6669_s4 + $0x260] sm:$0xff] }
 0x1da   : > { %v3097_v59 = vmul.f32 0.003921569, %v2777_v51  ;;  %v3098_v60 = vmul.f32 0.003921569, %v2778_v52  ;;  %5125 = vst [vmem:[%s6693_s25 + $0xbc0] sm:$0xff] %v3093_v54  ;;  %5126 = vst [vmem:[%s6693_s25 + $0xbc8] sm:$0xff] %v3094_v55 }
 0x1db   : > { %5127 = vst [vmem:[%s6693_s25 + $0xbd0] sm:$0xff] %v3095_v56  ;;  %v3099_v62 = vmul.f32 0.003921569, %v2779_v57  ;;  %v2141_v0 = vshra.s32 %v5847_v63, 8  ;;  %v2142_v2 = vshra.s32 %v5848_v1, 8  ;;  %v2143_v4 = vshra.s32 %v5849_v3, 8 }
 0x1dc   : > { %5128 = vst [vmem:[%s6693_s25 + $0xbd8] sm:$0xff] %v3096_v58  ;;  %5129 = vst [vmem:[%s6693_s25 + $0xbe0] sm:$0xff] %v3097_v59  ;;  %v3100_v5 = vmul.f32 0.003921569, %v2780_v61  ;;  %v2144_v7 = vshra.s32 %v5850_v6, 8  ;;  %v2145_v9 = vshra.s32 %v5851_v8, 8 }
 0x1dd   : > { %5130 = vst [vmem:[%s6693_s25 + $0xbe8] sm:$0xff] %v3098_v60  ;;  %v2146_v11 = vshra.s32 %v5852_v10, 8  ;;  %5131 = vst [vmem:[%s6693_s25 + $0xbf0] sm:$0xff] %v3099_v62  ;;  %v2461_v12 = vand.u32 255, %v2141_v0  ;;  %v2462_v13 = vand.u32 255, %v2142_v2  ;;  %v2463_v14 = vand.u32 255, %v2143_v4 }
 0x1de   : > { %v2147_v16 = vshra.s32 %v5853_v15, 8  ;;  %5132 = vst [vmem:[%s6693_s25 + $0xbf8] sm:$0xff] %v3100_v5  ;;  %v2464_v17 = vand.u32 255, %v2144_v7  ;;  %v2465_v18 = vand.u32 255, %v2145_v9  ;;  %v2148_v21 = vshra.s32 %v5854_v20, 8  ;;  %v5860_v50 = vld [vmem:[%s6669_s4 + $0x268] sm:$0xff] }
 0x1df   : > { %v2466_v19 = vand.u32 255, %v2146_v11  ;;  %v2781_v22 = vcvt.s32.f32 %v2461_v12  ;;  %v2782_v23 = vcvt.s32.f32 %v2462_v13  ;;  %v2783_v24 = vcvt.s32.f32 %v2463_v14  ;;  %v5861_v55 = vld [vmem:[%s6669_s4 + $0x270] sm:$0xff]  ;;  %v5862_v60 = vld [vmem:[%s6669_s4 + $0x278] sm:$0xff]  ;;  %v5863_v15 = vld [vmem:[%s6669_s4 + $0x280] sm:$0xff] }
 0x1e0   : > { %v2467_v25 = vand.u32 255, %v2147_v16  ;;  %v2784_v26 = vcvt.s32.f32 %v2464_v17  ;;  %v2785_v27 = vcvt.s32.f32 %v2465_v18  ;;  %v2468_v29 = vand.u32 255, %v2148_v21  ;;  %v5864_v17 = vld [vmem:[%s6669_s4 + $0x288] sm:$0xff] }
 0x1e1   : > { %v2786_v28 = vcvt.s32.f32 %v2466_v19  ;;  %v3101_v30 = vmul.f32 0.003921569, %v2781_v22  ;;  %v3102_v31 = vmul.f32 0.003921569, %v2782_v23  ;;  %v3103_v32 = vmul.f32 0.003921569, %v2783_v24 }
 0x1e2   : > { %v2787_v33 = vcvt.s32.f32 %v2467_v25  ;;  %v3104_v34 = vmul.f32 0.003921569, %v2784_v26  ;;  %v3105_v35 = vmul.f32 0.003921569, %v2785_v27  ;;  %v2788_v37 = vcvt.s32.f32 %v2468_v29  ;;  %v5865_v19 = vld [vmem:[%s6669_s4 + $0x290] sm:$0xff]  ;;  %v5866_v22 = vld [vmem:[%s6669_s4 + $0x298] sm:$0xff] }
 0x1e3   : > { %v3106_v36 = vmul.f32 0.003921569, %v2786_v28  ;;  %5133 = vst [vmem:[%s6693_s25 + $0xc00] sm:$0xff] %v3101_v30  ;;  %5134 = vst [vmem:[%s6693_s25 + $0xc08] sm:$0xff] %v3102_v31  ;;  %v2149_v40 = vshra.s32 %v5855_v39, 8  ;;  %v2150_v42 = vshra.s32 %v5856_v41, 8 }
 0x1e4   : > { %5135 = vst [vmem:[%s6693_s25 + $0xc10] sm:$0xff] %v3103_v32  ;;  %v3107_v38 = vmul.f32 0.003921569, %v2787_v33  ;;  %v2151_v44 = vshra.s32 %v5857_v43, 8  ;;  %5136 = vst [vmem:[%s6693_s25 + $0xc18] sm:$0xff] %v3104_v34  ;;  %v2152_v47 = vshra.s32 %v5858_v46, 8 }
 0x1e5   : > { %5137 = vst [vmem:[%s6693_s25 + $0xc20] sm:$0xff] %v3105_v35  ;;  %5138 = vst [vmem:[%s6693_s25 + $0xc28] sm:$0xff] %v3106_v36  ;;  %v3108_v45 = vmul.f32 0.003921569, %v2788_v37  ;;  %v2153_v49 = vshra.s32 %v5859_v48, 8  ;;  %v2154_v51 = vshra.s32 %v5860_v50, 8 }
 0x1e6   : > { %5139 = vst [vmem:[%s6693_s25 + $0xc30] sm:$0xff] %v3107_v38  ;;  %v2469_v52 = vand.u32 255, %v2149_v40  ;;  %v2470_v53 = vand.u32 255, %v2150_v42  ;;  %v2471_v54 = vand.u32 255, %v2151_v44  ;;  %v2155_v56 = vshra.s32 %v5861_v55, 8  ;;  %v5867_v24 = vld [vmem:[%s6669_s4 + $0x2a0] sm:$0xff] }
 0x1e7   : > { %5140 = vst [vmem:[%s6693_s25 + $0xc38] sm:$0xff] %v3108_v45  ;;  %v2472_v57 = vand.u32 255, %v2152_v47  ;;  %v2473_v58 = vand.u32 255, %v2153_v49  ;;  %v2474_v59 = vand.u32 255, %v2154_v51  ;;  %v2156_v61 = vshra.s32 %v5862_v60, 8  ;;  %v5868_v26 = vld [vmem:[%s6669_s4 + $0x2a8] sm:$0xff] }
 0x1e8   : > { %v2789_v62 = vcvt.s32.f32 %v2469_v52  ;;  %v2790_v63 = vcvt.s32.f32 %v2470_v53  ;;  %v2791_v0 = vcvt.s32.f32 %v2471_v54  ;;  %v2475_v1 = vand.u32 255, %v2155_v56  ;;  %v5869_v31 = vld [vmem:[%s6669_s4 + $0x2b0] sm:$0xff]  ;;  %v5870_v36 = vld [vmem:[%s6669_s4 + $0x2b8] sm:$0xff]  ;;  %v5871_v55 = vld [vmem:[%s6669_s4 + $0x2c0] sm:$0xff] }
 0x1e9   : > { %v2792_v2 = vcvt.s32.f32 %v2472_v57  ;;  %v2793_v3 = vcvt.s32.f32 %v2473_v58  ;;  %v2794_v4 = vcvt.s32.f32 %v2474_v59  ;;  %v2476_v5 = vand.u32 255, %v2156_v61  ;;  %v5872_v57 = vld [vmem:[%s6669_s4 + $0x2c8] sm:$0xff]  ;;  %v5873_v59 = vld [vmem:[%s6669_s4 + $0x2d0] sm:$0xff] }
 0x1ea   : > { %v3109_v6 = vmul.f32 0.003921569, %v2789_v62  ;;  %v3110_v7 = vmul.f32 0.003921569, %v2790_v63  ;;  %v3111_v8 = vmul.f32 0.003921569, %v2791_v0  ;;  %v2795_v9 = vcvt.s32.f32 %v2475_v1 }
 0x1eb   : > { %v3112_v10 = vmul.f32 0.003921569, %v2792_v2  ;;  %v3113_v11 = vmul.f32 0.003921569, %v2793_v3  ;;  %v3114_v12 = vmul.f32 0.003921569, %v2794_v4  ;;  %v2796_v13 = vcvt.s32.f32 %v2476_v5 }
 0x1ec   : > { %5141 = vst [vmem:[%s6693_s25 + $0xc40] sm:$0xff] %v3109_v6  ;;  %5142 = vst [vmem:[%s6693_s25 + $0xc48] sm:$0xff] %v3110_v7  ;;  %v3115_v14 = vmul.f32 0.003921569, %v2795_v9  ;;  %v2157_v16 = vshra.s32 %v5863_v15, 8  ;;  %v2158_v18 = vshra.s32 %v5864_v17, 8 }
 0x1ed   : > { %5143 = vst [vmem:[%s6693_s25 + $0xc50] sm:$0xff] %v3111_v8  ;;  %v2159_v20 = vshra.s32 %v5865_v19, 8  ;;  %5144 = vst [vmem:[%s6693_s25 + $0xc58] sm:$0xff] %v3112_v10  ;;  %v3116_v21 = vmul.f32 0.003921569, %v2796_v13  ;;  %v2160_v23 = vshra.s32 %v5866_v22, 8 }
 0x1ee   : > { %5145 = vst [vmem:[%s6693_s25 + $0xc60] sm:$0xff] %v3113_v11  ;;  %5146 = vst [vmem:[%s6693_s25 + $0xc68] sm:$0xff] %v3114_v12  ;;  %v2161_v25 = vshra.s32 %v5867_v24, 8  ;;  %v2162_v27 = vshra.s32 %v5868_v26, 8  ;;  %v2477_v28 = vand.u32 255, %v2157_v16  ;;  %v2478_v29 = vand.u32 255, %v2158_v18 }
 0x1ef   : > { %5147 = vst [vmem:[%s6693_s25 + $0xc70] sm:$0xff] %v3115_v14  ;;  %v2479_v30 = vand.u32 255, %v2159_v20  ;;  %v2163_v32 = vshra.s32 %v5869_v31, 8  ;;  %5148 = vst [vmem:[%s6693_s25 + $0xc78] sm:$0xff] %v3116_v21  ;;  %v2480_v33 = vand.u32 255, %v2160_v23  ;;  %v2164_v37 = vshra.s32 %v5870_v36, 8 }
 0x1f0   : > { %v2481_v34 = vand.u32 255, %v2161_v25  ;;  %v2482_v35 = vand.u32 255, %v2162_v27  ;;  %v2797_v38 = vcvt.s32.f32 %v2477_v28  ;;  %v2798_v39 = vcvt.s32.f32 %v2478_v29  ;;  %v5874_v62 = vld [vmem:[%s6669_s4 + $0x2d8] sm:$0xff]  ;;  %v5875_v0 = vld [vmem:[%s6669_s4 + $0x2e0] sm:$0xff]  ;;  %v5876_v2 = vld [vmem:[%s6669_s4 + $0x2e8] sm:$0xff] }
 0x1f1   : > { %v2799_v40 = vcvt.s32.f32 %v2479_v30  ;;  %v2483_v41 = vand.u32 255, %v2163_v32  ;;  %v2800_v42 = vcvt.s32.f32 %v2480_v33  ;;  %v2484_v45 = vand.u32 255, %v2164_v37  ;;  %v5877_v7 = vld [vmem:[%s6669_s4 + $0x2f0] sm:$0xff]  ;;  %v5878_v12 = vld [vmem:[%s6669_s4 + $0x2f8] sm:$0xff]  ;;  %v5879_v31 = vld [vmem:[%s6669_s4 + $0x300] sm:$0xff] }
 0x1f2   : > { %v2801_v43 = vcvt.s32.f32 %v2481_v34  ;;  %v2802_v44 = vcvt.s32.f32 %v2482_v35  ;;  %v3117_v46 = vmul.f32 0.003921569, %v2797_v38  ;;  %v3118_v47 = vmul.f32 0.003921569, %v2798_v39  ;;  %v5880_v33 = vld [vmem:[%s6669_s4 + $0x308] sm:$0xff]  ;;  %v5881_v35 = vld [vmem:[%s6669_s4 + $0x310] sm:$0xff] }
 0x1f3   : > { %v3119_v48 = vmul.f32 0.003921569, %v2799_v40  ;;  %v2803_v49 = vcvt.s32.f32 %v2483_v41  ;;  %v3120_v50 = vmul.f32 0.003921569, %v2800_v42  ;;  %v2804_v53 = vcvt.s32.f32 %v2484_v45  ;;  %v5882_v38 = vld [vmem:[%s6669_s4 + $0x318] sm:$0xff]  ;;  %v5883_v40 = vld [vmem:[%s6669_s4 + $0x320] sm:$0xff] }
 0x1f4   : > { %v3121_v51 = vmul.f32 0.003921569, %v2801_v43  ;;  %v3122_v52 = vmul.f32 0.003921569, %v2802_v44  ;;  %5149 = vst [vmem:[%s6693_s25 + $0xc80] sm:$0xff] %v3117_v46  ;;  %5150 = vst [vmem:[%s6693_s25 + $0xc88] sm:$0xff] %v3118_v47 }
 0x1f5   : > { %5151 = vst [vmem:[%s6693_s25 + $0xc90] sm:$0xff] %v3119_v48  ;;  %v3123_v54 = vmul.f32 0.003921569, %v2803_v49  ;;  %v2165_v56 = vshra.s32 %v5871_v55, 8  ;;  %v2166_v58 = vshra.s32 %v5872_v57, 8  ;;  %v2167_v60 = vshra.s32 %v5873_v59, 8 }
 0x1f6   : > { %5152 = vst [vmem:[%s6693_s25 + $0xc98] sm:$0xff] %v3120_v50  ;;  %5153 = vst [vmem:[%s6693_s25 + $0xca0] sm:$0xff] %v3121_v51  ;;  %v3124_v61 = vmul.f32 0.003921569, %v2804_v53  ;;  %v2168_v63 = vshra.s32 %v5874_v62, 8  ;;  %v2169_v1 = vshra.s32 %v5875_v0, 8 }
 0x1f7   : > { %5154 = vst [vmem:[%s6693_s25 + $0xca8] sm:$0xff] %v3122_v52  ;;  %v2170_v3 = vshra.s32 %v5876_v2, 8  ;;  %5155 = vst [vmem:[%s6693_s25 + $0xcb0] sm:$0xff] %v3123_v54  ;;  %v2485_v4 = vand.u32 255, %v2165_v56  ;;  %v2486_v5 = vand.u32 255, %v2166_v58  ;;  %v2487_v6 = vand.u32 255, %v2167_v60 }
 0x1f8   : > { %v2171_v8 = vshra.s32 %v5877_v7, 8  ;;  %5156 = vst [vmem:[%s6693_s25 + $0xcb8] sm:$0xff] %v3124_v61  ;;  %v2488_v9 = vand.u32 255, %v2168_v63  ;;  %v2489_v10 = vand.u32 255, %v2169_v1  ;;  %v2172_v13 = vshra.s32 %v5878_v12, 8  ;;  %v5884_v42 = vld [vmem:[%s6669_s4 + $0x328] sm:$0xff] }
 0x1f9   : > { %v2490_v11 = vand.u32 255, %v2170_v3  ;;  %v2805_v14 = vcvt.s32.f32 %v2485_v4  ;;  %v2806_v15 = vcvt.s32.f32 %v2486_v5  ;;  %v2807_v16 = vcvt.s32.f32 %v2487_v6  ;;  %v5885_v47 = vld [vmem:[%s6669_s4 + $0x330] sm:$0xff]  ;;  %v5886_v52 = vld [vmem:[%s6669_s4 + $0x338] sm:$0xff]  ;;  %v5887_v7 = vld [vmem:[%s6669_s4 + $0x340] sm:$0xff] }
 0x1fa   : > { %v2491_v17 = vand.u32 255, %v2171_v8  ;;  %v2808_v18 = vcvt.s32.f32 %v2488_v9  ;;  %v2809_v19 = vcvt.s32.f32 %v2489_v10  ;;  %v2492_v21 = vand.u32 255, %v2172_v13  ;;  %v5888_v9 = vld [vmem:[%s6669_s4 + $0x348] sm:$0xff] }
 0x1fb   : > { %v2810_v20 = vcvt.s32.f32 %v2490_v11  ;;  %v3125_v22 = vmul.f32 0.003921569, %v2805_v14  ;;  %v3126_v23 = vmul.f32 0.003921569, %v2806_v15  ;;  %v3127_v24 = vmul.f32 0.003921569, %v2807_v16 }
 0x1fc   : > { %v2811_v25 = vcvt.s32.f32 %v2491_v17  ;;  %v3128_v26 = vmul.f32 0.003921569, %v2808_v18  ;;  %v3129_v27 = vmul.f32 0.003921569, %v2809_v19  ;;  %v2812_v29 = vcvt.s32.f32 %v2492_v21  ;;  %v5889_v11 = vld [vmem:[%s6669_s4 + $0x350] sm:$0xff]  ;;  %v5890_v14 = vld [vmem:[%s6669_s4 + $0x358] sm:$0xff] }
 0x1fd   : > { %v3130_v28 = vmul.f32 0.003921569, %v2810_v20  ;;  %5157 = vst [vmem:[%s6693_s25 + $0xcc0] sm:$0xff] %v3125_v22  ;;  %5158 = vst [vmem:[%s6693_s25 + $0xcc8] sm:$0xff] %v3126_v23  ;;  %v2173_v32 = vshra.s32 %v5879_v31, 8  ;;  %v2174_v34 = vshra.s32 %v5880_v33, 8 }
 0x1fe   : > { %5159 = vst [vmem:[%s6693_s25 + $0xcd0] sm:$0xff] %v3127_v24  ;;  %v3131_v30 = vmul.f32 0.003921569, %v2811_v25  ;;  %v2175_v36 = vshra.s32 %v5881_v35, 8  ;;  %5160 = vst [vmem:[%s6693_s25 + $0xcd8] sm:$0xff] %v3128_v26  ;;  %v2176_v39 = vshra.s32 %v5882_v38, 8 }
 0x1ff   : > { %5161 = vst [vmem:[%s6693_s25 + $0xce0] sm:$0xff] %v3129_v27  ;;  %5162 = vst [vmem:[%s6693_s25 + $0xce8] sm:$0xff] %v3130_v28  ;;  %v3132_v37 = vmul.f32 0.003921569, %v2812_v29  ;;  %v2177_v41 = vshra.s32 %v5883_v40, 8  ;;  %v2178_v43 = vshra.s32 %v5884_v42, 8 }
 0x200   : > { %5163 = vst [vmem:[%s6693_s25 + $0xcf0] sm:$0xff] %v3131_v30  ;;  %v2493_v44 = vand.u32 255, %v2173_v32  ;;  %v2494_v45 = vand.u32 255, %v2174_v34  ;;  %v2495_v46 = vand.u32 255, %v2175_v36  ;;  %v2179_v48 = vshra.s32 %v5885_v47, 8  ;;  %v5891_v16 = vld [vmem:[%s6669_s4 + $0x360] sm:$0xff] }
 0x201   : > { %5164 = vst [vmem:[%s6693_s25 + $0xcf8] sm:$0xff] %v3132_v37  ;;  %v2496_v49 = vand.u32 255, %v2176_v39  ;;  %v2497_v50 = vand.u32 255, %v2177_v41  ;;  %v2498_v51 = vand.u32 255, %v2178_v43  ;;  %v2180_v53 = vshra.s32 %v5886_v52, 8  ;;  %v5892_v18 = vld [vmem:[%s6669_s4 + $0x368] sm:$0xff] }
 0x202   : > { %v2813_v54 = vcvt.s32.f32 %v2493_v44  ;;  %v2814_v55 = vcvt.s32.f32 %v2494_v45  ;;  %v2815_v56 = vcvt.s32.f32 %v2495_v46  ;;  %v2499_v57 = vand.u32 255, %v2179_v48  ;;  %v5893_v23 = vld [vmem:[%s6669_s4 + $0x370] sm:$0xff]  ;;  %v5894_v28 = vld [vmem:[%s6669_s4 + $0x378] sm:$0xff]  ;;  %v5895_v47 = vld [vmem:[%s6669_s4 + $0x380] sm:$0xff] }
 0x203   : > { %v2816_v58 = vcvt.s32.f32 %v2496_v49  ;;  %v2817_v59 = vcvt.s32.f32 %v2497_v50  ;;  %v2818_v60 = vcvt.s32.f32 %v2498_v51  ;;  %v2500_v61 = vand.u32 255, %v2180_v53  ;;  %v5896_v49 = vld [vmem:[%s6669_s4 + $0x388] sm:$0xff]  ;;  %v5897_v51 = vld [vmem:[%s6669_s4 + $0x390] sm:$0xff] }
 0x204   : > { %v3133_v62 = vmul.f32 0.003921569, %v2813_v54  ;;  %v3134_v63 = vmul.f32 0.003921569, %v2814_v55  ;;  %v3135_v0 = vmul.f32 0.003921569, %v2815_v56  ;;  %v2819_v1 = vcvt.s32.f32 %v2499_v57 }
 0x205   : > { %v3136_v2 = vmul.f32 0.003921569, %v2816_v58  ;;  %v3137_v3 = vmul.f32 0.003921569, %v2817_v59  ;;  %v3138_v4 = vmul.f32 0.003921569, %v2818_v60  ;;  %v2820_v5 = vcvt.s32.f32 %v2500_v61 }
 0x206   : > { %5165 = vst [vmem:[%s6693_s25 + $0xd00] sm:$0xff] %v3133_v62  ;;  %5166 = vst [vmem:[%s6693_s25 + $0xd08] sm:$0xff] %v3134_v63  ;;  %v3139_v6 = vmul.f32 0.003921569, %v2819_v1  ;;  %v2181_v8 = vshra.s32 %v5887_v7, 8  ;;  %v2182_v10 = vshra.s32 %v5888_v9, 8 }
 0x207   : > { %5167 = vst [vmem:[%s6693_s25 + $0xd10] sm:$0xff] %v3135_v0  ;;  %v2183_v12 = vshra.s32 %v5889_v11, 8  ;;  %5168 = vst [vmem:[%s6693_s25 + $0xd18] sm:$0xff] %v3136_v2  ;;  %v3140_v13 = vmul.f32 0.003921569, %v2820_v5  ;;  %v2184_v15 = vshra.s32 %v5890_v14, 8 }
 0x208   : > { %5169 = vst [vmem:[%s6693_s25 + $0xd20] sm:$0xff] %v3137_v3  ;;  %5170 = vst [vmem:[%s6693_s25 + $0xd28] sm:$0xff] %v3138_v4  ;;  %v2185_v17 = vshra.s32 %v5891_v16, 8  ;;  %v2186_v19 = vshra.s32 %v5892_v18, 8  ;;  %v2501_v20 = vand.u32 255, %v2181_v8  ;;  %v2502_v21 = vand.u32 255, %v2182_v10 }
 0x209   : > { %5171 = vst [vmem:[%s6693_s25 + $0xd30] sm:$0xff] %v3139_v6  ;;  %v2503_v22 = vand.u32 255, %v2183_v12  ;;  %v2187_v24 = vshra.s32 %v5893_v23, 8  ;;  %5172 = vst [vmem:[%s6693_s25 + $0xd38] sm:$0xff] %v3140_v13  ;;  %v2504_v25 = vand.u32 255, %v2184_v15  ;;  %v2188_v29 = vshra.s32 %v5894_v28, 8 }
 0x20a   : > { %v2505_v26 = vand.u32 255, %v2185_v17  ;;  %v2506_v27 = vand.u32 255, %v2186_v19  ;;  %v2821_v30 = vcvt.s32.f32 %v2501_v20  ;;  %v2822_v31 = vcvt.s32.f32 %v2502_v21  ;;  %v5898_v54 = vld [vmem:[%s6669_s4 + $0x398] sm:$0xff]  ;;  %v5899_v56 = vld [vmem:[%s6669_s4 + $0x3a0] sm:$0xff]  ;;  %v5900_v58 = vld [vmem:[%s6669_s4 + $0x3a8] sm:$0xff] }
 0x20b   : > { %v2823_v32 = vcvt.s32.f32 %v2503_v22  ;;  %v2507_v33 = vand.u32 255, %v2187_v24  ;;  %v2824_v34 = vcvt.s32.f32 %v2504_v25  ;;  %v2508_v37 = vand.u32 255, %v2188_v29  ;;  %v5901_v63 = vld [vmem:[%s6669_s4 + $0x3b0] sm:$0xff]  ;;  %v5902_v4 = vld [vmem:[%s6669_s4 + $0x3b8] sm:$0xff]  ;;  %v5903_v23 = vld [vmem:[%s6669_s4 + $0x3c0] sm:$0xff] }
 0x20c   : > { %v2825_v35 = vcvt.s32.f32 %v2505_v26  ;;  %v2826_v36 = vcvt.s32.f32 %v2506_v27  ;;  %v3141_v38 = vmul.f32 0.003921569, %v2821_v30  ;;  %v3142_v39 = vmul.f32 0.003921569, %v2822_v31  ;;  %v5904_v25 = vld [vmem:[%s6669_s4 + $0x3c8] sm:$0xff]  ;;  %v5905_v27 = vld [vmem:[%s6669_s4 + $0x3d0] sm:$0xff] }
 0x20d   : > { %v3143_v40 = vmul.f32 0.003921569, %v2823_v32  ;;  %v2827_v41 = vcvt.s32.f32 %v2507_v33  ;;  %v3144_v42 = vmul.f32 0.003921569, %v2824_v34  ;;  %v2828_v45 = vcvt.s32.f32 %v2508_v37  ;;  %v5906_v30 = vld [vmem:[%s6669_s4 + $0x3d8] sm:$0xff]  ;;  %v5907_v32 = vld [vmem:[%s6669_s4 + $0x3e0] sm:$0xff] }
 0x20e   : > { %v3145_v43 = vmul.f32 0.003921569, %v2825_v35  ;;  %v3146_v44 = vmul.f32 0.003921569, %v2826_v36  ;;  %5173 = vst [vmem:[%s6693_s25 + $0xd40] sm:$0xff] %v3141_v38  ;;  %5174 = vst [vmem:[%s6693_s25 + $0xd48] sm:$0xff] %v3142_v39 }
 0x20f   : > { %5175 = vst [vmem:[%s6693_s25 + $0xd50] sm:$0xff] %v3143_v40  ;;  %v3147_v46 = vmul.f32 0.003921569, %v2827_v41  ;;  %v2189_v48 = vshra.s32 %v5895_v47, 8  ;;  %v2190_v50 = vshra.s32 %v5896_v49, 8  ;;  %v2191_v52 = vshra.s32 %v5897_v51, 8 }
 0x210   : > { %5176 = vst [vmem:[%s6693_s25 + $0xd58] sm:$0xff] %v3144_v42  ;;  %5177 = vst [vmem:[%s6693_s25 + $0xd60] sm:$0xff] %v3145_v43  ;;  %v3148_v53 = vmul.f32 0.003921569, %v2828_v45  ;;  %v2192_v55 = vshra.s32 %v5898_v54, 8  ;;  %v2193_v57 = vshra.s32 %v5899_v56, 8 }
 0x211   : > { %5178 = vst [vmem:[%s6693_s25 + $0xd68] sm:$0xff] %v3146_v44  ;;  %v2194_v59 = vshra.s32 %v5900_v58, 8  ;;  %5179 = vst [vmem:[%s6693_s25 + $0xd70] sm:$0xff] %v3147_v46  ;;  %v2509_v60 = vand.u32 255, %v2189_v48  ;;  %v2510_v61 = vand.u32 255, %v2190_v50  ;;  %v2511_v62 = vand.u32 255, %v2191_v52 }
 0x212   : > { %v2195_v0 = vshra.s32 %v5901_v63, 8  ;;  %5180 = vst [vmem:[%s6693_s25 + $0xd78] sm:$0xff] %v3148_v53  ;;  %v2512_v1 = vand.u32 255, %v2192_v55  ;;  %v2513_v2 = vand.u32 255, %v2193_v57  ;;  %v2196_v5 = vshra.s32 %v5902_v4, 8  ;;  %v5908_v34 = vld [vmem:[%s6669_s4 + $0x3e8] sm:$0xff] }
 0x213   : > { %v2514_v3 = vand.u32 255, %v2194_v59  ;;  %v2829_v6 = vcvt.s32.f32 %v2509_v60  ;;  %v2830_v7 = vcvt.s32.f32 %v2510_v61  ;;  %v2831_v8 = vcvt.s32.f32 %v2511_v62  ;;  %v5909_v39 = vld [vmem:[%s6669_s4 + $0x3f0] sm:$0xff]  ;;  %v5910_v44 = vld [vmem:[%s6669_s4 + $0x3f8] sm:$0xff]  ;;  %v5911_v63 = vld [vmem:[%s6669_s4 + $0x400] sm:$0xff] }
 0x214   : > { %v2515_v9 = vand.u32 255, %v2195_v0  ;;  %v2832_v10 = vcvt.s32.f32 %v2512_v1  ;;  %v2833_v11 = vcvt.s32.f32 %v2513_v2  ;;  %v2516_v13 = vand.u32 255, %v2196_v5  ;;  %v5912_v1 = vld [vmem:[%s6669_s4 + $0x408] sm:$0xff] }
 0x215   : > { %v2834_v12 = vcvt.s32.f32 %v2514_v3  ;;  %v3149_v14 = vmul.f32 0.003921569, %v2829_v6  ;;  %v3150_v15 = vmul.f32 0.003921569, %v2830_v7  ;;  %v3151_v16 = vmul.f32 0.003921569, %v2831_v8 }
 0x216   : > { %v2835_v17 = vcvt.s32.f32 %v2515_v9  ;;  %v3152_v18 = vmul.f32 0.003921569, %v2832_v10  ;;  %v3153_v19 = vmul.f32 0.003921569, %v2833_v11  ;;  %v2836_v21 = vcvt.s32.f32 %v2516_v13  ;;  %v5913_v3 = vld [vmem:[%s6669_s4 + $0x410] sm:$0xff]  ;;  %v5914_v6 = vld [vmem:[%s6669_s4 + $0x418] sm:$0xff] }
 0x217   : > { %v3154_v20 = vmul.f32 0.003921569, %v2834_v12  ;;  %5181 = vst [vmem:[%s6693_s25 + $0xd80] sm:$0xff] %v3149_v14  ;;  %5182 = vst [vmem:[%s6693_s25 + $0xd88] sm:$0xff] %v3150_v15  ;;  %v2197_v24 = vshra.s32 %v5903_v23, 8  ;;  %v2198_v26 = vshra.s32 %v5904_v25, 8 }
 0x218   : > { %5183 = vst [vmem:[%s6693_s25 + $0xd90] sm:$0xff] %v3151_v16  ;;  %v3155_v22 = vmul.f32 0.003921569, %v2835_v17  ;;  %v2199_v28 = vshra.s32 %v5905_v27, 8  ;;  %5184 = vst [vmem:[%s6693_s25 + $0xd98] sm:$0xff] %v3152_v18  ;;  %v2200_v31 = vshra.s32 %v5906_v30, 8 }
 0x219   : > { %5185 = vst [vmem:[%s6693_s25 + $0xda0] sm:$0xff] %v3153_v19  ;;  %5186 = vst [vmem:[%s6693_s25 + $0xda8] sm:$0xff] %v3154_v20  ;;  %v3156_v29 = vmul.f32 0.003921569, %v2836_v21  ;;  %v2201_v33 = vshra.s32 %v5907_v32, 8  ;;  %v2202_v35 = vshra.s32 %v5908_v34, 8 }
 0x21a   : > { %5187 = vst [vmem:[%s6693_s25 + $0xdb0] sm:$0xff] %v3155_v22  ;;  %v2517_v36 = vand.u32 255, %v2197_v24  ;;  %v2518_v37 = vand.u32 255, %v2198_v26  ;;  %v2519_v38 = vand.u32 255, %v2199_v28  ;;  %v2203_v40 = vshra.s32 %v5909_v39, 8  ;;  %v5915_v8 = vld [vmem:[%s6669_s4 + $0x420] sm:$0xff] }
 0x21b   : > { %5188 = vst [vmem:[%s6693_s25 + $0xdb8] sm:$0xff] %v3156_v29  ;;  %v2520_v41 = vand.u32 255, %v2200_v31  ;;  %v2521_v42 = vand.u32 255, %v2201_v33  ;;  %v2522_v43 = vand.u32 255, %v2202_v35  ;;  %v2204_v45 = vshra.s32 %v5910_v44, 8  ;;  %v5916_v10 = vld [vmem:[%s6669_s4 + $0x428] sm:$0xff] }
 0x21c   : > { %v2837_v46 = vcvt.s32.f32 %v2517_v36  ;;  %v2838_v47 = vcvt.s32.f32 %v2518_v37  ;;  %v2839_v48 = vcvt.s32.f32 %v2519_v38  ;;  %v2523_v49 = vand.u32 255, %v2203_v40  ;;  %v5917_v15 = vld [vmem:[%s6669_s4 + $0x430] sm:$0xff]  ;;  %v5918_v20 = vld [vmem:[%s6669_s4 + $0x438] sm:$0xff]  ;;  %v5919_v39 = vld [vmem:[%s6669_s4 + $0x440] sm:$0xff] }
 0x21d   : > { %v2840_v50 = vcvt.s32.f32 %v2520_v41  ;;  %v2841_v51 = vcvt.s32.f32 %v2521_v42  ;;  %v2842_v52 = vcvt.s32.f32 %v2522_v43  ;;  %v2524_v53 = vand.u32 255, %v2204_v45  ;;  %v5920_v41 = vld [vmem:[%s6669_s4 + $0x448] sm:$0xff]  ;;  %v5921_v43 = vld [vmem:[%s6669_s4 + $0x450] sm:$0xff] }
 0x21e   : > { %v3157_v54 = vmul.f32 0.003921569, %v2837_v46  ;;  %v3158_v55 = vmul.f32 0.003921569, %v2838_v47  ;;  %v3159_v56 = vmul.f32 0.003921569, %v2839_v48  ;;  %v2843_v57 = vcvt.s32.f32 %v2523_v49 }
 0x21f   : > { %v3160_v58 = vmul.f32 0.003921569, %v2840_v50  ;;  %v3161_v59 = vmul.f32 0.003921569, %v2841_v51  ;;  %v3162_v60 = vmul.f32 0.003921569, %v2842_v52  ;;  %v2844_v61 = vcvt.s32.f32 %v2524_v53 }
 0x220   : > { %5189 = vst [vmem:[%s6693_s25 + $0xdc0] sm:$0xff] %v3157_v54  ;;  %5190 = vst [vmem:[%s6693_s25 + $0xdc8] sm:$0xff] %v3158_v55  ;;  %v3163_v62 = vmul.f32 0.003921569, %v2843_v57  ;;  %v2205_v0 = vshra.s32 %v5911_v63, 8  ;;  %v2206_v2 = vshra.s32 %v5912_v1, 8 }
 0x221   : > { %5191 = vst [vmem:[%s6693_s25 + $0xdd0] sm:$0xff] %v3159_v56  ;;  %v2207_v4 = vshra.s32 %v5913_v3, 8  ;;  %5192 = vst [vmem:[%s6693_s25 + $0xdd8] sm:$0xff] %v3160_v58  ;;  %v3164_v5 = vmul.f32 0.003921569, %v2844_v61  ;;  %v2208_v7 = vshra.s32 %v5914_v6, 8 }
 0x222   : > { %5193 = vst [vmem:[%s6693_s25 + $0xde0] sm:$0xff] %v3161_v59  ;;  %5194 = vst [vmem:[%s6693_s25 + $0xde8] sm:$0xff] %v3162_v60  ;;  %v2209_v9 = vshra.s32 %v5915_v8, 8  ;;  %v2210_v11 = vshra.s32 %v5916_v10, 8  ;;  %v2525_v12 = vand.u32 255, %v2205_v0  ;;  %v2526_v13 = vand.u32 255, %v2206_v2 }
 0x223   : > { %5195 = vst [vmem:[%s6693_s25 + $0xdf0] sm:$0xff] %v3163_v62  ;;  %v2527_v14 = vand.u32 255, %v2207_v4  ;;  %v2211_v16 = vshra.s32 %v5917_v15, 8  ;;  %5196 = vst [vmem:[%s6693_s25 + $0xdf8] sm:$0xff] %v3164_v5  ;;  %v2528_v17 = vand.u32 255, %v2208_v7  ;;  %v2212_v21 = vshra.s32 %v5918_v20, 8 }
 0x224   : > { %v2529_v18 = vand.u32 255, %v2209_v9  ;;  %v2530_v19 = vand.u32 255, %v2210_v11  ;;  %v2845_v22 = vcvt.s32.f32 %v2525_v12  ;;  %v2846_v23 = vcvt.s32.f32 %v2526_v13  ;;  %v5922_v46 = vld [vmem:[%s6669_s4 + $0x458] sm:$0xff]  ;;  %v5923_v48 = vld [vmem:[%s6669_s4 + $0x460] sm:$0xff]  ;;  %v5924_v50 = vld [vmem:[%s6669_s4 + $0x468] sm:$0xff] }
 0x225   : > { %v2847_v24 = vcvt.s32.f32 %v2527_v14  ;;  %v2531_v25 = vand.u32 255, %v2211_v16  ;;  %v2848_v26 = vcvt.s32.f32 %v2528_v17  ;;  %v2532_v29 = vand.u32 255, %v2212_v21  ;;  %v5925_v55 = vld [vmem:[%s6669_s4 + $0x470] sm:$0xff]  ;;  %v5926_v60 = vld [vmem:[%s6669_s4 + $0x478] sm:$0xff]  ;;  %v5927_v15 = vld [vmem:[%s6669_s4 + $0x480] sm:$0xff] }
 0x226   : > { %v2849_v27 = vcvt.s32.f32 %v2529_v18  ;;  %v2850_v28 = vcvt.s32.f32 %v2530_v19  ;;  %v3165_v30 = vmul.f32 0.003921569, %v2845_v22  ;;  %v3166_v31 = vmul.f32 0.003921569, %v2846_v23  ;;  %v5928_v17 = vld [vmem:[%s6669_s4 + $0x488] sm:$0xff]  ;;  %v5929_v19 = vld [vmem:[%s6669_s4 + $0x490] sm:$0xff] }
 0x227   : > { %v3167_v32 = vmul.f32 0.003921569, %v2847_v24  ;;  %v2851_v33 = vcvt.s32.f32 %v2531_v25  ;;  %v3168_v34 = vmul.f32 0.003921569, %v2848_v26  ;;  %v2852_v37 = vcvt.s32.f32 %v2532_v29  ;;  %v5930_v22 = vld [vmem:[%s6669_s4 + $0x498] sm:$0xff]  ;;  %v5931_v24 = vld [vmem:[%s6669_s4 + $0x4a0] sm:$0xff] }
 0x228   : > { %v3169_v35 = vmul.f32 0.003921569, %v2849_v27  ;;  %v3170_v36 = vmul.f32 0.003921569, %v2850_v28  ;;  %5197 = vst [vmem:[%s6693_s25 + $0xe00] sm:$0xff] %v3165_v30  ;;  %5198 = vst [vmem:[%s6693_s25 + $0xe08] sm:$0xff] %v3166_v31 }
 0x229   : > { %5199 = vst [vmem:[%s6693_s25 + $0xe10] sm:$0xff] %v3167_v32  ;;  %v3171_v38 = vmul.f32 0.003921569, %v2851_v33  ;;  %v2213_v40 = vshra.s32 %v5919_v39, 8  ;;  %v2214_v42 = vshra.s32 %v5920_v41, 8  ;;  %v2215_v44 = vshra.s32 %v5921_v43, 8 }
 0x22a   : > { %5200 = vst [vmem:[%s6693_s25 + $0xe18] sm:$0xff] %v3168_v34  ;;  %5201 = vst [vmem:[%s6693_s25 + $0xe20] sm:$0xff] %v3169_v35  ;;  %v3172_v45 = vmul.f32 0.003921569, %v2852_v37  ;;  %v2216_v47 = vshra.s32 %v5922_v46, 8  ;;  %v2217_v49 = vshra.s32 %v5923_v48, 8 }
 0x22b   : > { %5202 = vst [vmem:[%s6693_s25 + $0xe28] sm:$0xff] %v3170_v36  ;;  %v2218_v51 = vshra.s32 %v5924_v50, 8  ;;  %5203 = vst [vmem:[%s6693_s25 + $0xe30] sm:$0xff] %v3171_v38  ;;  %v2533_v52 = vand.u32 255, %v2213_v40  ;;  %v2534_v53 = vand.u32 255, %v2214_v42  ;;  %v2535_v54 = vand.u32 255, %v2215_v44 }
 0x22c   : > { %v2219_v56 = vshra.s32 %v5925_v55, 8  ;;  %5204 = vst [vmem:[%s6693_s25 + $0xe38] sm:$0xff] %v3172_v45  ;;  %v2536_v57 = vand.u32 255, %v2216_v47  ;;  %v2537_v58 = vand.u32 255, %v2217_v49  ;;  %v2220_v61 = vshra.s32 %v5926_v60, 8  ;;  %v5932_v26 = vld [vmem:[%s6669_s4 + $0x4a8] sm:$0xff] }
 0x22d   : > { %v2538_v59 = vand.u32 255, %v2218_v51  ;;  %v2853_v62 = vcvt.s32.f32 %v2533_v52  ;;  %v2854_v63 = vcvt.s32.f32 %v2534_v53  ;;  %v2855_v0 = vcvt.s32.f32 %v2535_v54  ;;  %v5933_v31 = vld [vmem:[%s6669_s4 + $0x4b0] sm:$0xff]  ;;  %v5934_v36 = vld [vmem:[%s6669_s4 + $0x4b8] sm:$0xff]  ;;  %v5935_v55 = vld [vmem:[%s6669_s4 + $0x4c0] sm:$0xff] }
 0x22e   : > { %v2539_v1 = vand.u32 255, %v2219_v56  ;;  %v2856_v2 = vcvt.s32.f32 %v2536_v57  ;;  %v2857_v3 = vcvt.s32.f32 %v2537_v58  ;;  %v2540_v5 = vand.u32 255, %v2220_v61  ;;  %v5936_v57 = vld [vmem:[%s6669_s4 + $0x4c8] sm:$0xff] }
 0x22f   : > { %v2858_v4 = vcvt.s32.f32 %v2538_v59  ;;  %v3173_v6 = vmul.f32 0.003921569, %v2853_v62  ;;  %v3174_v7 = vmul.f32 0.003921569, %v2854_v63  ;;  %v3175_v8 = vmul.f32 0.003921569, %v2855_v0 }
 0x230   : > { %v2859_v9 = vcvt.s32.f32 %v2539_v1  ;;  %v3176_v10 = vmul.f32 0.003921569, %v2856_v2  ;;  %v3177_v11 = vmul.f32 0.003921569, %v2857_v3  ;;  %v2860_v13 = vcvt.s32.f32 %v2540_v5  ;;  %v5937_v59 = vld [vmem:[%s6669_s4 + $0x4d0] sm:$0xff]  ;;  %v5938_v62 = vld [vmem:[%s6669_s4 + $0x4d8] sm:$0xff] }
 0x231   : > { %v3178_v12 = vmul.f32 0.003921569, %v2858_v4  ;;  %5205 = vst [vmem:[%s6693_s25 + $0xe40] sm:$0xff] %v3173_v6  ;;  %5206 = vst [vmem:[%s6693_s25 + $0xe48] sm:$0xff] %v3174_v7  ;;  %v2221_v16 = vshra.s32 %v5927_v15, 8  ;;  %v2222_v18 = vshra.s32 %v5928_v17, 8 }
 0x232   : > { %5207 = vst [vmem:[%s6693_s25 + $0xe50] sm:$0xff] %v3175_v8  ;;  %v3179_v14 = vmul.f32 0.003921569, %v2859_v9  ;;  %v2223_v20 = vshra.s32 %v5929_v19, 8  ;;  %5208 = vst [vmem:[%s6693_s25 + $0xe58] sm:$0xff] %v3176_v10  ;;  %v2224_v23 = vshra.s32 %v5930_v22, 8 }
 0x233   : > { %5209 = vst [vmem:[%s6693_s25 + $0xe60] sm:$0xff] %v3177_v11  ;;  %5210 = vst [vmem:[%s6693_s25 + $0xe68] sm:$0xff] %v3178_v12  ;;  %v3180_v21 = vmul.f32 0.003921569, %v2860_v13  ;;  %v2225_v25 = vshra.s32 %v5931_v24, 8  ;;  %v2226_v27 = vshra.s32 %v5932_v26, 8 }
 0x234   : > { %5211 = vst [vmem:[%s6693_s25 + $0xe70] sm:$0xff] %v3179_v14  ;;  %v2541_v28 = vand.u32 255, %v2221_v16  ;;  %v2542_v29 = vand.u32 255, %v2222_v18  ;;  %v2543_v30 = vand.u32 255, %v2223_v20  ;;  %v2227_v32 = vshra.s32 %v5933_v31, 8  ;;  %v5939_v0 = vld [vmem:[%s6669_s4 + $0x4e0] sm:$0xff] }
 0x235   : > { %5212 = vst [vmem:[%s6693_s25 + $0xe78] sm:$0xff] %v3180_v21  ;;  %v2544_v33 = vand.u32 255, %v2224_v23  ;;  %v2545_v34 = vand.u32 255, %v2225_v25  ;;  %v2546_v35 = vand.u32 255, %v2226_v27  ;;  %v2228_v37 = vshra.s32 %v5934_v36, 8  ;;  %v5940_v2 = vld [vmem:[%s6669_s4 + $0x4e8] sm:$0xff] }
 0x236   : > { %v2861_v38 = vcvt.s32.f32 %v2541_v28  ;;  %v2862_v39 = vcvt.s32.f32 %v2542_v29  ;;  %v2863_v40 = vcvt.s32.f32 %v2543_v30  ;;  %v2547_v41 = vand.u32 255, %v2227_v32  ;;  %v5941_v7 = vld [vmem:[%s6669_s4 + $0x4f0] sm:$0xff]  ;;  %v5942_v12 = vld [vmem:[%s6669_s4 + $0x4f8] sm:$0xff]  ;;  %v5943_v31 = vld [vmem:[%s6669_s4 + $0x500] sm:$0xff] }
 0x237   : > { %v2864_v42 = vcvt.s32.f32 %v2544_v33  ;;  %v2865_v43 = vcvt.s32.f32 %v2545_v34  ;;  %v2866_v44 = vcvt.s32.f32 %v2546_v35  ;;  %v2548_v45 = vand.u32 255, %v2228_v37  ;;  %v5944_v33 = vld [vmem:[%s6669_s4 + $0x508] sm:$0xff]  ;;  %v5945_v35 = vld [vmem:[%s6669_s4 + $0x510] sm:$0xff] }
 0x238   : > { %v3181_v46 = vmul.f32 0.003921569, %v2861_v38  ;;  %v3182_v47 = vmul.f32 0.003921569, %v2862_v39  ;;  %v3183_v48 = vmul.f32 0.003921569, %v2863_v40  ;;  %v2867_v49 = vcvt.s32.f32 %v2547_v41 }
 0x239   : > { %v3184_v50 = vmul.f32 0.003921569, %v2864_v42  ;;  %v3185_v51 = vmul.f32 0.003921569, %v2865_v43  ;;  %v3186_v52 = vmul.f32 0.003921569, %v2866_v44  ;;  %v2868_v53 = vcvt.s32.f32 %v2548_v45 }
 0x23a   : > { %5213 = vst [vmem:[%s6693_s25 + $0xe80] sm:$0xff] %v3181_v46  ;;  %5214 = vst [vmem:[%s6693_s25 + $0xe88] sm:$0xff] %v3182_v47  ;;  %v3187_v54 = vmul.f32 0.003921569, %v2867_v49  ;;  %v2229_v56 = vshra.s32 %v5935_v55, 8  ;;  %v2230_v58 = vshra.s32 %v5936_v57, 8 }
 0x23b   : > { %5215 = vst [vmem:[%s6693_s25 + $0xe90] sm:$0xff] %v3183_v48  ;;  %v2231_v60 = vshra.s32 %v5937_v59, 8  ;;  %5216 = vst [vmem:[%s6693_s25 + $0xe98] sm:$0xff] %v3184_v50  ;;  %v3188_v61 = vmul.f32 0.003921569, %v2868_v53  ;;  %v2232_v63 = vshra.s32 %v5938_v62, 8 }
 0x23c   : > { %5217 = vst [vmem:[%s6693_s25 + $0xea0] sm:$0xff] %v3185_v51  ;;  %5218 = vst [vmem:[%s6693_s25 + $0xea8] sm:$0xff] %v3186_v52  ;;  %v2233_v1 = vshra.s32 %v5939_v0, 8  ;;  %v2234_v3 = vshra.s32 %v5940_v2, 8  ;;  %v2549_v4 = vand.u32 255, %v2229_v56  ;;  %v2550_v5 = vand.u32 255, %v2230_v58 }
 0x23d   : > { %5219 = vst [vmem:[%s6693_s25 + $0xeb0] sm:$0xff] %v3187_v54  ;;  %v2551_v6 = vand.u32 255, %v2231_v60  ;;  %v2235_v8 = vshra.s32 %v5941_v7, 8  ;;  %5220 = vst [vmem:[%s6693_s25 + $0xeb8] sm:$0xff] %v3188_v61  ;;  %v2552_v9 = vand.u32 255, %v2232_v63  ;;  %v2236_v13 = vshra.s32 %v5942_v12, 8 }
 0x23e   : > { %v2553_v10 = vand.u32 255, %v2233_v1  ;;  %v2554_v11 = vand.u32 255, %v2234_v3  ;;  %v2869_v14 = vcvt.s32.f32 %v2549_v4  ;;  %v2870_v15 = vcvt.s32.f32 %v2550_v5  ;;  %v5946_v38 = vld [vmem:[%s6669_s4 + $0x518] sm:$0xff]  ;;  %v5947_v40 = vld [vmem:[%s6669_s4 + $0x520] sm:$0xff]  ;;  %v5948_v42 = vld [vmem:[%s6669_s4 + $0x528] sm:$0xff] }
 0x23f   : > { %v2871_v16 = vcvt.s32.f32 %v2551_v6  ;;  %v2555_v17 = vand.u32 255, %v2235_v8  ;;  %v2872_v18 = vcvt.s32.f32 %v2552_v9  ;;  %v2556_v21 = vand.u32 255, %v2236_v13  ;;  %v5949_v47 = vld [vmem:[%s6669_s4 + $0x530] sm:$0xff]  ;;  %v5950_v52 = vld [vmem:[%s6669_s4 + $0x538] sm:$0xff]  ;;  %v5951_v7 = vld [vmem:[%s6669_s4 + $0x540] sm:$0xff] }
 0x240   : > { %v2873_v19 = vcvt.s32.f32 %v2553_v10  ;;  %v2874_v20 = vcvt.s32.f32 %v2554_v11  ;;  %v3189_v22 = vmul.f32 0.003921569, %v2869_v14  ;;  %v3190_v23 = vmul.f32 0.003921569, %v2870_v15  ;;  %v5952_v9 = vld [vmem:[%s6669_s4 + $0x548] sm:$0xff]  ;;  %v5953_v11 = vld [vmem:[%s6669_s4 + $0x550] sm:$0xff] }
 0x241   : > { %v3191_v24 = vmul.f32 0.003921569, %v2871_v16  ;;  %v2875_v25 = vcvt.s32.f32 %v2555_v17  ;;  %v3192_v26 = vmul.f32 0.003921569, %v2872_v18  ;;  %v2876_v29 = vcvt.s32.f32 %v2556_v21  ;;  %v5954_v14 = vld [vmem:[%s6669_s4 + $0x558] sm:$0xff]  ;;  %v5955_v16 = vld [vmem:[%s6669_s4 + $0x560] sm:$0xff] }
 0x242   : > { %v3193_v27 = vmul.f32 0.003921569, %v2873_v19  ;;  %v3194_v28 = vmul.f32 0.003921569, %v2874_v20  ;;  %5221 = vst [vmem:[%s6693_s25 + $0xec0] sm:$0xff] %v3189_v22  ;;  %5222 = vst [vmem:[%s6693_s25 + $0xec8] sm:$0xff] %v3190_v23 }
 0x243   : > { %5223 = vst [vmem:[%s6693_s25 + $0xed0] sm:$0xff] %v3191_v24  ;;  %v3195_v30 = vmul.f32 0.003921569, %v2875_v25  ;;  %v2237_v32 = vshra.s32 %v5943_v31, 8  ;;  %v2238_v34 = vshra.s32 %v5944_v33, 8  ;;  %v2239_v36 = vshra.s32 %v5945_v35, 8 }
 0x244   : > { %5224 = vst [vmem:[%s6693_s25 + $0xed8] sm:$0xff] %v3192_v26  ;;  %5225 = vst [vmem:[%s6693_s25 + $0xee0] sm:$0xff] %v3193_v27  ;;  %v3196_v37 = vmul.f32 0.003921569, %v2876_v29  ;;  %v2240_v39 = vshra.s32 %v5946_v38, 8  ;;  %v2241_v41 = vshra.s32 %v5947_v40, 8 }
 0x245   : > { %5226 = vst [vmem:[%s6693_s25 + $0xee8] sm:$0xff] %v3194_v28  ;;  %v2242_v43 = vshra.s32 %v5948_v42, 8  ;;  %5227 = vst [vmem:[%s6693_s25 + $0xef0] sm:$0xff] %v3195_v30  ;;  %v2557_v44 = vand.u32 255, %v2237_v32  ;;  %v2558_v45 = vand.u32 255, %v2238_v34  ;;  %v2559_v46 = vand.u32 255, %v2239_v36 }
 0x246   : > { %v2243_v48 = vshra.s32 %v5949_v47, 8  ;;  %5228 = vst [vmem:[%s6693_s25 + $0xef8] sm:$0xff] %v3196_v37  ;;  %v2560_v49 = vand.u32 255, %v2240_v39  ;;  %v2561_v50 = vand.u32 255, %v2241_v41  ;;  %v2244_v53 = vshra.s32 %v5950_v52, 8  ;;  %v5956_v18 = vld [vmem:[%s6669_s4 + $0x568] sm:$0xff] }
 0x247   : > { %v2562_v51 = vand.u32 255, %v2242_v43  ;;  %v2877_v54 = vcvt.s32.f32 %v2557_v44  ;;  %v2878_v55 = vcvt.s32.f32 %v2558_v45  ;;  %v2879_v56 = vcvt.s32.f32 %v2559_v46  ;;  %v5957_v23 = vld [vmem:[%s6669_s4 + $0x570] sm:$0xff]  ;;  %v5958_v28 = vld [vmem:[%s6669_s4 + $0x578] sm:$0xff]  ;;  %v5959_v47 = vld [vmem:[%s6669_s4 + $0x580] sm:$0xff] }
 0x248   : > { %v2563_v57 = vand.u32 255, %v2243_v48  ;;  %v2880_v58 = vcvt.s32.f32 %v2560_v49  ;;  %v2881_v59 = vcvt.s32.f32 %v2561_v50  ;;  %v2564_v61 = vand.u32 255, %v2244_v53  ;;  %v5960_v49 = vld [vmem:[%s6669_s4 + $0x588] sm:$0xff] }
 0x249   : > { %v2882_v60 = vcvt.s32.f32 %v2562_v51  ;;  %v3197_v62 = vmul.f32 0.003921569, %v2877_v54  ;;  %v3198_v63 = vmul.f32 0.003921569, %v2878_v55  ;;  %v3199_v0 = vmul.f32 0.003921569, %v2879_v56 }
 0x24a   : > { %v2883_v1 = vcvt.s32.f32 %v2563_v57  ;;  %v3200_v2 = vmul.f32 0.003921569, %v2880_v58  ;;  %v3201_v3 = vmul.f32 0.003921569, %v2881_v59  ;;  %v2884_v5 = vcvt.s32.f32 %v2564_v61  ;;  %v5961_v51 = vld [vmem:[%s6669_s4 + $0x590] sm:$0xff]  ;;  %v5962_v54 = vld [vmem:[%s6669_s4 + $0x598] sm:$0xff] }
 0x24b   : > { %v3202_v4 = vmul.f32 0.003921569, %v2882_v60  ;;  %5229 = vst [vmem:[%s6693_s25 + $0xf00] sm:$0xff] %v3197_v62  ;;  %5230 = vst [vmem:[%s6693_s25 + $0xf08] sm:$0xff] %v3198_v63  ;;  %v2245_v8 = vshra.s32 %v5951_v7, 8  ;;  %v2246_v10 = vshra.s32 %v5952_v9, 8 }
 0x24c   : > { %5231 = vst [vmem:[%s6693_s25 + $0xf10] sm:$0xff] %v3199_v0  ;;  %v3203_v6 = vmul.f32 0.003921569, %v2883_v1  ;;  %v2247_v12 = vshra.s32 %v5953_v11, 8  ;;  %5232 = vst [vmem:[%s6693_s25 + $0xf18] sm:$0xff] %v3200_v2  ;;  %v2248_v15 = vshra.s32 %v5954_v14, 8 }
 0x24d   : > { %5233 = vst [vmem:[%s6693_s25 + $0xf20] sm:$0xff] %v3201_v3  ;;  %5234 = vst [vmem:[%s6693_s25 + $0xf28] sm:$0xff] %v3202_v4  ;;  %v3204_v13 = vmul.f32 0.003921569, %v2884_v5  ;;  %v2249_v17 = vshra.s32 %v5955_v16, 8  ;;  %v2250_v19 = vshra.s32 %v5956_v18, 8 }
 0x24e   : > { %5235 = vst [vmem:[%s6693_s25 + $0xf30] sm:$0xff] %v3203_v6  ;;  %v2565_v20 = vand.u32 255, %v2245_v8  ;;  %v2566_v21 = vand.u32 255, %v2246_v10  ;;  %v2567_v22 = vand.u32 255, %v2247_v12  ;;  %v2251_v24 = vshra.s32 %v5957_v23, 8  ;;  %v5963_v56 = vld [vmem:[%s6669_s4 + $0x5a0] sm:$0xff] }
 0x24f   : > { %5236 = vst [vmem:[%s6693_s25 + $0xf38] sm:$0xff] %v3204_v13  ;;  %v2568_v25 = vand.u32 255, %v2248_v15  ;;  %v2569_v26 = vand.u32 255, %v2249_v17  ;;  %v2570_v27 = vand.u32 255, %v2250_v19  ;;  %v2252_v29 = vshra.s32 %v5958_v28, 8  ;;  %v5964_v58 = vld [vmem:[%s6669_s4 + $0x5a8] sm:$0xff] }
 0x250   : > { %v2885_v30 = vcvt.s32.f32 %v2565_v20  ;;  %v2886_v31 = vcvt.s32.f32 %v2566_v21  ;;  %v2887_v32 = vcvt.s32.f32 %v2567_v22  ;;  %v2571_v33 = vand.u32 255, %v2251_v24  ;;  %v5965_v63 = vld [vmem:[%s6669_s4 + $0x5b0] sm:$0xff]  ;;  %v5966_v4 = vld [vmem:[%s6669_s4 + $0x5b8] sm:$0xff]  ;;  %v5967_v23 = vld [vmem:[%s6669_s4 + $0x5c0] sm:$0xff] }
 0x251   : > { %v2888_v34 = vcvt.s32.f32 %v2568_v25  ;;  %v2889_v35 = vcvt.s32.f32 %v2569_v26  ;;  %v2890_v36 = vcvt.s32.f32 %v2570_v27  ;;  %v2572_v37 = vand.u32 255, %v2252_v29  ;;  %v5968_v25 = vld [vmem:[%s6669_s4 + $0x5c8] sm:$0xff]  ;;  %v5969_v27 = vld [vmem:[%s6669_s4 + $0x5d0] sm:$0xff] }
 0x252   : > { %v3205_v38 = vmul.f32 0.003921569, %v2885_v30  ;;  %v3206_v39 = vmul.f32 0.003921569, %v2886_v31  ;;  %v3207_v40 = vmul.f32 0.003921569, %v2887_v32  ;;  %v2891_v41 = vcvt.s32.f32 %v2571_v33 }
 0x253   : > { %v3208_v42 = vmul.f32 0.003921569, %v2888_v34  ;;  %v3209_v43 = vmul.f32 0.003921569, %v2889_v35  ;;  %v3210_v44 = vmul.f32 0.003921569, %v2890_v36  ;;  %v2892_v45 = vcvt.s32.f32 %v2572_v37 }
 0x254   : > { %5237 = vst [vmem:[%s6693_s25 + $0xf40] sm:$0xff] %v3205_v38  ;;  %5238 = vst [vmem:[%s6693_s25 + $0xf48] sm:$0xff] %v3206_v39  ;;  %v3211_v46 = vmul.f32 0.003921569, %v2891_v41  ;;  %v2253_v48 = vshra.s32 %v5959_v47, 8  ;;  %v2254_v50 = vshra.s32 %v5960_v49, 8 }
 0x255   : > { %5239 = vst [vmem:[%s6693_s25 + $0xf50] sm:$0xff] %v3207_v40  ;;  %v2255_v52 = vshra.s32 %v5961_v51, 8  ;;  %5240 = vst [vmem:[%s6693_s25 + $0xf58] sm:$0xff] %v3208_v42  ;;  %v3212_v53 = vmul.f32 0.003921569, %v2892_v45  ;;  %v2256_v55 = vshra.s32 %v5962_v54, 8 }
 0x256   : > { %5241 = vst [vmem:[%s6693_s25 + $0xf60] sm:$0xff] %v3209_v43  ;;  %5242 = vst [vmem:[%s6693_s25 + $0xf68] sm:$0xff] %v3210_v44  ;;  %v2257_v57 = vshra.s32 %v5963_v56, 8  ;;  %v2258_v59 = vshra.s32 %v5964_v58, 8  ;;  %v2573_v60 = vand.u32 255, %v2253_v48  ;;  %v2574_v61 = vand.u32 255, %v2254_v50 }
 0x257   : > { %5243 = vst [vmem:[%s6693_s25 + $0xf70] sm:$0xff] %v3211_v46  ;;  %v2575_v62 = vand.u32 255, %v2255_v52  ;;  %v2259_v0 = vshra.s32 %v5965_v63, 8  ;;  %5244 = vst [vmem:[%s6693_s25 + $0xf78] sm:$0xff] %v3212_v53  ;;  %v2576_v1 = vand.u32 255, %v2256_v55  ;;  %v2260_v5 = vshra.s32 %v5966_v4, 8 }
 0x258   : > { %v2577_v2 = vand.u32 255, %v2257_v57  ;;  %v2578_v3 = vand.u32 255, %v2258_v59  ;;  %v2893_v6 = vcvt.s32.f32 %v2573_v60  ;;  %v2894_v7 = vcvt.s32.f32 %v2574_v61  ;;  %v5970_v30 = vld [vmem:[%s6669_s4 + $0x5d8] sm:$0xff]  ;;  %v5971_v32 = vld [vmem:[%s6669_s4 + $0x5e0] sm:$0xff]  ;;  %v5972_v34 = vld [vmem:[%s6669_s4 + $0x5e8] sm:$0xff] }
 0x259   : > { %v2895_v8 = vcvt.s32.f32 %v2575_v62  ;;  %v2579_v9 = vand.u32 255, %v2259_v0  ;;  %v2896_v10 = vcvt.s32.f32 %v2576_v1  ;;  %v2580_v13 = vand.u32 255, %v2260_v5  ;;  %v5973_v39 = vld [vmem:[%s6669_s4 + $0x5f0] sm:$0xff]  ;;  %v5974_v44 = vld [vmem:[%s6669_s4 + $0x5f8] sm:$0xff]  ;;  %v5975_v63 = vld [vmem:[%s6669_s4 + $0x600] sm:$0xff] }
 0x25a   : > { %v2897_v11 = vcvt.s32.f32 %v2577_v2  ;;  %v2898_v12 = vcvt.s32.f32 %v2578_v3  ;;  %v3213_v14 = vmul.f32 0.003921569, %v2893_v6  ;;  %v3214_v15 = vmul.f32 0.003921569, %v2894_v7  ;;  %v5976_v1 = vld [vmem:[%s6669_s4 + $0x608] sm:$0xff]  ;;  %v5977_v3 = vld [vmem:[%s6669_s4 + $0x610] sm:$0xff] }
 0x25b   : > { %v3215_v16 = vmul.f32 0.003921569, %v2895_v8  ;;  %v2899_v17 = vcvt.s32.f32 %v2579_v9  ;;  %v3216_v18 = vmul.f32 0.003921569, %v2896_v10  ;;  %v2900_v21 = vcvt.s32.f32 %v2580_v13  ;;  %v5978_v6 = vld [vmem:[%s6669_s4 + $0x618] sm:$0xff]  ;;  %v5979_v8 = vld [vmem:[%s6669_s4 + $0x620] sm:$0xff] }
 0x25c   : > { %v3217_v19 = vmul.f32 0.003921569, %v2897_v11  ;;  %v3218_v20 = vmul.f32 0.003921569, %v2898_v12  ;;  %5245 = vst [vmem:[%s6693_s25 + $0xf80] sm:$0xff] %v3213_v14  ;;  %5246 = vst [vmem:[%s6693_s25 + $0xf88] sm:$0xff] %v3214_v15 }
 0x25d   : > { %5247 = vst [vmem:[%s6693_s25 + $0xf90] sm:$0xff] %v3215_v16  ;;  %v3219_v22 = vmul.f32 0.003921569, %v2899_v17  ;;  %v2261_v24 = vshra.s32 %v5967_v23, 8  ;;  %v2262_v26 = vshra.s32 %v5968_v25, 8  ;;  %v2263_v28 = vshra.s32 %v5969_v27, 8 }
 0x25e   : > { %5248 = vst [vmem:[%s6693_s25 + $0xf98] sm:$0xff] %v3216_v18  ;;  %5249 = vst [vmem:[%s6693_s25 + $0xfa0] sm:$0xff] %v3217_v19  ;;  %v3220_v29 = vmul.f32 0.003921569, %v2900_v21  ;;  %v2264_v31 = vshra.s32 %v5970_v30, 8  ;;  %v2265_v33 = vshra.s32 %v5971_v32, 8 }
 0x25f   : > { %5250 = vst [vmem:[%s6693_s25 + $0xfa8] sm:$0xff] %v3218_v20  ;;  %v2266_v35 = vshra.s32 %v5972_v34, 8  ;;  %5251 = vst [vmem:[%s6693_s25 + $0xfb0] sm:$0xff] %v3219_v22  ;;  %v2581_v36 = vand.u32 255, %v2261_v24  ;;  %v2582_v37 = vand.u32 255, %v2262_v26  ;;  %v2583_v38 = vand.u32 255, %v2263_v28 }
 0x260   : > { %v2267_v40 = vshra.s32 %v5973_v39, 8  ;;  %5252 = vst [vmem:[%s6693_s25 + $0xfb8] sm:$0xff] %v3220_v29  ;;  %v2584_v41 = vand.u32 255, %v2264_v31  ;;  %v2585_v42 = vand.u32 255, %v2265_v33  ;;  %v2268_v45 = vshra.s32 %v5974_v44, 8  ;;  %v5980_v10 = vld [vmem:[%s6669_s4 + $0x628] sm:$0xff] }
 0x261   : > { %v2586_v43 = vand.u32 255, %v2266_v35  ;;  %v2901_v46 = vcvt.s32.f32 %v2581_v36  ;;  %v2902_v47 = vcvt.s32.f32 %v2582_v37  ;;  %v2903_v48 = vcvt.s32.f32 %v2583_v38  ;;  %v5981_v15 = vld [vmem:[%s6669_s4 + $0x630] sm:$0xff]  ;;  %v5982_v20 = vld [vmem:[%s6669_s4 + $0x638] sm:$0xff]  ;;  %v5983_v39 = vld [vmem:[%s6669_s4 + $0x640] sm:$0xff] }
 0x262   : > { %v2587_v49 = vand.u32 255, %v2267_v40  ;;  %v2904_v50 = vcvt.s32.f32 %v2584_v41  ;;  %v2905_v51 = vcvt.s32.f32 %v2585_v42  ;;  %v2588_v53 = vand.u32 255, %v2268_v45  ;;  %v5984_v41 = vld [vmem:[%s6669_s4 + $0x648] sm:$0xff] }
 0x263   : > { %v2906_v52 = vcvt.s32.f32 %v2586_v43  ;;  %v3221_v54 = vmul.f32 0.003921569, %v2901_v46  ;;  %v3222_v55 = vmul.f32 0.003921569, %v2902_v47  ;;  %v3223_v56 = vmul.f32 0.003921569, %v2903_v48 }
 0x264   : > { %v2907_v57 = vcvt.s32.f32 %v2587_v49  ;;  %v3224_v58 = vmul.f32 0.003921569, %v2904_v50  ;;  %v3225_v59 = vmul.f32 0.003921569, %v2905_v51  ;;  %v2908_v61 = vcvt.s32.f32 %v2588_v53  ;;  %v5985_v43 = vld [vmem:[%s6669_s4 + $0x650] sm:$0xff]  ;;  %v5986_v46 = vld [vmem:[%s6669_s4 + $0x658] sm:$0xff] }
 0x265   : > { %v3226_v60 = vmul.f32 0.003921569, %v2906_v52  ;;  %5253 = vst [vmem:[%s6693_s25 + $0xfc0] sm:$0xff] %v3221_v54  ;;  %5254 = vst [vmem:[%s6693_s25 + $0xfc8] sm:$0xff] %v3222_v55  ;;  %v2269_v0 = vshra.s32 %v5975_v63, 8  ;;  %v2270_v2 = vshra.s32 %v5976_v1, 8 }
 0x266   : > { %5255 = vst [vmem:[%s6693_s25 + $0xfd0] sm:$0xff] %v3223_v56  ;;  %v3227_v62 = vmul.f32 0.003921569, %v2907_v57  ;;  %v2271_v4 = vshra.s32 %v5977_v3, 8  ;;  %5256 = vst [vmem:[%s6693_s25 + $0xfd8] sm:$0xff] %v3224_v58  ;;  %v2272_v7 = vshra.s32 %v5978_v6, 8 }
 0x267   : > { %5257 = vst [vmem:[%s6693_s25 + $0xfe0] sm:$0xff] %v3225_v59  ;;  %5258 = vst [vmem:[%s6693_s25 + $0xfe8] sm:$0xff] %v3226_v60  ;;  %v3228_v5 = vmul.f32 0.003921569, %v2908_v61  ;;  %v2273_v9 = vshra.s32 %v5979_v8, 8  ;;  %v2274_v11 = vshra.s32 %v5980_v10, 8 }
 0x268   : > { %5259 = vst [vmem:[%s6693_s25 + $0xff0] sm:$0xff] %v3227_v62  ;;  %v2589_v12 = vand.u32 255, %v2269_v0  ;;  %v2590_v13 = vand.u32 255, %v2270_v2  ;;  %v2591_v14 = vand.u32 255, %v2271_v4  ;;  %v2275_v16 = vshra.s32 %v5981_v15, 8  ;;  %v5987_v48 = vld [vmem:[%s6669_s4 + $0x660] sm:$0xff] }
 0x269   : > { %5260 = vst [vmem:[%s6693_s25 + $0xff8] sm:$0xff] %v3228_v5  ;;  %v2592_v17 = vand.u32 255, %v2272_v7  ;;  %v2593_v18 = vand.u32 255, %v2273_v9  ;;  %v2594_v19 = vand.u32 255, %v2274_v11  ;;  %v2276_v21 = vshra.s32 %v5982_v20, 8  ;;  %v5988_v50 = vld [vmem:[%s6669_s4 + $0x668] sm:$0xff] }
 0x26a   : > { %v2909_v22 = vcvt.s32.f32 %v2589_v12  ;;  %v2910_v23 = vcvt.s32.f32 %v2590_v13  ;;  %v2911_v24 = vcvt.s32.f32 %v2591_v14  ;;  %v2595_v25 = vand.u32 255, %v2275_v16  ;;  %v5989_v55 = vld [vmem:[%s6669_s4 + $0x670] sm:$0xff]  ;;  %v5990_v60 = vld [vmem:[%s6669_s4 + $0x678] sm:$0xff]  ;;  %v5991_v15 = vld [vmem:[%s6669_s4 + $0x680] sm:$0xff] }
 0x26b   : > { %v2912_v26 = vcvt.s32.f32 %v2592_v17  ;;  %v2913_v27 = vcvt.s32.f32 %v2593_v18  ;;  %v2914_v28 = vcvt.s32.f32 %v2594_v19  ;;  %v2596_v29 = vand.u32 255, %v2276_v21  ;;  %v5992_v17 = vld [vmem:[%s6669_s4 + $0x688] sm:$0xff]  ;;  %v5993_v19 = vld [vmem:[%s6669_s4 + $0x690] sm:$0xff] }
 0x26c   : > { %v3229_v30 = vmul.f32 0.003921569, %v2909_v22  ;;  %v3230_v31 = vmul.f32 0.003921569, %v2910_v23  ;;  %v3231_v32 = vmul.f32 0.003921569, %v2911_v24  ;;  %v2915_v33 = vcvt.s32.f32 %v2595_v25 }
 0x26d   : > { %v3232_v34 = vmul.f32 0.003921569, %v2912_v26  ;;  %v3233_v35 = vmul.f32 0.003921569, %v2913_v27  ;;  %v3234_v36 = vmul.f32 0.003921569, %v2914_v28  ;;  %v2916_v37 = vcvt.s32.f32 %v2596_v29 }
 0x26e   : > { %5261 = vst [vmem:[%s6693_s25 + $0x1000] sm:$0xff] %v3229_v30  ;;  %5262 = vst [vmem:[%s6693_s25 + $0x1008] sm:$0xff] %v3230_v31  ;;  %v3235_v38 = vmul.f32 0.003921569, %v2915_v33  ;;  %v2277_v40 = vshra.s32 %v5983_v39, 8  ;;  %v2278_v42 = vshra.s32 %v5984_v41, 8 }
 0x26f   : > { %5263 = vst [vmem:[%s6693_s25 + $0x1010] sm:$0xff] %v3231_v32  ;;  %v2279_v44 = vshra.s32 %v5985_v43, 8  ;;  %5264 = vst [vmem:[%s6693_s25 + $0x1018] sm:$0xff] %v3232_v34  ;;  %v3236_v45 = vmul.f32 0.003921569, %v2916_v37  ;;  %v2280_v47 = vshra.s32 %v5986_v46, 8 }
 0x270   : > { %5265 = vst [vmem:[%s6693_s25 + $0x1020] sm:$0xff] %v3233_v35  ;;  %5266 = vst [vmem:[%s6693_s25 + $0x1028] sm:$0xff] %v3234_v36  ;;  %v2281_v49 = vshra.s32 %v5987_v48, 8  ;;  %v2282_v51 = vshra.s32 %v5988_v50, 8  ;;  %v2597_v52 = vand.u32 255, %v2277_v40  ;;  %v2598_v53 = vand.u32 255, %v2278_v42 }
 0x271   : > { %5267 = vst [vmem:[%s6693_s25 + $0x1030] sm:$0xff] %v3235_v38  ;;  %v2599_v54 = vand.u32 255, %v2279_v44  ;;  %v2283_v56 = vshra.s32 %v5989_v55, 8  ;;  %5268 = vst [vmem:[%s6693_s25 + $0x1038] sm:$0xff] %v3236_v45  ;;  %v2600_v57 = vand.u32 255, %v2280_v47  ;;  %v2284_v61 = vshra.s32 %v5990_v60, 8 }
 0x272   : > { %v2601_v58 = vand.u32 255, %v2281_v49  ;;  %v2602_v59 = vand.u32 255, %v2282_v51  ;;  %v2917_v62 = vcvt.s32.f32 %v2597_v52  ;;  %v2918_v63 = vcvt.s32.f32 %v2598_v53  ;;  %v5994_v22 = vld [vmem:[%s6669_s4 + $0x698] sm:$0xff]  ;;  %v5995_v24 = vld [vmem:[%s6669_s4 + $0x6a0] sm:$0xff]  ;;  %v5996_v26 = vld [vmem:[%s6669_s4 + $0x6a8] sm:$0xff] }
 0x273   : > { %v2919_v0 = vcvt.s32.f32 %v2599_v54  ;;  %v2603_v1 = vand.u32 255, %v2283_v56  ;;  %v2920_v2 = vcvt.s32.f32 %v2600_v57  ;;  %v2604_v5 = vand.u32 255, %v2284_v61  ;;  %v5997_v31 = vld [vmem:[%s6669_s4 + $0x6b0] sm:$0xff]  ;;  %v5998_v36 = vld [vmem:[%s6669_s4 + $0x6b8] sm:$0xff]  ;;  %v5999_v55 = vld [vmem:[%s6669_s4 + $0x6c0] sm:$0xff] }
 0x274   : > { %v2921_v3 = vcvt.s32.f32 %v2601_v58  ;;  %v2922_v4 = vcvt.s32.f32 %v2602_v59  ;;  %v3237_v6 = vmul.f32 0.003921569, %v2917_v62  ;;  %v3238_v7 = vmul.f32 0.003921569, %v2918_v63  ;;  %v6000_v57 = vld [vmem:[%s6669_s4 + $0x6c8] sm:$0xff]  ;;  %v6001_v59 = vld [vmem:[%s6669_s4 + $0x6d0] sm:$0xff] }
 0x275   : > { %v3239_v8 = vmul.f32 0.003921569, %v2919_v0  ;;  %v2923_v9 = vcvt.s32.f32 %v2603_v1  ;;  %v3240_v10 = vmul.f32 0.003921569, %v2920_v2  ;;  %v2924_v13 = vcvt.s32.f32 %v2604_v5  ;;  %v6002_v62 = vld [vmem:[%s6669_s4 + $0x6d8] sm:$0xff]  ;;  %v6003_v0 = vld [vmem:[%s6669_s4 + $0x6e0] sm:$0xff] }
 0x276   : > { %v3241_v11 = vmul.f32 0.003921569, %v2921_v3  ;;  %v3242_v12 = vmul.f32 0.003921569, %v2922_v4  ;;  %5269 = vst [vmem:[%s6693_s25 + $0x1040] sm:$0xff] %v3237_v6  ;;  %5270 = vst [vmem:[%s6693_s25 + $0x1048] sm:$0xff] %v3238_v7 }
 0x277   : > { %5271 = vst [vmem:[%s6693_s25 + $0x1050] sm:$0xff] %v3239_v8  ;;  %v3243_v14 = vmul.f32 0.003921569, %v2923_v9  ;;  %v2285_v16 = vshra.s32 %v5991_v15, 8  ;;  %v2286_v18 = vshra.s32 %v5992_v17, 8  ;;  %v2287_v20 = vshra.s32 %v5993_v19, 8 }
 0x278   : > { %5272 = vst [vmem:[%s6693_s25 + $0x1058] sm:$0xff] %v3240_v10  ;;  %5273 = vst [vmem:[%s6693_s25 + $0x1060] sm:$0xff] %v3241_v11  ;;  %v3244_v21 = vmul.f32 0.003921569, %v2924_v13  ;;  %v2288_v23 = vshra.s32 %v5994_v22, 8  ;;  %v2289_v25 = vshra.s32 %v5995_v24, 8 }
 0x279   : > { %5274 = vst [vmem:[%s6693_s25 + $0x1068] sm:$0xff] %v3242_v12  ;;  %v2290_v27 = vshra.s32 %v5996_v26, 8  ;;  %5275 = vst [vmem:[%s6693_s25 + $0x1070] sm:$0xff] %v3243_v14  ;;  %v2605_v28 = vand.u32 255, %v2285_v16  ;;  %v2606_v29 = vand.u32 255, %v2286_v18  ;;  %v2607_v30 = vand.u32 255, %v2287_v20 }
 0x27a   : > { %v2291_v32 = vshra.s32 %v5997_v31, 8  ;;  %5276 = vst [vmem:[%s6693_s25 + $0x1078] sm:$0xff] %v3244_v21  ;;  %v2608_v33 = vand.u32 255, %v2288_v23  ;;  %v2609_v34 = vand.u32 255, %v2289_v25  ;;  %v2292_v37 = vshra.s32 %v5998_v36, 8  ;;  %v6004_v2 = vld [vmem:[%s6669_s4 + $0x6e8] sm:$0xff] }
 0x27b   : > { %v2610_v35 = vand.u32 255, %v2290_v27  ;;  %v2925_v38 = vcvt.s32.f32 %v2605_v28  ;;  %v2926_v39 = vcvt.s32.f32 %v2606_v29  ;;  %v2927_v40 = vcvt.s32.f32 %v2607_v30  ;;  %v6005_v7 = vld [vmem:[%s6669_s4 + $0x6f0] sm:$0xff]  ;;  %v6006_v12 = vld [vmem:[%s6669_s4 + $0x6f8] sm:$0xff]  ;;  %v6007_v31 = vld [vmem:[%s6669_s4 + $0x700] sm:$0xff] }
 0x27c   : > { %v2611_v41 = vand.u32 255, %v2291_v32  ;;  %v2928_v42 = vcvt.s32.f32 %v2608_v33  ;;  %v2929_v43 = vcvt.s32.f32 %v2609_v34  ;;  %v2612_v45 = vand.u32 255, %v2292_v37  ;;  %v6008_v33 = vld [vmem:[%s6669_s4 + $0x708] sm:$0xff] }
 0x27d   : > { %v2930_v44 = vcvt.s32.f32 %v2610_v35  ;;  %v3245_v46 = vmul.f32 0.003921569, %v2925_v38  ;;  %v3246_v47 = vmul.f32 0.003921569, %v2926_v39  ;;  %v3247_v48 = vmul.f32 0.003921569, %v2927_v40 }
 0x27e   : > { %v2931_v49 = vcvt.s32.f32 %v2611_v41  ;;  %v3248_v50 = vmul.f32 0.003921569, %v2928_v42  ;;  %v3249_v51 = vmul.f32 0.003921569, %v2929_v43  ;;  %v2932_v53 = vcvt.s32.f32 %v2612_v45  ;;  %v6009_v35 = vld [vmem:[%s6669_s4 + $0x710] sm:$0xff]  ;;  %v6010_v38 = vld [vmem:[%s6669_s4 + $0x718] sm:$0xff] }
 0x27f   : > { %v3250_v52 = vmul.f32 0.003921569, %v2930_v44  ;;  %5277 = vst [vmem:[%s6693_s25 + $0x1080] sm:$0xff] %v3245_v46  ;;  %5278 = vst [vmem:[%s6693_s25 + $0x1088] sm:$0xff] %v3246_v47  ;;  %v2293_v56 = vshra.s32 %v5999_v55, 8  ;;  %v2294_v58 = vshra.s32 %v6000_v57, 8 }
 0x280   : > { %5279 = vst [vmem:[%s6693_s25 + $0x1090] sm:$0xff] %v3247_v48  ;;  %v3251_v54 = vmul.f32 0.003921569, %v2931_v49  ;;  %v2295_v60 = vshra.s32 %v6001_v59, 8  ;;  %5280 = vst [vmem:[%s6693_s25 + $0x1098] sm:$0xff] %v3248_v50  ;;  %v2296_v63 = vshra.s32 %v6002_v62, 8 }
 0x281   : > { %5281 = vst [vmem:[%s6693_s25 + $0x10a0] sm:$0xff] %v3249_v51  ;;  %5282 = vst [vmem:[%s6693_s25 + $0x10a8] sm:$0xff] %v3250_v52  ;;  %v3252_v61 = vmul.f32 0.003921569, %v2932_v53  ;;  %v2297_v1 = vshra.s32 %v6003_v0, 8  ;;  %v2298_v3 = vshra.s32 %v6004_v2, 8 }
 0x282   : > { %5283 = vst [vmem:[%s6693_s25 + $0x10b0] sm:$0xff] %v3251_v54  ;;  %v2613_v4 = vand.u32 255, %v2293_v56  ;;  %v2614_v5 = vand.u32 255, %v2294_v58  ;;  %v2615_v6 = vand.u32 255, %v2295_v60  ;;  %v2299_v8 = vshra.s32 %v6005_v7, 8  ;;  %v6011_v40 = vld [vmem:[%s6669_s4 + $0x720] sm:$0xff] }
 0x283   : > { %5284 = vst [vmem:[%s6693_s25 + $0x10b8] sm:$0xff] %v3252_v61  ;;  %v2616_v9 = vand.u32 255, %v2296_v63  ;;  %v2617_v10 = vand.u32 255, %v2297_v1  ;;  %v2618_v11 = vand.u32 255, %v2298_v3  ;;  %v2300_v13 = vshra.s32 %v6006_v12, 8  ;;  %v6012_v42 = vld [vmem:[%s6669_s4 + $0x728] sm:$0xff] }
 0x284   : > { %v2933_v14 = vcvt.s32.f32 %v2613_v4  ;;  %v2934_v15 = vcvt.s32.f32 %v2614_v5  ;;  %v2935_v16 = vcvt.s32.f32 %v2615_v6  ;;  %v2619_v17 = vand.u32 255, %v2299_v8  ;;  %v6013_v47 = vld [vmem:[%s6669_s4 + $0x730] sm:$0xff]  ;;  %v6014_v52 = vld [vmem:[%s6669_s4 + $0x738] sm:$0xff]  ;;  %v6015_v7 = vld [vmem:[%s6669_s4 + $0x740] sm:$0xff] }
 0x285   : > { %v2936_v18 = vcvt.s32.f32 %v2616_v9  ;;  %v2937_v19 = vcvt.s32.f32 %v2617_v10  ;;  %v2938_v20 = vcvt.s32.f32 %v2618_v11  ;;  %v2620_v21 = vand.u32 255, %v2300_v13  ;;  %v6016_v9 = vld [vmem:[%s6669_s4 + $0x748] sm:$0xff]  ;;  %v6017_v11 = vld [vmem:[%s6669_s4 + $0x750] sm:$0xff] }
 0x286   : > { %v3253_v22 = vmul.f32 0.003921569, %v2933_v14  ;;  %v3254_v23 = vmul.f32 0.003921569, %v2934_v15  ;;  %v3255_v24 = vmul.f32 0.003921569, %v2935_v16  ;;  %v2939_v25 = vcvt.s32.f32 %v2619_v17 }
 0x287   : > { %v3256_v26 = vmul.f32 0.003921569, %v2936_v18  ;;  %v3257_v27 = vmul.f32 0.003921569, %v2937_v19  ;;  %v3258_v28 = vmul.f32 0.003921569, %v2938_v20  ;;  %v2940_v29 = vcvt.s32.f32 %v2620_v21 }
 0x288   : > { %5285 = vst [vmem:[%s6693_s25 + $0x10c0] sm:$0xff] %v3253_v22  ;;  %5286 = vst [vmem:[%s6693_s25 + $0x10c8] sm:$0xff] %v3254_v23  ;;  %v3259_v30 = vmul.f32 0.003921569, %v2939_v25  ;;  %v2301_v32 = vshra.s32 %v6007_v31, 8  ;;  %v2302_v34 = vshra.s32 %v6008_v33, 8 }
 0x289   : > { %5287 = vst [vmem:[%s6693_s25 + $0x10d0] sm:$0xff] %v3255_v24  ;;  %v2303_v36 = vshra.s32 %v6009_v35, 8  ;;  %5288 = vst [vmem:[%s6693_s25 + $0x10d8] sm:$0xff] %v3256_v26  ;;  %v3260_v37 = vmul.f32 0.003921569, %v2940_v29  ;;  %v2304_v39 = vshra.s32 %v6010_v38, 8 }
 0x28a   : > { %5289 = vst [vmem:[%s6693_s25 + $0x10e0] sm:$0xff] %v3257_v27  ;;  %5290 = vst [vmem:[%s6693_s25 + $0x10e8] sm:$0xff] %v3258_v28  ;;  %v2305_v41 = vshra.s32 %v6011_v40, 8  ;;  %v2306_v43 = vshra.s32 %v6012_v42, 8  ;;  %v2621_v44 = vand.u32 255, %v2301_v32  ;;  %v2622_v45 = vand.u32 255, %v2302_v34 }
 0x28b   : > { %5291 = vst [vmem:[%s6693_s25 + $0x10f0] sm:$0xff] %v3259_v30  ;;  %v2623_v46 = vand.u32 255, %v2303_v36  ;;  %v2307_v48 = vshra.s32 %v6013_v47, 8  ;;  %5292 = vst [vmem:[%s6693_s25 + $0x10f8] sm:$0xff] %v3260_v37  ;;  %v2624_v49 = vand.u32 255, %v2304_v39  ;;  %v2308_v53 = vshra.s32 %v6014_v52, 8 }
 0x28c   : > { %v2625_v50 = vand.u32 255, %v2305_v41  ;;  %v2626_v51 = vand.u32 255, %v2306_v43  ;;  %v2941_v54 = vcvt.s32.f32 %v2621_v44  ;;  %v2942_v55 = vcvt.s32.f32 %v2622_v45  ;;  %v6018_v14 = vld [vmem:[%s6669_s4 + $0x758] sm:$0xff]  ;;  %v6019_v16 = vld [vmem:[%s6669_s4 + $0x760] sm:$0xff]  ;;  %v6020_v18 = vld [vmem:[%s6669_s4 + $0x768] sm:$0xff] }
 0x28d   : > { %v2943_v56 = vcvt.s32.f32 %v2623_v46  ;;  %v2627_v57 = vand.u32 255, %v2307_v48  ;;  %v2944_v58 = vcvt.s32.f32 %v2624_v49  ;;  %v2628_v61 = vand.u32 255, %v2308_v53  ;;  %v6021_v23 = vld [vmem:[%s6669_s4 + $0x770] sm:$0xff]  ;;  %v6022_v28 = vld [vmem:[%s6669_s4 + $0x778] sm:$0xff]  ;;  %v6023_v47 = vld [vmem:[%s6669_s4 + $0x780] sm:$0xff] }
 0x28e   : > { %v2945_v59 = vcvt.s32.f32 %v2625_v50  ;;  %v2946_v60 = vcvt.s32.f32 %v2626_v51  ;;  %v3261_v62 = vmul.f32 0.003921569, %v2941_v54  ;;  %v3262_v63 = vmul.f32 0.003921569, %v2942_v55  ;;  %v6024_v49 = vld [vmem:[%s6669_s4 + $0x788] sm:$0xff]  ;;  %v6025_v51 = vld [vmem:[%s6669_s4 + $0x790] sm:$0xff] }
 0x28f   : > { %v3263_v0 = vmul.f32 0.003921569, %v2943_v56  ;;  %v2947_v1 = vcvt.s32.f32 %v2627_v57  ;;  %v3264_v2 = vmul.f32 0.003921569, %v2944_v58  ;;  %v2948_v5 = vcvt.s32.f32 %v2628_v61  ;;  %v6026_v54 = vld [vmem:[%s6669_s4 + $0x798] sm:$0xff]  ;;  %v6027_v56 = vld [vmem:[%s6669_s4 + $0x7a0] sm:$0xff] }
 0x290   : > { %v3265_v3 = vmul.f32 0.003921569, %v2945_v59  ;;  %v3266_v4 = vmul.f32 0.003921569, %v2946_v60  ;;  %5293 = vst [vmem:[%s6693_s25 + $0x1100] sm:$0xff] %v3261_v62  ;;  %5294 = vst [vmem:[%s6693_s25 + $0x1108] sm:$0xff] %v3262_v63 }
 0x291   : > { %5295 = vst [vmem:[%s6693_s25 + $0x1110] sm:$0xff] %v3263_v0  ;;  %v3267_v6 = vmul.f32 0.003921569, %v2947_v1  ;;  %v2309_v8 = vshra.s32 %v6015_v7, 8  ;;  %v2310_v10 = vshra.s32 %v6016_v9, 8  ;;  %v2311_v12 = vshra.s32 %v6017_v11, 8 }
 0x292   : > { %5296 = vst [vmem:[%s6693_s25 + $0x1118] sm:$0xff] %v3264_v2  ;;  %5297 = vst [vmem:[%s6693_s25 + $0x1120] sm:$0xff] %v3265_v3  ;;  %v3268_v13 = vmul.f32 0.003921569, %v2948_v5  ;;  %v2312_v15 = vshra.s32 %v6018_v14, 8  ;;  %v2313_v17 = vshra.s32 %v6019_v16, 8 }
 0x293   : > { %5298 = vst [vmem:[%s6693_s25 + $0x1128] sm:$0xff] %v3266_v4  ;;  %v2314_v19 = vshra.s32 %v6020_v18, 8  ;;  %5299 = vst [vmem:[%s6693_s25 + $0x1130] sm:$0xff] %v3267_v6  ;;  %v2629_v20 = vand.u32 255, %v2309_v8  ;;  %v2630_v21 = vand.u32 255, %v2310_v10  ;;  %v2631_v22 = vand.u32 255, %v2311_v12 }
 0x294   : > { %v2315_v24 = vshra.s32 %v6021_v23, 8  ;;  %5300 = vst [vmem:[%s6693_s25 + $0x1138] sm:$0xff] %v3268_v13  ;;  %v2632_v25 = vand.u32 255, %v2312_v15  ;;  %v2633_v26 = vand.u32 255, %v2313_v17  ;;  %v2316_v29 = vshra.s32 %v6022_v28, 8  ;;  %v6028_v58 = vld [vmem:[%s6669_s4 + $0x7a8] sm:$0xff] }
 0x295   : > { %v2634_v27 = vand.u32 255, %v2314_v19  ;;  %v2949_v30 = vcvt.s32.f32 %v2629_v20  ;;  %v2950_v31 = vcvt.s32.f32 %v2630_v21  ;;  %v2951_v32 = vcvt.s32.f32 %v2631_v22  ;;  %v6029_v63 = vld [vmem:[%s6669_s4 + $0x7b0] sm:$0xff]  ;;  %v6030_v4 = vld [vmem:[%s6669_s4 + $0x7b8] sm:$0xff]  ;;  %v6031_v23 = vld [vmem:[%s6669_s4 + $0x7c0] sm:$0xff] }
 0x296   : > { %v2635_v33 = vand.u32 255, %v2315_v24  ;;  %v2952_v34 = vcvt.s32.f32 %v2632_v25  ;;  %v2953_v35 = vcvt.s32.f32 %v2633_v26  ;;  %v2636_v37 = vand.u32 255, %v2316_v29  ;;  %v6032_v25 = vld [vmem:[%s6669_s4 + $0x7c8] sm:$0xff] }
 0x297   : > { %v2954_v36 = vcvt.s32.f32 %v2634_v27  ;;  %v3269_v38 = vmul.f32 0.003921569, %v2949_v30  ;;  %v3270_v39 = vmul.f32 0.003921569, %v2950_v31  ;;  %v3271_v40 = vmul.f32 0.003921569, %v2951_v32 }
 0x298   : > { %v2955_v41 = vcvt.s32.f32 %v2635_v33  ;;  %v3272_v42 = vmul.f32 0.003921569, %v2952_v34  ;;  %v3273_v43 = vmul.f32 0.003921569, %v2953_v35  ;;  %v2956_v45 = vcvt.s32.f32 %v2636_v37  ;;  %v6033_v27 = vld [vmem:[%s6669_s4 + $0x7d0] sm:$0xff]  ;;  %v6034_v30 = vld [vmem:[%s6669_s4 + $0x7d8] sm:$0xff] }
 0x299   : > { %v3274_v44 = vmul.f32 0.003921569, %v2954_v36  ;;  %5301 = vst [vmem:[%s6693_s25 + $0x1140] sm:$0xff] %v3269_v38  ;;  %5302 = vst [vmem:[%s6693_s25 + $0x1148] sm:$0xff] %v3270_v39  ;;  %v2317_v48 = vshra.s32 %v6023_v47, 8  ;;  %v2318_v50 = vshra.s32 %v6024_v49, 8 }
 0x29a   : > { %5303 = vst [vmem:[%s6693_s25 + $0x1150] sm:$0xff] %v3271_v40  ;;  %v3275_v46 = vmul.f32 0.003921569, %v2955_v41  ;;  %v2319_v52 = vshra.s32 %v6025_v51, 8  ;;  %5304 = vst [vmem:[%s6693_s25 + $0x1158] sm:$0xff] %v3272_v42  ;;  %v2320_v55 = vshra.s32 %v6026_v54, 8 }
 0x29b   : > { %5305 = vst [vmem:[%s6693_s25 + $0x1160] sm:$0xff] %v3273_v43  ;;  %5306 = vst [vmem:[%s6693_s25 + $0x1168] sm:$0xff] %v3274_v44  ;;  %v3276_v53 = vmul.f32 0.003921569, %v2956_v45  ;;  %v2321_v57 = vshra.s32 %v6027_v56, 8  ;;  %v2322_v59 = vshra.s32 %v6028_v58, 8 }
 0x29c   : > { %5307 = vst [vmem:[%s6693_s25 + $0x1170] sm:$0xff] %v3275_v46  ;;  %v2637_v60 = vand.u32 255, %v2317_v48  ;;  %v2638_v61 = vand.u32 255, %v2318_v50  ;;  %v2639_v62 = vand.u32 255, %v2319_v52  ;;  %v2323_v0 = vshra.s32 %v6029_v63, 8  ;;  %v6035_v32 = vld [vmem:[%s6669_s4 + $0x7e0] sm:$0xff] }
 0x29d   : > { %5308 = vst [vmem:[%s6693_s25 + $0x1178] sm:$0xff] %v3276_v53  ;;  %v2640_v1 = vand.u32 255, %v2320_v55  ;;  %v2641_v2 = vand.u32 255, %v2321_v57  ;;  %v2642_v3 = vand.u32 255, %v2322_v59  ;;  %v2324_v5 = vshra.s32 %v6030_v4, 8  ;;  %v6036_v34 = vld [vmem:[%s6669_s4 + $0x7e8] sm:$0xff] }
 0x29e   : > { %v2957_v6 = vcvt.s32.f32 %v2637_v60  ;;  %v2958_v7 = vcvt.s32.f32 %v2638_v61  ;;  %v2959_v8 = vcvt.s32.f32 %v2639_v62  ;;  %v2643_v9 = vand.u32 255, %v2323_v0  ;;  %v6037_v39 = vld [vmem:[%s6669_s4 + $0x7f0] sm:$0xff]  ;;  %v6038_v44 = vld [vmem:[%s6669_s4 + $0x7f8] sm:$0xff]  ;;  %v6039_v63 = vld [vmem:[%s6669_s4 + $0x800] sm:$0xff] }
 0x29f   : > { %v2960_v10 = vcvt.s32.f32 %v2640_v1  ;;  %v2961_v11 = vcvt.s32.f32 %v2641_v2  ;;  %v2962_v12 = vcvt.s32.f32 %v2642_v3  ;;  %v2644_v13 = vand.u32 255, %v2324_v5  ;;  %v6040_v1 = vld [vmem:[%s6669_s4 + $0x808] sm:$0xff]  ;;  %v6041_v3 = vld [vmem:[%s6669_s4 + $0x810] sm:$0xff] }
 0x2a0   : > { %v3277_v14 = vmul.f32 0.003921569, %v2957_v6  ;;  %v3278_v15 = vmul.f32 0.003921569, %v2958_v7  ;;  %v3279_v16 = vmul.f32 0.003921569, %v2959_v8  ;;  %v2963_v17 = vcvt.s32.f32 %v2643_v9 }
 0x2a1   : > { %v3280_v18 = vmul.f32 0.003921569, %v2960_v10  ;;  %v3281_v19 = vmul.f32 0.003921569, %v2961_v11  ;;  %v3282_v20 = vmul.f32 0.003921569, %v2962_v12  ;;  %v2964_v21 = vcvt.s32.f32 %v2644_v13 }
 0x2a2   : > { %5309 = vst [vmem:[%s6693_s25 + $0x1180] sm:$0xff] %v3277_v14  ;;  %5310 = vst [vmem:[%s6693_s25 + $0x1188] sm:$0xff] %v3278_v15  ;;  %v3283_v22 = vmul.f32 0.003921569, %v2963_v17  ;;  %v2325_v24 = vshra.s32 %v6031_v23, 8  ;;  %v2326_v26 = vshra.s32 %v6032_v25, 8 }
 0x2a3   : > { %5311 = vst [vmem:[%s6693_s25 + $0x1190] sm:$0xff] %v3279_v16  ;;  %v2327_v28 = vshra.s32 %v6033_v27, 8  ;;  %5312 = vst [vmem:[%s6693_s25 + $0x1198] sm:$0xff] %v3280_v18  ;;  %v3284_v29 = vmul.f32 0.003921569, %v2964_v21  ;;  %v2328_v31 = vshra.s32 %v6034_v30, 8 }
 0x2a4   : > { %5313 = vst [vmem:[%s6693_s25 + $0x11a0] sm:$0xff] %v3281_v19  ;;  %5314 = vst [vmem:[%s6693_s25 + $0x11a8] sm:$0xff] %v3282_v20  ;;  %v2329_v33 = vshra.s32 %v6035_v32, 8  ;;  %v2330_v35 = vshra.s32 %v6036_v34, 8  ;;  %v2645_v36 = vand.u32 255, %v2325_v24  ;;  %v2646_v37 = vand.u32 255, %v2326_v26 }
 0x2a5   : > { %5315 = vst [vmem:[%s6693_s25 + $0x11b0] sm:$0xff] %v3283_v22  ;;  %v2647_v38 = vand.u32 255, %v2327_v28  ;;  %v2331_v40 = vshra.s32 %v6037_v39, 8  ;;  %5316 = vst [vmem:[%s6693_s25 + $0x11b8] sm:$0xff] %v3284_v29  ;;  %v2648_v41 = vand.u32 255, %v2328_v31  ;;  %v2332_v45 = vshra.s32 %v6038_v44, 8 }
 0x2a6   : > { %v2649_v42 = vand.u32 255, %v2329_v33  ;;  %v2650_v43 = vand.u32 255, %v2330_v35  ;;  %v2965_v46 = vcvt.s32.f32 %v2645_v36  ;;  %v2966_v47 = vcvt.s32.f32 %v2646_v37  ;;  %v6042_v6 = vld [vmem:[%s6669_s4 + $0x818] sm:$0xff]  ;;  %v6043_v8 = vld [vmem:[%s6669_s4 + $0x820] sm:$0xff]  ;;  %v6044_v10 = vld [vmem:[%s6669_s4 + $0x828] sm:$0xff] }
 0x2a7   : > { %v2967_v48 = vcvt.s32.f32 %v2647_v38  ;;  %v2651_v49 = vand.u32 255, %v2331_v40  ;;  %v2968_v50 = vcvt.s32.f32 %v2648_v41  ;;  %v2652_v53 = vand.u32 255, %v2332_v45  ;;  %v6045_v15 = vld [vmem:[%s6669_s4 + $0x830] sm:$0xff]  ;;  %v6046_v20 = vld [vmem:[%s6669_s4 + $0x838] sm:$0xff]  ;;  %v6047_v39 = vld [vmem:[%s6669_s4 + $0x840] sm:$0xff] }
 0x2a8   : > { %v2969_v51 = vcvt.s32.f32 %v2649_v42  ;;  %v2970_v52 = vcvt.s32.f32 %v2650_v43  ;;  %v3285_v54 = vmul.f32 0.003921569, %v2965_v46  ;;  %v3286_v55 = vmul.f32 0.003921569, %v2966_v47  ;;  %v6048_v41 = vld [vmem:[%s6669_s4 + $0x848] sm:$0xff]  ;;  %v6049_v43 = vld [vmem:[%s6669_s4 + $0x850] sm:$0xff] }
 0x2a9   : > { %v3287_v56 = vmul.f32 0.003921569, %v2967_v48  ;;  %v2971_v57 = vcvt.s32.f32 %v2651_v49  ;;  %v3288_v58 = vmul.f32 0.003921569, %v2968_v50  ;;  %v2972_v61 = vcvt.s32.f32 %v2652_v53  ;;  %v6050_v46 = vld [vmem:[%s6669_s4 + $0x858] sm:$0xff]  ;;  %v6051_v48 = vld [vmem:[%s6669_s4 + $0x860] sm:$0xff] }
 0x2aa   : > { %v3289_v59 = vmul.f32 0.003921569, %v2969_v51  ;;  %v3290_v60 = vmul.f32 0.003921569, %v2970_v52  ;;  %5317 = vst [vmem:[%s6693_s25 + $0x11c0] sm:$0xff] %v3285_v54  ;;  %5318 = vst [vmem:[%s6693_s25 + $0x11c8] sm:$0xff] %v3286_v55 }
 0x2ab   : > { %5319 = vst [vmem:[%s6693_s25 + $0x11d0] sm:$0xff] %v3287_v56  ;;  %v3291_v62 = vmul.f32 0.003921569, %v2971_v57  ;;  %v2333_v0 = vshra.s32 %v6039_v63, 8  ;;  %v2334_v2 = vshra.s32 %v6040_v1, 8  ;;  %v2335_v4 = vshra.s32 %v6041_v3, 8 }
 0x2ac   : > { %5320 = vst [vmem:[%s6693_s25 + $0x11d8] sm:$0xff] %v3288_v58  ;;  %5321 = vst [vmem:[%s6693_s25 + $0x11e0] sm:$0xff] %v3289_v59  ;;  %v3292_v5 = vmul.f32 0.003921569, %v2972_v61  ;;  %v2336_v7 = vshra.s32 %v6042_v6, 8  ;;  %v2337_v9 = vshra.s32 %v6043_v8, 8 }
 0x2ad   : > { %5322 = vst [vmem:[%s6693_s25 + $0x11e8] sm:$0xff] %v3290_v60  ;;  %v2338_v11 = vshra.s32 %v6044_v10, 8  ;;  %5323 = vst [vmem:[%s6693_s25 + $0x11f0] sm:$0xff] %v3291_v62  ;;  %v2653_v12 = vand.u32 255, %v2333_v0  ;;  %v2654_v13 = vand.u32 255, %v2334_v2  ;;  %v2655_v14 = vand.u32 255, %v2335_v4 }
 0x2ae   : > { %v2339_v16 = vshra.s32 %v6045_v15, 8  ;;  %5324 = vst [vmem:[%s6693_s25 + $0x11f8] sm:$0xff] %v3292_v5  ;;  %v2656_v17 = vand.u32 255, %v2336_v7  ;;  %v2657_v18 = vand.u32 255, %v2337_v9  ;;  %v2340_v21 = vshra.s32 %v6046_v20, 8  ;;  %v6052_v50 = vld [vmem:[%s6669_s4 + $0x868] sm:$0xff] }
 0x2af   : > { %v2658_v19 = vand.u32 255, %v2338_v11  ;;  %v2973_v22 = vcvt.s32.f32 %v2653_v12  ;;  %v2974_v23 = vcvt.s32.f32 %v2654_v13  ;;  %v2975_v24 = vcvt.s32.f32 %v2655_v14  ;;  %v6053_v55 = vld [vmem:[%s6669_s4 + $0x870] sm:$0xff]  ;;  %v6054_v60 = vld [vmem:[%s6669_s4 + $0x878] sm:$0xff]  ;;  %v6055_v15 = vld [vmem:[%s6669_s4 + $0x880] sm:$0xff] }
 0x2b0   : > { %v2659_v25 = vand.u32 255, %v2339_v16  ;;  %v2976_v26 = vcvt.s32.f32 %v2656_v17  ;;  %v2977_v27 = vcvt.s32.f32 %v2657_v18  ;;  %v2660_v29 = vand.u32 255, %v2340_v21  ;;  %v6056_v17 = vld [vmem:[%s6669_s4 + $0x888] sm:$0xff] }
 0x2b1   : > { %v2978_v28 = vcvt.s32.f32 %v2658_v19  ;;  %v3293_v30 = vmul.f32 0.003921569, %v2973_v22  ;;  %v3294_v31 = vmul.f32 0.003921569, %v2974_v23  ;;  %v3295_v32 = vmul.f32 0.003921569, %v2975_v24 }
 0x2b2   : > { %v2979_v33 = vcvt.s32.f32 %v2659_v25  ;;  %v3296_v34 = vmul.f32 0.003921569, %v2976_v26  ;;  %v3297_v35 = vmul.f32 0.003921569, %v2977_v27  ;;  %v2980_v37 = vcvt.s32.f32 %v2660_v29  ;;  %v6057_v19 = vld [vmem:[%s6669_s4 + $0x890] sm:$0xff]  ;;  %v6058_v22 = vld [vmem:[%s6669_s4 + $0x898] sm:$0xff] }
 0x2b3   : > { %v3298_v36 = vmul.f32 0.003921569, %v2978_v28  ;;  %5325 = vst [vmem:[%s6693_s25 + $0x1200] sm:$0xff] %v3293_v30  ;;  %5326 = vst [vmem:[%s6693_s25 + $0x1208] sm:$0xff] %v3294_v31  ;;  %v2341_v40 = vshra.s32 %v6047_v39, 8  ;;  %v2342_v42 = vshra.s32 %v6048_v41, 8 }
 0x2b4   : > { %5327 = vst [vmem:[%s6693_s25 + $0x1210] sm:$0xff] %v3295_v32  ;;  %v3299_v38 = vmul.f32 0.003921569, %v2979_v33  ;;  %v2343_v44 = vshra.s32 %v6049_v43, 8  ;;  %5328 = vst [vmem:[%s6693_s25 + $0x1218] sm:$0xff] %v3296_v34  ;;  %v2344_v47 = vshra.s32 %v6050_v46, 8 }
 0x2b5   : > { %5329 = vst [vmem:[%s6693_s25 + $0x1220] sm:$0xff] %v3297_v35  ;;  %5330 = vst [vmem:[%s6693_s25 + $0x1228] sm:$0xff] %v3298_v36  ;;  %v3300_v45 = vmul.f32 0.003921569, %v2980_v37  ;;  %v2345_v49 = vshra.s32 %v6051_v48, 8  ;;  %v2346_v51 = vshra.s32 %v6052_v50, 8 }
 0x2b6   : > { %5331 = vst [vmem:[%s6693_s25 + $0x1230] sm:$0xff] %v3299_v38  ;;  %v2661_v52 = vand.u32 255, %v2341_v40  ;;  %v2662_v53 = vand.u32 255, %v2342_v42  ;;  %v2663_v54 = vand.u32 255, %v2343_v44  ;;  %v2347_v56 = vshra.s32 %v6053_v55, 8  ;;  %v6059_v24 = vld [vmem:[%s6669_s4 + $0x8a0] sm:$0xff] }
 0x2b7   : > { %5332 = vst [vmem:[%s6693_s25 + $0x1238] sm:$0xff] %v3300_v45  ;;  %v2664_v57 = vand.u32 255, %v2344_v47  ;;  %v2665_v58 = vand.u32 255, %v2345_v49  ;;  %v2666_v59 = vand.u32 255, %v2346_v51  ;;  %v2348_v61 = vshra.s32 %v6054_v60, 8  ;;  %v6060_v26 = vld [vmem:[%s6669_s4 + $0x8a8] sm:$0xff] }
 0x2b8   : > { %v2981_v62 = vcvt.s32.f32 %v2661_v52  ;;  %v2982_v63 = vcvt.s32.f32 %v2662_v53  ;;  %v2983_v0 = vcvt.s32.f32 %v2663_v54  ;;  %v2667_v1 = vand.u32 255, %v2347_v56  ;;  %v6061_v31 = vld [vmem:[%s6669_s4 + $0x8b0] sm:$0xff]  ;;  %v6062_v36 = vld [vmem:[%s6669_s4 + $0x8b8] sm:$0xff]  ;;  %v6063_v55 = vld [vmem:[%s6669_s4 + $0x8c0] sm:$0xff] }
 0x2b9   : > { %v2984_v2 = vcvt.s32.f32 %v2664_v57  ;;  %v2985_v3 = vcvt.s32.f32 %v2665_v58  ;;  %v2986_v4 = vcvt.s32.f32 %v2666_v59  ;;  %v2668_v5 = vand.u32 255, %v2348_v61  ;;  %v6064_v57 = vld [vmem:[%s6669_s4 + $0x8c8] sm:$0xff]  ;;  %v6065_v59 = vld [vmem:[%s6669_s4 + $0x8d0] sm:$0xff] }
 0x2ba   : > { %v3301_v6 = vmul.f32 0.003921569, %v2981_v62  ;;  %v3302_v7 = vmul.f32 0.003921569, %v2982_v63  ;;  %v3303_v8 = vmul.f32 0.003921569, %v2983_v0  ;;  %v2987_v9 = vcvt.s32.f32 %v2667_v1 }
 0x2bb   : > { %v3304_v10 = vmul.f32 0.003921569, %v2984_v2  ;;  %v3305_v11 = vmul.f32 0.003921569, %v2985_v3  ;;  %v3306_v12 = vmul.f32 0.003921569, %v2986_v4  ;;  %v2988_v13 = vcvt.s32.f32 %v2668_v5 }
 0x2bc   : > { %5333 = vst [vmem:[%s6693_s25 + $0x1240] sm:$0xff] %v3301_v6  ;;  %5334 = vst [vmem:[%s6693_s25 + $0x1248] sm:$0xff] %v3302_v7  ;;  %v3307_v14 = vmul.f32 0.003921569, %v2987_v9  ;;  %v2349_v16 = vshra.s32 %v6055_v15, 8  ;;  %v2350_v18 = vshra.s32 %v6056_v17, 8 }
 0x2bd   : > { %5335 = vst [vmem:[%s6693_s25 + $0x1250] sm:$0xff] %v3303_v8  ;;  %v2351_v20 = vshra.s32 %v6057_v19, 8  ;;  %5336 = vst [vmem:[%s6693_s25 + $0x1258] sm:$0xff] %v3304_v10  ;;  %v3308_v21 = vmul.f32 0.003921569, %v2988_v13  ;;  %v2352_v23 = vshra.s32 %v6058_v22, 8 }
 0x2be   : > { %5337 = vst [vmem:[%s6693_s25 + $0x1260] sm:$0xff] %v3305_v11  ;;  %5338 = vst [vmem:[%s6693_s25 + $0x1268] sm:$0xff] %v3306_v12  ;;  %v2353_v25 = vshra.s32 %v6059_v24, 8  ;;  %v2354_v27 = vshra.s32 %v6060_v26, 8  ;;  %v2669_v28 = vand.u32 255, %v2349_v16  ;;  %v2670_v29 = vand.u32 255, %v2350_v18 }
 0x2bf   : > { %5339 = vst [vmem:[%s6693_s25 + $0x1270] sm:$0xff] %v3307_v14  ;;  %v2671_v30 = vand.u32 255, %v2351_v20  ;;  %v2355_v32 = vshra.s32 %v6061_v31, 8  ;;  %5340 = vst [vmem:[%s6693_s25 + $0x1278] sm:$0xff] %v3308_v21  ;;  %v2672_v33 = vand.u32 255, %v2352_v23  ;;  %v2356_v37 = vshra.s32 %v6062_v36, 8 }
 0x2c0   : > { %v2673_v34 = vand.u32 255, %v2353_v25  ;;  %v2674_v35 = vand.u32 255, %v2354_v27  ;;  %v2989_v38 = vcvt.s32.f32 %v2669_v28  ;;  %v2990_v39 = vcvt.s32.f32 %v2670_v29  ;;  %v6066_v62 = vld [vmem:[%s6669_s4 + $0x8d8] sm:$0xff]  ;;  %v6067_v0 = vld [vmem:[%s6669_s4 + $0x8e0] sm:$0xff]  ;;  %v6068_v2 = vld [vmem:[%s6669_s4 + $0x8e8] sm:$0xff] }
 0x2c1   : > { %v2991_v40 = vcvt.s32.f32 %v2671_v30  ;;  %v2675_v41 = vand.u32 255, %v2355_v32  ;;  %v2992_v42 = vcvt.s32.f32 %v2672_v33  ;;  %v2676_v45 = vand.u32 255, %v2356_v37  ;;  %v6069_v7 = vld [vmem:[%s6669_s4 + $0x8f0] sm:$0xff]  ;;  %v6070_v12 = vld [vmem:[%s6669_s4 + $0x8f8] sm:$0xff]  ;;  %v6071_v31 = vld [vmem:[%s6669_s4 + $0x900] sm:$0xff] }
 0x2c2   : > { %v2993_v43 = vcvt.s32.f32 %v2673_v34  ;;  %v2994_v44 = vcvt.s32.f32 %v2674_v35  ;;  %v3309_v46 = vmul.f32 0.003921569, %v2989_v38  ;;  %v3310_v47 = vmul.f32 0.003921569, %v2990_v39  ;;  %v6072_v33 = vld [vmem:[%s6669_s4 + $0x908] sm:$0xff]  ;;  %v6073_v35 = vld [vmem:[%s6669_s4 + $0x910] sm:$0xff] }
 0x2c3   : > { %v3311_v48 = vmul.f32 0.003921569, %v2991_v40  ;;  %v2995_v49 = vcvt.s32.f32 %v2675_v41  ;;  %v3312_v50 = vmul.f32 0.003921569, %v2992_v42  ;;  %v2996_v53 = vcvt.s32.f32 %v2676_v45  ;;  %v6074_v38 = vld [vmem:[%s6669_s4 + $0x918] sm:$0xff]  ;;  %v6075_v40 = vld [vmem:[%s6669_s4 + $0x920] sm:$0xff] }
 0x2c4   : > { %v3313_v51 = vmul.f32 0.003921569, %v2993_v43  ;;  %v3314_v52 = vmul.f32 0.003921569, %v2994_v44  ;;  %5341 = vst [vmem:[%s6693_s25 + $0x1280] sm:$0xff] %v3309_v46  ;;  %5342 = vst [vmem:[%s6693_s25 + $0x1288] sm:$0xff] %v3310_v47 }
 0x2c5   : > { %5343 = vst [vmem:[%s6693_s25 + $0x1290] sm:$0xff] %v3311_v48  ;;  %v3315_v54 = vmul.f32 0.003921569, %v2995_v49  ;;  %v2357_v56 = vshra.s32 %v6063_v55, 8  ;;  %v2358_v58 = vshra.s32 %v6064_v57, 8  ;;  %v2359_v60 = vshra.s32 %v6065_v59, 8 }
 0x2c6   : > { %5344 = vst [vmem:[%s6693_s25 + $0x1298] sm:$0xff] %v3312_v50  ;;  %5345 = vst [vmem:[%s6693_s25 + $0x12a0] sm:$0xff] %v3313_v51  ;;  %v3316_v61 = vmul.f32 0.003921569, %v2996_v53  ;;  %v2360_v63 = vshra.s32 %v6066_v62, 8  ;;  %v2361_v1 = vshra.s32 %v6067_v0, 8 }
 0x2c7   : > { %5346 = vst [vmem:[%s6693_s25 + $0x12a8] sm:$0xff] %v3314_v52  ;;  %v2362_v3 = vshra.s32 %v6068_v2, 8  ;;  %5347 = vst [vmem:[%s6693_s25 + $0x12b0] sm:$0xff] %v3315_v54  ;;  %v2677_v4 = vand.u32 255, %v2357_v56  ;;  %v2678_v5 = vand.u32 255, %v2358_v58  ;;  %v2679_v6 = vand.u32 255, %v2359_v60 }
 0x2c8   : > { %v2363_v8 = vshra.s32 %v6069_v7, 8  ;;  %5348 = vst [vmem:[%s6693_s25 + $0x12b8] sm:$0xff] %v3316_v61  ;;  %v2680_v9 = vand.u32 255, %v2360_v63  ;;  %v2681_v10 = vand.u32 255, %v2361_v1  ;;  %v2364_v13 = vshra.s32 %v6070_v12, 8  ;;  %v6076_v42 = vld [vmem:[%s6669_s4 + $0x928] sm:$0xff] }
 0x2c9   : > { %v2682_v11 = vand.u32 255, %v2362_v3  ;;  %v2997_v14 = vcvt.s32.f32 %v2677_v4  ;;  %v2998_v15 = vcvt.s32.f32 %v2678_v5  ;;  %v2999_v16 = vcvt.s32.f32 %v2679_v6  ;;  %v6077_v47 = vld [vmem:[%s6669_s4 + $0x930] sm:$0xff]  ;;  %v6078_v52 = vld [vmem:[%s6669_s4 + $0x938] sm:$0xff]  ;;  %v6079_v7 = vld [vmem:[%s6669_s4 + $0x940] sm:$0xff] }
 0x2ca   : > { %v2683_v17 = vand.u32 255, %v2363_v8  ;;  %v3000_v18 = vcvt.s32.f32 %v2680_v9  ;;  %v3001_v19 = vcvt.s32.f32 %v2681_v10  ;;  %v2684_v21 = vand.u32 255, %v2364_v13  ;;  %v6080_v9 = vld [vmem:[%s6669_s4 + $0x948] sm:$0xff] }
 0x2cb   : > { %v3002_v20 = vcvt.s32.f32 %v2682_v11  ;;  %v3317_v22 = vmul.f32 0.003921569, %v2997_v14  ;;  %v3318_v23 = vmul.f32 0.003921569, %v2998_v15  ;;  %v3319_v24 = vmul.f32 0.003921569, %v2999_v16 }
 0x2cc   : > { %v3003_v25 = vcvt.s32.f32 %v2683_v17  ;;  %v3320_v26 = vmul.f32 0.003921569, %v3000_v18  ;;  %v3321_v27 = vmul.f32 0.003921569, %v3001_v19  ;;  %v3004_v29 = vcvt.s32.f32 %v2684_v21  ;;  %v6081_v11 = vld [vmem:[%s6669_s4 + $0x950] sm:$0xff]  ;;  %v6082_v14 = vld [vmem:[%s6669_s4 + $0x958] sm:$0xff] }
 0x2cd   : > { %v3322_v28 = vmul.f32 0.003921569, %v3002_v20  ;;  %5349 = vst [vmem:[%s6693_s25 + $0x12c0] sm:$0xff] %v3317_v22  ;;  %5350 = vst [vmem:[%s6693_s25 + $0x12c8] sm:$0xff] %v3318_v23  ;;  %v2365_v32 = vshra.s32 %v6071_v31, 8  ;;  %v2366_v34 = vshra.s32 %v6072_v33, 8 }
 0x2ce   : > { %5351 = vst [vmem:[%s6693_s25 + $0x12d0] sm:$0xff] %v3319_v24  ;;  %v3323_v30 = vmul.f32 0.003921569, %v3003_v25  ;;  %v2367_v36 = vshra.s32 %v6073_v35, 8  ;;  %5352 = vst [vmem:[%s6693_s25 + $0x12d8] sm:$0xff] %v3320_v26  ;;  %v2368_v39 = vshra.s32 %v6074_v38, 8 }
 0x2cf   : > { %5353 = vst [vmem:[%s6693_s25 + $0x12e0] sm:$0xff] %v3321_v27  ;;  %5354 = vst [vmem:[%s6693_s25 + $0x12e8] sm:$0xff] %v3322_v28  ;;  %v3324_v37 = vmul.f32 0.003921569, %v3004_v29  ;;  %v2369_v41 = vshra.s32 %v6075_v40, 8  ;;  %v2370_v43 = vshra.s32 %v6076_v42, 8 }
 0x2d0   : > { %5355 = vst [vmem:[%s6693_s25 + $0x12f0] sm:$0xff] %v3323_v30  ;;  %v2685_v44 = vand.u32 255, %v2365_v32  ;;  %v2686_v45 = vand.u32 255, %v2366_v34  ;;  %v2687_v46 = vand.u32 255, %v2367_v36  ;;  %v2371_v48 = vshra.s32 %v6077_v47, 8  ;;  %v6083_v16 = vld [vmem:[%s6669_s4 + $0x960] sm:$0xff] }
 0x2d1   : > { %5356 = vst [vmem:[%s6693_s25 + $0x12f8] sm:$0xff] %v3324_v37  ;;  %v2688_v49 = vand.u32 255, %v2368_v39  ;;  %v2689_v50 = vand.u32 255, %v2369_v41  ;;  %v2690_v51 = vand.u32 255, %v2370_v43  ;;  %v2372_v53 = vshra.s32 %v6078_v52, 8  ;;  %v6084_v18 = vld [vmem:[%s6669_s4 + $0x968] sm:$0xff] }
 0x2d2   : > { %v3005_v54 = vcvt.s32.f32 %v2685_v44  ;;  %v3006_v55 = vcvt.s32.f32 %v2686_v45  ;;  %v3007_v56 = vcvt.s32.f32 %v2687_v46  ;;  %v2691_v57 = vand.u32 255, %v2371_v48  ;;  %v6085_v23 = vld [vmem:[%s6669_s4 + $0x970] sm:$0xff]  ;;  %v6086_v28 = vld [vmem:[%s6669_s4 + $0x978] sm:$0xff]  ;;  %v6087_v47 = vld [vmem:[%s6669_s4 + $0x980] sm:$0xff] }
 0x2d3   : > { %v3008_v58 = vcvt.s32.f32 %v2688_v49  ;;  %v3009_v59 = vcvt.s32.f32 %v2689_v50  ;;  %v3010_v60 = vcvt.s32.f32 %v2690_v51  ;;  %v2692_v61 = vand.u32 255, %v2372_v53  ;;  %v6088_v49 = vld [vmem:[%s6669_s4 + $0x988] sm:$0xff]  ;;  %v6089_v51 = vld [vmem:[%s6669_s4 + $0x990] sm:$0xff] }
 0x2d4   : > { %v3325_v62 = vmul.f32 0.003921569, %v3005_v54  ;;  %v3326_v63 = vmul.f32 0.003921569, %v3006_v55  ;;  %v3327_v0 = vmul.f32 0.003921569, %v3007_v56  ;;  %v3011_v1 = vcvt.s32.f32 %v2691_v57 }
 0x2d5   : > { %v3328_v2 = vmul.f32 0.003921569, %v3008_v58  ;;  %v3329_v3 = vmul.f32 0.003921569, %v3009_v59  ;;  %v3330_v4 = vmul.f32 0.003921569, %v3010_v60  ;;  %v3012_v5 = vcvt.s32.f32 %v2692_v61 }
 0x2d6   : > { %5357 = vst [vmem:[%s6693_s25 + $0x1300] sm:$0xff] %v3325_v62  ;;  %5358 = vst [vmem:[%s6693_s25 + $0x1308] sm:$0xff] %v3326_v63  ;;  %v3331_v6 = vmul.f32 0.003921569, %v3011_v1  ;;  %v2373_v8 = vshra.s32 %v6079_v7, 8  ;;  %v2374_v10 = vshra.s32 %v6080_v9, 8 }
 0x2d7   : > { %5359 = vst [vmem:[%s6693_s25 + $0x1310] sm:$0xff] %v3327_v0  ;;  %v2375_v12 = vshra.s32 %v6081_v11, 8  ;;  %5360 = vst [vmem:[%s6693_s25 + $0x1318] sm:$0xff] %v3328_v2  ;;  %v3332_v13 = vmul.f32 0.003921569, %v3012_v5  ;;  %v2376_v15 = vshra.s32 %v6082_v14, 8 }
 0x2d8   : > { %5361 = vst [vmem:[%s6693_s25 + $0x1320] sm:$0xff] %v3329_v3  ;;  %5362 = vst [vmem:[%s6693_s25 + $0x1328] sm:$0xff] %v3330_v4  ;;  %v2377_v17 = vshra.s32 %v6083_v16, 8  ;;  %v2378_v19 = vshra.s32 %v6084_v18, 8  ;;  %v2693_v20 = vand.u32 255, %v2373_v8  ;;  %v2694_v21 = vand.u32 255, %v2374_v10 }
 0x2d9   : > { %5363 = vst [vmem:[%s6693_s25 + $0x1330] sm:$0xff] %v3331_v6  ;;  %v2695_v22 = vand.u32 255, %v2375_v12  ;;  %v2379_v24 = vshra.s32 %v6085_v23, 8  ;;  %5364 = vst [vmem:[%s6693_s25 + $0x1338] sm:$0xff] %v3332_v13  ;;  %v2696_v25 = vand.u32 255, %v2376_v15  ;;  %v2380_v29 = vshra.s32 %v6086_v28, 8 }
 0x2da   : > { %v2697_v26 = vand.u32 255, %v2377_v17  ;;  %v2698_v27 = vand.u32 255, %v2378_v19  ;;  %v3013_v30 = vcvt.s32.f32 %v2693_v20  ;;  %v3014_v31 = vcvt.s32.f32 %v2694_v21  ;;  %v6090_v54 = vld [vmem:[%s6669_s4 + $0x998] sm:$0xff]  ;;  %v6091_v56 = vld [vmem:[%s6669_s4 + $0x9a0] sm:$0xff]  ;;  %v6092_v58 = vld [vmem:[%s6669_s4 + $0x9a8] sm:$0xff] }
 0x2db   : > { %v3015_v32 = vcvt.s32.f32 %v2695_v22  ;;  %v2699_v33 = vand.u32 255, %v2379_v24  ;;  %v3016_v34 = vcvt.s32.f32 %v2696_v25  ;;  %v2700_v37 = vand.u32 255, %v2380_v29  ;;  %v6093_v63 = vld [vmem:[%s6669_s4 + $0x9b0] sm:$0xff]  ;;  %v6094_v4 = vld [vmem:[%s6669_s4 + $0x9b8] sm:$0xff]  ;;  %v6095_v23 = vld [vmem:[%s6669_s4 + $0x9c0] sm:$0xff] }
 0x2dc   : > { %v3017_v35 = vcvt.s32.f32 %v2697_v26  ;;  %v3018_v36 = vcvt.s32.f32 %v2698_v27  ;;  %v3333_v38 = vmul.f32 0.003921569, %v3013_v30  ;;  %v3334_v39 = vmul.f32 0.003921569, %v3014_v31  ;;  %v6096_v25 = vld [vmem:[%s6669_s4 + $0x9c8] sm:$0xff]  ;;  %v6097_v27 = vld [vmem:[%s6669_s4 + $0x9d0] sm:$0xff] }
 0x2dd   : > { %v3335_v40 = vmul.f32 0.003921569, %v3015_v32  ;;  %v3019_v41 = vcvt.s32.f32 %v2699_v33  ;;  %v3336_v42 = vmul.f32 0.003921569, %v3016_v34  ;;  %v3020_v45 = vcvt.s32.f32 %v2700_v37  ;;  %v6098_v30 = vld [vmem:[%s6669_s4 + $0x9d8] sm:$0xff]  ;;  %v6099_v32 = vld [vmem:[%s6669_s4 + $0x9e0] sm:$0xff] }
 0x2de   : > { %v3337_v43 = vmul.f32 0.003921569, %v3017_v35  ;;  %v3338_v44 = vmul.f32 0.003921569, %v3018_v36  ;;  %5365 = vst [vmem:[%s6693_s25 + $0x1340] sm:$0xff] %v3333_v38  ;;  %5366 = vst [vmem:[%s6693_s25 + $0x1348] sm:$0xff] %v3334_v39 }
 0x2df   : > { %5367 = vst [vmem:[%s6693_s25 + $0x1350] sm:$0xff] %v3335_v40  ;;  %v3339_v46 = vmul.f32 0.003921569, %v3019_v41  ;;  %v2381_v48 = vshra.s32 %v6087_v47, 8  ;;  %v2382_v50 = vshra.s32 %v6088_v49, 8  ;;  %v2383_v52 = vshra.s32 %v6089_v51, 8 }
 0x2e0   : > { %5368 = vst [vmem:[%s6693_s25 + $0x1358] sm:$0xff] %v3336_v42  ;;  %5369 = vst [vmem:[%s6693_s25 + $0x1360] sm:$0xff] %v3337_v43  ;;  %v3340_v53 = vmul.f32 0.003921569, %v3020_v45  ;;  %v2384_v55 = vshra.s32 %v6090_v54, 8  ;;  %v2385_v57 = vshra.s32 %v6091_v56, 8 }
 0x2e1   : > { %5370 = vst [vmem:[%s6693_s25 + $0x1368] sm:$0xff] %v3338_v44  ;;  %v2386_v59 = vshra.s32 %v6092_v58, 8  ;;  %5371 = vst [vmem:[%s6693_s25 + $0x1370] sm:$0xff] %v3339_v46  ;;  %v2701_v60 = vand.u32 255, %v2381_v48  ;;  %v2702_v61 = vand.u32 255, %v2382_v50  ;;  %v2703_v62 = vand.u32 255, %v2383_v52 }
 0x2e2   : > { %v2387_v0 = vshra.s32 %v6093_v63, 8  ;;  %5372 = vst [vmem:[%s6693_s25 + $0x1378] sm:$0xff] %v3340_v53  ;;  %v2704_v1 = vand.u32 255, %v2384_v55  ;;  %v2705_v2 = vand.u32 255, %v2385_v57  ;;  %v2388_v5 = vshra.s32 %v6094_v4, 8  ;;  %v6100_v34 = vld [vmem:[%s6669_s4 + $0x9e8] sm:$0xff] }
 0x2e3   : > { %v2706_v3 = vand.u32 255, %v2386_v59  ;;  %v3021_v6 = vcvt.s32.f32 %v2701_v60  ;;  %v3022_v7 = vcvt.s32.f32 %v2702_v61  ;;  %v3023_v8 = vcvt.s32.f32 %v2703_v62  ;;  %v6101_v39 = vld [vmem:[%s6669_s4 + $0x9f0] sm:$0xff]  ;;  %v6102_v44 = vld [vmem:[%s6669_s4 + $0x9f8] sm:$0xff]  ;;  %v6103_v63 = vld [vmem:[%s6669_s4] sm:$0xff] }
 0x2e4   : > { %v2707_v9 = vand.u32 255, %v2387_v0  ;;  %v3024_v10 = vcvt.s32.f32 %v2704_v1  ;;  %v3025_v11 = vcvt.s32.f32 %v2705_v2  ;;  %v2708_v13 = vand.u32 255, %v2388_v5  ;;  %v6104_v1 = vld [vmem:[%s6669_s4 + $0x8] sm:$0xff] }
 0x2e5   : > { %v3026_v12 = vcvt.s32.f32 %v2706_v3  ;;  %v3341_v14 = vmul.f32 0.003921569, %v3021_v6  ;;  %v3342_v15 = vmul.f32 0.003921569, %v3022_v7  ;;  %v3343_v16 = vmul.f32 0.003921569, %v3023_v8 }
 0x2e6   : > { %v3027_v17 = vcvt.s32.f32 %v2707_v9  ;;  %v3344_v18 = vmul.f32 0.003921569, %v3024_v10  ;;  %v3345_v19 = vmul.f32 0.003921569, %v3025_v11  ;;  %v3028_v21 = vcvt.s32.f32 %v2708_v13  ;;  %v6105_v3 = vld [vmem:[%s6669_s4 + $0x10] sm:$0xff]  ;;  %v6106_v6 = vld [vmem:[%s6669_s4 + $0x18] sm:$0xff] }
 0x2e7   : > { %v3346_v20 = vmul.f32 0.003921569, %v3026_v12  ;;  %5373 = vst [vmem:[%s6693_s25 + $0x1380] sm:$0xff] %v3341_v14  ;;  %5374 = vst [vmem:[%s6693_s25 + $0x1388] sm:$0xff] %v3342_v15  ;;  %v2389_v24 = vshra.s32 %v6095_v23, 8  ;;  %v2390_v26 = vshra.s32 %v6096_v25, 8 }
 0x2e8   : > { %5375 = vst [vmem:[%s6693_s25 + $0x1390] sm:$0xff] %v3343_v16  ;;  %v3347_v22 = vmul.f32 0.003921569, %v3027_v17  ;;  %v2391_v28 = vshra.s32 %v6097_v27, 8  ;;  %5376 = vst [vmem:[%s6693_s25 + $0x1398] sm:$0xff] %v3344_v18  ;;  %v2392_v31 = vshra.s32 %v6098_v30, 8 }
 0x2e9   : > { %5377 = vst [vmem:[%s6693_s25 + $0x13a0] sm:$0xff] %v3345_v19  ;;  %5378 = vst [vmem:[%s6693_s25 + $0x13a8] sm:$0xff] %v3346_v20  ;;  %v3348_v29 = vmul.f32 0.003921569, %v3028_v21  ;;  %v2393_v33 = vshra.s32 %v6099_v32, 8  ;;  %v2394_v35 = vshra.s32 %v6100_v34, 8 }
 0x2ea   : > { %5379 = vst [vmem:[%s6693_s25 + $0x13b0] sm:$0xff] %v3347_v22  ;;  %v2709_v36 = vand.u32 255, %v2389_v24  ;;  %v2710_v37 = vand.u32 255, %v2390_v26  ;;  %v2711_v38 = vand.u32 255, %v2391_v28  ;;  %v2395_v40 = vshra.s32 %v6101_v39, 8  ;;  %v6107_v8 = vld [vmem:[%s6669_s4 + $0x20] sm:$0xff] }
 0x2eb   : > { %5380 = vst [vmem:[%s6693_s25 + $0x13b8] sm:$0xff] %v3348_v29  ;;  %v2712_v41 = vand.u32 255, %v2392_v31  ;;  %v2713_v42 = vand.u32 255, %v2393_v33  ;;  %v2714_v43 = vand.u32 255, %v2394_v35  ;;  %v2396_v45 = vshra.s32 %v6102_v44, 8  ;;  %v6108_v10 = vld [vmem:[%s6669_s4 + $0x28] sm:$0xff] }
 0x2ec   : > { %v3029_v46 = vcvt.s32.f32 %v2709_v36  ;;  %v3030_v47 = vcvt.s32.f32 %v2710_v37  ;;  %v3031_v48 = vcvt.s32.f32 %v2711_v38  ;;  %v2715_v49 = vand.u32 255, %v2395_v40  ;;  %v6109_v15 = vld [vmem:[%s6669_s4 + $0x30] sm:$0xff]  ;;  %v6110_v20 = vld [vmem:[%s6669_s4 + $0x38] sm:$0xff]  ;;  %v6111_v31 = vld [vmem:[%s6669_s4 + $0x40] sm:$0xff] }
 0x2ed   : > { %v3032_v50 = vcvt.s32.f32 %v2712_v41  ;;  %v3033_v51 = vcvt.s32.f32 %v2713_v42  ;;  %v3034_v52 = vcvt.s32.f32 %v2714_v43  ;;  %v2716_v53 = vand.u32 255, %v2396_v45  ;;  %v6112_v33 = vld [vmem:[%s6669_s4 + $0x48] sm:$0xff]  ;;  %v6113_v35 = vld [vmem:[%s6669_s4 + $0x50] sm:$0xff]  ;;  %v6114_v38 = vld [vmem:[%s6669_s4 + $0x58] sm:$0xff] }
 0x2ee   : > { %v3349_v54 = vmul.f32 0.003921569, %v3029_v46  ;;  %v3350_v55 = vmul.f32 0.003921569, %v3030_v47  ;;  %v3351_v56 = vmul.f32 0.003921569, %v3031_v48  ;;  %v3035_v57 = vcvt.s32.f32 %v2715_v49 }
 0x2ef   : > { %v3352_v58 = vmul.f32 0.003921569, %v3032_v50  ;;  %v3353_v59 = vmul.f32 0.003921569, %v3033_v51  ;;  %v3354_v60 = vmul.f32 0.003921569, %v3034_v52  ;;  %v3036_v61 = vcvt.s32.f32 %v2716_v53 }
 0x2f0   : > { %5381 = vst [vmem:[%s6693_s25 + $0x13c0] sm:$0xff] %v3349_v54  ;;  %5382 = vst [vmem:[%s6693_s25 + $0x13c8] sm:$0xff] %v3350_v55  ;;  %v3355_v62 = vmul.f32 0.003921569, %v3035_v57  ;;  %v3678_v0 = vand.u32 255, %v6103_v63  ;;  %v3679_v2 = vand.u32 255, %v6104_v1 }
 0x2f1   : > { %5383 = vst [vmem:[%s6693_s25 + $0x13d0] sm:$0xff] %v3351_v56  ;;  %v3680_v4 = vand.u32 255, %v6105_v3  ;;  %5384 = vst [vmem:[%s6693_s25 + $0x13d8] sm:$0xff] %v3352_v58  ;;  %v3356_v5 = vmul.f32 0.003921569, %v3036_v61  ;;  %v3681_v7 = vand.u32 255, %v6106_v6 }
 0x2f2   : > { %5385 = vst [vmem:[%s6693_s25 + $0x13e0] sm:$0xff] %v3353_v59  ;;  %5386 = vst [vmem:[%s6693_s25 + $0x13e8] sm:$0xff] %v3354_v60  ;;  %v3682_v9 = vand.u32 255, %v6107_v8  ;;  %v3683_v11 = vand.u32 255, %v6108_v10  ;;  %v3998_v12 = vcvt.s32.f32 %v3678_v0  ;;  %v3999_v13 = vcvt.s32.f32 %v3679_v2  ;;  %v6115_v40 = vld [vmem:[%s6669_s4 + $0x60] sm:$0xff]  ;;  %v6116_v42 = vld [vmem:[%s6669_s4 + $0x68] sm:$0xff] }
 0x2f3   : > { %5387 = vst [vmem:[%s6693_s25 + $0x13f0] sm:$0xff] %v3355_v62  ;;  %v4000_v14 = vcvt.s32.f32 %v3680_v4  ;;  %v3684_v16 = vand.u32 255, %v6109_v15  ;;  %5388 = vst [vmem:[%s6693_s25 + $0x13f8] sm:$0xff] %v3356_v5  ;;  %v4001_v17 = vcvt.s32.f32 %v3681_v7  ;;  %v3685_v21 = vand.u32 255, %v6110_v20  ;;  %v6117_v47 = vld [vmem:[%s6669_s4 + $0x70] sm:$0xff]  ;;  %v6118_v52 = vld [vmem:[%s6669_s4 + $0x78] sm:$0xff] }
 0x2f4   : > { %v4002_v18 = vcvt.s32.f32 %v3682_v9  ;;  %v4003_v19 = vcvt.s32.f32 %v3683_v11  ;;  %v4318_v22 = vmul.f32 0.003921569, %v3998_v12  ;;  %v4319_v23 = vmul.f32 0.003921569, %v3999_v13  ;;  %v6119_v63 = vld [vmem:[%s6669_s4 + $0x80] sm:$0xff]  ;;  %v6120_v1 = vld [vmem:[%s6669_s4 + $0x88] sm:$0xff] }
 0x2f5   : > { %v4320_v24 = vmul.f32 0.003921569, %v4000_v14  ;;  %v4004_v25 = vcvt.s32.f32 %v3684_v16  ;;  %v4321_v26 = vmul.f32 0.003921569, %v4001_v17  ;;  %v4005_v29 = vcvt.s32.f32 %v3685_v21  ;;  %v6121_v3 = vld [vmem:[%s6669_s4 + $0x90] sm:$0xff]  ;;  %v6122_v6 = vld [vmem:[%s6669_s4 + $0x98] sm:$0xff] }
 0x2f6   : > { %v4322_v27 = vmul.f32 0.003921569, %v4002_v18  ;;  %v4323_v28 = vmul.f32 0.003921569, %v4003_v19  ;;  %5389 = vst [vmem:[%s6693_s25 + $0x1400] sm:$0xff] %v4318_v22  ;;  %5390 = vst [vmem:[%s6693_s25 + $0x1408] sm:$0xff] %v4319_v23 }
 0x2f7   : > { %5391 = vst [vmem:[%s6693_s25 + $0x1410] sm:$0xff] %v4320_v24  ;;  %v4324_v30 = vmul.f32 0.003921569, %v4004_v25  ;;  %v3686_v32 = vand.u32 255, %v6111_v31  ;;  %v3687_v34 = vand.u32 255, %v6112_v33  ;;  %v3688_v36 = vand.u32 255, %v6113_v35 }
 0x2f8   : > { %5392 = vst [vmem:[%s6693_s25 + $0x1418] sm:$0xff] %v4321_v26  ;;  %5393 = vst [vmem:[%s6693_s25 + $0x1420] sm:$0xff] %v4322_v27  ;;  %v4325_v37 = vmul.f32 0.003921569, %v4005_v29  ;;  %v3689_v39 = vand.u32 255, %v6114_v38  ;;  %v3690_v41 = vand.u32 255, %v6115_v40 }
 0x2f9   : > { %5394 = vst [vmem:[%s6693_s25 + $0x1428] sm:$0xff] %v4323_v28  ;;  %v3691_v43 = vand.u32 255, %v6116_v42  ;;  %5395 = vst [vmem:[%s6693_s25 + $0x1430] sm:$0xff] %v4324_v30  ;;  %v4006_v44 = vcvt.s32.f32 %v3686_v32  ;;  %v4007_v45 = vcvt.s32.f32 %v3687_v34  ;;  %v4008_v46 = vcvt.s32.f32 %v3688_v36  ;;  %v6123_v8 = vld [vmem:[%s6669_s4 + $0xa0] sm:$0xff]  ;;  %v6124_v10 = vld [vmem:[%s6669_s4 + $0xa8] sm:$0xff] }
 0x2fa   : > { %v3692_v48 = vand.u32 255, %v6117_v47  ;;  %5396 = vst [vmem:[%s6693_s25 + $0x1438] sm:$0xff] %v4325_v37  ;;  %v4009_v49 = vcvt.s32.f32 %v3689_v39  ;;  %v4010_v50 = vcvt.s32.f32 %v3690_v41  ;;  %v3693_v53 = vand.u32 255, %v6118_v52  ;;  %v6125_v15 = vld [vmem:[%s6669_s4 + $0xb0] sm:$0xff]  ;;  %v6126_v20 = vld [vmem:[%s6669_s4 + $0xb8] sm:$0xff]  ;;  %v6127_v31 = vld [vmem:[%s6669_s4 + $0xc0] sm:$0xff] }
 0x2fb   : > { %v4011_v51 = vcvt.s32.f32 %v3691_v43  ;;  %v4326_v54 = vmul.f32 0.003921569, %v4006_v44  ;;  %v4327_v55 = vmul.f32 0.003921569, %v4007_v45  ;;  %v4328_v56 = vmul.f32 0.003921569, %v4008_v46 }
 0x2fc   : > { %v4012_v57 = vcvt.s32.f32 %v3692_v48  ;;  %v4329_v58 = vmul.f32 0.003921569, %v4009_v49  ;;  %v4330_v59 = vmul.f32 0.003921569, %v4010_v50  ;;  %v4013_v61 = vcvt.s32.f32 %v3693_v53  ;;  %v6128_v33 = vld [vmem:[%s6669_s4 + $0xc8] sm:$0xff]  ;;  %v6129_v35 = vld [vmem:[%s6669_s4 + $0xd0] sm:$0xff] }
 0x2fd   : > { %v4331_v60 = vmul.f32 0.003921569, %v4011_v51  ;;  %5397 = vst [vmem:[%s6693_s25 + $0x1440] sm:$0xff] %v4326_v54  ;;  %5398 = vst [vmem:[%s6693_s25 + $0x1448] sm:$0xff] %v4327_v55  ;;  %v3694_v0 = vand.u32 255, %v6119_v63  ;;  %v3695_v2 = vand.u32 255, %v6120_v1 }
 0x2fe   : > { %5399 = vst [vmem:[%s6693_s25 + $0x1450] sm:$0xff] %v4328_v56  ;;  %v4332_v62 = vmul.f32 0.003921569, %v4012_v57  ;;  %v3696_v4 = vand.u32 255, %v6121_v3  ;;  %5400 = vst [vmem:[%s6693_s25 + $0x1458] sm:$0xff] %v4329_v58  ;;  %v3697_v7 = vand.u32 255, %v6122_v6 }
 0x2ff   : > { %5401 = vst [vmem:[%s6693_s25 + $0x1460] sm:$0xff] %v4330_v59  ;;  %5402 = vst [vmem:[%s6693_s25 + $0x1468] sm:$0xff] %v4331_v60  ;;  %v4333_v5 = vmul.f32 0.003921569, %v4013_v61  ;;  %v3698_v9 = vand.u32 255, %v6123_v8  ;;  %v3699_v11 = vand.u32 255, %v6124_v10  ;;  %v4014_v12 = vcvt.s32.f32 %v3694_v0 }
 0x300   : > { %5403 = vst [vmem:[%s6693_s25 + $0x1470] sm:$0xff] %v4332_v62  ;;  %v4015_v13 = vcvt.s32.f32 %v3695_v2  ;;  %v4016_v14 = vcvt.s32.f32 %v3696_v4  ;;  %v3700_v16 = vand.u32 255, %v6125_v15  ;;  %v4017_v17 = vcvt.s32.f32 %v3697_v7  ;;  %v6130_v38 = vld [vmem:[%s6669_s4 + $0xd8] sm:$0xff]  ;;  %v6131_v40 = vld [vmem:[%s6669_s4 + $0xe0] sm:$0xff]  ;;  %v6132_v42 = vld [vmem:[%s6669_s4 + $0xe8] sm:$0xff] }
 0x301   : > { %5404 = vst [vmem:[%s6693_s25 + $0x1478] sm:$0xff] %v4333_v5  ;;  %v4018_v18 = vcvt.s32.f32 %v3698_v9  ;;  %v4019_v19 = vcvt.s32.f32 %v3699_v11  ;;  %v3701_v21 = vand.u32 255, %v6126_v20  ;;  %v4334_v22 = vmul.f32 0.003921569, %v4014_v12  ;;  %v6133_v47 = vld [vmem:[%s6669_s4 + $0xf0] sm:$0xff]  ;;  %v6134_v52 = vld [vmem:[%s6669_s4 + $0xf8] sm:$0xff] }
 0x302   : > { %v4335_v23 = vmul.f32 0.003921569, %v4015_v13  ;;  %v4336_v24 = vmul.f32 0.003921569, %v4016_v14  ;;  %v4020_v25 = vcvt.s32.f32 %v3700_v16  ;;  %v4337_v26 = vmul.f32 0.003921569, %v4017_v17 }
 0x303   : > { %v4338_v27 = vmul.f32 0.003921569, %v4018_v18  ;;  %v4339_v28 = vmul.f32 0.003921569, %v4019_v19  ;;  %v4021_v29 = vcvt.s32.f32 %v3701_v21  ;;  %5405 = vst [vmem:[%s6693_s25 + $0x1480] sm:$0xff] %v4334_v22  ;;  %v3702_v32 = vand.u32 255, %v6127_v31 }
 0x304   : > { %5406 = vst [vmem:[%s6693_s25 + $0x1488] sm:$0xff] %v4335_v23  ;;  %5407 = vst [vmem:[%s6693_s25 + $0x1490] sm:$0xff] %v4336_v24  ;;  %v4340_v30 = vmul.f32 0.003921569, %v4020_v25  ;;  %v3703_v34 = vand.u32 255, %v6128_v33  ;;  %v3704_v36 = vand.u32 255, %v6129_v35 }
 0x305   : > { %5408 = vst [vmem:[%s6693_s25 + $0x1498] sm:$0xff] %v4337_v26  ;;  %5409 = vst [vmem:[%s6693_s25 + $0x14a0] sm:$0xff] %v4338_v27  ;;  %v4341_v37 = vmul.f32 0.003921569, %v4021_v29  ;;  %v3705_v39 = vand.u32 255, %v6130_v38  ;;  %v3706_v41 = vand.u32 255, %v6131_v40  ;;  %v4022_v44 = vcvt.s32.f32 %v3702_v32 }
 0x306   : > { %5410 = vst [vmem:[%s6693_s25 + $0x14a8] sm:$0xff] %v4339_v28  ;;  %v3707_v43 = vand.u32 255, %v6132_v42  ;;  %5411 = vst [vmem:[%s6693_s25 + $0x14b0] sm:$0xff] %v4340_v30  ;;  %v4023_v45 = vcvt.s32.f32 %v3703_v34  ;;  %v4024_v46 = vcvt.s32.f32 %v3704_v36  ;;  %v3708_v48 = vand.u32 255, %v6133_v47  ;;  %v6135_v63 = vld [vmem:[%s6669_s4 + $0x100] sm:$0xff]  ;;  %v6136_v1 = vld [vmem:[%s6669_s4 + $0x108] sm:$0xff] }
 0x307   : > { %5412 = vst [vmem:[%s6693_s25 + $0x14b8] sm:$0xff] %v4341_v37  ;;  %v4025_v49 = vcvt.s32.f32 %v3705_v39  ;;  %v4026_v50 = vcvt.s32.f32 %v3706_v41  ;;  %v3709_v53 = vand.u32 255, %v6134_v52  ;;  %v4342_v54 = vmul.f32 0.003921569, %v4022_v44  ;;  %v6137_v3 = vld [vmem:[%s6669_s4 + $0x110] sm:$0xff]  ;;  %v6138_v6 = vld [vmem:[%s6669_s4 + $0x118] sm:$0xff] }
 0x308   : > { %v4027_v51 = vcvt.s32.f32 %v3707_v43  ;;  %v4343_v55 = vmul.f32 0.003921569, %v4023_v45  ;;  %v4344_v56 = vmul.f32 0.003921569, %v4024_v46  ;;  %v4028_v57 = vcvt.s32.f32 %v3708_v48  ;;  %v6139_v8 = vld [vmem:[%s6669_s4 + $0x120] sm:$0xff]  ;;  %v6140_v10 = vld [vmem:[%s6669_s4 + $0x128] sm:$0xff] }
 0x309   : > { %v4345_v58 = vmul.f32 0.003921569, %v4025_v49  ;;  %v4346_v59 = vmul.f32 0.003921569, %v4026_v50  ;;  %v4029_v61 = vcvt.s32.f32 %v3709_v53  ;;  %5413 = vst [vmem:[%s6693_s25 + $0x14c0] sm:$0xff] %v4342_v54  ;;  %v3710_v0 = vand.u32 255, %v6135_v63 }
 0x30a   : > { %v4347_v60 = vmul.f32 0.003921569, %v4027_v51  ;;  %5414 = vst [vmem:[%s6693_s25 + $0x14c8] sm:$0xff] %v4343_v55  ;;  %5415 = vst [vmem:[%s6693_s25 + $0x14d0] sm:$0xff] %v4344_v56  ;;  %v4348_v62 = vmul.f32 0.003921569, %v4028_v57 }
 0x30b   : > { %v3711_v2 = vand.u32 255, %v6136_v1  ;;  %v3712_v4 = vand.u32 255, %v6137_v3  ;;  %5416 = vst [vmem:[%s6693_s25 + $0x14d8] sm:$0xff] %v4345_v58  ;;  %5417 = vst [vmem:[%s6693_s25 + $0x14e0] sm:$0xff] %v4346_v59  ;;  %v4349_v5 = vmul.f32 0.003921569, %v4029_v61  ;;  %v4030_v12 = vcvt.s32.f32 %v3710_v0 }
 0x30c   : > { %5418 = vst [vmem:[%s6693_s25 + $0x14e8] sm:$0xff] %v4347_v60  ;;  %v3713_v7 = vand.u32 255, %v6138_v6  ;;  %v3714_v9 = vand.u32 255, %v6139_v8  ;;  %v3715_v11 = vand.u32 255, %v6140_v10  ;;  %5419 = vst [vmem:[%s6693_s25 + $0x14f0] sm:$0xff] %v4348_v62  ;;  %v6141_v15 = vld [vmem:[%s6669_s4 + $0x130] sm:$0xff] }
 0x30d   : > { %v4031_v13 = vcvt.s32.f32 %v3711_v2  ;;  %v4032_v14 = vcvt.s32.f32 %v3712_v4  ;;  %v3716_v16 = vand.u32 255, %v6141_v15  ;;  %5420 = vst [vmem:[%s6693_s25 + $0x14f8] sm:$0xff] %v4349_v5  ;;  %v6142_v20 = vld [vmem:[%s6669_s4 + $0x138] sm:$0xff]  ;;  %v4350_v22 = vmul.f32 0.003921569, %v4030_v12  ;;  %v6143_v31 = vld [vmem:[%s6669_s4 + $0x140] sm:$0xff] }
 0x30e   : > { %v4033_v17 = vcvt.s32.f32 %v3713_v7  ;;  %v4034_v18 = vcvt.s32.f32 %v3714_v9  ;;  %v4035_v19 = vcvt.s32.f32 %v3715_v11  ;;  %v3717_v21 = vand.u32 255, %v6142_v20  ;;  %v6144_v33 = vld [vmem:[%s6669_s4 + $0x148] sm:$0xff]  ;;  %v6145_v35 = vld [vmem:[%s6669_s4 + $0x150] sm:$0xff]  ;;  %v6146_v38 = vld [vmem:[%s6669_s4 + $0x158] sm:$0xff] }
 0x30f   : > { %v4351_v23 = vmul.f32 0.003921569, %v4031_v13  ;;  %v4352_v24 = vmul.f32 0.003921569, %v4032_v14  ;;  %v4036_v25 = vcvt.s32.f32 %v3716_v16  ;;  %5421 = vst [vmem:[%s6693_s25 + $0x1500] sm:$0xff] %v4350_v22  ;;  %v3718_v32 = vand.u32 255, %v6143_v31 }
 0x310   : > { %v4353_v26 = vmul.f32 0.003921569, %v4033_v17  ;;  %v4354_v27 = vmul.f32 0.003921569, %v4034_v18  ;;  %v4355_v28 = vmul.f32 0.003921569, %v4035_v19  ;;  %v4037_v29 = vcvt.s32.f32 %v3717_v21 }
 0x311   : > { %5422 = vst [vmem:[%s6693_s25 + $0x1508] sm:$0xff] %v4351_v23  ;;  %5423 = vst [vmem:[%s6693_s25 + $0x1510] sm:$0xff] %v4352_v24  ;;  %v4356_v30 = vmul.f32 0.003921569, %v4036_v25  ;;  %v3719_v34 = vand.u32 255, %v6144_v33  ;;  %v3720_v36 = vand.u32 255, %v6145_v35  ;;  %v4038_v44 = vcvt.s32.f32 %v3718_v32 }
 0x312   : > { %5424 = vst [vmem:[%s6693_s25 + $0x1518] sm:$0xff] %v4353_v26  ;;  %5425 = vst [vmem:[%s6693_s25 + $0x1520] sm:$0xff] %v4354_v27  ;;  %v4357_v37 = vmul.f32 0.003921569, %v4037_v29  ;;  %v3721_v39 = vand.u32 255, %v6146_v38  ;;  %v6147_v40 = vld [vmem:[%s6669_s4 + $0x160] sm:$0xff] }
 0x313   : > { %5426 = vst [vmem:[%s6693_s25 + $0x1528] sm:$0xff] %v4355_v28  ;;  %v3722_v41 = vand.u32 255, %v6147_v40  ;;  %v6148_v42 = vld [vmem:[%s6669_s4 + $0x168] sm:$0xff]  ;;  %5427 = vst [vmem:[%s6693_s25 + $0x1530] sm:$0xff] %v4356_v30  ;;  %v4039_v45 = vcvt.s32.f32 %v3719_v34  ;;  %v4040_v46 = vcvt.s32.f32 %v3720_v36  ;;  %v6149_v47 = vld [vmem:[%s6669_s4 + $0x170] sm:$0xff] }
 0x314   : > { %v3723_v43 = vand.u32 255, %v6148_v42  ;;  %v3724_v48 = vand.u32 255, %v6149_v47  ;;  %5428 = vst [vmem:[%s6693_s25 + $0x1538] sm:$0xff] %v4357_v37  ;;  %v4041_v49 = vcvt.s32.f32 %v3721_v39  ;;  %v6150_v52 = vld [vmem:[%s6669_s4 + $0x178] sm:$0xff]  ;;  %v4358_v54 = vmul.f32 0.003921569, %v4038_v44 }
 0x315   : > { %v4042_v50 = vcvt.s32.f32 %v3722_v41  ;;  %v3725_v53 = vand.u32 255, %v6150_v52  ;;  %v4359_v55 = vmul.f32 0.003921569, %v4039_v45  ;;  %v4360_v56 = vmul.f32 0.003921569, %v4040_v46  ;;  %v6151_v63 = vld [vmem:[%s6669_s4 + $0x180] sm:$0xff] }
 0x316   : > { %v4043_v51 = vcvt.s32.f32 %v3723_v43  ;;  %v4044_v57 = vcvt.s32.f32 %v3724_v48  ;;  %v4361_v58 = vmul.f32 0.003921569, %v4041_v49  ;;  %5429 = vst [vmem:[%s6693_s25 + $0x1540] sm:$0xff] %v4358_v54  ;;  %v3726_v0 = vand.u32 255, %v6151_v63  ;;  %v6152_v1 = vld [vmem:[%s6669_s4 + $0x188] sm:$0xff]  ;;  %v6153_v3 = vld [vmem:[%s6669_s4 + $0x190] sm:$0xff] }
 0x317   : > { %v4362_v59 = vmul.f32 0.003921569, %v4042_v50  ;;  %v4045_v61 = vcvt.s32.f32 %v3725_v53  ;;  %5430 = vst [vmem:[%s6693_s25 + $0x1548] sm:$0xff] %v4359_v55  ;;  %5431 = vst [vmem:[%s6693_s25 + $0x1550] sm:$0xff] %v4360_v56  ;;  %v3727_v2 = vand.u32 255, %v6152_v1  ;;  %v3728_v4 = vand.u32 255, %v6153_v3 }
 0x318   : > { %v4363_v60 = vmul.f32 0.003921569, %v4043_v51  ;;  %v4364_v62 = vmul.f32 0.003921569, %v4044_v57  ;;  %5432 = vst [vmem:[%s6693_s25 + $0x1558] sm:$0xff] %v4361_v58  ;;  %v6154_v6 = vld [vmem:[%s6669_s4 + $0x198] sm:$0xff]  ;;  %v4046_v12 = vcvt.s32.f32 %v3726_v0 }
 0x319   : > { %5433 = vst [vmem:[%s6693_s25 + $0x1560] sm:$0xff] %v4362_v59  ;;  %v4365_v5 = vmul.f32 0.003921569, %v4045_v61  ;;  %v3729_v7 = vand.u32 255, %v6154_v6  ;;  %v6155_v8 = vld [vmem:[%s6669_s4 + $0x1a0] sm:$0xff]  ;;  %v6156_v10 = vld [vmem:[%s6669_s4 + $0x1a8] sm:$0xff]  ;;  %v4047_v13 = vcvt.s32.f32 %v3727_v2  ;;  %v4048_v14 = vcvt.s32.f32 %v3728_v4 }
 0x31a   : > { %5434 = vst [vmem:[%s6693_s25 + $0x1568] sm:$0xff] %v4363_v60  ;;  %v3730_v9 = vand.u32 255, %v6155_v8  ;;  %v3731_v11 = vand.u32 255, %v6156_v10  ;;  %5435 = vst [vmem:[%s6693_s25 + $0x1570] sm:$0xff] %v4364_v62  ;;  %v6157_v15 = vld [vmem:[%s6669_s4 + $0x1b0] sm:$0xff]  ;;  %v6158_v20 = vld [vmem:[%s6669_s4 + $0x1b8] sm:$0xff] }
 0x31b   : > { %v3732_v16 = vand.u32 255, %v6157_v15  ;;  %5436 = vst [vmem:[%s6693_s25 + $0x1578] sm:$0xff] %v4365_v5  ;;  %v4049_v17 = vcvt.s32.f32 %v3729_v7  ;;  %v3733_v21 = vand.u32 255, %v6158_v20  ;;  %v4366_v22 = vmul.f32 0.003921569, %v4046_v12  ;;  %v6159_v31 = vld [vmem:[%s6669_s4 + $0x1c0] sm:$0xff] }
 0x31c   : > { %v4050_v18 = vcvt.s32.f32 %v3730_v9  ;;  %v4051_v19 = vcvt.s32.f32 %v3731_v11  ;;  %v4367_v23 = vmul.f32 0.003921569, %v4047_v13  ;;  %v4368_v24 = vmul.f32 0.003921569, %v4048_v14  ;;  %v6160_v33 = vld [vmem:[%s6669_s4 + $0x1c8] sm:$0xff]  ;;  %v6161_v35 = vld [vmem:[%s6669_s4 + $0x1d0] sm:$0xff] }
 0x31d   : > { %v4052_v25 = vcvt.s32.f32 %v3732_v16  ;;  %v4369_v26 = vmul.f32 0.003921569, %v4049_v17  ;;  %v4053_v29 = vcvt.s32.f32 %v3733_v21  ;;  %5437 = vst [vmem:[%s6693_s25 + $0x1580] sm:$0xff] %v4366_v22  ;;  %v3734_v32 = vand.u32 255, %v6159_v31  ;;  %v6162_v38 = vld [vmem:[%s6669_s4 + $0x1d8] sm:$0xff]  ;;  %v6163_v40 = vld [vmem:[%s6669_s4 + $0x1e0] sm:$0xff] }
 0x31e   : > { %v4370_v27 = vmul.f32 0.003921569, %v4050_v18  ;;  %v4371_v28 = vmul.f32 0.003921569, %v4051_v19  ;;  %5438 = vst [vmem:[%s6693_s25 + $0x1588] sm:$0xff] %v4367_v23  ;;  %5439 = vst [vmem:[%s6693_s25 + $0x1590] sm:$0xff] %v4368_v24 }
 0x31f   : > { %v4372_v30 = vmul.f32 0.003921569, %v4052_v25  ;;  %v3735_v34 = vand.u32 255, %v6160_v33  ;;  %v3736_v36 = vand.u32 255, %v6161_v35  ;;  %5440 = vst [vmem:[%s6693_s25 + $0x1598] sm:$0xff] %v4369_v26  ;;  %v3737_v39 = vand.u32 255, %v6162_v38 }
 0x320   : > { %5441 = vst [vmem:[%s6693_s25 + $0x15a0] sm:$0xff] %v4370_v27  ;;  %5442 = vst [vmem:[%s6693_s25 + $0x15a8] sm:$0xff] %v4371_v28  ;;  %v4373_v37 = vmul.f32 0.003921569, %v4053_v29  ;;  %v3738_v41 = vand.u32 255, %v6163_v40  ;;  %v6164_v42 = vld [vmem:[%s6669_s4 + $0x1e8] sm:$0xff]  ;;  %v4054_v44 = vcvt.s32.f32 %v3734_v32 }
 0x321   : > { %v3739_v43 = vand.u32 255, %v6164_v42  ;;  %5443 = vst [vmem:[%s6693_s25 + $0x15b0] sm:$0xff] %v4372_v30  ;;  %v4055_v45 = vcvt.s32.f32 %v3735_v34  ;;  %v4056_v46 = vcvt.s32.f32 %v3736_v36  ;;  %v6165_v47 = vld [vmem:[%s6669_s4 + $0x1f0] sm:$0xff]  ;;  %v4057_v49 = vcvt.s32.f32 %v3737_v39  ;;  %v6166_v52 = vld [vmem:[%s6669_s4 + $0x1f8] sm:$0xff]  ;;  %v6167_v63 = vld [vmem:[%s6669_s4 + $0x200] sm:$0xff] }
 0x322   : > { %v3740_v48 = vand.u32 255, %v6165_v47  ;;  %5444 = vst [vmem:[%s6693_s25 + $0x15b8] sm:$0xff] %v4373_v37  ;;  %v4058_v50 = vcvt.s32.f32 %v3738_v41  ;;  %v3741_v53 = vand.u32 255, %v6166_v52  ;;  %v4374_v54 = vmul.f32 0.003921569, %v4054_v44  ;;  %v6168_v1 = vld [vmem:[%s6669_s4 + $0x208] sm:$0xff] }
 0x323   : > { %v4059_v51 = vcvt.s32.f32 %v3739_v43  ;;  %v4375_v55 = vmul.f32 0.003921569, %v4055_v45  ;;  %v4376_v56 = vmul.f32 0.003921569, %v4056_v46  ;;  %v4377_v58 = vmul.f32 0.003921569, %v4057_v49 }
 0x324   : > { %v4060_v57 = vcvt.s32.f32 %v3740_v48  ;;  %v4378_v59 = vmul.f32 0.003921569, %v4058_v50  ;;  %v4061_v61 = vcvt.s32.f32 %v3741_v53  ;;  %5445 = vst [vmem:[%s6693_s25 + $0x15c0] sm:$0xff] %v4374_v54  ;;  %v3742_v0 = vand.u32 255, %v6167_v63  ;;  %v6169_v3 = vld [vmem:[%s6669_s4 + $0x210] sm:$0xff]  ;;  %v6170_v6 = vld [vmem:[%s6669_s4 + $0x218] sm:$0xff] }
 0x325   : > { %v4379_v60 = vmul.f32 0.003921569, %v4059_v51  ;;  %5446 = vst [vmem:[%s6693_s25 + $0x15c8] sm:$0xff] %v4375_v55  ;;  %5447 = vst [vmem:[%s6693_s25 + $0x15d0] sm:$0xff] %v4376_v56  ;;  %v3743_v2 = vand.u32 255, %v6168_v1  ;;  %v3744_v4 = vand.u32 255, %v6169_v3 }
 0x326   : > { %v4380_v62 = vmul.f32 0.003921569, %v4060_v57  ;;  %5448 = vst [vmem:[%s6693_s25 + $0x15d8] sm:$0xff] %v4377_v58  ;;  %5449 = vst [vmem:[%s6693_s25 + $0x15e0] sm:$0xff] %v4378_v59  ;;  %v4381_v5 = vmul.f32 0.003921569, %v4061_v61  ;;  %v4062_v12 = vcvt.s32.f32 %v3742_v0 }
 0x327   : > { %5450 = vst [vmem:[%s6693_s25 + $0x15e8] sm:$0xff] %v4379_v60  ;;  %v3745_v7 = vand.u32 255, %v6170_v6  ;;  %v6171_v8 = vld [vmem:[%s6669_s4 + $0x220] sm:$0xff]  ;;  %v6172_v10 = vld [vmem:[%s6669_s4 + $0x228] sm:$0xff]  ;;  %v4063_v13 = vcvt.s32.f32 %v3743_v2  ;;  %v4064_v14 = vcvt.s32.f32 %v3744_v4  ;;  %v6173_v15 = vld [vmem:[%s6669_s4 + $0x230] sm:$0xff] }
 0x328   : > { %v3746_v9 = vand.u32 255, %v6171_v8  ;;  %v3747_v11 = vand.u32 255, %v6172_v10  ;;  %5451 = vst [vmem:[%s6693_s25 + $0x15f0] sm:$0xff] %v4380_v62  ;;  %v3748_v16 = vand.u32 255, %v6173_v15  ;;  %5452 = vst [vmem:[%s6693_s25 + $0x15f8] sm:$0xff] %v4381_v5  ;;  %v6174_v20 = vld [vmem:[%s6669_s4 + $0x238] sm:$0xff] }
 0x329   : > { %v4065_v17 = vcvt.s32.f32 %v3745_v7  ;;  %v3749_v21 = vand.u32 255, %v6174_v20  ;;  %v4382_v22 = vmul.f32 0.003921569, %v4062_v12  ;;  %v4383_v23 = vmul.f32 0.003921569, %v4063_v13  ;;  %v6175_v31 = vld [vmem:[%s6669_s4 + $0x240] sm:$0xff] }
 0x32a   : > { %v4066_v18 = vcvt.s32.f32 %v3746_v9  ;;  %v4067_v19 = vcvt.s32.f32 %v3747_v11  ;;  %v4384_v24 = vmul.f32 0.003921569, %v4064_v14  ;;  %v4068_v25 = vcvt.s32.f32 %v3748_v16  ;;  %v6176_v33 = vld [vmem:[%s6669_s4 + $0x248] sm:$0xff]  ;;  %v6177_v35 = vld [vmem:[%s6669_s4 + $0x250] sm:$0xff]  ;;  %v6178_v38 = vld [vmem:[%s6669_s4 + $0x258] sm:$0xff] }
 0x32b   : > { %v4385_v26 = vmul.f32 0.003921569, %v4065_v17  ;;  %v4069_v29 = vcvt.s32.f32 %v3749_v21  ;;  %5453 = vst [vmem:[%s6693_s25 + $0x1600] sm:$0xff] %v4382_v22  ;;  %5454 = vst [vmem:[%s6693_s25 + $0x1608] sm:$0xff] %v4383_v23  ;;  %v3750_v32 = vand.u32 255, %v6175_v31  ;;  %v3751_v34 = vand.u32 255, %v6176_v33 }
 0x32c   : > { %v4386_v27 = vmul.f32 0.003921569, %v4066_v18  ;;  %v4387_v28 = vmul.f32 0.003921569, %v4067_v19  ;;  %5455 = vst [vmem:[%s6693_s25 + $0x1610] sm:$0xff] %v4384_v24  ;;  %v3752_v36 = vand.u32 255, %v6177_v35 }
 0x32d   : > { %v4388_v30 = vmul.f32 0.003921569, %v4068_v25  ;;  %5456 = vst [vmem:[%s6693_s25 + $0x1618] sm:$0xff] %v4385_v26  ;;  %v4389_v37 = vmul.f32 0.003921569, %v4069_v29  ;;  %v3753_v39 = vand.u32 255, %v6178_v38  ;;  %v4070_v44 = vcvt.s32.f32 %v3750_v32 }
 0x32e   : > { %5457 = vst [vmem:[%s6693_s25 + $0x1620] sm:$0xff] %v4386_v27  ;;  %5458 = vst [vmem:[%s6693_s25 + $0x1628] sm:$0xff] %v4387_v28  ;;  %v6179_v40 = vld [vmem:[%s6669_s4 + $0x260] sm:$0xff]  ;;  %v6180_v42 = vld [vmem:[%s6669_s4 + $0x268] sm:$0xff]  ;;  %v4071_v45 = vcvt.s32.f32 %v3751_v34  ;;  %v4072_v46 = vcvt.s32.f32 %v3752_v36 }
 0x32f   : > { %v3754_v41 = vand.u32 255, %v6179_v40  ;;  %v3755_v43 = vand.u32 255, %v6180_v42  ;;  %5459 = vst [vmem:[%s6693_s25 + $0x1630] sm:$0xff] %v4388_v30  ;;  %v6181_v47 = vld [vmem:[%s6669_s4 + $0x270] sm:$0xff]  ;;  %5460 = vst [vmem:[%s6693_s25 + $0x1638] sm:$0xff] %v4389_v37  ;;  %v4073_v49 = vcvt.s32.f32 %v3753_v39  ;;  %v6182_v52 = vld [vmem:[%s6669_s4 + $0x278] sm:$0xff] }
 0x330   : > { %v3756_v48 = vand.u32 255, %v6181_v47  ;;  %v3757_v53 = vand.u32 255, %v6182_v52  ;;  %v4390_v54 = vmul.f32 0.003921569, %v4070_v44  ;;  %v4391_v55 = vmul.f32 0.003921569, %v4071_v45 }
 0x331   : > { %v4074_v50 = vcvt.s32.f32 %v3754_v41  ;;  %v4075_v51 = vcvt.s32.f32 %v3755_v43  ;;  %v4392_v56 = vmul.f32 0.003921569, %v4072_v46  ;;  %v4393_v58 = vmul.f32 0.003921569, %v4073_v49  ;;  %v6183_v63 = vld [vmem:[%s6669_s4 + $0x280] sm:$0xff]  ;;  %v6184_v1 = vld [vmem:[%s6669_s4 + $0x288] sm:$0xff] }
 0x332   : > { %v4076_v57 = vcvt.s32.f32 %v3756_v48  ;;  %v4077_v61 = vcvt.s32.f32 %v3757_v53  ;;  %5461 = vst [vmem:[%s6693_s25 + $0x1640] sm:$0xff] %v4390_v54  ;;  %5462 = vst [vmem:[%s6693_s25 + $0x1648] sm:$0xff] %v4391_v55  ;;  %v3758_v0 = vand.u32 255, %v6183_v63  ;;  %v3759_v2 = vand.u32 255, %v6184_v1  ;;  %v6185_v3 = vld [vmem:[%s6669_s4 + $0x290] sm:$0xff]  ;;  %v6186_v6 = vld [vmem:[%s6669_s4 + $0x298] sm:$0xff] }
 0x333   : > { %v4394_v59 = vmul.f32 0.003921569, %v4074_v50  ;;  %v4395_v60 = vmul.f32 0.003921569, %v4075_v51  ;;  %5463 = vst [vmem:[%s6693_s25 + $0x1650] sm:$0xff] %v4392_v56  ;;  %v3760_v4 = vand.u32 255, %v6185_v3 }
 0x334   : > { %v4396_v62 = vmul.f32 0.003921569, %v4076_v57  ;;  %5464 = vst [vmem:[%s6693_s25 + $0x1658] sm:$0xff] %v4393_v58  ;;  %v4397_v5 = vmul.f32 0.003921569, %v4077_v61  ;;  %v3761_v7 = vand.u32 255, %v6186_v6  ;;  %v4078_v12 = vcvt.s32.f32 %v3758_v0 }
 0x335   : > { %5465 = vst [vmem:[%s6693_s25 + $0x1660] sm:$0xff] %v4394_v59  ;;  %5466 = vst [vmem:[%s6693_s25 + $0x1668] sm:$0xff] %v4395_v60  ;;  %v6187_v8 = vld [vmem:[%s6669_s4 + $0x2a0] sm:$0xff]  ;;  %v6188_v10 = vld [vmem:[%s6669_s4 + $0x2a8] sm:$0xff]  ;;  %v4079_v13 = vcvt.s32.f32 %v3759_v2  ;;  %v4080_v14 = vcvt.s32.f32 %v3760_v4 }
 0x336   : > { %v3762_v9 = vand.u32 255, %v6187_v8  ;;  %v3763_v11 = vand.u32 255, %v6188_v10  ;;  %5467 = vst [vmem:[%s6693_s25 + $0x1670] sm:$0xff] %v4396_v62  ;;  %v6189_v15 = vld [vmem:[%s6669_s4 + $0x2b0] sm:$0xff]  ;;  %5468 = vst [vmem:[%s6693_s25 + $0x1678] sm:$0xff] %v4397_v5  ;;  %v4081_v17 = vcvt.s32.f32 %v3761_v7  ;;  %v6190_v20 = vld [vmem:[%s6669_s4 + $0x2b8] sm:$0xff] }
 0x337   : > { %v3764_v16 = vand.u32 255, %v6189_v15  ;;  %v3765_v21 = vand.u32 255, %v6190_v20  ;;  %v4398_v22 = vmul.f32 0.003921569, %v4078_v12  ;;  %v4399_v23 = vmul.f32 0.003921569, %v4079_v13 }
 0x338   : > { %v4082_v18 = vcvt.s32.f32 %v3762_v9  ;;  %v4083_v19 = vcvt.s32.f32 %v3763_v11  ;;  %v4400_v24 = vmul.f32 0.003921569, %v4080_v14  ;;  %v4401_v26 = vmul.f32 0.003921569, %v4081_v17  ;;  %v6191_v31 = vld [vmem:[%s6669_s4 + $0x2c0] sm:$0xff]  ;;  %v6192_v33 = vld [vmem:[%s6669_s4 + $0x2c8] sm:$0xff] }
 0x339   : > { %v4084_v25 = vcvt.s32.f32 %v3764_v16  ;;  %v4085_v29 = vcvt.s32.f32 %v3765_v21  ;;  %5469 = vst [vmem:[%s6693_s25 + $0x1680] sm:$0xff] %v4398_v22  ;;  %5470 = vst [vmem:[%s6693_s25 + $0x1688] sm:$0xff] %v4399_v23  ;;  %v3766_v32 = vand.u32 255, %v6191_v31  ;;  %v3767_v34 = vand.u32 255, %v6192_v33  ;;  %v6193_v35 = vld [vmem:[%s6669_s4 + $0x2d0] sm:$0xff]  ;;  %v6194_v38 = vld [vmem:[%s6669_s4 + $0x2d8] sm:$0xff] }
 0x33a   : > { %v4402_v27 = vmul.f32 0.003921569, %v4082_v18  ;;  %v4403_v28 = vmul.f32 0.003921569, %v4083_v19  ;;  %5471 = vst [vmem:[%s6693_s25 + $0x1690] sm:$0xff] %v4400_v24  ;;  %v3768_v36 = vand.u32 255, %v6193_v35 }
 0x33b   : > { %v4404_v30 = vmul.f32 0.003921569, %v4084_v25  ;;  %5472 = vst [vmem:[%s6693_s25 + $0x1698] sm:$0xff] %v4401_v26  ;;  %v4405_v37 = vmul.f32 0.003921569, %v4085_v29  ;;  %v3769_v39 = vand.u32 255, %v6194_v38  ;;  %v4086_v44 = vcvt.s32.f32 %v3766_v32 }
 0x33c   : > { %5473 = vst [vmem:[%s6693_s25 + $0x16a0] sm:$0xff] %v4402_v27  ;;  %5474 = vst [vmem:[%s6693_s25 + $0x16a8] sm:$0xff] %v4403_v28  ;;  %v6195_v40 = vld [vmem:[%s6669_s4 + $0x2e0] sm:$0xff]  ;;  %v6196_v42 = vld [vmem:[%s6669_s4 + $0x2e8] sm:$0xff]  ;;  %v4087_v45 = vcvt.s32.f32 %v3767_v34  ;;  %v4088_v46 = vcvt.s32.f32 %v3768_v36 }
 0x33d   : > { %v3770_v41 = vand.u32 255, %v6195_v40  ;;  %v3771_v43 = vand.u32 255, %v6196_v42  ;;  %5475 = vst [vmem:[%s6693_s25 + $0x16b0] sm:$0xff] %v4404_v30  ;;  %v6197_v47 = vld [vmem:[%s6669_s4 + $0x2f0] sm:$0xff]  ;;  %5476 = vst [vmem:[%s6693_s25 + $0x16b8] sm:$0xff] %v4405_v37  ;;  %v4089_v49 = vcvt.s32.f32 %v3769_v39  ;;  %v6198_v52 = vld [vmem:[%s6669_s4 + $0x2f8] sm:$0xff] }
 0x33e   : > { %v3772_v48 = vand.u32 255, %v6197_v47  ;;  %v3773_v53 = vand.u32 255, %v6198_v52  ;;  %v4406_v54 = vmul.f32 0.003921569, %v4086_v44  ;;  %v4407_v55 = vmul.f32 0.003921569, %v4087_v45 }
 0x33f   : > { %v4090_v50 = vcvt.s32.f32 %v3770_v41  ;;  %v4091_v51 = vcvt.s32.f32 %v3771_v43  ;;  %v4408_v56 = vmul.f32 0.003921569, %v4088_v46  ;;  %v4409_v58 = vmul.f32 0.003921569, %v4089_v49  ;;  %v6199_v63 = vld [vmem:[%s6669_s4 + $0x300] sm:$0xff]  ;;  %v6200_v1 = vld [vmem:[%s6669_s4 + $0x308] sm:$0xff] }
 0x340   : > { %v4092_v57 = vcvt.s32.f32 %v3772_v48  ;;  %v4093_v61 = vcvt.s32.f32 %v3773_v53  ;;  %5477 = vst [vmem:[%s6693_s25 + $0x16c0] sm:$0xff] %v4406_v54  ;;  %5478 = vst [vmem:[%s6693_s25 + $0x16c8] sm:$0xff] %v4407_v55  ;;  %v3774_v0 = vand.u32 255, %v6199_v63  ;;  %v3775_v2 = vand.u32 255, %v6200_v1  ;;  %v6201_v3 = vld [vmem:[%s6669_s4 + $0x310] sm:$0xff]  ;;  %v6202_v6 = vld [vmem:[%s6669_s4 + $0x318] sm:$0xff] }
 0x341   : > { %v4410_v59 = vmul.f32 0.003921569, %v4090_v50  ;;  %v4411_v60 = vmul.f32 0.003921569, %v4091_v51  ;;  %5479 = vst [vmem:[%s6693_s25 + $0x16d0] sm:$0xff] %v4408_v56  ;;  %v3776_v4 = vand.u32 255, %v6201_v3 }
 0x342   : > { %v4412_v62 = vmul.f32 0.003921569, %v4092_v57  ;;  %5480 = vst [vmem:[%s6693_s25 + $0x16d8] sm:$0xff] %v4409_v58  ;;  %v4413_v5 = vmul.f32 0.003921569, %v4093_v61  ;;  %v3777_v7 = vand.u32 255, %v6202_v6  ;;  %v4094_v12 = vcvt.s32.f32 %v3774_v0 }
 0x343   : > { %5481 = vst [vmem:[%s6693_s25 + $0x16e0] sm:$0xff] %v4410_v59  ;;  %5482 = vst [vmem:[%s6693_s25 + $0x16e8] sm:$0xff] %v4411_v60  ;;  %v6203_v8 = vld [vmem:[%s6669_s4 + $0x320] sm:$0xff]  ;;  %v6204_v10 = vld [vmem:[%s6669_s4 + $0x328] sm:$0xff]  ;;  %v4095_v13 = vcvt.s32.f32 %v3775_v2  ;;  %v4096_v14 = vcvt.s32.f32 %v3776_v4 }
 0x344   : > { %v3778_v9 = vand.u32 255, %v6203_v8  ;;  %v3779_v11 = vand.u32 255, %v6204_v10  ;;  %5483 = vst [vmem:[%s6693_s25 + $0x16f0] sm:$0xff] %v4412_v62  ;;  %v6205_v15 = vld [vmem:[%s6669_s4 + $0x330] sm:$0xff]  ;;  %5484 = vst [vmem:[%s6693_s25 + $0x16f8] sm:$0xff] %v4413_v5  ;;  %v4097_v17 = vcvt.s32.f32 %v3777_v7  ;;  %v6206_v20 = vld [vmem:[%s6669_s4 + $0x338] sm:$0xff] }
 0x345   : > { %v3780_v16 = vand.u32 255, %v6205_v15  ;;  %v3781_v21 = vand.u32 255, %v6206_v20  ;;  %v4414_v22 = vmul.f32 0.003921569, %v4094_v12  ;;  %v4415_v23 = vmul.f32 0.003921569, %v4095_v13 }
 0x346   : > { %v4098_v18 = vcvt.s32.f32 %v3778_v9  ;;  %v4099_v19 = vcvt.s32.f32 %v3779_v11  ;;  %v4416_v24 = vmul.f32 0.003921569, %v4096_v14  ;;  %v4417_v26 = vmul.f32 0.003921569, %v4097_v17  ;;  %v6207_v31 = vld [vmem:[%s6669_s4 + $0x340] sm:$0xff]  ;;  %v6208_v33 = vld [vmem:[%s6669_s4 + $0x348] sm:$0xff] }
 0x347   : > { %v4100_v25 = vcvt.s32.f32 %v3780_v16  ;;  %v4101_v29 = vcvt.s32.f32 %v3781_v21  ;;  %5485 = vst [vmem:[%s6693_s25 + $0x1700] sm:$0xff] %v4414_v22  ;;  %5486 = vst [vmem:[%s6693_s25 + $0x1708] sm:$0xff] %v4415_v23  ;;  %v3782_v32 = vand.u32 255, %v6207_v31  ;;  %v3783_v34 = vand.u32 255, %v6208_v33  ;;  %v6209_v35 = vld [vmem:[%s6669_s4 + $0x350] sm:$0xff]  ;;  %v6210_v38 = vld [vmem:[%s6669_s4 + $0x358] sm:$0xff] }
 0x348   : > { %v4418_v27 = vmul.f32 0.003921569, %v4098_v18  ;;  %v4419_v28 = vmul.f32 0.003921569, %v4099_v19  ;;  %5487 = vst [vmem:[%s6693_s25 + $0x1710] sm:$0xff] %v4416_v24  ;;  %v3784_v36 = vand.u32 255, %v6209_v35 }
 0x349   : > { %v4420_v30 = vmul.f32 0.003921569, %v4100_v25  ;;  %5488 = vst [vmem:[%s6693_s25 + $0x1718] sm:$0xff] %v4417_v26  ;;  %v4421_v37 = vmul.f32 0.003921569, %v4101_v29  ;;  %v3785_v39 = vand.u32 255, %v6210_v38  ;;  %v4102_v44 = vcvt.s32.f32 %v3782_v32 }
 0x34a   : > { %5489 = vst [vmem:[%s6693_s25 + $0x1720] sm:$0xff] %v4418_v27  ;;  %5490 = vst [vmem:[%s6693_s25 + $0x1728] sm:$0xff] %v4419_v28  ;;  %v6211_v40 = vld [vmem:[%s6669_s4 + $0x360] sm:$0xff]  ;;  %v6212_v42 = vld [vmem:[%s6669_s4 + $0x368] sm:$0xff]  ;;  %v4103_v45 = vcvt.s32.f32 %v3783_v34  ;;  %v4104_v46 = vcvt.s32.f32 %v3784_v36 }
 0x34b   : > { %v3786_v41 = vand.u32 255, %v6211_v40  ;;  %v3787_v43 = vand.u32 255, %v6212_v42  ;;  %5491 = vst [vmem:[%s6693_s25 + $0x1730] sm:$0xff] %v4420_v30  ;;  %v6213_v47 = vld [vmem:[%s6669_s4 + $0x370] sm:$0xff]  ;;  %5492 = vst [vmem:[%s6693_s25 + $0x1738] sm:$0xff] %v4421_v37  ;;  %v4105_v49 = vcvt.s32.f32 %v3785_v39  ;;  %v6214_v52 = vld [vmem:[%s6669_s4 + $0x378] sm:$0xff] }
 0x34c   : > { %v3788_v48 = vand.u32 255, %v6213_v47  ;;  %v3789_v53 = vand.u32 255, %v6214_v52  ;;  %v4422_v54 = vmul.f32 0.003921569, %v4102_v44  ;;  %v4423_v55 = vmul.f32 0.003921569, %v4103_v45 }
 0x34d   : > { %v4106_v50 = vcvt.s32.f32 %v3786_v41  ;;  %v4107_v51 = vcvt.s32.f32 %v3787_v43  ;;  %v4424_v56 = vmul.f32 0.003921569, %v4104_v46  ;;  %v4425_v58 = vmul.f32 0.003921569, %v4105_v49  ;;  %v6215_v63 = vld [vmem:[%s6669_s4 + $0x380] sm:$0xff]  ;;  %v6216_v1 = vld [vmem:[%s6669_s4 + $0x388] sm:$0xff] }
 0x34e   : > { %v4108_v57 = vcvt.s32.f32 %v3788_v48  ;;  %v4109_v61 = vcvt.s32.f32 %v3789_v53  ;;  %5493 = vst [vmem:[%s6693_s25 + $0x1740] sm:$0xff] %v4422_v54  ;;  %5494 = vst [vmem:[%s6693_s25 + $0x1748] sm:$0xff] %v4423_v55  ;;  %v3790_v0 = vand.u32 255, %v6215_v63  ;;  %v3791_v2 = vand.u32 255, %v6216_v1  ;;  %v6217_v3 = vld [vmem:[%s6669_s4 + $0x390] sm:$0xff]  ;;  %v6218_v6 = vld [vmem:[%s6669_s4 + $0x398] sm:$0xff] }
 0x34f   : > { %v4426_v59 = vmul.f32 0.003921569, %v4106_v50  ;;  %v4427_v60 = vmul.f32 0.003921569, %v4107_v51  ;;  %5495 = vst [vmem:[%s6693_s25 + $0x1750] sm:$0xff] %v4424_v56  ;;  %v3792_v4 = vand.u32 255, %v6217_v3 }
 0x350   : > { %v4428_v62 = vmul.f32 0.003921569, %v4108_v57  ;;  %5496 = vst [vmem:[%s6693_s25 + $0x1758] sm:$0xff] %v4425_v58  ;;  %v4429_v5 = vmul.f32 0.003921569, %v4109_v61  ;;  %v3793_v7 = vand.u32 255, %v6218_v6  ;;  %v4110_v12 = vcvt.s32.f32 %v3790_v0 }
 0x351   : > { %5497 = vst [vmem:[%s6693_s25 + $0x1760] sm:$0xff] %v4426_v59  ;;  %5498 = vst [vmem:[%s6693_s25 + $0x1768] sm:$0xff] %v4427_v60  ;;  %v6219_v8 = vld [vmem:[%s6669_s4 + $0x3a0] sm:$0xff]  ;;  %v6220_v10 = vld [vmem:[%s6669_s4 + $0x3a8] sm:$0xff]  ;;  %v4111_v13 = vcvt.s32.f32 %v3791_v2  ;;  %v4112_v14 = vcvt.s32.f32 %v3792_v4 }
 0x352   : > { %v3794_v9 = vand.u32 255, %v6219_v8  ;;  %v3795_v11 = vand.u32 255, %v6220_v10  ;;  %5499 = vst [vmem:[%s6693_s25 + $0x1770] sm:$0xff] %v4428_v62  ;;  %v6221_v15 = vld [vmem:[%s6669_s4 + $0x3b0] sm:$0xff]  ;;  %5500 = vst [vmem:[%s6693_s25 + $0x1778] sm:$0xff] %v4429_v5  ;;  %v4113_v17 = vcvt.s32.f32 %v3793_v7  ;;  %v6222_v20 = vld [vmem:[%s6669_s4 + $0x3b8] sm:$0xff] }
 0x353   : > { %v3796_v16 = vand.u32 255, %v6221_v15  ;;  %v3797_v21 = vand.u32 255, %v6222_v20  ;;  %v4430_v22 = vmul.f32 0.003921569, %v4110_v12  ;;  %v4431_v23 = vmul.f32 0.003921569, %v4111_v13 }
 0x354   : > { %v4114_v18 = vcvt.s32.f32 %v3794_v9  ;;  %v4115_v19 = vcvt.s32.f32 %v3795_v11  ;;  %v4432_v24 = vmul.f32 0.003921569, %v4112_v14  ;;  %v4433_v26 = vmul.f32 0.003921569, %v4113_v17  ;;  %v6223_v31 = vld [vmem:[%s6669_s4 + $0x3c0] sm:$0xff]  ;;  %v6224_v33 = vld [vmem:[%s6669_s4 + $0x3c8] sm:$0xff] }
 0x355   : > { %v4116_v25 = vcvt.s32.f32 %v3796_v16  ;;  %v4117_v29 = vcvt.s32.f32 %v3797_v21  ;;  %5501 = vst [vmem:[%s6693_s25 + $0x1780] sm:$0xff] %v4430_v22  ;;  %5502 = vst [vmem:[%s6693_s25 + $0x1788] sm:$0xff] %v4431_v23  ;;  %v3798_v32 = vand.u32 255, %v6223_v31  ;;  %v3799_v34 = vand.u32 255, %v6224_v33  ;;  %v6225_v35 = vld [vmem:[%s6669_s4 + $0x3d0] sm:$0xff]  ;;  %v6226_v38 = vld [vmem:[%s6669_s4 + $0x3d8] sm:$0xff] }
 0x356   : > { %v4434_v27 = vmul.f32 0.003921569, %v4114_v18  ;;  %v4435_v28 = vmul.f32 0.003921569, %v4115_v19  ;;  %5503 = vst [vmem:[%s6693_s25 + $0x1790] sm:$0xff] %v4432_v24  ;;  %v3800_v36 = vand.u32 255, %v6225_v35 }
 0x357   : > { %v4436_v30 = vmul.f32 0.003921569, %v4116_v25  ;;  %5504 = vst [vmem:[%s6693_s25 + $0x1798] sm:$0xff] %v4433_v26  ;;  %v4437_v37 = vmul.f32 0.003921569, %v4117_v29  ;;  %v3801_v39 = vand.u32 255, %v6226_v38  ;;  %v4118_v44 = vcvt.s32.f32 %v3798_v32 }
 0x358   : > { %5505 = vst [vmem:[%s6693_s25 + $0x17a0] sm:$0xff] %v4434_v27  ;;  %5506 = vst [vmem:[%s6693_s25 + $0x17a8] sm:$0xff] %v4435_v28  ;;  %v6227_v40 = vld [vmem:[%s6669_s4 + $0x3e0] sm:$0xff]  ;;  %v6228_v42 = vld [vmem:[%s6669_s4 + $0x3e8] sm:$0xff]  ;;  %v4119_v45 = vcvt.s32.f32 %v3799_v34  ;;  %v4120_v46 = vcvt.s32.f32 %v3800_v36 }
 0x359   : > { %v3802_v41 = vand.u32 255, %v6227_v40  ;;  %v3803_v43 = vand.u32 255, %v6228_v42  ;;  %5507 = vst [vmem:[%s6693_s25 + $0x17b0] sm:$0xff] %v4436_v30  ;;  %v6229_v47 = vld [vmem:[%s6669_s4 + $0x3f0] sm:$0xff]  ;;  %5508 = vst [vmem:[%s6693_s25 + $0x17b8] sm:$0xff] %v4437_v37  ;;  %v4121_v49 = vcvt.s32.f32 %v3801_v39  ;;  %v6230_v52 = vld [vmem:[%s6669_s4 + $0x3f8] sm:$0xff] }
 0x35a   : > { %v3804_v48 = vand.u32 255, %v6229_v47  ;;  %v3805_v53 = vand.u32 255, %v6230_v52  ;;  %v4438_v54 = vmul.f32 0.003921569, %v4118_v44  ;;  %v4439_v55 = vmul.f32 0.003921569, %v4119_v45 }
 0x35b   : > { %v4122_v50 = vcvt.s32.f32 %v3802_v41  ;;  %v4123_v51 = vcvt.s32.f32 %v3803_v43  ;;  %v4440_v56 = vmul.f32 0.003921569, %v4120_v46  ;;  %v4441_v58 = vmul.f32 0.003921569, %v4121_v49  ;;  %v6231_v63 = vld [vmem:[%s6669_s4 + $0x400] sm:$0xff]  ;;  %v6232_v1 = vld [vmem:[%s6669_s4 + $0x408] sm:$0xff] }
 0x35c   : > { %v4124_v57 = vcvt.s32.f32 %v3804_v48  ;;  %v4125_v61 = vcvt.s32.f32 %v3805_v53  ;;  %5509 = vst [vmem:[%s6693_s25 + $0x17c0] sm:$0xff] %v4438_v54  ;;  %5510 = vst [vmem:[%s6693_s25 + $0x17c8] sm:$0xff] %v4439_v55  ;;  %v3806_v0 = vand.u32 255, %v6231_v63  ;;  %v3807_v2 = vand.u32 255, %v6232_v1  ;;  %v6233_v3 = vld [vmem:[%s6669_s4 + $0x410] sm:$0xff]  ;;  %v6234_v6 = vld [vmem:[%s6669_s4 + $0x418] sm:$0xff] }
 0x35d   : > { %v4442_v59 = vmul.f32 0.003921569, %v4122_v50  ;;  %v4443_v60 = vmul.f32 0.003921569, %v4123_v51  ;;  %5511 = vst [vmem:[%s6693_s25 + $0x17d0] sm:$0xff] %v4440_v56  ;;  %v3808_v4 = vand.u32 255, %v6233_v3 }
 0x35e   : > { %v4444_v62 = vmul.f32 0.003921569, %v4124_v57  ;;  %5512 = vst [vmem:[%s6693_s25 + $0x17d8] sm:$0xff] %v4441_v58  ;;  %v4445_v5 = vmul.f32 0.003921569, %v4125_v61  ;;  %v3809_v7 = vand.u32 255, %v6234_v6  ;;  %v4126_v12 = vcvt.s32.f32 %v3806_v0 }
 0x35f   : > { %5513 = vst [vmem:[%s6693_s25 + $0x17e0] sm:$0xff] %v4442_v59  ;;  %5514 = vst [vmem:[%s6693_s25 + $0x17e8] sm:$0xff] %v4443_v60  ;;  %v6235_v8 = vld [vmem:[%s6669_s4 + $0x420] sm:$0xff]  ;;  %v6236_v10 = vld [vmem:[%s6669_s4 + $0x428] sm:$0xff]  ;;  %v4127_v13 = vcvt.s32.f32 %v3807_v2  ;;  %v4128_v14 = vcvt.s32.f32 %v3808_v4 }
 0x360   : > { %v3810_v9 = vand.u32 255, %v6235_v8  ;;  %v3811_v11 = vand.u32 255, %v6236_v10  ;;  %5515 = vst [vmem:[%s6693_s25 + $0x17f0] sm:$0xff] %v4444_v62  ;;  %v6237_v15 = vld [vmem:[%s6669_s4 + $0x430] sm:$0xff]  ;;  %5516 = vst [vmem:[%s6693_s25 + $0x17f8] sm:$0xff] %v4445_v5  ;;  %v4129_v17 = vcvt.s32.f32 %v3809_v7  ;;  %v6238_v20 = vld [vmem:[%s6669_s4 + $0x438] sm:$0xff] }
 0x361   : > { %v3812_v16 = vand.u32 255, %v6237_v15  ;;  %v3813_v21 = vand.u32 255, %v6238_v20  ;;  %v4446_v22 = vmul.f32 0.003921569, %v4126_v12  ;;  %v4447_v23 = vmul.f32 0.003921569, %v4127_v13 }
 0x362   : > { %v4130_v18 = vcvt.s32.f32 %v3810_v9  ;;  %v4131_v19 = vcvt.s32.f32 %v3811_v11  ;;  %v4448_v24 = vmul.f32 0.003921569, %v4128_v14  ;;  %v4449_v26 = vmul.f32 0.003921569, %v4129_v17  ;;  %v6239_v31 = vld [vmem:[%s6669_s4 + $0x440] sm:$0xff]  ;;  %v6240_v33 = vld [vmem:[%s6669_s4 + $0x448] sm:$0xff] }
 0x363   : > { %v4132_v25 = vcvt.s32.f32 %v3812_v16  ;;  %v4133_v29 = vcvt.s32.f32 %v3813_v21  ;;  %5517 = vst [vmem:[%s6693_s25 + $0x1800] sm:$0xff] %v4446_v22  ;;  %5518 = vst [vmem:[%s6693_s25 + $0x1808] sm:$0xff] %v4447_v23  ;;  %v3814_v32 = vand.u32 255, %v6239_v31  ;;  %v3815_v34 = vand.u32 255, %v6240_v33  ;;  %v6241_v35 = vld [vmem:[%s6669_s4 + $0x450] sm:$0xff]  ;;  %v6242_v38 = vld [vmem:[%s6669_s4 + $0x458] sm:$0xff] }
 0x364   : > { %v4450_v27 = vmul.f32 0.003921569, %v4130_v18  ;;  %v4451_v28 = vmul.f32 0.003921569, %v4131_v19  ;;  %5519 = vst [vmem:[%s6693_s25 + $0x1810] sm:$0xff] %v4448_v24  ;;  %v3816_v36 = vand.u32 255, %v6241_v35 }
 0x365   : > { %v4452_v30 = vmul.f32 0.003921569, %v4132_v25  ;;  %5520 = vst [vmem:[%s6693_s25 + $0x1818] sm:$0xff] %v4449_v26  ;;  %v4453_v37 = vmul.f32 0.003921569, %v4133_v29  ;;  %v3817_v39 = vand.u32 255, %v6242_v38  ;;  %v4134_v44 = vcvt.s32.f32 %v3814_v32 }
 0x366   : > { %5521 = vst [vmem:[%s6693_s25 + $0x1820] sm:$0xff] %v4450_v27  ;;  %5522 = vst [vmem:[%s6693_s25 + $0x1828] sm:$0xff] %v4451_v28  ;;  %v6243_v40 = vld [vmem:[%s6669_s4 + $0x460] sm:$0xff]  ;;  %v6244_v42 = vld [vmem:[%s6669_s4 + $0x468] sm:$0xff]  ;;  %v4135_v45 = vcvt.s32.f32 %v3815_v34  ;;  %v4136_v46 = vcvt.s32.f32 %v3816_v36 }
 0x367   : > { %v3818_v41 = vand.u32 255, %v6243_v40  ;;  %v3819_v43 = vand.u32 255, %v6244_v42  ;;  %5523 = vst [vmem:[%s6693_s25 + $0x1830] sm:$0xff] %v4452_v30  ;;  %v6245_v47 = vld [vmem:[%s6669_s4 + $0x470] sm:$0xff]  ;;  %5524 = vst [vmem:[%s6693_s25 + $0x1838] sm:$0xff] %v4453_v37  ;;  %v4137_v49 = vcvt.s32.f32 %v3817_v39  ;;  %v6246_v52 = vld [vmem:[%s6669_s4 + $0x478] sm:$0xff] }
 0x368   : > { %v3820_v48 = vand.u32 255, %v6245_v47  ;;  %v3821_v53 = vand.u32 255, %v6246_v52  ;;  %v4454_v54 = vmul.f32 0.003921569, %v4134_v44  ;;  %v4455_v55 = vmul.f32 0.003921569, %v4135_v45 }
 0x369   : > { %v4138_v50 = vcvt.s32.f32 %v3818_v41  ;;  %v4139_v51 = vcvt.s32.f32 %v3819_v43  ;;  %v4456_v56 = vmul.f32 0.003921569, %v4136_v46  ;;  %v4457_v58 = vmul.f32 0.003921569, %v4137_v49  ;;  %v6247_v63 = vld [vmem:[%s6669_s4 + $0x480] sm:$0xff]  ;;  %v6248_v1 = vld [vmem:[%s6669_s4 + $0x488] sm:$0xff] }
 0x36a   : > { %v4140_v57 = vcvt.s32.f32 %v3820_v48  ;;  %v4141_v61 = vcvt.s32.f32 %v3821_v53  ;;  %5525 = vst [vmem:[%s6693_s25 + $0x1840] sm:$0xff] %v4454_v54  ;;  %5526 = vst [vmem:[%s6693_s25 + $0x1848] sm:$0xff] %v4455_v55  ;;  %v3822_v0 = vand.u32 255, %v6247_v63  ;;  %v3823_v2 = vand.u32 255, %v6248_v1  ;;  %v6249_v3 = vld [vmem:[%s6669_s4 + $0x490] sm:$0xff]  ;;  %v6250_v6 = vld [vmem:[%s6669_s4 + $0x498] sm:$0xff] }
 0x36b   : > { %v4458_v59 = vmul.f32 0.003921569, %v4138_v50  ;;  %v4459_v60 = vmul.f32 0.003921569, %v4139_v51  ;;  %5527 = vst [vmem:[%s6693_s25 + $0x1850] sm:$0xff] %v4456_v56  ;;  %v3824_v4 = vand.u32 255, %v6249_v3 }
 0x36c   : > { %v4460_v62 = vmul.f32 0.003921569, %v4140_v57  ;;  %5528 = vst [vmem:[%s6693_s25 + $0x1858] sm:$0xff] %v4457_v58  ;;  %v4461_v5 = vmul.f32 0.003921569, %v4141_v61  ;;  %v3825_v7 = vand.u32 255, %v6250_v6  ;;  %v4142_v12 = vcvt.s32.f32 %v3822_v0 }
 0x36d   : > { %5529 = vst [vmem:[%s6693_s25 + $0x1860] sm:$0xff] %v4458_v59  ;;  %5530 = vst [vmem:[%s6693_s25 + $0x1868] sm:$0xff] %v4459_v60  ;;  %v6251_v8 = vld [vmem:[%s6669_s4 + $0x4a0] sm:$0xff]  ;;  %v6252_v10 = vld [vmem:[%s6669_s4 + $0x4a8] sm:$0xff]  ;;  %v4143_v13 = vcvt.s32.f32 %v3823_v2  ;;  %v4144_v14 = vcvt.s32.f32 %v3824_v4 }
 0x36e   : > { %v3826_v9 = vand.u32 255, %v6251_v8  ;;  %v3827_v11 = vand.u32 255, %v6252_v10  ;;  %5531 = vst [vmem:[%s6693_s25 + $0x1870] sm:$0xff] %v4460_v62  ;;  %v6253_v15 = vld [vmem:[%s6669_s4 + $0x4b0] sm:$0xff]  ;;  %5532 = vst [vmem:[%s6693_s25 + $0x1878] sm:$0xff] %v4461_v5  ;;  %v4145_v17 = vcvt.s32.f32 %v3825_v7  ;;  %v6254_v20 = vld [vmem:[%s6669_s4 + $0x4b8] sm:$0xff] }
 0x36f   : > { %v3828_v16 = vand.u32 255, %v6253_v15  ;;  %v3829_v21 = vand.u32 255, %v6254_v20  ;;  %v4462_v22 = vmul.f32 0.003921569, %v4142_v12  ;;  %v4463_v23 = vmul.f32 0.003921569, %v4143_v13 }
 0x370   : > { %v4146_v18 = vcvt.s32.f32 %v3826_v9  ;;  %v4147_v19 = vcvt.s32.f32 %v3827_v11  ;;  %v4464_v24 = vmul.f32 0.003921569, %v4144_v14  ;;  %v4465_v26 = vmul.f32 0.003921569, %v4145_v17  ;;  %v6255_v31 = vld [vmem:[%s6669_s4 + $0x4c0] sm:$0xff]  ;;  %v6256_v33 = vld [vmem:[%s6669_s4 + $0x4c8] sm:$0xff] }
 0x371   : > { %v4148_v25 = vcvt.s32.f32 %v3828_v16  ;;  %v4149_v29 = vcvt.s32.f32 %v3829_v21  ;;  %5533 = vst [vmem:[%s6693_s25 + $0x1880] sm:$0xff] %v4462_v22  ;;  %5534 = vst [vmem:[%s6693_s25 + $0x1888] sm:$0xff] %v4463_v23  ;;  %v3830_v32 = vand.u32 255, %v6255_v31  ;;  %v3831_v34 = vand.u32 255, %v6256_v33  ;;  %v6257_v35 = vld [vmem:[%s6669_s4 + $0x4d0] sm:$0xff]  ;;  %v6258_v38 = vld [vmem:[%s6669_s4 + $0x4d8] sm:$0xff] }
 0x372   : > { %v4466_v27 = vmul.f32 0.003921569, %v4146_v18  ;;  %v4467_v28 = vmul.f32 0.003921569, %v4147_v19  ;;  %5535 = vst [vmem:[%s6693_s25 + $0x1890] sm:$0xff] %v4464_v24  ;;  %v3832_v36 = vand.u32 255, %v6257_v35 }
 0x373   : > { %v4468_v30 = vmul.f32 0.003921569, %v4148_v25  ;;  %5536 = vst [vmem:[%s6693_s25 + $0x1898] sm:$0xff] %v4465_v26  ;;  %v4469_v37 = vmul.f32 0.003921569, %v4149_v29  ;;  %v3833_v39 = vand.u32 255, %v6258_v38  ;;  %v4150_v44 = vcvt.s32.f32 %v3830_v32 }
 0x374   : > { %5537 = vst [vmem:[%s6693_s25 + $0x18a0] sm:$0xff] %v4466_v27  ;;  %5538 = vst [vmem:[%s6693_s25 + $0x18a8] sm:$0xff] %v4467_v28  ;;  %v6259_v40 = vld [vmem:[%s6669_s4 + $0x4e0] sm:$0xff]  ;;  %v6260_v42 = vld [vmem:[%s6669_s4 + $0x4e8] sm:$0xff]  ;;  %v4151_v45 = vcvt.s32.f32 %v3831_v34  ;;  %v4152_v46 = vcvt.s32.f32 %v3832_v36 }
 0x375   : > { %v3834_v41 = vand.u32 255, %v6259_v40  ;;  %v3835_v43 = vand.u32 255, %v6260_v42  ;;  %5539 = vst [vmem:[%s6693_s25 + $0x18b0] sm:$0xff] %v4468_v30  ;;  %v6261_v47 = vld [vmem:[%s6669_s4 + $0x4f0] sm:$0xff]  ;;  %5540 = vst [vmem:[%s6693_s25 + $0x18b8] sm:$0xff] %v4469_v37  ;;  %v4153_v49 = vcvt.s32.f32 %v3833_v39  ;;  %v6262_v52 = vld [vmem:[%s6669_s4 + $0x4f8] sm:$0xff] }
 0x376   : > { %v3836_v48 = vand.u32 255, %v6261_v47  ;;  %v3837_v53 = vand.u32 255, %v6262_v52  ;;  %v4470_v54 = vmul.f32 0.003921569, %v4150_v44  ;;  %v4471_v55 = vmul.f32 0.003921569, %v4151_v45 }
 0x377   : > { %v4154_v50 = vcvt.s32.f32 %v3834_v41  ;;  %v4155_v51 = vcvt.s32.f32 %v3835_v43  ;;  %v4472_v56 = vmul.f32 0.003921569, %v4152_v46  ;;  %v4473_v58 = vmul.f32 0.003921569, %v4153_v49  ;;  %v6263_v63 = vld [vmem:[%s6669_s4 + $0x500] sm:$0xff]  ;;  %v6264_v1 = vld [vmem:[%s6669_s4 + $0x508] sm:$0xff] }
 0x378   : > { %v4156_v57 = vcvt.s32.f32 %v3836_v48  ;;  %v4157_v61 = vcvt.s32.f32 %v3837_v53  ;;  %5541 = vst [vmem:[%s6693_s25 + $0x18c0] sm:$0xff] %v4470_v54  ;;  %5542 = vst [vmem:[%s6693_s25 + $0x18c8] sm:$0xff] %v4471_v55  ;;  %v3838_v0 = vand.u32 255, %v6263_v63  ;;  %v3839_v2 = vand.u32 255, %v6264_v1  ;;  %v6265_v3 = vld [vmem:[%s6669_s4 + $0x510] sm:$0xff]  ;;  %v6266_v6 = vld [vmem:[%s6669_s4 + $0x518] sm:$0xff] }
 0x379   : > { %v4474_v59 = vmul.f32 0.003921569, %v4154_v50  ;;  %v4475_v60 = vmul.f32 0.003921569, %v4155_v51  ;;  %5543 = vst [vmem:[%s6693_s25 + $0x18d0] sm:$0xff] %v4472_v56  ;;  %v3840_v4 = vand.u32 255, %v6265_v3 }
 0x37a   : > { %v4476_v62 = vmul.f32 0.003921569, %v4156_v57  ;;  %5544 = vst [vmem:[%s6693_s25 + $0x18d8] sm:$0xff] %v4473_v58  ;;  %v4477_v5 = vmul.f32 0.003921569, %v4157_v61  ;;  %v3841_v7 = vand.u32 255, %v6266_v6  ;;  %v4158_v12 = vcvt.s32.f32 %v3838_v0 }
 0x37b   : > { %5545 = vst [vmem:[%s6693_s25 + $0x18e0] sm:$0xff] %v4474_v59  ;;  %5546 = vst [vmem:[%s6693_s25 + $0x18e8] sm:$0xff] %v4475_v60  ;;  %v6267_v8 = vld [vmem:[%s6669_s4 + $0x520] sm:$0xff]  ;;  %v6268_v10 = vld [vmem:[%s6669_s4 + $0x528] sm:$0xff]  ;;  %v4159_v13 = vcvt.s32.f32 %v3839_v2  ;;  %v4160_v14 = vcvt.s32.f32 %v3840_v4 }
 0x37c   : > { %v3842_v9 = vand.u32 255, %v6267_v8  ;;  %v3843_v11 = vand.u32 255, %v6268_v10  ;;  %5547 = vst [vmem:[%s6693_s25 + $0x18f0] sm:$0xff] %v4476_v62  ;;  %v6269_v15 = vld [vmem:[%s6669_s4 + $0x530] sm:$0xff]  ;;  %5548 = vst [vmem:[%s6693_s25 + $0x18f8] sm:$0xff] %v4477_v5  ;;  %v4161_v17 = vcvt.s32.f32 %v3841_v7  ;;  %v6270_v20 = vld [vmem:[%s6669_s4 + $0x538] sm:$0xff] }
 0x37d   : > { %v3844_v16 = vand.u32 255, %v6269_v15  ;;  %v3845_v21 = vand.u32 255, %v6270_v20  ;;  %v4478_v22 = vmul.f32 0.003921569, %v4158_v12  ;;  %v4479_v23 = vmul.f32 0.003921569, %v4159_v13 }
 0x37e   : > { %v4162_v18 = vcvt.s32.f32 %v3842_v9  ;;  %v4163_v19 = vcvt.s32.f32 %v3843_v11  ;;  %v4480_v24 = vmul.f32 0.003921569, %v4160_v14  ;;  %v4481_v26 = vmul.f32 0.003921569, %v4161_v17  ;;  %v6271_v31 = vld [vmem:[%s6669_s4 + $0x540] sm:$0xff]  ;;  %v6272_v33 = vld [vmem:[%s6669_s4 + $0x548] sm:$0xff] }
 0x37f   : > { %v4164_v25 = vcvt.s32.f32 %v3844_v16  ;;  %v4165_v29 = vcvt.s32.f32 %v3845_v21  ;;  %5549 = vst [vmem:[%s6693_s25 + $0x1900] sm:$0xff] %v4478_v22  ;;  %5550 = vst [vmem:[%s6693_s25 + $0x1908] sm:$0xff] %v4479_v23  ;;  %v3846_v32 = vand.u32 255, %v6271_v31  ;;  %v3847_v34 = vand.u32 255, %v6272_v33  ;;  %v6273_v35 = vld [vmem:[%s6669_s4 + $0x550] sm:$0xff]  ;;  %v6274_v38 = vld [vmem:[%s6669_s4 + $0x558] sm:$0xff] }
 0x380   : > { %v4482_v27 = vmul.f32 0.003921569, %v4162_v18  ;;  %v4483_v28 = vmul.f32 0.003921569, %v4163_v19  ;;  %5551 = vst [vmem:[%s6693_s25 + $0x1910] sm:$0xff] %v4480_v24  ;;  %v3848_v36 = vand.u32 255, %v6273_v35 }
 0x381   : > { %v4484_v30 = vmul.f32 0.003921569, %v4164_v25  ;;  %5552 = vst [vmem:[%s6693_s25 + $0x1918] sm:$0xff] %v4481_v26  ;;  %v4485_v37 = vmul.f32 0.003921569, %v4165_v29  ;;  %v3849_v39 = vand.u32 255, %v6274_v38  ;;  %v4166_v44 = vcvt.s32.f32 %v3846_v32 }
 0x382   : > { %5553 = vst [vmem:[%s6693_s25 + $0x1920] sm:$0xff] %v4482_v27  ;;  %5554 = vst [vmem:[%s6693_s25 + $0x1928] sm:$0xff] %v4483_v28  ;;  %v6275_v40 = vld [vmem:[%s6669_s4 + $0x560] sm:$0xff]  ;;  %v6276_v42 = vld [vmem:[%s6669_s4 + $0x568] sm:$0xff]  ;;  %v4167_v45 = vcvt.s32.f32 %v3847_v34  ;;  %v4168_v46 = vcvt.s32.f32 %v3848_v36 }
 0x383   : > { %v3850_v41 = vand.u32 255, %v6275_v40  ;;  %v3851_v43 = vand.u32 255, %v6276_v42  ;;  %5555 = vst [vmem:[%s6693_s25 + $0x1930] sm:$0xff] %v4484_v30  ;;  %v6277_v47 = vld [vmem:[%s6669_s4 + $0x570] sm:$0xff]  ;;  %5556 = vst [vmem:[%s6693_s25 + $0x1938] sm:$0xff] %v4485_v37  ;;  %v4169_v49 = vcvt.s32.f32 %v3849_v39  ;;  %v6278_v52 = vld [vmem:[%s6669_s4 + $0x578] sm:$0xff] }
 0x384   : > { %v3852_v48 = vand.u32 255, %v6277_v47  ;;  %v3853_v53 = vand.u32 255, %v6278_v52  ;;  %v4486_v54 = vmul.f32 0.003921569, %v4166_v44  ;;  %v4487_v55 = vmul.f32 0.003921569, %v4167_v45 }
 0x385   : > { %v4170_v50 = vcvt.s32.f32 %v3850_v41  ;;  %v4171_v51 = vcvt.s32.f32 %v3851_v43  ;;  %v4488_v56 = vmul.f32 0.003921569, %v4168_v46  ;;  %v4489_v58 = vmul.f32 0.003921569, %v4169_v49  ;;  %v6279_v63 = vld [vmem:[%s6669_s4 + $0x580] sm:$0xff]  ;;  %v6280_v1 = vld [vmem:[%s6669_s4 + $0x588] sm:$0xff] }
 0x386   : > { %v4172_v57 = vcvt.s32.f32 %v3852_v48  ;;  %v4173_v61 = vcvt.s32.f32 %v3853_v53  ;;  %5557 = vst [vmem:[%s6693_s25 + $0x1940] sm:$0xff] %v4486_v54  ;;  %5558 = vst [vmem:[%s6693_s25 + $0x1948] sm:$0xff] %v4487_v55  ;;  %v3854_v0 = vand.u32 255, %v6279_v63  ;;  %v3855_v2 = vand.u32 255, %v6280_v1  ;;  %v6281_v3 = vld [vmem:[%s6669_s4 + $0x590] sm:$0xff]  ;;  %v6282_v6 = vld [vmem:[%s6669_s4 + $0x598] sm:$0xff] }
 0x387   : > { %v4490_v59 = vmul.f32 0.003921569, %v4170_v50  ;;  %v4491_v60 = vmul.f32 0.003921569, %v4171_v51  ;;  %5559 = vst [vmem:[%s6693_s25 + $0x1950] sm:$0xff] %v4488_v56  ;;  %v3856_v4 = vand.u32 255, %v6281_v3 }
 0x388   : > { %v4492_v62 = vmul.f32 0.003921569, %v4172_v57  ;;  %5560 = vst [vmem:[%s6693_s25 + $0x1958] sm:$0xff] %v4489_v58  ;;  %v4493_v5 = vmul.f32 0.003921569, %v4173_v61  ;;  %v3857_v7 = vand.u32 255, %v6282_v6  ;;  %v4174_v12 = vcvt.s32.f32 %v3854_v0 }
 0x389   : > { %5561 = vst [vmem:[%s6693_s25 + $0x1960] sm:$0xff] %v4490_v59  ;;  %5562 = vst [vmem:[%s6693_s25 + $0x1968] sm:$0xff] %v4491_v60  ;;  %v6283_v8 = vld [vmem:[%s6669_s4 + $0x5a0] sm:$0xff]  ;;  %v6284_v10 = vld [vmem:[%s6669_s4 + $0x5a8] sm:$0xff]  ;;  %v4175_v13 = vcvt.s32.f32 %v3855_v2  ;;  %v4176_v14 = vcvt.s32.f32 %v3856_v4 }
 0x38a   : > { %v3858_v9 = vand.u32 255, %v6283_v8  ;;  %v3859_v11 = vand.u32 255, %v6284_v10  ;;  %5563 = vst [vmem:[%s6693_s25 + $0x1970] sm:$0xff] %v4492_v62  ;;  %v6285_v15 = vld [vmem:[%s6669_s4 + $0x5b0] sm:$0xff]  ;;  %5564 = vst [vmem:[%s6693_s25 + $0x1978] sm:$0xff] %v4493_v5  ;;  %v4177_v17 = vcvt.s32.f32 %v3857_v7  ;;  %v6286_v20 = vld [vmem:[%s6669_s4 + $0x5b8] sm:$0xff] }
 0x38b   : > { %v3860_v16 = vand.u32 255, %v6285_v15  ;;  %v3861_v21 = vand.u32 255, %v6286_v20  ;;  %v4494_v22 = vmul.f32 0.003921569, %v4174_v12  ;;  %v4495_v23 = vmul.f32 0.003921569, %v4175_v13 }
 0x38c   : > { %v4178_v18 = vcvt.s32.f32 %v3858_v9  ;;  %v4179_v19 = vcvt.s32.f32 %v3859_v11  ;;  %v4496_v24 = vmul.f32 0.003921569, %v4176_v14  ;;  %v4497_v26 = vmul.f32 0.003921569, %v4177_v17  ;;  %v6287_v31 = vld [vmem:[%s6669_s4 + $0x5c0] sm:$0xff]  ;;  %v6288_v33 = vld [vmem:[%s6669_s4 + $0x5c8] sm:$0xff] }
 0x38d   : > { %v4180_v25 = vcvt.s32.f32 %v3860_v16  ;;  %v4181_v29 = vcvt.s32.f32 %v3861_v21  ;;  %5565 = vst [vmem:[%s6693_s25 + $0x1980] sm:$0xff] %v4494_v22  ;;  %5566 = vst [vmem:[%s6693_s25 + $0x1988] sm:$0xff] %v4495_v23  ;;  %v3862_v32 = vand.u32 255, %v6287_v31  ;;  %v3863_v34 = vand.u32 255, %v6288_v33  ;;  %v6289_v35 = vld [vmem:[%s6669_s4 + $0x5d0] sm:$0xff]  ;;  %v6290_v38 = vld [vmem:[%s6669_s4 + $0x5d8] sm:$0xff] }
 0x38e   : > { %v4498_v27 = vmul.f32 0.003921569, %v4178_v18  ;;  %v4499_v28 = vmul.f32 0.003921569, %v4179_v19  ;;  %5567 = vst [vmem:[%s6693_s25 + $0x1990] sm:$0xff] %v4496_v24  ;;  %v3864_v36 = vand.u32 255, %v6289_v35 }
 0x38f   : > { %v4500_v30 = vmul.f32 0.003921569, %v4180_v25  ;;  %5568 = vst [vmem:[%s6693_s25 + $0x1998] sm:$0xff] %v4497_v26  ;;  %v4501_v37 = vmul.f32 0.003921569, %v4181_v29  ;;  %v3865_v39 = vand.u32 255, %v6290_v38  ;;  %v4182_v44 = vcvt.s32.f32 %v3862_v32 }
 0x390   : > { %5569 = vst [vmem:[%s6693_s25 + $0x19a0] sm:$0xff] %v4498_v27  ;;  %5570 = vst [vmem:[%s6693_s25 + $0x19a8] sm:$0xff] %v4499_v28  ;;  %v6291_v40 = vld [vmem:[%s6669_s4 + $0x5e0] sm:$0xff]  ;;  %v6292_v42 = vld [vmem:[%s6669_s4 + $0x5e8] sm:$0xff]  ;;  %v4183_v45 = vcvt.s32.f32 %v3863_v34  ;;  %v4184_v46 = vcvt.s32.f32 %v3864_v36 }
 0x391   : > { %v3866_v41 = vand.u32 255, %v6291_v40  ;;  %v3867_v43 = vand.u32 255, %v6292_v42  ;;  %5571 = vst [vmem:[%s6693_s25 + $0x19b0] sm:$0xff] %v4500_v30  ;;  %v6293_v47 = vld [vmem:[%s6669_s4 + $0x5f0] sm:$0xff]  ;;  %5572 = vst [vmem:[%s6693_s25 + $0x19b8] sm:$0xff] %v4501_v37  ;;  %v4185_v49 = vcvt.s32.f32 %v3865_v39  ;;  %v6294_v52 = vld [vmem:[%s6669_s4 + $0x5f8] sm:$0xff] }
 0x392   : > { %v3868_v48 = vand.u32 255, %v6293_v47  ;;  %v3869_v53 = vand.u32 255, %v6294_v52  ;;  %v4502_v54 = vmul.f32 0.003921569, %v4182_v44  ;;  %v4503_v55 = vmul.f32 0.003921569, %v4183_v45 }
 0x393   : > { %v4186_v50 = vcvt.s32.f32 %v3866_v41  ;;  %v4187_v51 = vcvt.s32.f32 %v3867_v43  ;;  %v4504_v56 = vmul.f32 0.003921569, %v4184_v46  ;;  %v4505_v58 = vmul.f32 0.003921569, %v4185_v49  ;;  %v6295_v63 = vld [vmem:[%s6669_s4 + $0x600] sm:$0xff]  ;;  %v6296_v1 = vld [vmem:[%s6669_s4 + $0x608] sm:$0xff] }
 0x394   : > { %v4188_v57 = vcvt.s32.f32 %v3868_v48  ;;  %v4189_v61 = vcvt.s32.f32 %v3869_v53  ;;  %5573 = vst [vmem:[%s6693_s25 + $0x19c0] sm:$0xff] %v4502_v54  ;;  %5574 = vst [vmem:[%s6693_s25 + $0x19c8] sm:$0xff] %v4503_v55  ;;  %v3870_v0 = vand.u32 255, %v6295_v63  ;;  %v3871_v2 = vand.u32 255, %v6296_v1  ;;  %v6297_v3 = vld [vmem:[%s6669_s4 + $0x610] sm:$0xff]  ;;  %v6298_v6 = vld [vmem:[%s6669_s4 + $0x618] sm:$0xff] }
 0x395   : > { %v4506_v59 = vmul.f32 0.003921569, %v4186_v50  ;;  %v4507_v60 = vmul.f32 0.003921569, %v4187_v51  ;;  %5575 = vst [vmem:[%s6693_s25 + $0x19d0] sm:$0xff] %v4504_v56  ;;  %v3872_v4 = vand.u32 255, %v6297_v3 }
 0x396   : > { %v4508_v62 = vmul.f32 0.003921569, %v4188_v57  ;;  %5576 = vst [vmem:[%s6693_s25 + $0x19d8] sm:$0xff] %v4505_v58  ;;  %v4509_v5 = vmul.f32 0.003921569, %v4189_v61  ;;  %v3873_v7 = vand.u32 255, %v6298_v6  ;;  %v4190_v12 = vcvt.s32.f32 %v3870_v0 }
 0x397   : > { %5577 = vst [vmem:[%s6693_s25 + $0x19e0] sm:$0xff] %v4506_v59  ;;  %5578 = vst [vmem:[%s6693_s25 + $0x19e8] sm:$0xff] %v4507_v60  ;;  %v6299_v8 = vld [vmem:[%s6669_s4 + $0x620] sm:$0xff]  ;;  %v6300_v10 = vld [vmem:[%s6669_s4 + $0x628] sm:$0xff]  ;;  %v4191_v13 = vcvt.s32.f32 %v3871_v2  ;;  %v4192_v14 = vcvt.s32.f32 %v3872_v4 }
 0x398   : > { %v3874_v9 = vand.u32 255, %v6299_v8  ;;  %v3875_v11 = vand.u32 255, %v6300_v10  ;;  %5579 = vst [vmem:[%s6693_s25 + $0x19f0] sm:$0xff] %v4508_v62  ;;  %v6301_v15 = vld [vmem:[%s6669_s4 + $0x630] sm:$0xff]  ;;  %5580 = vst [vmem:[%s6693_s25 + $0x19f8] sm:$0xff] %v4509_v5  ;;  %v4193_v17 = vcvt.s32.f32 %v3873_v7  ;;  %v6302_v20 = vld [vmem:[%s6669_s4 + $0x638] sm:$0xff] }
 0x399   : > { %v3876_v16 = vand.u32 255, %v6301_v15  ;;  %v3877_v21 = vand.u32 255, %v6302_v20  ;;  %v4510_v22 = vmul.f32 0.003921569, %v4190_v12  ;;  %v4511_v23 = vmul.f32 0.003921569, %v4191_v13 }
 0x39a   : > { %v4194_v18 = vcvt.s32.f32 %v3874_v9  ;;  %v4195_v19 = vcvt.s32.f32 %v3875_v11  ;;  %v4512_v24 = vmul.f32 0.003921569, %v4192_v14  ;;  %v4513_v26 = vmul.f32 0.003921569, %v4193_v17  ;;  %v6303_v31 = vld [vmem:[%s6669_s4 + $0x640] sm:$0xff]  ;;  %v6304_v33 = vld [vmem:[%s6669_s4 + $0x648] sm:$0xff] }
 0x39b   : > { %v4196_v25 = vcvt.s32.f32 %v3876_v16  ;;  %v4197_v29 = vcvt.s32.f32 %v3877_v21  ;;  %5581 = vst [vmem:[%s6693_s25 + $0x1a00] sm:$0xff] %v4510_v22  ;;  %5582 = vst [vmem:[%s6693_s25 + $0x1a08] sm:$0xff] %v4511_v23  ;;  %v3878_v32 = vand.u32 255, %v6303_v31  ;;  %v3879_v34 = vand.u32 255, %v6304_v33  ;;  %v6305_v35 = vld [vmem:[%s6669_s4 + $0x650] sm:$0xff]  ;;  %v6306_v38 = vld [vmem:[%s6669_s4 + $0x658] sm:$0xff] }
 0x39c   : > { %v4514_v27 = vmul.f32 0.003921569, %v4194_v18  ;;  %v4515_v28 = vmul.f32 0.003921569, %v4195_v19  ;;  %5583 = vst [vmem:[%s6693_s25 + $0x1a10] sm:$0xff] %v4512_v24  ;;  %v3880_v36 = vand.u32 255, %v6305_v35 }
 0x39d   : > { %v4516_v30 = vmul.f32 0.003921569, %v4196_v25  ;;  %5584 = vst [vmem:[%s6693_s25 + $0x1a18] sm:$0xff] %v4513_v26  ;;  %v4517_v37 = vmul.f32 0.003921569, %v4197_v29  ;;  %v3881_v39 = vand.u32 255, %v6306_v38  ;;  %v4198_v44 = vcvt.s32.f32 %v3878_v32 }
 0x39e   : > { %5585 = vst [vmem:[%s6693_s25 + $0x1a20] sm:$0xff] %v4514_v27  ;;  %5586 = vst [vmem:[%s6693_s25 + $0x1a28] sm:$0xff] %v4515_v28  ;;  %v6307_v40 = vld [vmem:[%s6669_s4 + $0x660] sm:$0xff]  ;;  %v6308_v42 = vld [vmem:[%s6669_s4 + $0x668] sm:$0xff]  ;;  %v4199_v45 = vcvt.s32.f32 %v3879_v34  ;;  %v4200_v46 = vcvt.s32.f32 %v3880_v36 }
 0x39f   : > { %v3882_v41 = vand.u32 255, %v6307_v40  ;;  %v3883_v43 = vand.u32 255, %v6308_v42  ;;  %5587 = vst [vmem:[%s6693_s25 + $0x1a30] sm:$0xff] %v4516_v30  ;;  %v6309_v47 = vld [vmem:[%s6669_s4 + $0x670] sm:$0xff]  ;;  %5588 = vst [vmem:[%s6693_s25 + $0x1a38] sm:$0xff] %v4517_v37  ;;  %v4201_v49 = vcvt.s32.f32 %v3881_v39  ;;  %v6310_v52 = vld [vmem:[%s6669_s4 + $0x678] sm:$0xff] }
 0x3a0   : > { %v3884_v48 = vand.u32 255, %v6309_v47  ;;  %v3885_v53 = vand.u32 255, %v6310_v52  ;;  %v4518_v54 = vmul.f32 0.003921569, %v4198_v44  ;;  %v4519_v55 = vmul.f32 0.003921569, %v4199_v45 }
 0x3a1   : > { %v4202_v50 = vcvt.s32.f32 %v3882_v41  ;;  %v4203_v51 = vcvt.s32.f32 %v3883_v43  ;;  %v4520_v56 = vmul.f32 0.003921569, %v4200_v46  ;;  %v4521_v58 = vmul.f32 0.003921569, %v4201_v49  ;;  %v6311_v63 = vld [vmem:[%s6669_s4 + $0x680] sm:$0xff]  ;;  %v6312_v1 = vld [vmem:[%s6669_s4 + $0x688] sm:$0xff] }
 0x3a2   : > { %v4204_v57 = vcvt.s32.f32 %v3884_v48  ;;  %v4205_v61 = vcvt.s32.f32 %v3885_v53  ;;  %5589 = vst [vmem:[%s6693_s25 + $0x1a40] sm:$0xff] %v4518_v54  ;;  %5590 = vst [vmem:[%s6693_s25 + $0x1a48] sm:$0xff] %v4519_v55  ;;  %v3886_v0 = vand.u32 255, %v6311_v63  ;;  %v3887_v2 = vand.u32 255, %v6312_v1  ;;  %v6313_v3 = vld [vmem:[%s6669_s4 + $0x690] sm:$0xff]  ;;  %v6314_v6 = vld [vmem:[%s6669_s4 + $0x698] sm:$0xff] }
 0x3a3   : > { %v4522_v59 = vmul.f32 0.003921569, %v4202_v50  ;;  %v4523_v60 = vmul.f32 0.003921569, %v4203_v51  ;;  %5591 = vst [vmem:[%s6693_s25 + $0x1a50] sm:$0xff] %v4520_v56  ;;  %v3888_v4 = vand.u32 255, %v6313_v3 }
 0x3a4   : > { %v4524_v62 = vmul.f32 0.003921569, %v4204_v57  ;;  %5592 = vst [vmem:[%s6693_s25 + $0x1a58] sm:$0xff] %v4521_v58  ;;  %v4525_v5 = vmul.f32 0.003921569, %v4205_v61  ;;  %v3889_v7 = vand.u32 255, %v6314_v6  ;;  %v4206_v12 = vcvt.s32.f32 %v3886_v0 }
 0x3a5   : > { %5593 = vst [vmem:[%s6693_s25 + $0x1a60] sm:$0xff] %v4522_v59  ;;  %5594 = vst [vmem:[%s6693_s25 + $0x1a68] sm:$0xff] %v4523_v60  ;;  %v6315_v8 = vld [vmem:[%s6669_s4 + $0x6a0] sm:$0xff]  ;;  %v6316_v10 = vld [vmem:[%s6669_s4 + $0x6a8] sm:$0xff]  ;;  %v4207_v13 = vcvt.s32.f32 %v3887_v2  ;;  %v4208_v14 = vcvt.s32.f32 %v3888_v4 }
 0x3a6   : > { %v3890_v9 = vand.u32 255, %v6315_v8  ;;  %v3891_v11 = vand.u32 255, %v6316_v10  ;;  %5595 = vst [vmem:[%s6693_s25 + $0x1a70] sm:$0xff] %v4524_v62  ;;  %v6317_v15 = vld [vmem:[%s6669_s4 + $0x6b0] sm:$0xff]  ;;  %5596 = vst [vmem:[%s6693_s25 + $0x1a78] sm:$0xff] %v4525_v5  ;;  %v4209_v17 = vcvt.s32.f32 %v3889_v7  ;;  %v6318_v20 = vld [vmem:[%s6669_s4 + $0x6b8] sm:$0xff] }
 0x3a7   : > { %v3892_v16 = vand.u32 255, %v6317_v15  ;;  %v3893_v21 = vand.u32 255, %v6318_v20  ;;  %v4526_v22 = vmul.f32 0.003921569, %v4206_v12  ;;  %v4527_v23 = vmul.f32 0.003921569, %v4207_v13 }
 0x3a8   : > { %v4210_v18 = vcvt.s32.f32 %v3890_v9  ;;  %v4211_v19 = vcvt.s32.f32 %v3891_v11  ;;  %v4528_v24 = vmul.f32 0.003921569, %v4208_v14  ;;  %v4529_v26 = vmul.f32 0.003921569, %v4209_v17  ;;  %v6319_v31 = vld [vmem:[%s6669_s4 + $0x6c0] sm:$0xff]  ;;  %v6320_v33 = vld [vmem:[%s6669_s4 + $0x6c8] sm:$0xff] }
 0x3a9   : > { %v4212_v25 = vcvt.s32.f32 %v3892_v16  ;;  %v4213_v29 = vcvt.s32.f32 %v3893_v21  ;;  %5597 = vst [vmem:[%s6693_s25 + $0x1a80] sm:$0xff] %v4526_v22  ;;  %5598 = vst [vmem:[%s6693_s25 + $0x1a88] sm:$0xff] %v4527_v23  ;;  %v3894_v32 = vand.u32 255, %v6319_v31  ;;  %v3895_v34 = vand.u32 255, %v6320_v33  ;;  %v6321_v35 = vld [vmem:[%s6669_s4 + $0x6d0] sm:$0xff]  ;;  %v6322_v38 = vld [vmem:[%s6669_s4 + $0x6d8] sm:$0xff] }
 0x3aa   : > { %v4530_v27 = vmul.f32 0.003921569, %v4210_v18  ;;  %v4531_v28 = vmul.f32 0.003921569, %v4211_v19  ;;  %5599 = vst [vmem:[%s6693_s25 + $0x1a90] sm:$0xff] %v4528_v24  ;;  %v3896_v36 = vand.u32 255, %v6321_v35 }
 0x3ab   : > { %v4532_v30 = vmul.f32 0.003921569, %v4212_v25  ;;  %5600 = vst [vmem:[%s6693_s25 + $0x1a98] sm:$0xff] %v4529_v26  ;;  %v4533_v37 = vmul.f32 0.003921569, %v4213_v29  ;;  %v3897_v39 = vand.u32 255, %v6322_v38  ;;  %v4214_v44 = vcvt.s32.f32 %v3894_v32 }
 0x3ac   : > { %5601 = vst [vmem:[%s6693_s25 + $0x1aa0] sm:$0xff] %v4530_v27  ;;  %5602 = vst [vmem:[%s6693_s25 + $0x1aa8] sm:$0xff] %v4531_v28  ;;  %v6323_v40 = vld [vmem:[%s6669_s4 + $0x6e0] sm:$0xff]  ;;  %v6324_v42 = vld [vmem:[%s6669_s4 + $0x6e8] sm:$0xff]  ;;  %v4215_v45 = vcvt.s32.f32 %v3895_v34  ;;  %v4216_v46 = vcvt.s32.f32 %v3896_v36 }
 0x3ad   : > { %v3898_v41 = vand.u32 255, %v6323_v40  ;;  %v3899_v43 = vand.u32 255, %v6324_v42  ;;  %5603 = vst [vmem:[%s6693_s25 + $0x1ab0] sm:$0xff] %v4532_v30  ;;  %v6325_v47 = vld [vmem:[%s6669_s4 + $0x6f0] sm:$0xff]  ;;  %5604 = vst [vmem:[%s6693_s25 + $0x1ab8] sm:$0xff] %v4533_v37  ;;  %v4217_v49 = vcvt.s32.f32 %v3897_v39  ;;  %v6326_v52 = vld [vmem:[%s6669_s4 + $0x6f8] sm:$0xff] }
 0x3ae   : > { %v3900_v48 = vand.u32 255, %v6325_v47  ;;  %v3901_v53 = vand.u32 255, %v6326_v52  ;;  %v4534_v54 = vmul.f32 0.003921569, %v4214_v44  ;;  %v4535_v55 = vmul.f32 0.003921569, %v4215_v45 }
 0x3af   : > { %v4218_v50 = vcvt.s32.f32 %v3898_v41  ;;  %v4219_v51 = vcvt.s32.f32 %v3899_v43  ;;  %v4536_v56 = vmul.f32 0.003921569, %v4216_v46  ;;  %v4537_v58 = vmul.f32 0.003921569, %v4217_v49  ;;  %v6327_v63 = vld [vmem:[%s6669_s4 + $0x700] sm:$0xff]  ;;  %v6328_v1 = vld [vmem:[%s6669_s4 + $0x708] sm:$0xff] }
 0x3b0   : > { %v4220_v57 = vcvt.s32.f32 %v3900_v48  ;;  %v4221_v61 = vcvt.s32.f32 %v3901_v53  ;;  %5605 = vst [vmem:[%s6693_s25 + $0x1ac0] sm:$0xff] %v4534_v54  ;;  %5606 = vst [vmem:[%s6693_s25 + $0x1ac8] sm:$0xff] %v4535_v55  ;;  %v3902_v0 = vand.u32 255, %v6327_v63  ;;  %v3903_v2 = vand.u32 255, %v6328_v1  ;;  %v6329_v3 = vld [vmem:[%s6669_s4 + $0x710] sm:$0xff]  ;;  %v6330_v6 = vld [vmem:[%s6669_s4 + $0x718] sm:$0xff] }
 0x3b1   : > { %v4538_v59 = vmul.f32 0.003921569, %v4218_v50  ;;  %v4539_v60 = vmul.f32 0.003921569, %v4219_v51  ;;  %5607 = vst [vmem:[%s6693_s25 + $0x1ad0] sm:$0xff] %v4536_v56  ;;  %v3904_v4 = vand.u32 255, %v6329_v3 }
 0x3b2   : > { %v4540_v62 = vmul.f32 0.003921569, %v4220_v57  ;;  %5608 = vst [vmem:[%s6693_s25 + $0x1ad8] sm:$0xff] %v4537_v58  ;;  %v4541_v5 = vmul.f32 0.003921569, %v4221_v61  ;;  %v3905_v7 = vand.u32 255, %v6330_v6  ;;  %v4222_v12 = vcvt.s32.f32 %v3902_v0 }
 0x3b3   : > { %5609 = vst [vmem:[%s6693_s25 + $0x1ae0] sm:$0xff] %v4538_v59  ;;  %5610 = vst [vmem:[%s6693_s25 + $0x1ae8] sm:$0xff] %v4539_v60  ;;  %v6331_v8 = vld [vmem:[%s6669_s4 + $0x720] sm:$0xff]  ;;  %v6332_v10 = vld [vmem:[%s6669_s4 + $0x728] sm:$0xff]  ;;  %v4223_v13 = vcvt.s32.f32 %v3903_v2  ;;  %v4224_v14 = vcvt.s32.f32 %v3904_v4 }
 0x3b4   : > { %v3906_v9 = vand.u32 255, %v6331_v8  ;;  %v3907_v11 = vand.u32 255, %v6332_v10  ;;  %5611 = vst [vmem:[%s6693_s25 + $0x1af0] sm:$0xff] %v4540_v62  ;;  %v6333_v15 = vld [vmem:[%s6669_s4 + $0x730] sm:$0xff]  ;;  %5612 = vst [vmem:[%s6693_s25 + $0x1af8] sm:$0xff] %v4541_v5  ;;  %v4225_v17 = vcvt.s32.f32 %v3905_v7  ;;  %v6334_v20 = vld [vmem:[%s6669_s4 + $0x738] sm:$0xff] }
 0x3b5   : > { %v3908_v16 = vand.u32 255, %v6333_v15  ;;  %v3909_v21 = vand.u32 255, %v6334_v20  ;;  %v4542_v22 = vmul.f32 0.003921569, %v4222_v12  ;;  %v4543_v23 = vmul.f32 0.003921569, %v4223_v13 }
 0x3b6   : > { %v4226_v18 = vcvt.s32.f32 %v3906_v9  ;;  %v4227_v19 = vcvt.s32.f32 %v3907_v11  ;;  %v4544_v24 = vmul.f32 0.003921569, %v4224_v14  ;;  %v4545_v26 = vmul.f32 0.003921569, %v4225_v17  ;;  %v6335_v31 = vld [vmem:[%s6669_s4 + $0x740] sm:$0xff]  ;;  %v6336_v33 = vld [vmem:[%s6669_s4 + $0x748] sm:$0xff] }
 0x3b7   : > { %v4228_v25 = vcvt.s32.f32 %v3908_v16  ;;  %v4229_v29 = vcvt.s32.f32 %v3909_v21  ;;  %5613 = vst [vmem:[%s6693_s25 + $0x1b00] sm:$0xff] %v4542_v22  ;;  %5614 = vst [vmem:[%s6693_s25 + $0x1b08] sm:$0xff] %v4543_v23  ;;  %v3910_v32 = vand.u32 255, %v6335_v31  ;;  %v3911_v34 = vand.u32 255, %v6336_v33  ;;  %v6337_v35 = vld [vmem:[%s6669_s4 + $0x750] sm:$0xff]  ;;  %v6338_v38 = vld [vmem:[%s6669_s4 + $0x758] sm:$0xff] }
 0x3b8   : > { %v4546_v27 = vmul.f32 0.003921569, %v4226_v18  ;;  %v4547_v28 = vmul.f32 0.003921569, %v4227_v19  ;;  %5615 = vst [vmem:[%s6693_s25 + $0x1b10] sm:$0xff] %v4544_v24  ;;  %v3912_v36 = vand.u32 255, %v6337_v35 }
 0x3b9   : > { %v4548_v30 = vmul.f32 0.003921569, %v4228_v25  ;;  %5616 = vst [vmem:[%s6693_s25 + $0x1b18] sm:$0xff] %v4545_v26  ;;  %v4549_v37 = vmul.f32 0.003921569, %v4229_v29  ;;  %v3913_v39 = vand.u32 255, %v6338_v38  ;;  %v4230_v44 = vcvt.s32.f32 %v3910_v32 }
 0x3ba   : > { %5617 = vst [vmem:[%s6693_s25 + $0x1b20] sm:$0xff] %v4546_v27  ;;  %5618 = vst [vmem:[%s6693_s25 + $0x1b28] sm:$0xff] %v4547_v28  ;;  %v6339_v40 = vld [vmem:[%s6669_s4 + $0x760] sm:$0xff]  ;;  %v6340_v42 = vld [vmem:[%s6669_s4 + $0x768] sm:$0xff]  ;;  %v4231_v45 = vcvt.s32.f32 %v3911_v34  ;;  %v4232_v46 = vcvt.s32.f32 %v3912_v36 }
 0x3bb   : > { %v3914_v41 = vand.u32 255, %v6339_v40  ;;  %v3915_v43 = vand.u32 255, %v6340_v42  ;;  %5619 = vst [vmem:[%s6693_s25 + $0x1b30] sm:$0xff] %v4548_v30  ;;  %v6341_v47 = vld [vmem:[%s6669_s4 + $0x770] sm:$0xff]  ;;  %5620 = vst [vmem:[%s6693_s25 + $0x1b38] sm:$0xff] %v4549_v37  ;;  %v4233_v49 = vcvt.s32.f32 %v3913_v39  ;;  %v6342_v52 = vld [vmem:[%s6669_s4 + $0x778] sm:$0xff] }
 0x3bc   : > { %v3916_v48 = vand.u32 255, %v6341_v47  ;;  %v3917_v53 = vand.u32 255, %v6342_v52  ;;  %v4550_v54 = vmul.f32 0.003921569, %v4230_v44  ;;  %v4551_v55 = vmul.f32 0.003921569, %v4231_v45 }
 0x3bd   : > { %v4234_v50 = vcvt.s32.f32 %v3914_v41  ;;  %v4235_v51 = vcvt.s32.f32 %v3915_v43  ;;  %v4552_v56 = vmul.f32 0.003921569, %v4232_v46  ;;  %v4553_v58 = vmul.f32 0.003921569, %v4233_v49  ;;  %v6343_v63 = vld [vmem:[%s6669_s4 + $0x780] sm:$0xff]  ;;  %v6344_v1 = vld [vmem:[%s6669_s4 + $0x788] sm:$0xff] }
 0x3be   : > { %v4236_v57 = vcvt.s32.f32 %v3916_v48  ;;  %v4237_v61 = vcvt.s32.f32 %v3917_v53  ;;  %5621 = vst [vmem:[%s6693_s25 + $0x1b40] sm:$0xff] %v4550_v54  ;;  %5622 = vst [vmem:[%s6693_s25 + $0x1b48] sm:$0xff] %v4551_v55  ;;  %v3918_v0 = vand.u32 255, %v6343_v63  ;;  %v3919_v2 = vand.u32 255, %v6344_v1  ;;  %v6345_v3 = vld [vmem:[%s6669_s4 + $0x790] sm:$0xff]  ;;  %v6346_v6 = vld [vmem:[%s6669_s4 + $0x798] sm:$0xff] }
 0x3bf   : > { %v4554_v59 = vmul.f32 0.003921569, %v4234_v50  ;;  %v4555_v60 = vmul.f32 0.003921569, %v4235_v51  ;;  %5623 = vst [vmem:[%s6693_s25 + $0x1b50] sm:$0xff] %v4552_v56  ;;  %v3920_v4 = vand.u32 255, %v6345_v3 }
 0x3c0   : > { %v4556_v62 = vmul.f32 0.003921569, %v4236_v57  ;;  %5624 = vst [vmem:[%s6693_s25 + $0x1b58] sm:$0xff] %v4553_v58  ;;  %v4557_v5 = vmul.f32 0.003921569, %v4237_v61  ;;  %v3921_v7 = vand.u32 255, %v6346_v6  ;;  %v4238_v12 = vcvt.s32.f32 %v3918_v0 }
 0x3c1   : > { %5625 = vst [vmem:[%s6693_s25 + $0x1b60] sm:$0xff] %v4554_v59  ;;  %5626 = vst [vmem:[%s6693_s25 + $0x1b68] sm:$0xff] %v4555_v60  ;;  %v6347_v8 = vld [vmem:[%s6669_s4 + $0x7a0] sm:$0xff]  ;;  %v6348_v10 = vld [vmem:[%s6669_s4 + $0x7a8] sm:$0xff]  ;;  %v4239_v13 = vcvt.s32.f32 %v3919_v2  ;;  %v4240_v14 = vcvt.s32.f32 %v3920_v4 }
 0x3c2   : > { %v3922_v9 = vand.u32 255, %v6347_v8  ;;  %v3923_v11 = vand.u32 255, %v6348_v10  ;;  %5627 = vst [vmem:[%s6693_s25 + $0x1b70] sm:$0xff] %v4556_v62  ;;  %v6349_v15 = vld [vmem:[%s6669_s4 + $0x7b0] sm:$0xff]  ;;  %5628 = vst [vmem:[%s6693_s25 + $0x1b78] sm:$0xff] %v4557_v5  ;;  %v4241_v17 = vcvt.s32.f32 %v3921_v7  ;;  %v6350_v20 = vld [vmem:[%s6669_s4 + $0x7b8] sm:$0xff] }
 0x3c3   : > { %v3924_v16 = vand.u32 255, %v6349_v15  ;;  %v3925_v21 = vand.u32 255, %v6350_v20  ;;  %v4558_v22 = vmul.f32 0.003921569, %v4238_v12  ;;  %v4559_v23 = vmul.f32 0.003921569, %v4239_v13 }
 0x3c4   : > { %v4242_v18 = vcvt.s32.f32 %v3922_v9  ;;  %v4243_v19 = vcvt.s32.f32 %v3923_v11  ;;  %v4560_v24 = vmul.f32 0.003921569, %v4240_v14  ;;  %v4561_v26 = vmul.f32 0.003921569, %v4241_v17  ;;  %v6351_v31 = vld [vmem:[%s6669_s4 + $0x7c0] sm:$0xff]  ;;  %v6352_v33 = vld [vmem:[%s6669_s4 + $0x7c8] sm:$0xff] }
 0x3c5   : > { %v4244_v25 = vcvt.s32.f32 %v3924_v16  ;;  %v4245_v29 = vcvt.s32.f32 %v3925_v21  ;;  %5629 = vst [vmem:[%s6693_s25 + $0x1b80] sm:$0xff] %v4558_v22  ;;  %5630 = vst [vmem:[%s6693_s25 + $0x1b88] sm:$0xff] %v4559_v23  ;;  %v3926_v32 = vand.u32 255, %v6351_v31  ;;  %v3927_v34 = vand.u32 255, %v6352_v33  ;;  %v6353_v35 = vld [vmem:[%s6669_s4 + $0x7d0] sm:$0xff]  ;;  %v6354_v38 = vld [vmem:[%s6669_s4 + $0x7d8] sm:$0xff] }
 0x3c6   : > { %v4562_v27 = vmul.f32 0.003921569, %v4242_v18  ;;  %v4563_v28 = vmul.f32 0.003921569, %v4243_v19  ;;  %5631 = vst [vmem:[%s6693_s25 + $0x1b90] sm:$0xff] %v4560_v24  ;;  %v3928_v36 = vand.u32 255, %v6353_v35 }
 0x3c7   : > { %v4564_v30 = vmul.f32 0.003921569, %v4244_v25  ;;  %5632 = vst [vmem:[%s6693_s25 + $0x1b98] sm:$0xff] %v4561_v26  ;;  %v4565_v37 = vmul.f32 0.003921569, %v4245_v29  ;;  %v3929_v39 = vand.u32 255, %v6354_v38  ;;  %v4246_v44 = vcvt.s32.f32 %v3926_v32 }
 0x3c8   : > { %5633 = vst [vmem:[%s6693_s25 + $0x1ba0] sm:$0xff] %v4562_v27  ;;  %5634 = vst [vmem:[%s6693_s25 + $0x1ba8] sm:$0xff] %v4563_v28  ;;  %v6355_v40 = vld [vmem:[%s6669_s4 + $0x7e0] sm:$0xff]  ;;  %v6356_v42 = vld [vmem:[%s6669_s4 + $0x7e8] sm:$0xff]  ;;  %v4247_v45 = vcvt.s32.f32 %v3927_v34  ;;  %v4248_v46 = vcvt.s32.f32 %v3928_v36 }
 0x3c9   : > { %v3930_v41 = vand.u32 255, %v6355_v40  ;;  %v3931_v43 = vand.u32 255, %v6356_v42  ;;  %5635 = vst [vmem:[%s6693_s25 + $0x1bb0] sm:$0xff] %v4564_v30  ;;  %v6357_v47 = vld [vmem:[%s6669_s4 + $0x7f0] sm:$0xff]  ;;  %5636 = vst [vmem:[%s6693_s25 + $0x1bb8] sm:$0xff] %v4565_v37  ;;  %v4249_v49 = vcvt.s32.f32 %v3929_v39  ;;  %v6358_v52 = vld [vmem:[%s6669_s4 + $0x7f8] sm:$0xff] }
 0x3ca   : > { %v3932_v48 = vand.u32 255, %v6357_v47  ;;  %v3933_v53 = vand.u32 255, %v6358_v52  ;;  %v4566_v54 = vmul.f32 0.003921569, %v4246_v44  ;;  %v4567_v55 = vmul.f32 0.003921569, %v4247_v45 }
 0x3cb   : > { %v4250_v50 = vcvt.s32.f32 %v3930_v41  ;;  %v4251_v51 = vcvt.s32.f32 %v3931_v43  ;;  %v4568_v56 = vmul.f32 0.003921569, %v4248_v46  ;;  %v4569_v58 = vmul.f32 0.003921569, %v4249_v49  ;;  %v6359_v63 = vld [vmem:[%s6669_s4 + $0x800] sm:$0xff]  ;;  %v6360_v1 = vld [vmem:[%s6669_s4 + $0x808] sm:$0xff] }
 0x3cc   : > { %v4252_v57 = vcvt.s32.f32 %v3932_v48  ;;  %v4253_v61 = vcvt.s32.f32 %v3933_v53  ;;  %5637 = vst [vmem:[%s6693_s25 + $0x1bc0] sm:$0xff] %v4566_v54  ;;  %5638 = vst [vmem:[%s6693_s25 + $0x1bc8] sm:$0xff] %v4567_v55  ;;  %v3934_v0 = vand.u32 255, %v6359_v63  ;;  %v3935_v2 = vand.u32 255, %v6360_v1  ;;  %v6361_v3 = vld [vmem:[%s6669_s4 + $0x810] sm:$0xff]  ;;  %v6362_v6 = vld [vmem:[%s6669_s4 + $0x818] sm:$0xff] }
 0x3cd   : > { %v4570_v59 = vmul.f32 0.003921569, %v4250_v50  ;;  %v4571_v60 = vmul.f32 0.003921569, %v4251_v51  ;;  %5639 = vst [vmem:[%s6693_s25 + $0x1bd0] sm:$0xff] %v4568_v56  ;;  %v3936_v4 = vand.u32 255, %v6361_v3 }
 0x3ce   : > { %v4572_v62 = vmul.f32 0.003921569, %v4252_v57  ;;  %5640 = vst [vmem:[%s6693_s25 + $0x1bd8] sm:$0xff] %v4569_v58  ;;  %v4573_v5 = vmul.f32 0.003921569, %v4253_v61  ;;  %v3937_v7 = vand.u32 255, %v6362_v6  ;;  %v4254_v12 = vcvt.s32.f32 %v3934_v0 }
 0x3cf   : > { %5641 = vst [vmem:[%s6693_s25 + $0x1be0] sm:$0xff] %v4570_v59  ;;  %5642 = vst [vmem:[%s6693_s25 + $0x1be8] sm:$0xff] %v4571_v60  ;;  %v6363_v8 = vld [vmem:[%s6669_s4 + $0x820] sm:$0xff]  ;;  %v6364_v10 = vld [vmem:[%s6669_s4 + $0x828] sm:$0xff]  ;;  %v4255_v13 = vcvt.s32.f32 %v3935_v2  ;;  %v4256_v14 = vcvt.s32.f32 %v3936_v4 }
 0x3d0   : > { %v3938_v9 = vand.u32 255, %v6363_v8  ;;  %v3939_v11 = vand.u32 255, %v6364_v10  ;;  %5643 = vst [vmem:[%s6693_s25 + $0x1bf0] sm:$0xff] %v4572_v62  ;;  %v6365_v15 = vld [vmem:[%s6669_s4 + $0x830] sm:$0xff]  ;;  %5644 = vst [vmem:[%s6693_s25 + $0x1bf8] sm:$0xff] %v4573_v5  ;;  %v4257_v17 = vcvt.s32.f32 %v3937_v7  ;;  %v6366_v20 = vld [vmem:[%s6669_s4 + $0x838] sm:$0xff] }
 0x3d1   : > { %v3940_v16 = vand.u32 255, %v6365_v15  ;;  %v3941_v21 = vand.u32 255, %v6366_v20  ;;  %v4574_v22 = vmul.f32 0.003921569, %v4254_v12  ;;  %v4575_v23 = vmul.f32 0.003921569, %v4255_v13 }
 0x3d2   : > { %v4258_v18 = vcvt.s32.f32 %v3938_v9  ;;  %v4259_v19 = vcvt.s32.f32 %v3939_v11  ;;  %v4576_v24 = vmul.f32 0.003921569, %v4256_v14  ;;  %v4577_v26 = vmul.f32 0.003921569, %v4257_v17  ;;  %v6367_v31 = vld [vmem:[%s6669_s4 + $0x840] sm:$0xff]  ;;  %v6368_v33 = vld [vmem:[%s6669_s4 + $0x848] sm:$0xff] }
 0x3d3   : > { %v4260_v25 = vcvt.s32.f32 %v3940_v16  ;;  %v4261_v29 = vcvt.s32.f32 %v3941_v21  ;;  %5645 = vst [vmem:[%s6693_s25 + $0x1c00] sm:$0xff] %v4574_v22  ;;  %5646 = vst [vmem:[%s6693_s25 + $0x1c08] sm:$0xff] %v4575_v23  ;;  %v3942_v32 = vand.u32 255, %v6367_v31  ;;  %v3943_v34 = vand.u32 255, %v6368_v33  ;;  %v6369_v35 = vld [vmem:[%s6669_s4 + $0x850] sm:$0xff]  ;;  %v6370_v38 = vld [vmem:[%s6669_s4 + $0x858] sm:$0xff] }
 0x3d4   : > { %v4578_v27 = vmul.f32 0.003921569, %v4258_v18  ;;  %v4579_v28 = vmul.f32 0.003921569, %v4259_v19  ;;  %5647 = vst [vmem:[%s6693_s25 + $0x1c10] sm:$0xff] %v4576_v24  ;;  %v3944_v36 = vand.u32 255, %v6369_v35 }
 0x3d5   : > { %v4580_v30 = vmul.f32 0.003921569, %v4260_v25  ;;  %5648 = vst [vmem:[%s6693_s25 + $0x1c18] sm:$0xff] %v4577_v26  ;;  %v4581_v37 = vmul.f32 0.003921569, %v4261_v29  ;;  %v3945_v39 = vand.u32 255, %v6370_v38  ;;  %v4262_v44 = vcvt.s32.f32 %v3942_v32 }
 0x3d6   : > { %5649 = vst [vmem:[%s6693_s25 + $0x1c20] sm:$0xff] %v4578_v27  ;;  %5650 = vst [vmem:[%s6693_s25 + $0x1c28] sm:$0xff] %v4579_v28  ;;  %v6371_v40 = vld [vmem:[%s6669_s4 + $0x860] sm:$0xff]  ;;  %v6372_v42 = vld [vmem:[%s6669_s4 + $0x868] sm:$0xff]  ;;  %v4263_v45 = vcvt.s32.f32 %v3943_v34  ;;  %v4264_v46 = vcvt.s32.f32 %v3944_v36 }
 0x3d7   : > { %v3946_v41 = vand.u32 255, %v6371_v40  ;;  %v3947_v43 = vand.u32 255, %v6372_v42  ;;  %5651 = vst [vmem:[%s6693_s25 + $0x1c30] sm:$0xff] %v4580_v30  ;;  %v6373_v47 = vld [vmem:[%s6669_s4 + $0x870] sm:$0xff]  ;;  %5652 = vst [vmem:[%s6693_s25 + $0x1c38] sm:$0xff] %v4581_v37  ;;  %v4265_v49 = vcvt.s32.f32 %v3945_v39  ;;  %v6374_v52 = vld [vmem:[%s6669_s4 + $0x878] sm:$0xff] }
 0x3d8   : > { %v3948_v48 = vand.u32 255, %v6373_v47  ;;  %v3949_v53 = vand.u32 255, %v6374_v52  ;;  %v4582_v54 = vmul.f32 0.003921569, %v4262_v44  ;;  %v4583_v55 = vmul.f32 0.003921569, %v4263_v45 }
 0x3d9   : > { %v4266_v50 = vcvt.s32.f32 %v3946_v41  ;;  %v4267_v51 = vcvt.s32.f32 %v3947_v43  ;;  %v4584_v56 = vmul.f32 0.003921569, %v4264_v46  ;;  %v4585_v58 = vmul.f32 0.003921569, %v4265_v49  ;;  %v6375_v63 = vld [vmem:[%s6669_s4 + $0x880] sm:$0xff]  ;;  %v6376_v1 = vld [vmem:[%s6669_s4 + $0x888] sm:$0xff] }
 0x3da   : > { %v4268_v57 = vcvt.s32.f32 %v3948_v48  ;;  %v4269_v61 = vcvt.s32.f32 %v3949_v53  ;;  %5653 = vst [vmem:[%s6693_s25 + $0x1c40] sm:$0xff] %v4582_v54  ;;  %5654 = vst [vmem:[%s6693_s25 + $0x1c48] sm:$0xff] %v4583_v55  ;;  %v3950_v0 = vand.u32 255, %v6375_v63  ;;  %v3951_v2 = vand.u32 255, %v6376_v1  ;;  %v6377_v3 = vld [vmem:[%s6669_s4 + $0x890] sm:$0xff]  ;;  %v6378_v6 = vld [vmem:[%s6669_s4 + $0x898] sm:$0xff] }
 0x3db   : > { %v4586_v59 = vmul.f32 0.003921569, %v4266_v50  ;;  %v4587_v60 = vmul.f32 0.003921569, %v4267_v51  ;;  %5655 = vst [vmem:[%s6693_s25 + $0x1c50] sm:$0xff] %v4584_v56  ;;  %v3952_v4 = vand.u32 255, %v6377_v3 }
 0x3dc   : > { %v4588_v62 = vmul.f32 0.003921569, %v4268_v57  ;;  %5656 = vst [vmem:[%s6693_s25 + $0x1c58] sm:$0xff] %v4585_v58  ;;  %v4589_v5 = vmul.f32 0.003921569, %v4269_v61  ;;  %v3953_v7 = vand.u32 255, %v6378_v6  ;;  %v4270_v12 = vcvt.s32.f32 %v3950_v0 }
 0x3dd   : > { %5657 = vst [vmem:[%s6693_s25 + $0x1c60] sm:$0xff] %v4586_v59  ;;  %5658 = vst [vmem:[%s6693_s25 + $0x1c68] sm:$0xff] %v4587_v60  ;;  %v6379_v8 = vld [vmem:[%s6669_s4 + $0x8a0] sm:$0xff]  ;;  %v6380_v10 = vld [vmem:[%s6669_s4 + $0x8a8] sm:$0xff]  ;;  %v4271_v13 = vcvt.s32.f32 %v3951_v2  ;;  %v4272_v14 = vcvt.s32.f32 %v3952_v4 }
 0x3de   : > { %v3954_v9 = vand.u32 255, %v6379_v8  ;;  %v3955_v11 = vand.u32 255, %v6380_v10  ;;  %5659 = vst [vmem:[%s6693_s25 + $0x1c70] sm:$0xff] %v4588_v62  ;;  %v6381_v15 = vld [vmem:[%s6669_s4 + $0x8b0] sm:$0xff]  ;;  %5660 = vst [vmem:[%s6693_s25 + $0x1c78] sm:$0xff] %v4589_v5  ;;  %v4273_v17 = vcvt.s32.f32 %v3953_v7  ;;  %v6382_v20 = vld [vmem:[%s6669_s4 + $0x8b8] sm:$0xff] }
 0x3df   : > { %v3956_v16 = vand.u32 255, %v6381_v15  ;;  %v3957_v21 = vand.u32 255, %v6382_v20  ;;  %v4590_v22 = vmul.f32 0.003921569, %v4270_v12  ;;  %v4591_v23 = vmul.f32 0.003921569, %v4271_v13 }
 0x3e0   : > { %v4274_v18 = vcvt.s32.f32 %v3954_v9  ;;  %v4275_v19 = vcvt.s32.f32 %v3955_v11  ;;  %v4592_v24 = vmul.f32 0.003921569, %v4272_v14  ;;  %v4593_v26 = vmul.f32 0.003921569, %v4273_v17  ;;  %v6383_v31 = vld [vmem:[%s6669_s4 + $0x8c0] sm:$0xff]  ;;  %v6384_v33 = vld [vmem:[%s6669_s4 + $0x8c8] sm:$0xff] }
 0x3e1   : > { %v4276_v25 = vcvt.s32.f32 %v3956_v16  ;;  %v4277_v29 = vcvt.s32.f32 %v3957_v21  ;;  %5661 = vst [vmem:[%s6693_s25 + $0x1c80] sm:$0xff] %v4590_v22  ;;  %5662 = vst [vmem:[%s6693_s25 + $0x1c88] sm:$0xff] %v4591_v23  ;;  %v3958_v32 = vand.u32 255, %v6383_v31  ;;  %v3959_v34 = vand.u32 255, %v6384_v33  ;;  %v6385_v35 = vld [vmem:[%s6669_s4 + $0x8d0] sm:$0xff]  ;;  %v6386_v38 = vld [vmem:[%s6669_s4 + $0x8d8] sm:$0xff] }
 0x3e2   : > { %v4594_v27 = vmul.f32 0.003921569, %v4274_v18  ;;  %v4595_v28 = vmul.f32 0.003921569, %v4275_v19  ;;  %5663 = vst [vmem:[%s6693_s25 + $0x1c90] sm:$0xff] %v4592_v24  ;;  %v3960_v36 = vand.u32 255, %v6385_v35 }
 0x3e3   : > { %v4596_v30 = vmul.f32 0.003921569, %v4276_v25  ;;  %5664 = vst [vmem:[%s6693_s25 + $0x1c98] sm:$0xff] %v4593_v26  ;;  %v4597_v37 = vmul.f32 0.003921569, %v4277_v29  ;;  %v3961_v39 = vand.u32 255, %v6386_v38  ;;  %v4278_v44 = vcvt.s32.f32 %v3958_v32 }
 0x3e4   : > { %5665 = vst [vmem:[%s6693_s25 + $0x1ca0] sm:$0xff] %v4594_v27  ;;  %5666 = vst [vmem:[%s6693_s25 + $0x1ca8] sm:$0xff] %v4595_v28  ;;  %v6387_v40 = vld [vmem:[%s6669_s4 + $0x8e0] sm:$0xff]  ;;  %v6388_v42 = vld [vmem:[%s6669_s4 + $0x8e8] sm:$0xff]  ;;  %v4279_v45 = vcvt.s32.f32 %v3959_v34  ;;  %v4280_v46 = vcvt.s32.f32 %v3960_v36 }
 0x3e5   : > { %v3962_v41 = vand.u32 255, %v6387_v40  ;;  %v3963_v43 = vand.u32 255, %v6388_v42  ;;  %5667 = vst [vmem:[%s6693_s25 + $0x1cb0] sm:$0xff] %v4596_v30  ;;  %v6389_v47 = vld [vmem:[%s6669_s4 + $0x8f0] sm:$0xff]  ;;  %5668 = vst [vmem:[%s6693_s25 + $0x1cb8] sm:$0xff] %v4597_v37  ;;  %v4281_v49 = vcvt.s32.f32 %v3961_v39  ;;  %v6390_v52 = vld [vmem:[%s6669_s4 + $0x8f8] sm:$0xff] }
 0x3e6   : > { %v3964_v48 = vand.u32 255, %v6389_v47  ;;  %v3965_v53 = vand.u32 255, %v6390_v52  ;;  %v4598_v54 = vmul.f32 0.003921569, %v4278_v44  ;;  %v4599_v55 = vmul.f32 0.003921569, %v4279_v45 }
 0x3e7   : > { %v4282_v50 = vcvt.s32.f32 %v3962_v41  ;;  %v4283_v51 = vcvt.s32.f32 %v3963_v43  ;;  %v4600_v56 = vmul.f32 0.003921569, %v4280_v46  ;;  %v4601_v58 = vmul.f32 0.003921569, %v4281_v49  ;;  %v6391_v63 = vld [vmem:[%s6669_s4 + $0x900] sm:$0xff]  ;;  %v6392_v1 = vld [vmem:[%s6669_s4 + $0x908] sm:$0xff] }
 0x3e8   : > { %v4284_v57 = vcvt.s32.f32 %v3964_v48  ;;  %v4285_v61 = vcvt.s32.f32 %v3965_v53  ;;  %5669 = vst [vmem:[%s6693_s25 + $0x1cc0] sm:$0xff] %v4598_v54  ;;  %5670 = vst [vmem:[%s6693_s25 + $0x1cc8] sm:$0xff] %v4599_v55  ;;  %v3966_v0 = vand.u32 255, %v6391_v63  ;;  %v3967_v2 = vand.u32 255, %v6392_v1  ;;  %v6393_v3 = vld [vmem:[%s6669_s4 + $0x910] sm:$0xff]  ;;  %v6394_v6 = vld [vmem:[%s6669_s4 + $0x918] sm:$0xff] }
 0x3e9   : > { %v4602_v59 = vmul.f32 0.003921569, %v4282_v50  ;;  %v4603_v60 = vmul.f32 0.003921569, %v4283_v51  ;;  %5671 = vst [vmem:[%s6693_s25 + $0x1cd0] sm:$0xff] %v4600_v56  ;;  %v3968_v4 = vand.u32 255, %v6393_v3 }
 0x3ea   : > { %v4604_v62 = vmul.f32 0.003921569, %v4284_v57  ;;  %5672 = vst [vmem:[%s6693_s25 + $0x1cd8] sm:$0xff] %v4601_v58  ;;  %v4605_v5 = vmul.f32 0.003921569, %v4285_v61  ;;  %v3969_v7 = vand.u32 255, %v6394_v6  ;;  %v4286_v12 = vcvt.s32.f32 %v3966_v0 }
 0x3eb   : > { %5673 = vst [vmem:[%s6693_s25 + $0x1ce0] sm:$0xff] %v4602_v59  ;;  %5674 = vst [vmem:[%s6693_s25 + $0x1ce8] sm:$0xff] %v4603_v60  ;;  %v6395_v8 = vld [vmem:[%s6669_s4 + $0x920] sm:$0xff]  ;;  %v6396_v10 = vld [vmem:[%s6669_s4 + $0x928] sm:$0xff]  ;;  %v4287_v13 = vcvt.s32.f32 %v3967_v2  ;;  %v4288_v14 = vcvt.s32.f32 %v3968_v4 }
 0x3ec   : > { %v3970_v9 = vand.u32 255, %v6395_v8  ;;  %v3971_v11 = vand.u32 255, %v6396_v10  ;;  %5675 = vst [vmem:[%s6693_s25 + $0x1cf0] sm:$0xff] %v4604_v62  ;;  %v6397_v15 = vld [vmem:[%s6669_s4 + $0x930] sm:$0xff]  ;;  %5676 = vst [vmem:[%s6693_s25 + $0x1cf8] sm:$0xff] %v4605_v5  ;;  %v4289_v17 = vcvt.s32.f32 %v3969_v7  ;;  %v6398_v20 = vld [vmem:[%s6669_s4 + $0x938] sm:$0xff] }
 0x3ed   : > { %v3972_v16 = vand.u32 255, %v6397_v15  ;;  %v3973_v21 = vand.u32 255, %v6398_v20  ;;  %v4606_v22 = vmul.f32 0.003921569, %v4286_v12  ;;  %v4607_v23 = vmul.f32 0.003921569, %v4287_v13 }
 0x3ee   : > { %v4290_v18 = vcvt.s32.f32 %v3970_v9  ;;  %v4291_v19 = vcvt.s32.f32 %v3971_v11  ;;  %v4608_v24 = vmul.f32 0.003921569, %v4288_v14  ;;  %v4609_v26 = vmul.f32 0.003921569, %v4289_v17  ;;  %v6399_v31 = vld [vmem:[%s6669_s4 + $0x940] sm:$0xff]  ;;  %v6400_v33 = vld [vmem:[%s6669_s4 + $0x948] sm:$0xff] }
 0x3ef   : > { %v4292_v25 = vcvt.s32.f32 %v3972_v16  ;;  %v4293_v29 = vcvt.s32.f32 %v3973_v21  ;;  %5677 = vst [vmem:[%s6693_s25 + $0x1d00] sm:$0xff] %v4606_v22  ;;  %5678 = vst [vmem:[%s6693_s25 + $0x1d08] sm:$0xff] %v4607_v23  ;;  %v3974_v32 = vand.u32 255, %v6399_v31  ;;  %v3975_v34 = vand.u32 255, %v6400_v33  ;;  %v6401_v35 = vld [vmem:[%s6669_s4 + $0x950] sm:$0xff]  ;;  %v6402_v38 = vld [vmem:[%s6669_s4 + $0x958] sm:$0xff] }
 0x3f0   : > { %v4610_v27 = vmul.f32 0.003921569, %v4290_v18  ;;  %v4611_v28 = vmul.f32 0.003921569, %v4291_v19  ;;  %5679 = vst [vmem:[%s6693_s25 + $0x1d10] sm:$0xff] %v4608_v24  ;;  %v3976_v36 = vand.u32 255, %v6401_v35 }
 0x3f1   : > { %v4612_v30 = vmul.f32 0.003921569, %v4292_v25  ;;  %5680 = vst [vmem:[%s6693_s25 + $0x1d18] sm:$0xff] %v4609_v26  ;;  %v4613_v37 = vmul.f32 0.003921569, %v4293_v29  ;;  %v3977_v39 = vand.u32 255, %v6402_v38  ;;  %v4294_v44 = vcvt.s32.f32 %v3974_v32 }
 0x3f2   : > { %5681 = vst [vmem:[%s6693_s25 + $0x1d20] sm:$0xff] %v4610_v27  ;;  %5682 = vst [vmem:[%s6693_s25 + $0x1d28] sm:$0xff] %v4611_v28  ;;  %v6403_v40 = vld [vmem:[%s6669_s4 + $0x960] sm:$0xff]  ;;  %v6404_v42 = vld [vmem:[%s6669_s4 + $0x968] sm:$0xff]  ;;  %v4295_v45 = vcvt.s32.f32 %v3975_v34  ;;  %v4296_v46 = vcvt.s32.f32 %v3976_v36 }
 0x3f3   : > { %v3978_v41 = vand.u32 255, %v6403_v40  ;;  %v3979_v43 = vand.u32 255, %v6404_v42  ;;  %5683 = vst [vmem:[%s6693_s25 + $0x1d30] sm:$0xff] %v4612_v30  ;;  %v6405_v47 = vld [vmem:[%s6669_s4 + $0x970] sm:$0xff]  ;;  %5684 = vst [vmem:[%s6693_s25 + $0x1d38] sm:$0xff] %v4613_v37  ;;  %v4297_v49 = vcvt.s32.f32 %v3977_v39  ;;  %v6406_v52 = vld [vmem:[%s6669_s4 + $0x978] sm:$0xff] }
 0x3f4   : > { %v3980_v48 = vand.u32 255, %v6405_v47  ;;  %v3981_v53 = vand.u32 255, %v6406_v52  ;;  %v4614_v54 = vmul.f32 0.003921569, %v4294_v44  ;;  %v4615_v55 = vmul.f32 0.003921569, %v4295_v45 }
 0x3f5   : > { %v4298_v50 = vcvt.s32.f32 %v3978_v41  ;;  %v4299_v51 = vcvt.s32.f32 %v3979_v43  ;;  %v4616_v56 = vmul.f32 0.003921569, %v4296_v46  ;;  %v4617_v58 = vmul.f32 0.003921569, %v4297_v49  ;;  %v6407_v63 = vld [vmem:[%s6669_s4 + $0x980] sm:$0xff]  ;;  %v6408_v1 = vld [vmem:[%s6669_s4 + $0x988] sm:$0xff] }
 0x3f6   : > { %v4300_v57 = vcvt.s32.f32 %v3980_v48  ;;  %v4301_v61 = vcvt.s32.f32 %v3981_v53  ;;  %5685 = vst [vmem:[%s6693_s25 + $0x1d40] sm:$0xff] %v4614_v54  ;;  %5686 = vst [vmem:[%s6693_s25 + $0x1d48] sm:$0xff] %v4615_v55  ;;  %v3982_v0 = vand.u32 255, %v6407_v63  ;;  %v3983_v2 = vand.u32 255, %v6408_v1  ;;  %v6409_v3 = vld [vmem:[%s6669_s4 + $0x990] sm:$0xff]  ;;  %v6410_v6 = vld [vmem:[%s6669_s4 + $0x998] sm:$0xff] }
 0x3f7   : > { %v4618_v59 = vmul.f32 0.003921569, %v4298_v50  ;;  %v4619_v60 = vmul.f32 0.003921569, %v4299_v51  ;;  %5687 = vst [vmem:[%s6693_s25 + $0x1d50] sm:$0xff] %v4616_v56  ;;  %v3984_v4 = vand.u32 255, %v6409_v3 }
 0x3f8   : > { %v4620_v62 = vmul.f32 0.003921569, %v4300_v57  ;;  %5688 = vst [vmem:[%s6693_s25 + $0x1d58] sm:$0xff] %v4617_v58  ;;  %v4621_v5 = vmul.f32 0.003921569, %v4301_v61  ;;  %v3985_v7 = vand.u32 255, %v6410_v6  ;;  %v4302_v12 = vcvt.s32.f32 %v3982_v0 }
 0x3f9   : > { %5689 = vst [vmem:[%s6693_s25 + $0x1d60] sm:$0xff] %v4618_v59  ;;  %5690 = vst [vmem:[%s6693_s25 + $0x1d68] sm:$0xff] %v4619_v60  ;;  %v6411_v8 = vld [vmem:[%s6669_s4 + $0x9a0] sm:$0xff]  ;;  %v6412_v10 = vld [vmem:[%s6669_s4 + $0x9a8] sm:$0xff]  ;;  %v4303_v13 = vcvt.s32.f32 %v3983_v2  ;;  %v4304_v14 = vcvt.s32.f32 %v3984_v4 }
 0x3fa   : > { %v3986_v9 = vand.u32 255, %v6411_v8  ;;  %v3987_v11 = vand.u32 255, %v6412_v10  ;;  %5691 = vst [vmem:[%s6693_s25 + $0x1d70] sm:$0xff] %v4620_v62  ;;  %v6413_v15 = vld [vmem:[%s6669_s4 + $0x9b0] sm:$0xff]  ;;  %5692 = vst [vmem:[%s6693_s25 + $0x1d78] sm:$0xff] %v4621_v5  ;;  %v4305_v17 = vcvt.s32.f32 %v3985_v7  ;;  %v6414_v20 = vld [vmem:[%s6669_s4 + $0x9b8] sm:$0xff] }
 0x3fb   : > { %v3988_v16 = vand.u32 255, %v6413_v15  ;;  %v3989_v21 = vand.u32 255, %v6414_v20  ;;  %v4622_v22 = vmul.f32 0.003921569, %v4302_v12  ;;  %v4623_v23 = vmul.f32 0.003921569, %v4303_v13 }
 0x3fc   : > { %v4306_v18 = vcvt.s32.f32 %v3986_v9  ;;  %v4307_v19 = vcvt.s32.f32 %v3987_v11  ;;  %v4624_v24 = vmul.f32 0.003921569, %v4304_v14  ;;  %v4625_v26 = vmul.f32 0.003921569, %v4305_v17  ;;  %v6415_v31 = vld [vmem:[%s6669_s4 + $0x9c0] sm:$0xff]  ;;  %v6416_v33 = vld [vmem:[%s6669_s4 + $0x9c8] sm:$0xff] }
 0x3fd   : > { %v4308_v25 = vcvt.s32.f32 %v3988_v16  ;;  %v4309_v29 = vcvt.s32.f32 %v3989_v21  ;;  %5693 = vst [vmem:[%s6693_s25 + $0x1d80] sm:$0xff] %v4622_v22  ;;  %5694 = vst [vmem:[%s6693_s25 + $0x1d88] sm:$0xff] %v4623_v23  ;;  %v3990_v32 = vand.u32 255, %v6415_v31  ;;  %v3991_v34 = vand.u32 255, %v6416_v33  ;;  %v6417_v35 = vld [vmem:[%s6669_s4 + $0x9d0] sm:$0xff]  ;;  %v6418_v38 = vld [vmem:[%s6669_s4 + $0x9d8] sm:$0xff] }
 0x3fe   : > { %v4626_v27 = vmul.f32 0.003921569, %v4306_v18  ;;  %v4627_v28 = vmul.f32 0.003921569, %v4307_v19  ;;  %5695 = vst [vmem:[%s6693_s25 + $0x1d90] sm:$0xff] %v4624_v24  ;;  %v3992_v36 = vand.u32 255, %v6417_v35 }
 0x3ff   : > { %v4628_v30 = vmul.f32 0.003921569, %v4308_v25  ;;  %5696 = vst [vmem:[%s6693_s25 + $0x1d98] sm:$0xff] %v4625_v26  ;;  %v4629_v37 = vmul.f32 0.003921569, %v4309_v29  ;;  %v3993_v39 = vand.u32 255, %v6418_v38  ;;  %v4310_v44 = vcvt.s32.f32 %v3990_v32 }
 0x400   : > { %5697 = vst [vmem:[%s6693_s25 + $0x1da0] sm:$0xff] %v4626_v27  ;;  %5698 = vst [vmem:[%s6693_s25 + $0x1da8] sm:$0xff] %v4627_v28  ;;  %v6419_v40 = vld [vmem:[%s6669_s4 + $0x9e0] sm:$0xff]  ;;  %v6420_v42 = vld [vmem:[%s6669_s4 + $0x9e8] sm:$0xff]  ;;  %v4311_v45 = vcvt.s32.f32 %v3991_v34  ;;  %v4312_v46 = vcvt.s32.f32 %v3992_v36 }
 0x401   : > { %v3994_v41 = vand.u32 255, %v6419_v40  ;;  %v3995_v43 = vand.u32 255, %v6420_v42  ;;  %5699 = vst [vmem:[%s6693_s25 + $0x1db0] sm:$0xff] %v4628_v30  ;;  %v6421_v47 = vld [vmem:[%s6669_s4 + $0x9f0] sm:$0xff]  ;;  %5700 = vst [vmem:[%s6693_s25 + $0x1db8] sm:$0xff] %v4629_v37  ;;  %v4313_v49 = vcvt.s32.f32 %v3993_v39  ;;  %v6422_v52 = vld [vmem:[%s6669_s4 + $0x9f8] sm:$0xff] }
 0x402   : > { %v3996_v48 = vand.u32 255, %v6421_v47  ;;  %v3997_v53 = vand.u32 255, %v6422_v52  ;;  %v4630_v54 = vmul.f32 0.003921569, %v4310_v44  ;;  %v4631_v55 = vmul.f32 0.003921569, %v4311_v45 }
 0x403   : > { %v4314_v50 = vcvt.s32.f32 %v3994_v41  ;;  %v4315_v51 = vcvt.s32.f32 %v3995_v43  ;;  %v4632_v56 = vmul.f32 0.003921569, %v4312_v46  ;;  %v4633_v58 = vmul.f32 0.003921569, %v4313_v49 }
 0x404   : > { %v4316_v57 = vcvt.s32.f32 %v3996_v48  ;;  %v4317_v61 = vcvt.s32.f32 %v3997_v53  ;;  %5701 = vst [vmem:[%s6693_s25 + $0x1dc0] sm:$0xff] %v4630_v54  ;;  %5702 = vst [vmem:[%s6693_s25 + $0x1dc8] sm:$0xff] %v4631_v55 }
 0x405   : > { %v4634_v59 = vmul.f32 0.003921569, %v4314_v50  ;;  %v4635_v60 = vmul.f32 0.003921569, %v4315_v51  ;;  %5703 = vst [vmem:[%s6693_s25 + $0x1dd0] sm:$0xff] %v4632_v56  ;;  %5704 = vst [vmem:[%s6693_s25 + $0x1dd8] sm:$0xff] %v4633_v58 }
 0x406   : > { %v4636_v62 = vmul.f32 0.003921569, %v4316_v57  ;;  %v4637_v63 = vmul.f32 0.003921569, %v4317_v61 }
 0x407   : > { %5705 = vst [vmem:[%s6693_s25 + $0x1de0] sm:$0xff] %v4634_v59  ;;  %5706 = vst [vmem:[%s6693_s25 + $0x1de8] sm:$0xff] %v4635_v60 }
 0x408   : > { %5707 = vst [vmem:[%s6693_s25 + $0x1df0] sm:$0xff] %v4636_v62  ;;  %5708 = vst [vmem:[%s6693_s25 + $0x1df8] sm:$0xff] %v4637_v63 }
 0x409   : > { %6466 = shalt.err (!%p6463_p4)
}
 0x40a   : > { %s6467_s22 = scalar_lea.hbm %s8600_s5, 122880  ;;  %s6471_s26 = scalar_lea.hbm %s8657_s1, 245760 }
 0x40b   : > { %p6468_p6 = scmp.ne.s32.totalorder %s8600_s5, %s6467_s22  ;;  %p6472_p12 = scmp.lt.u32.totalorder %s8600_s5, %s8657_s1 }
 0x40c   : > { %p6473_p1 = scmp.lt.u32.totalorder %s6471_s26, %s6467_s22  ;;  %p6475_p8 = scmp.lt.u32.totalorder %s6467_s22, %s8600_s5 }
 0x40d   : > { %p6469_p7 = pnand %p6468_p6, %p8665_p9 }
 0x40e   : > { %p6474_p3 = por %p6473_p1, %p6472_p12 }
 0x40f   : > { %p6470_p10 = pneg %p6469_p7 }
 0x410   : > { %p6476_p11 = por %p6475_p8, %p6474_p3 }
 0x412   : > { %p6477_p0 = pnand %p6476_p11, %p6470_p10 }
 0x414   : > { %6480 = shalt.err (!%p6477_p0)
}
 0x415   : > { %s6541_s4 = smov 640   ;;  %s6542_s18 = smov 40  }
 0x416   : > { %5719 = dma.vmem_to_hbm [thread:$0]  (%p8665_p9), %s8602_s30, 122880, %s8600_s5, %s4960_s12, %s6541_s4, %s6541_s4, %s6542_s18  }
 0x417 PF: > { %s4991_s25 = sand.u32 1, %s6515_s6   ;;  %p8666_p5 = scmp.ne.s32.totalorder %s8662_s21, 0 }
 0x418   : > { %p8667_p13 = scmp.ge.s32.totalorder %s6535_s11, 2  ;;  %s4992_s28 = scalar_lea.sflag [#allocation4], %s4991_s25 }
 0x41a   : > { %p5726_p2 = pnand %p8667_p13, %p8666_p5 }
 0x41c   : > { %6510 = dma.done.wait (!%p5726_p2), %s4992_s28, 122880  }
 0x41d   : > { %6512 = vsyncadd (!%p5726_p2), %s4992_s28, 4294844416  ;;  %s17_s11 = sadd.s32 1, %s6535_s11   ;;  %s8668_s6 = smov %s6519_s7 }
 0x41e   : > { %p14_p4 = scmp.ge.s32.totalorder %s17_s11, 4   ;;  %s8669_s7 = smov %s6523_s8 }
 0x41f   : > { %s8670_s8 = smov %s6609_s20  ;;  %s8671_s9 = smov %s6531_s10 }
 0x420   : > { %s8672_s10 = smov %s8674_s14  ;;  %16 = sbr.rel (!%p14_p4) target bundleno = 6 (0x6), region = 71 }
 0x427   :  { %4997 = vsyncpa [#allocation3], 1 }
 0x428   :  { %4999 = vsyncpa [#allocation3 + $0x1], 1 }
 0x429   :  { %5000 = vsyncpa [#allocation4], 1 }
 0x42a   :  { %5002 = vsyncpa [#allocation4 + $0x1], 1 }

</bundles_post_ra>
